<compile_context>
chip_gen: v7x
topology: tpu7x:2x2x1
jax: 0.10.0
libtpu: 0.0.40
codegen_flags: <defaults>
</compile_context>

<pallas_src>
import functools

import jax
import jax.numpy as jnp
from jax.experimental import pallas as pl
from jax.experimental.pallas import tpu as pltpu


def _attention_kernel(x_ref, wqkv_ref, wout_ref, b_ref, o_ref,
                      *, seqs, seq_len, heads, dim_head):
    """One grid step: `seqs` independent length-`seq_len` sequences.

    x_ref    : (seqs*seq_len, C)   bf16 channels-last activations
    wqkv_ref : (C, 3*inner)        bf16 fused qkv weight (scale pre-folded in q cols)
    wout_ref : (inner, C)          bf16 output-projection weight
    b_ref    : (1, C)              f32  output bias
    o_ref    : (seqs*seq_len, C)   output block
    """
    T, A, H, D = seqs, seq_len, heads, dim_head
    inner = H * D

    x = x_ref[...]                                          # (T*A, C) bf16

    # Fused Q/K/V projection: one full-width matmul (N = 3*inner), f32 acc.
    qkv = jnp.dot(x, wqkv_ref[...], preferred_element_type=jnp.float32)
    qkv = qkv.astype(jnp.bfloat16)                          # (T*A, 3*inner)

    def to_heads(t2d):                                      # (T*A, inner) -> (T*H, A, D)
        t4 = t2d.reshape(T, A, H, D)
        return jnp.transpose(t4, (0, 2, 1, 3)).reshape(T * H, A, D)

    q = to_heads(qkv[:, :inner])        # softmax scale already folded into weights
    k = to_heads(qkv[:, inner:2 * inner])
    v = to_heads(qkv[:, 2 * inner:])

    # Head-batched attention over the (T*H) batch dimension.
    dots = jnp.einsum('bqd,bkd->bqk', q, k,
                      preferred_element_type=jnp.float32)   # (T*H, A, A)
    dots = dots - jnp.max(dots, axis=-1, keepdims=True)
    e = jnp.exp(dots)
    p = e * pl.reciprocal(jnp.sum(e, axis=-1, keepdims=True), approx=True)
    out = jnp.einsum('bqk,bkd->bqd', p.astype(jnp.bfloat16), v,
                     preferred_element_type=jnp.float32)    # (T*H, A, D)

    # Merge heads -> (T*A, inner); single merged output projection (K = inner).
    out = jnp.transpose(out.reshape(T, H, A, D), (0, 2, 1, 3))
    out = out.reshape(T * A, inner).astype(jnp.bfloat16)
    y = jnp.dot(out, wout_ref[...], preferred_element_type=jnp.float32)  # (T*A, C)

    o_ref[...] = (y + b_ref[...]).astype(o_ref.dtype)


def _pick_seq_block(num_seqs, seq_len, target_rows=2048, min_steps=4):
    """Largest divisor T of num_seqs with T*seq_len <= target_rows and, when
    possible, at least `min_steps` grid steps (DMA/compute overlap; >=2 steps
    per v7x TensorCore)."""
    limit = max(1, target_rows // max(seq_len, 1))
    limit = min(limit, num_seqs)
    if num_seqs >= min_steps:
        limit = min(limit, num_seqs // min_steps)
    elif num_seqs >= 2:
        limit = min(limit, num_seqs // 2)
    best = 1
    for t in range(1, limit + 1):
        if num_seqs % t == 0:
            best = t
    return best


def attention_forward(x, w_qkv, w_out, b_out, *, heads, dim_head, seq_block=None):
    """x: (B, C, U, A). Returns (B, C, U, A). Linear weights stored as (in, out)."""
    B, C, U, A = x.shape
    inner = heads * dim_head
    assert w_qkv.shape == (C, 3 * inner)
    assert w_out.shape == (inner, C)
    scale = float(dim_head) ** -0.5
    num_seqs = B * U

    T = seq_block if seq_block is not None else _pick_seq_block(num_seqs, A)
    assert num_seqs % T == 0, "seq_block must divide B*U"
    rows = T * A
    grid_steps = num_seqs // T
    # (8, 128) BlockSpec rule: row block must be a multiple of 8 unless a
    # single step spans the whole array.
    assert grid_steps == 1 or rows % 8 == 0, (
        "T*A must be a multiple of 8 (pad A or choose seq_block accordingly)")

    # NCHW -> channels-last, flattened to (B*U*A, C); bf16 for the MXU.
    # TODO(synk): verify in xprof that allow_input_fusion absorbs this
    # transpose+cast; if it still materializes, move it into the kernel via a
    # 4-D BlockSpec over the original layout and an in-kernel (XLU) transpose.
    x_seq = jnp.transpose(x, (0, 2, 3, 1)).reshape(num_seqs * A, C)
    x_seq = x_seq.astype(jnp.bfloat16)

    # Fold the softmax scale into the q columns of the fused qkv weight.
    w_qkv_scaled = jnp.concatenate(
        [w_qkv[:, :inner] * scale, w_qkv[:, inner:]], axis=-1)
    wqkv = w_qkv_scaled.astype(jnp.bfloat16)                 # (C, 3*inner)
    wout = w_out.astype(jnp.bfloat16)                        # (inner, C)
    b2d = b_out.reshape(1, C).astype(jnp.float32)

    kernel = functools.partial(_attention_kernel, seqs=T, seq_len=A,
                               heads=heads, dim_head=dim_head)

    # Rough VMEM budget: double-buffered x/out blocks + weights + f32/bf16
    # temps, with margin; clamped to a range safe on v5e/v6e/v7x.
    out_itemsize = jnp.dtype(x.dtype).itemsize
    est = (2 * rows * C * 2 + 2 * rows * C * out_itemsize
           + (C * 3 * inner + inner * C) * 2 + C * 4
           + rows * 3 * inner * (4 + 2)          # qkv f32 + bf16 copy
           + T * heads * A * max(A, 128) * 4 * 2 # dots/softmax temps (lane-padded)
           + rows * inner * (4 + 2)              # attention output f32 + bf16
           + rows * C * 4)                       # y (f32)
    vmem_limit = int(min(max(3 * est, 16 << 20), 48 << 20))

    out_seq = pl.pallas_call(
        kernel,
        out_shape=jax.ShapeDtypeStruct((num_seqs * A, C), x.dtype),
        grid_spec=pltpu.PrefetchScalarGridSpec(
            num_scalar_prefetch=0,
            grid=(grid_steps,),
            in_specs=[
                pl.BlockSpec((rows, C), lambda i: (i, 0)),
                pl.BlockSpec((C, 3 * inner), lambda i: (0, 0)),
                pl.BlockSpec((inner, C), lambda i: (0, 0)),
                pl.BlockSpec((1, C), lambda i: (0, 0)),
            ],
            out_specs=pl.BlockSpec((rows, C), lambda i: (i, 0)),
        ),
        compiler_params=pltpu.CompilerParams(
            dimension_semantics=("parallel",),
            vmem_limit_bytes=vmem_limit,
            # Let XLA fuse the NCHW->channels-last transpose/cast into the
            # pallas_call input so it is not a separate HBM round trip.
            allow_input_fusion=[True, False, False, False],
        ),
    )(x_seq, wqkv, wout, b2d)

    # (B*U*A, C) -> (B, C, U, A)
    out = out_seq.reshape(B, U, A, C)
    return jnp.transpose(out, (0, 3, 1, 2))


def _reference_forward(x, w_qkv, w_out, b_out, *, heads, dim_head):
    """Pure-JAX f32 reference matching the PyTorch module."""
    B, C, U, A = x.shape
    inner = heads * dim_head
    scale = float(dim_head) ** -0.5
    xt = jnp.transpose(x, (0, 2, 3, 1))                      # (B, U, A, C)
    qkv = xt @ w_qkv                                         # (B, U, A, 3*inner)
    q, k, v = jnp.split(qkv, 3, axis=-1)

    def to_heads(t):
        return jnp.transpose(t.reshape(B, U, A, heads, dim_head),
                             (0, 3, 1, 2, 4))                # (B, H, U, A, D)

    q, k, v = map(to_heads, (q, k, v))
    dots = jnp.einsum('bhuad,bhued->bhuae', q, k) * scale    # (B, H, U, A, A)
    attn = jax.nn.softmax(dots, axis=-1)
    out = jnp.einsum('bhuae,bhued->bhuad', attn, v)          # (B, H, U, A, D)
    out = jnp.transpose(out, (0, 2, 3, 1, 4)).reshape(B, U, A, inner)
    y = out @ w_out + b_out                                  # (B, U, A, C)
    return jnp.transpose(y, (0, 3, 1, 2))                    # (B, C, U, A)


if __name__ == "__main__":
    # Small, module-consistent shapes (C = 128 keeps the output store lane-dense).
    B, dim, U, A = 2, 128, 16, 16
    heads, dim_head = 4, 32
    inner = heads * dim_head

    key = jax.random.PRNGKey(0)
    k_x, k_qkv, k_out, k_b = jax.random.split(key, 4)

    x = jax.random.normal(k_x, (B, dim, U, A), dtype=jnp.float32)
    # Deterministic synthetic parameters (Linear weights stored as (in, out)).
    w_qkv = jax.random.normal(k_qkv, (dim, 3 * inner), dtype=jnp.float32) * 0.05
    w_out = jax.random.normal(k_out, (inner, dim), dtype=jnp.float32) * 0.05
    b_out = jax.random.normal(k_b, (dim,), dtype=jnp.float32) * 0.05

    y = attention_forward(x, w_qkv, w_out, b_out, heads=heads, dim_head=dim_head)
    y = jax.block_until_ready(y)

    y_ref = _reference_forward(x, w_qkv, w_out, b_out,
                               heads=heads, dim_head=dim_head)
    assert y.shape == (B, dim, U, A)
    # bf16 MXU inputs with f32 accumulation -> bf16-level tolerance vs f32 ref.
    max_err = float(jnp.max(jnp.abs(y - y_ref)))
    assert jnp.allclose(y, y_ref, atol=2e-2, rtol=2e-2), f"max abs err {max_err}"

    print("KERNEL_OK")
</pallas_src>

<mosaic_0001>
module attributes {stable_mosaic.version = 11 : i64} {
  func.func @_attention_kernel(%arg0: i32, %arg1: memref<128x128xbf16, #tpu.memory_space<vmem>>, %arg2: memref<128x384xbf16, #tpu.memory_space<vmem>>, %arg3: memref<128x128xbf16, #tpu.memory_space<vmem>>, %arg4: memref<1x128xf32, #tpu.memory_space<vmem>>, %arg5: memref<128x128xf32, #tpu.memory_space<vmem>>) attributes {dimension_semantics = [#tpu.dimension_semantics<parallel>], iteration_bounds = array<i64: 4>, scalar_prefetch = 0 : i64, scratch_operands = 0 : i64, tpu.core_type = #tpu.core_type<tc>, window_params = [{transform_indices = @transform_0, window_bounds = array<i64: 128, 128>}, {pipeline_mode = #tpu.pipeline_mode<synchronous>, transform_indices = @transform_1, window_bounds = array<i64: 128, 384>}, {pipeline_mode = #tpu.pipeline_mode<synchronous>, transform_indices = @transform_2, window_bounds = array<i64: 128, 128>}, {pipeline_mode = #tpu.pipeline_mode<synchronous>, transform_indices = @transform_3, window_bounds = array<i64: 1, 128>}, {transform_indices = @transform_4, window_bounds = array<i64: 128, 128>}]} {
    %c0 = arith.constant 0 : index
    %c0_0 = arith.constant 0 : index
    %0 = vector.load %arg1[%c0, %c0_0] : memref<128x128xbf16, #tpu.memory_space<vmem>>, vector<128x128xbf16>
    %c0_1 = arith.constant 0 : index
    %c0_2 = arith.constant 0 : index
    %1 = vector.load %arg2[%c0_1, %c0_2] : memref<128x384xbf16, #tpu.memory_space<vmem>>, vector<128x384xbf16>
    %cst = arith.constant dense<0.000000e+00> : vector<128x384xf32>
    %2 = tpu.matmul %0, %1, %cst {dimension_numbers = #tpu.dot_dimension_numbers<[1], [0], [0], [1], [0, 0, 1, 1], [], []>} : vector<128x128xbf16>, vector<128x384xbf16>, vector<128x384xf32> -> vector<128x384xf32>
    %3 = arith.truncf %2 : vector<128x384xf32> to vector<128x384xbf16>
    %4 = vector.extract_strided_slice %3 {offsets = [0, 0], sizes = [128, 128], strides = [1, 1]} : vector<128x384xbf16> to vector<128x128xbf16>
    %5 = vector.shape_cast %4 : vector<128x128xbf16> to vector<8x16x4x32xbf16>
    %6 = tpu.transpose %5, [0, 2, 1, 3] : vector<8x16x4x32xbf16> -> vector<8x4x16x32xbf16>
    %7 = vector.shape_cast %6 : vector<8x4x16x32xbf16> to vector<32x16x32xbf16>
    %8 = vector.extract_strided_slice %3 {offsets = [0, 128], sizes = [128, 128], strides = [1, 1]} : vector<128x384xbf16> to vector<128x128xbf16>
    %9 = vector.shape_cast %8 : vector<128x128xbf16> to vector<8x16x4x32xbf16>
    %10 = tpu.transpose %9, [0, 2, 1, 3] : vector<8x16x4x32xbf16> -> vector<8x4x16x32xbf16>
    %11 = vector.shape_cast %10 : vector<8x4x16x32xbf16> to vector<32x16x32xbf16>
    %12 = vector.extract_strided_slice %3 {offsets = [0, 256], sizes = [128, 128], strides = [1, 1]} : vector<128x384xbf16> to vector<128x128xbf16>
    %13 = vector.shape_cast %12 : vector<128x128xbf16> to vector<8x16x4x32xbf16>
    %14 = tpu.transpose %13, [0, 2, 1, 3] : vector<8x16x4x32xbf16> -> vector<8x4x16x32xbf16>
    %15 = vector.shape_cast %14 : vector<8x4x16x32xbf16> to vector<32x16x32xbf16>
    "tpu.trace_start"() <{level = 10 : i32, message = "bqd,bkd->bqk"}> : () -> ()
    %cst_3 = arith.constant dense<0.000000e+00> : vector<32x16x16xf32>
    %16 = tpu.matmul %7, %11, %cst_3 {dimension_numbers = #tpu.dot_dimension_numbers<[2], [2], [1], [1], [0, 0, 0, 1, 1, 1], [0], [0]>} : vector<32x16x32xbf16>, vector<32x16x32xbf16>, vector<32x16x16xf32> -> vector<32x16x16xf32>
    "tpu.trace_stop"() : () -> ()
    %cst_4 = arith.constant dense<0xFF800000> : vector<32x16xf32>
    %17 = vector.multi_reduction <maximumf>, %16, %cst_4 [2] : vector<32x16x16xf32> to vector<32x16xf32>
    %18 = vector.shape_cast %17 : vector<32x16xf32> to vector<32x16x1xf32>
    %19 = vector.broadcast %18 : vector<32x16x1xf32> to vector<32x16x16xf32>
    %20 = arith.subf %16, %19 : vector<32x16x16xf32>
    %21 = math.exp %20 : vector<32x16x16xf32>
    %cst_5 = arith.constant dense<0.000000e+00> : vector<32x16xf32>
    %22 = vector.multi_reduction <add>, %21, %cst_5 [2] : vector<32x16x16xf32> to vector<32x16xf32>
    %23 = vector.shape_cast %22 : vector<32x16xf32> to vector<32x16x1xf32>
    %24 = tpu.reciprocal %23 {approx = true} : vector<32x16x1xf32> -> vector<32x16x1xf32>
    %25 = vector.broadcast %24 : vector<32x16x1xf32> to vector<32x16x16xf32>
    %26 = arith.mulf %21, %25 : vector<32x16x16xf32>
    %27 = arith.truncf %26 : vector<32x16x16xf32> to vector<32x16x16xbf16>
    "tpu.trace_start"() <{level = 10 : i32, message = "bqk,bkd->bqd"}> : () -> ()
    %cst_6 = arith.constant dense<0.000000e+00> : vector<32x16x32xf32>
    %28 = tpu.matmul %27, %15, %cst_6 {dimension_numbers = #tpu.dot_dimension_numbers<[2], [1], [1], [2], [0, 0, 0, 1, 1, 2], [0], [0]>} : vector<32x16x16xbf16>, vector<32x16x32xbf16>, vector<32x16x32xf32> -> vector<32x16x32xf32>
    "tpu.trace_stop"() : () -> ()
    %29 = vector.shape_cast %28 : vector<32x16x32xf32> to vector<8x4x16x32xf32>
    %30 = tpu.transpose %29, [0, 2, 1, 3] : vector<8x4x16x32xf32> -> vector<8x16x4x32xf32>
    %31 = vector.shape_cast %30 : vector<8x16x4x32xf32> to vector<128x128xf32>
    %32 = arith.truncf %31 : vector<128x128xf32> to vector<128x128xbf16>
    %c0_7 = arith.constant 0 : index
    %c0_8 = arith.constant 0 : index
    %33 = vector.load %arg3[%c0_7, %c0_8] : memref<128x128xbf16, #tpu.memory_space<vmem>>, vector<128x128xbf16>
    %cst_9 = arith.constant dense<0.000000e+00> : vector<128x128xf32>
    %34 = tpu.matmul %32, %33, %cst_9 {dimension_numbers = #tpu.dot_dimension_numbers<[1], [0], [0], [1], [0, 0, 1, 1], [], []>} : vector<128x128xbf16>, vector<128x128xbf16>, vector<128x128xf32> -> vector<128x128xf32>
    %c0_10 = arith.constant 0 : index
    %c0_11 = arith.constant 0 : index
    %35 = vector.load %arg4[%c0_10, %c0_11] : memref<1x128xf32, #tpu.memory_space<vmem>>, vector<1x128xf32>
    %36 = vector.broadcast %35 : vector<1x128xf32> to vector<128x128xf32>
    %37 = arith.addf %34, %36 : vector<128x128xf32>
    %c0_12 = arith.constant 0 : index
    %c0_13 = arith.constant 0 : index
    %38 = vector.load %arg5[%c0_12, %c0_13] : memref<128x128xf32, #tpu.memory_space<vmem>>, vector<128x128xf32>
    tpu.vector_store %arg5[%c0_12, %c0_13], %37 {strides = array<i32>} : memref<128x128xf32, #tpu.memory_space<vmem>>, vector<128x128xf32>,
    return
  }
  func.func @transform_0(%arg0: i32) -> (i32, i32) {
    %c0_i32 = arith.constant 0 : i32
    %c0_i32_0 = arith.constant 0 : i32
    return %arg0, %c0_i32 : i32, i32
  }
  func.func @transform_1(%arg0: i32) -> (i32, i32) {
    %c0_i32 = arith.constant 0 : i32
    %c0_i32_0 = arith.constant 0 : i32
    %c0_i32_1 = arith.constant 0 : i32
    return %c0_i32, %c0_i32_0 : i32, i32
  }
  func.func @transform_2(%arg0: i32) -> (i32, i32) {
    %c0_i32 = arith.constant 0 : i32
    %c0_i32_0 = arith.constant 0 : i32
    %c0_i32_1 = arith.constant 0 : i32
    return %c0_i32, %c0_i32_0 : i32, i32
  }
  func.func @transform_3(%arg0: i32) -> (i32, i32) {
    %c0_i32 = arith.constant 0 : i32
    %c0_i32_0 = arith.constant 0 : i32
    %c0_i32_1 = arith.constant 0 : i32
    return %c0_i32, %c0_i32_0 : i32, i32
  }
  func.func @transform_4(%arg0: i32) -> (i32, i32) {
    %c0_i32 = arith.constant 0 : i32
    %c0_i32_0 = arith.constant 0 : i32
    return %arg0, %c0_i32 : i32, i32
  }
}

</mosaic_0001>

<bundles_post_ra>
// kernel: tpu_custom_call.1
= control target key start
LH: loop header
LB: loop body
LE: loop exit
PB: predicated region body
PF: predicated region fallthrough
CT: control target
= control target key end

     0   :  { %9 = vsyncpa [#allocation3], 0  ;;  %s19889_s0 = inlined_call_operand.hbm [shape: bf16[512,128], index: 0, kind: input, shape index: {}]   ;;  %s19890_s1 = inlined_call_operand.hbm [shape: bf16[128,384], index: 1, kind: input, shape index: {}]   ;;  %s19891_s2 = inlined_call_operand.hbm [shape: bf16[128,128], index: 2, kind: input, shape index: {}]   ;;  %s19892_s3 = inlined_call_operand.vmem [shape: f32[1,128], index: 3, kind: input, shape index: {}]   ;;  %s19893_s4 = inlined_call_operand.hbm [shape: f32[512,128], index: 4, kind: output, shape index: {}]  }
   0x1   :  { %11 = vsyncpa [#allocation3 + $0x1], 0 }
   0x2   :  { %12 = vsyncpa [#allocation6], 0 }
   0x3   :  { %13 = vsyncpa [#allocation4], 0 }
   0x4   :  { %15 = vsyncpa [#allocation4 + $0x1], 0  ;;  %s15101_s15 = smov 0   ;;  %s15103_s16 = smov 0  }
   0x5   :  { %s15105_s17 = smov 0   ;;  %s15107_s18 = smov 0  }
   0x6 LB: > { %s15122_s19 = sadd.s32 4294967295, %s15056_s18   ;;  %s13518_s20 = sadd.s32 4294967294, %s15056_s18   ;;  %s15056_s18 = sphi %s15107_s18, %s20534_s18   ;;  %s15052_s17 = sphi %s15105_s17, %s20533_s17   ;;  %s15048_s16 = sphi %s15103_s16, %s20532_s16   ;;  %s15044_s15 = sphi %s15101_s15, %s20531_s15  }
   0x7   : > { %p41_p0 = scmp.ne.s32.totalorder %s15048_s16, %s15044_s15  ;;  %p19894_p1 = scmp.eq.s32.totalorder %s15122_s19, 0 }
   0x8   : > { %p134_p3 = scmp.eq.s32.totalorder %s13518_s20, 3  ;;  %p13519_p5 = scmp.ge.s32.totalorder %s15056_s18, 1 }
   0x9   : > { %p15131_p4 = por %p19894_p1, %p41_p0  ;;  %p141_p7 = scmp.lt.s32.totalorder %s15056_s18, 5 }
   0xa   : > { %p15136_p6 = por %p134_p3, %p41_p0  ;;  %s15058_s24 = smov [#allocation5]  }
   0xb   : > { %s20074_s21 = scalar_select %p15131_p4, 1, 0 }
   0xc   : > { %s20075_s22 = scalar_select %p15136_p6, 1, 0 }
   0xd   : > { %p15141_p8 = pnand %p13519_p5, %p141_p7  ;;  %s153_s25 = sshll.u32 %s15058_s24, 4  ;;  %s154_s25 = int_to_ptr.vmem [resolvable:$true] %s153_s25 }
   0xe   : > { %s15059_s27 = smov [#allocation7]   ;;  %s14900_s5 = scalar_lea.hbm %s19890_s1, 3072 }
   0xf   : > { %s20076_s23 = scalar_select %p15141_p8, 1, 0 }
  0x10   : > { %p14407_p9 = pneg %p15141_p8  ;;  %s166_s28 = sshll.u32 %s15059_s27, 4  ;;  %s15153_s28 = int_to_ptr.vmem [resolvable:$true] %s166_s28 }
  0x11   : > { %p14901_p11 = scmp.ne.s32.totalorder %s19890_s1, %s14900_s5  ;;  %p14907_p3 = scmp.lt.u32.totalorder %s14900_s5, %s19890_s1 }
  0x12   : > { %p15149_p10 = pnand %p14407_p9, %p19894_p1 }
  0x14   : > { %p14902_p12 = pneg %p15149_p10 }
  0x16   : > { %p14903_p13 = pnand %p14902_p12, %p14901_p11 }
  0x18   : > { %p14904_p0 = pneg %p14903_p13 }
  0x1a   : > { %p14909_p5 = pnand %p14907_p3, %p14904_p0 }
  0x1c   : > { %14912 = shalt.err (!%p14909_p5)
}
  0x1d   : > { %s14913_s10 = scalar_lea.vmem %s154_s25, 3072  ;;  %p14921_p2 = scmp.lt.s32.totalorder %s154_s25, %s154_s25 }
  0x1e   : > { %p14914_p7 = scmp.ne.s32.totalorder %s154_s25, %s14913_s10  ;;  %p14922_p6 = scmp.lt.s32.totalorder %s14913_s10, %s14913_s10 }
  0x20   : > { %p14916_p9 = pnand %p14914_p7, %p14902_p12  ;;  %p14923_p4 = por %p14922_p6, %p14921_p2 }
  0x22   : > { %p14917_p1 = pneg %p14916_p9 }
  0x24   : > { %p14924_p8 = pnand %p14923_p4, %p14917_p1 }
  0x26   : > { %14927 = shalt.err (!%p14924_p8)
}
  0x27   : > { %s15060_s11 = smov 192   ;;  %s15061_s12 = smov 12  }
  0x28   : > { %14410 = dma.hbm_to_vmem [thread:$0]  (!%p15149_p10), %s19890_s1, 3072, %s154_s25, [#allocation6], %s15060_s11, %s15060_s11, %s15061_s12  }
  0x29   : > { %s14928_s27 = scalar_lea.hbm %s19891_s2, 1024 }
  0x2a   : > { %p14929_p11 = scmp.ne.s32.totalorder %s19891_s2, %s14928_s27  ;;  %p14935_p4 = scmp.lt.u32.totalorder %s14928_s27, %s19891_s2 }
  0x2c   : > { %p14931_p1 = pnand %p14929_p11, %p14902_p12 }
  0x2e   : > { %p14932_p2 = pneg %p14931_p1 }
  0x30   : > { %p14937_p6 = pnand %p14935_p4, %p14932_p2 }
  0x32   : > { %14940 = shalt.err (!%p14937_p6)
}
  0x33   : > { %s14941_s25 = scalar_lea.vmem %s15153_s28, 1024  ;;  %p14949_p3 = scmp.lt.s32.totalorder %s15153_s28, %s15153_s28 }
  0x34   : > { %p14942_p8 = scmp.ne.s32.totalorder %s15153_s28, %s14941_s25  ;;  %p14950_p5 = scmp.lt.s32.totalorder %s14941_s25, %s14941_s25 }
  0x36   : > { %p14944_p13 = pnand %p14942_p8, %p14902_p12  ;;  %p14951_p7 = por %p14950_p5, %p14949_p3 }
  0x38   : > { %p14945_p0 = pneg %p14944_p13 }
  0x3a   : > { %p14952_p9 = pnand %p14951_p7, %p14945_p0 }
  0x3c   : > { %14955 = shalt.err (!%p14952_p9)
}
  0x3d   : > { %s15062_s7 = smov 64   ;;  %s15063_s8 = smov 4  }
  0x3e   : > { %14413 = dma.hbm_to_vmem [thread:$0]  (!%p15149_p10), %s19891_s2, 1024, %s15153_s28, [#allocation6], %s15062_s7, %s15062_s7, %s15063_s8  }
  0x3f   : > { %s15206_s11 = sadd.s32 1, %s15056_s18   ;;  %s28_s13 = sadd.s32 1, %s15052_s17 }
  0x40   : > { %s25_s12 = ssub.s32 %s15056_s18, %s15206_s11  ;;  %p35_p11 = scmp.ne.s32.totalorder %s15052_s17, %s15048_s16 }
  0x41   : > { %p26_p12 = scmp.eq.s32.totalorder %s25_s12, 0  ;;  %p36_p1 = scmp.eq.s32.totalorder %s15056_s18, 0 }
  0x42   : > { %p20078_p4 = scmp.eq.s32.totalorder %s15122_s19, 3  ;;  %p14424_p8 = scmp.lt.s32.totalorder %s15056_s18, 4 }
  0x43   : > { %s15215_s14 = scalar_select %p26_p12, %s15052_s17, %s28_s13  }
  0x44   : > { %p37_p2 = por %p36_p1, %p35_p11  ;;  %p15219_p6 = por %p20078_p4, %p35_p11 }
  0x45   : > { %s183_s20 = sand.u32 1, %s15052_s17   ;;  %s13769_s28 = sshll.u32 %s15056_s18, 10 }
  0x46   : > { %s13523_s24 = sshll.u32 %s183_s20, 6  ;;  %s15229_s30 = scalar_lea.hbm %s19889_s0, %s13769_s28 }
  0x47   : > { %s187_s5 = scalar_lea.vmem [#allocation2], %s13523_s24  ;;  %p15233_p10 = pnand %p14424_p8, %p37_p2 }
  0x48   : > { %s194_s6 = sshll.u32 %s187_s5, 4  ;;  %s15237_s9 = scalar_lea.sflag [#allocation3], %s183_s20  ;;  %s15231_s6 = int_to_ptr.vmem [resolvable:$true] %s194_s6 }
  0x49   : > { %s14956_s10 = scalar_lea.hbm %s15229_s30, 1024  ;;  %p14958_p0 = pneg %p15233_p10 }
  0x4a   : > { %p14957_p13 = scmp.ne.s32.totalorder %s15229_s30, %s14956_s10  ;;  %s14961_s24 = scalar_lea.hbm %s19889_s0, 4096 }
  0x4b   : > { %p14962_p7 = scmp.lt.u32.totalorder %s15229_s30, %s19889_s0  ;;  %p14963_p9 = scmp.lt.u32.totalorder %s14961_s24, %s14956_s10 }
  0x4c   : > { %p14959_p3 = pnand %p14958_p0, %p14957_p13  ;;  %p14965_p11 = scmp.lt.u32.totalorder %s14956_s10, %s15229_s30 }
  0x4d   : > { %p14964_p12 = por %p14963_p9, %p14962_p7 }
  0x4e   : > { %p14960_p5 = pneg %p14959_p3 }
  0x4f   : > { %p14966_p1 = por %p14965_p11, %p14964_p12 }
  0x51   : > { %p14967_p2 = pnand %p14966_p1, %p14960_p5 }
  0x53   : > { %14970 = shalt.err (!%p14967_p2)
}
  0x54   : > { %s14971_s20 = scalar_lea.vmem %s15231_s6, 1024  ;;  %s15064_s29 = smov [#allocation2]  }
  0x55   : > { %p14972_p4 = scmp.ne.s32.totalorder %s15231_s6, %s14971_s20  ;;  %s14976_s5 = sshll.u32 %s15064_s29, 4  ;;  %s14977_s5 = int_to_ptr.vmem [resolvable:$false] %s14976_s5 }
  0x56   : > { %s14978_s12 = scalar_lea.vmem %s14977_s5, 2048  ;;  %p14979_p3 = scmp.lt.s32.totalorder %s15231_s6, %s14977_s5 }
  0x57   : > { %p14974_p8 = pnand %p14972_p4, %p14958_p0  ;;  %p14980_p7 = scmp.lt.s32.totalorder %s14978_s12, %s14971_s20 }
  0x59   : > { %p14975_p13 = pneg %p14974_p8  ;;  %p14981_p9 = por %p14980_p7, %p14979_p3 }
  0x5b   : > { %p14982_p12 = pnand %p14981_p9, %p14975_p13 }
  0x5d   : > { %14985 = shalt.err (!%p14982_p12)
}
  0x5e   : > { %14417 = dma.hbm_to_vmem [thread:$0]  (!%p15233_p10), %s15229_s30, 1024, %s15231_s6, %s15237_s9, %s15062_s7, %s15062_s7, %s15063_s8  }
  0x5f   : > { %p20081_p0 = scmp.ne.s32.totalorder %s20076_s23, 0 }
  0x61   : > { %206 = sbr.rel (%p20081_p0) target bundleno = 2026 (0x7ea), region = 36 }
  0x68   : > { %s15271_s10 = sand.u32 1, %s15048_s16   ;;  %p20082_p5 = scmp.ne.s32.totalorder %s20074_s21, 0 }
  0x69   : > { %s13527_s13 = sshll.u32 %s15271_s10, 6  ;;  %s209_s24 = scalar_lea.sflag [#allocation3], %s15271_s10 }
  0x6a   : > { %s15275_s28 = scalar_lea.vmem [#allocation2], %s13527_s13 }
  0x6b   : > { %15031 = dma.done.wait (%p20082_p5), %s209_s24, 1024  }
  0x6c   : > { %15033 = vsyncadd (%p20082_p5), %s209_s24, 4294966272  ;;  %p20083_p10 = scmp.eq.s32.totalorder %s15122_s19, 0 }
  0x6e   : > { %15035 = dma.done.wait (%p20083_p10), [#allocation6], 4096   ;;  %p20084_p11 = pmov %p20083_p10 }
  0x6f   : > { %v15065_v0 = vmov 0   ;;  %v14596_v1 = vld [vmem:[#allocation5 + $0x4] ss:$12 sps:$4 sm:$0xff]   ;;  %v14598_v2 = vld [vmem:[#allocation5] ss:$12 sps:$4 sm:$0xff]   ;;  %v14623_v28 = vld [vmem:[%s15275_s28 + $0x18] sm:$0xff]  }
  0x70   : > { %15037 = vsyncadd (%p20084_p11), [#allocation6], 4294963200  ;;  %504 = vmatprep.mubr.bf16.mxu0 %v15065_v0  ;;  %472 = vmatprep.subr.bf16.mxu0 %v14596_v1  ;;  %v14599_v3 = vld [vmem:[#allocation5 + $0x1c] ss:$12 sps:$4 sm:$0xff]   ;;  %v14601_v4 = vld [vmem:[#allocation5 + $0x18] ss:$12 sps:$4 sm:$0xff]  }
  0x71   : > { %473 = vmatpush1.bf16.msra.mxu0 %v14598_v2  ;;  %v14602_v5 = vld [vmem:[#allocation5 + $0x34] ss:$12 sps:$4 sm:$0xff]   ;;  %v14604_v6 = vld [vmem:[#allocation5 + $0x30] ss:$12 sps:$4 sm:$0xff]   ;;  %v14605_v7 = vld [vmem:[#allocation5 + $0x4c] ss:$12 sps:$4 sm:$0xff]  }
  0x72   : > { %474 = vmatprep.subr.bf16.mxu0 %v14599_v3  ;;  %v14607_v8 = vld [vmem:[#allocation5 + $0x48] ss:$12 sps:$4 sm:$0xff]   ;;  %v14620_v9 = vld [vmem:[%s15275_s28] sm:$0xff]   ;;  %v14616_v17 = vld [vmem:[#allocation5 + $0x90] ss:$12 sps:$4 sm:$0xff]   ;;  %s15066_s21 = smov 32  }
  0x73   : > { %v14608_v10 = vld [vmem:[#allocation5 + $0x64] ss:$12 sps:$4 sm:$0xff]   ;;  %13947 = vmatprep.mubr.bf16.mxu1 %v14620_v9  ;;  %v14610_v11 = vld [vmem:[#allocation5 + $0x60] ss:$12 sps:$4 sm:$0xff]   ;;  %v14611_v12 = vld [vmem:[#allocation5 + $0x7c] ss:$12 sps:$4 sm:$0xff]  }
  0x74   : > { %v14613_v13 = vld [vmem:[#allocation5 + $0x78] ss:$12 sps:$4 sm:$0xff]   ;;  %v14614_v14 = vld [vmem:[#allocation5 + $0x94] ss:$12 sps:$4 sm:$0xff]   ;;  %v14631_v21 = vld [vmem:[#allocation5 + $0x50] ss:$12 sps:$4 sm:$0xff]  }
  0x75   : > { %475 = vmatpush1.bf16.msra.mxu0 %v14601_v4  ;;  %v14628_v15 = vld [vmem:[#allocation5 + $0x8] ss:$12 sps:$4 sm:$0xff]   ;;  %v14629_v16 = vld [vmem:[#allocation5 + $0x20] ss:$12 sps:$4 sm:$0xff]   ;;  %v14630_v18 = vld [vmem:[#allocation5 + $0x38] ss:$12 sps:$4 sm:$0xff]  }
  0x76   : > { %476 = vmatprep.subr.bf16.mxu0 %v14602_v5  ;;  %13931 = vmatprep.subr.bf16.mxu1 %v14628_v15  ;;  %v14617_v19 = vld [vmem:[#allocation5 + $0xac] ss:$12 sps:$4 sm:$0xff]   ;;  %v14619_v20 = vld [vmem:[#allocation5 + $0xa8] ss:$12 sps:$4 sm:$0xff]   ;;  %v14635_v26 = vld [vmem:[#allocation5 + $0xb0] ss:$12 sps:$4 sm:$0xff]  }
  0x77   : > { %13932 = vmatpush3.bf16.msra.mxu1 %v14628_v15  ;;  %v14632_v22 = vld [vmem:[#allocation5 + $0x68] ss:$12 sps:$4 sm:$0xff]   ;;  %v14633_v23 = vld [vmem:[#allocation5 + $0x80] ss:$12 sps:$4 sm:$0xff]   ;;  %v14634_v25 = vld [vmem:[#allocation5 + $0x98] ss:$12 sps:$4 sm:$0xff]  }
  0x78   : > { %13933 = vmatprep.subr.bf16.mxu1 %v14629_v16  ;;  %v14621_v24 = vld [vmem:[%s15275_s28 + $0x8] sm:$0xff]   ;;  %v14622_v27 = vld [vmem:[%s15275_s28 + $0x10] sm:$0xff]   ;;  %v14624_v29 = vld [vmem:[%s15275_s28 + $0x20] sm:$0xff]   ;;  %s15067_s23 = smov 96   ;;  %s15068_s7 = smov 64   ;;  %vm15070_vm0 = vmmov 0  }
  0x79   : > { %477 = vmatpush1.bf16.msra.mxu0 %v14604_v6  ;;  %v14625_v30 = vld [vmem:[%s15275_s28 + $0x28] sm:$0xff]   ;;  %v14626_v31 = vld [vmem:[%s15275_s28 + $0x30] sm:$0xff]   ;;  %v14627_v32 = vld [vmem:[%s15275_s28 + $0x38] sm:$0xff]   ;;  %vm7152_vm1 = vcmask 261120   ;;  %vm8657_vm2 = vcmask 130048   ;;  %vm13186_vm3 = vcmask 523264  }
  0x7a   : > { %478 = vmatprep.subr.bf16.mxu0 %v14605_v7  ;;  %vm13203_vm4 = vcmask 785408   ;;  %s13530_s8 = sshll.u32 %s15271_s10, 7  ;;  %s13770_s9 = sshll.u32 %s15122_s19, 11 }
  0x7b   : > { %13934 = vmatpush3.bf16.msra.mxu1 %v14629_v16  ;;  %s19821_s25 = scalar_lea.vmem [#allocation8], %s13530_s8  ;;  %s19841_s5 = scalar_lea.hbm %s19893_s4, %s13770_s9 }
  0x7c   : > { %13935 = vmatprep.subr.bf16.mxu1 %v14630_v18  ;;  %s13426_s27 = sshll.u32 %s19821_s25, 4  ;;  %s13413_s19 = scalar_lea.sflag [#allocation4], %s15271_s10  ;;  %s19843_s27 = int_to_ptr.vmem [resolvable:$true] %s13426_s27 }
  0x7d   : > { %479 = vmatpush1.bf16.msra.mxu0 %v14607_v8  ;;  %v19897_v8 = vmov 0.0   ;;  %s14986_s12 = scalar_lea.vmem %s19843_s27, 2048  ;;  %s15073_s13 = smov [#allocation8]  }
  0x7e   : > { %480 = vmatprep.subr.bf16.mxu0 %v14608_v10  ;;  %p14987_p1 = scmp.ne.s32.totalorder %s19843_s27, %s14986_s12  ;;  %s14990_s24 = sshll.u32 %s15073_s13, 4  ;;  %s14991_s24 = int_to_ptr.vmem [resolvable:$false] %s14990_s24 }
  0x7f   : > { %13936 = vmatpush3.bf16.msra.mxu1 %v14630_v18  ;;  %s14992_s28 = scalar_lea.vmem %s14991_s24, 4096  ;;  %p14993_p8 = scmp.lt.s32.totalorder %s19843_s27, %s14991_s24 }
  0x80   : > { %13937 = vmatprep.subr.bf16.mxu1 %v14631_v21  ;;  %p14988_p2 = pnand %p14987_p1, %p15219_p6  ;;  %p14994_p13 = scmp.lt.s32.totalorder %s14992_s28, %s14986_s12 }
  0x81   : > { %481 = vmatpush1.bf16.msra.mxu0 %v14610_v11 }
  0x82   : > { %482 = vmatprep.subr.bf16.mxu0 %v14611_v12  ;;  %p14989_p4 = pneg %p14988_p2  ;;  %p14995_p3 = por %p14994_p13, %p14993_p8 }
  0x83   : > { %13938 = vmatpush3.bf16.msra.mxu1 %v14631_v21 }
  0x84   : > { %13939 = vmatprep.subr.bf16.mxu1 %v14632_v22  ;;  %p14996_p7 = pnand %p14995_p3, %p14989_p4 }
  0x85   : > { %483 = vmatpush1.bf16.msra.mxu0 %v14613_v13 }
  0x86   : > { %484 = vmatprep.subr.bf16.mxu0 %v14614_v14 }
  0x87   : > { %13940 = vmatpush3.bf16.msra.mxu1 %v14632_v22  ;;  %v900_v22 = vlaneseq }
  0x88   : > { %13941 = vmatprep.subr.bf16.mxu1 %v14633_v23 }
  0x89   : > { %485 = vmatpush1.bf16.msra.mxu0 %v14616_v17 }
  0x8a   : > { %486 = vmatprep.subr.bf16.mxu0 %v14617_v19 }
  0x8b   : > { %13942 = vmatpush3.bf16.msra.mxu1 %v14633_v23 }
  0x8c   : > { %13943 = vmatprep.subr.bf16.mxu1 %v14634_v25 }
  0x8d   : > { %487 = vmatpush1.bf16.msra.mxu0 %v14619_v20  ;;  %v15071_v20 = vmov 1983009808  }
  0x8e   : > { %13987 = vmatprep.subr.bf16.mxu0 %v19897_v8  ;;  %v898_v21 = vunpack.c.l.s4 %v15071_v20 }
  0x8f   : > { %13944 = vmatpush3.bf16.msra.mxu1 %v14634_v25 }
  0x90   : > { %505 = vmatmul.mubr.bf16.vlgmr.msra.gmra.mrb[0].mxu0 %v14620_v9  ;;  %13945 = vmatprep.subr.bf16.mxu1 %v14635_v26 }
  0x91   : > { %514 = vmatprep.mubr.bf16.mxu0 %v15065_v0 }
  0x93   : > { %13946 = vmatpush3.bf16.msra.mxu1 %v14635_v26  ;;  %v899_v26 = vunpack.c.0.s8 %v898_v21 }
  0x94   : > { %13963 = vmatprep.subr.bf16.mxu1 %v19897_v8 }
  0x96   : > { %13948 = vmatmul.mubr.bf16.vlgmr.msra.gmra.mrb[0].mxu1 %v14621_v24 }
  0x97   : > { %13951 = vmatprep.mubr.bf16.mxu1 %v14622_v27 }
  0x98   : > { %515 = vmatmul.mubr.bf16.gmra.mrb[4].mxu0 %v14621_v24  ;;  %v15072_v24 = vmov 1934713408  }
  0x99   : > { %524 = vmatprep.mubr.bf16.mxu0 %v15065_v0  ;;  %v929_v25 = vunpack.c.l.s4 %v15072_v24 }
  0x9e   : > { %13952 = vmatmul.mubr.bf16.gmra.mrb[4].mxu1 %v14623_v28 }
  0x9f   : > { %13955 = vmatprep.mubr.bf16.mxu1 %v14624_v29 }
  0xa0   : > { %525 = vmatmul.mubr.bf16.gmra.mrb[8].mxu0 %v14622_v27  ;;  %v901_v27 = vshrl.u32 %v900_v22, 7 }
  0xa1   : > { %534 = vmatprep.mubr.bf16.mxu0 %v15065_v0 }
  0xa6   : > { %13956 = vmatmul.mubr.bf16.gmra.mrb[8].mxu1 %v14625_v30 }
  0xa7   : > { %13959 = vmatprep.mubr.bf16.mxu1 %v14626_v31 }
  0xa8   : > { %535 = vmatmul.mubr.bf16.gmra.mrb[12].mxu0 %v14623_v28 }
  0xa9   : > { %544 = vmatprep.mubr.bf16.mxu0 %v15065_v0 }
  0xae   : > { %13960 = vmatmul.mubr.bf16.gmra.mrb[12].mxu1 %v14627_v32 }
  0xaf   : > { %13965 = vmatprep.mubr.msk.bf16.mxu1 %vm15070_vm0, %v19897_v8 }
  0xb0   : > { %545 = vmatmul.mubr.bf16.gmra.mrb[16].mxu0 %v14624_v29  ;;  %v930_v29 = vunpack.c.0.s8 %v929_v25 }
  0xb1   : > { %554 = vmatprep.mubr.bf16.mxu0 %v15065_v0 }
  0xb8   : > { %555 = vmatmul.mubr.bf16.gmra.mrb[20].mxu0 %v14625_v30 }
  0xb9   : > { %564 = vmatprep.mubr.bf16.mxu0 %v15065_v0 }
  0xc0   : > { %565 = vmatmul.mubr.bf16.gmra.mrb[24].mxu0 %v14626_v31  ;;  %v15437_v31 = vpack.i.b16 %v15065_v0, %v15065_v0 }
  0xc1   : > { %574 = vmatprep.mubr.bf16.mxu0 %v15065_v0 }
  0xc2   : > { %20090 = vst [vmem:[#allocation17_spill] sm:$0xff] %v15437_v31 }
  0xc8   : > { %575 = vmatmul.mubr.bf16.gmra.mrb[28].mxu0 %v14627_v32  ;;  %v15439_v32 = vsub.s32 %v899_v26, %v901_v27 }
  0xc9   : > { %13989 = vmatprep.mubr.msk.bf16.mxu0 %vm15070_vm0, %v19897_v8 }
  0xca   : > { %20091 = vst [vmem:[#allocation18_spill] sm:$0xff] %v15439_v32 }
 0x163   : > { %v506_v33 = vpop.f32.mrb[0].mxu0 }
 0x164   : > { %v508_v34 = vpop.f32.mrb[1].mxu0 }
 0x165   : > { %v510_v35 = vpop.f32.mrb[2].mxu0 }
 0x166   : > { %v15301_v36 = vpack.c.bf16 %v510_v35, %v506_v33  ;;  %v512_v37 = vpop.f32.mrb[3].mxu0 }
 0x167   : > { %v15303_v38 = vpack.c.bf16 %v512_v37, %v508_v34  ;;  %v15442_v34 = vsub.s32 %v930_v29, %v901_v27 }
 0x168   : > { %v766_v33 = vshrl.u32 %v15301_v36, 16 }
 0x169   : > { %2888 = vrot.lane.b32.xlu1 %v15303_v38, %s15066_s21  ;;  %2856 = vrot.lane.b32.xlu0 %v15303_v38, %s15067_s23  ;;  %20092 = vst [vmem:[#allocation19_spill] sm:$0xff] %v15442_v34 }
 0x16b   : > { %v516_v39 = vpop.f32.mrb[4].mxu0 }
 0x16c   : > { %v518_v40 = vpop.f32.mrb[5].mxu0 }
 0x16d   : > { %714 = vrot.lane.b32.xlu1 %v15301_v36, %s15067_s23  ;;  %2872 = vrot.lane.b32.xlu0 %v15303_v38, %s15068_s7  ;;  %v520_v41 = vpop.f32.mrb[6].mxu0 }
 0x16e   : > { %v15313_v42 = vpack.c.bf16 %v520_v41, %v516_v39  ;;  %v522_v43 = vpop.f32.mrb[7].mxu0 }
 0x16f   : > { %v15315_v44 = vpack.c.bf16 %v522_v43, %v518_v40  ;;  %v2908_v40 = vshrl.u32 %v15303_v38, 16 }
 0x170   : > { %v788_v43 = vshrl.u32 %v15313_v42, 16 }
 0x171   : > { %746 = vrot.lane.b32.xlu1 %v15301_v36, %s15066_s21  ;;  %730 = vrot.lane.b32.xlu0 %v15301_v36, %s15068_s7  ;;  %v2924_v0 = vshrl.u32 %v15315_v44, 16 }
 0x173   : > { %v526_v45 = vpop.f32.mrb[8].mxu0 }
 0x174   : > { %v528_v46 = vpop.f32.mrb[9].mxu0 }
 0x175   : > { %2874 = vrot.lane.b32.xlu1 %v15315_v44, %s15068_s7  ;;  %2858 = vrot.lane.b32.xlu0 %v15315_v44, %s15067_s23  ;;  %v530_v47 = vpop.f32.mrb[10].mxu0 }
 0x176   : > { %v15325_v48 = vpack.c.bf16 %v530_v47, %v526_v45  ;;  %v532_v49 = vpop.f32.mrb[11].mxu0 }
 0x177   : > { %v15327_v50 = vpack.c.bf16 %v532_v49, %v528_v46 }
 0x178   : > { %v804_v47 = vshrl.u32 %v15325_v48, 16 }
 0x179   : > { %716 = vrot.lane.b32.xlu1 %v15313_v42, %s15067_s23  ;;  %2890 = vrot.lane.b32.xlu0 %v15315_v44, %s15066_s21 }
 0x17b   : > { %v536_v51 = vpop.f32.mrb[12].mxu0 }
 0x17c   : > { %v538_v52 = vpop.f32.mrb[13].mxu0 }
 0x17d   : > { %748 = vrot.lane.b32.xlu1 %v15313_v42, %s15066_s21  ;;  %732 = vrot.lane.b32.xlu0 %v15313_v42, %s15068_s7  ;;  %v540_v53 = vpop.f32.mrb[14].mxu0 }
 0x17e   : > { %v15337_v54 = vpack.c.bf16 %v540_v53, %v536_v51  ;;  %v542_v55 = vpop.f32.mrb[15].mxu0  ;;  %v2940_v53 = vshrl.u32 %v15327_v50, 16 }
 0x17f   : > { %v15339_v56 = vpack.c.bf16 %v542_v55, %v538_v52 }
 0x181   : > { %2876 = vrot.lane.b32.xlu1 %v15327_v50, %s15068_s7  ;;  %2860 = vrot.lane.b32.xlu0 %v15327_v50, %s15067_s23 }
 0x183   : > { %v546_v57 = vpop.f32.mrb[16].mxu0 }
 0x184   : > { %v548_v58 = vpop.f32.mrb[17].mxu0 }
 0x185   : > { %718 = vrot.lane.b32.xlu1 %v15325_v48, %s15067_s23  ;;  %2892 = vrot.lane.b32.xlu0 %v15327_v50, %s15066_s21  ;;  %v550_v59 = vpop.f32.mrb[18].mxu0 }
 0x186   : > { %v15349_v60 = vpack.c.bf16 %v550_v59, %v546_v57  ;;  %v552_v61 = vpop.f32.mrb[19].mxu0 }
 0x187   : > { %v15351_v62 = vpack.c.bf16 %v552_v61, %v548_v58 }
 0x189   : > { %750 = vrot.lane.b32.xlu1 %v15325_v48, %s15066_s21  ;;  %734 = vrot.lane.b32.xlu0 %v15325_v48, %s15068_s7 }
 0x18b   : > { %v556_v63 = vpop.f32.mrb[20].mxu0 }
 0x18c   : > { %v558_v1 = vpop.f32.mrb[21].mxu0 }
 0x18d   : > { %2878 = vrot.lane.b32.xlu1 %v15339_v56, %s15068_s7  ;;  %2862 = vrot.lane.b32.xlu0 %v15339_v56, %s15067_s23  ;;  %v560_v2 = vpop.f32.mrb[22].mxu0 }
 0x18e   : > { %v15361_v3 = vpack.c.bf16 %v560_v2, %v556_v63  ;;  %v562_v4 = vpop.f32.mrb[23].mxu0 }
 0x18f   : > { %v15363_v5 = vpack.c.bf16 %v562_v4, %v558_v1 }
 0x190   : > { %20085 = vst [vmem:[#allocation12_spill] sm:$0xff] %v15361_v3 }
 0x191   : > { %20086 = vst [vmem:[#allocation13_spill] sm:$0xff] %v15363_v5  ;;  %720 = vrot.lane.b32.xlu1 %v15337_v54, %s15067_s23  ;;  %2894 = vrot.lane.b32.xlu0 %v15339_v56, %s15066_s21 }
 0x193   : > { %v566_v6 = vpop.f32.mrb[24].mxu0 }
 0x194   : > { %v568_v7 = vpop.f32.mrb[25].mxu0 }
 0x195   : > { %752 = vrot.lane.b32.xlu1 %v15337_v54, %s15066_s21  ;;  %736 = vrot.lane.b32.xlu0 %v15337_v54, %s15068_s7  ;;  %v570_v9 = vpop.f32.mrb[26].mxu0 }
 0x196   : > { %v15375_v10 = vpack.c.bf16 %v570_v9, %v566_v6  ;;  %v572_v11 = vpop.f32.mrb[27].mxu0 }
 0x197   : > { %v15377_v12 = vpack.c.bf16 %v572_v11, %v568_v7 }
 0x199   : > { %20087 = vst [vmem:[#allocation14_spill] sm:$0xff] %v15377_v12  ;;  %2880 = vrot.lane.b32.xlu1 %v15351_v62, %s15068_s7  ;;  %2864 = vrot.lane.b32.xlu0 %v15351_v62, %s15067_s23 }
 0x19b   : > { %v576_v13 = vpop.f32.mrb[28].mxu0 }
 0x19c   : > { %v578_v14 = vpop.f32.mrb[29].mxu0 }
 0x19d   : > { %722 = vrot.lane.b32.xlu1 %v15349_v60, %s15067_s23  ;;  %2896 = vrot.lane.b32.xlu0 %v15351_v62, %s15066_s21  ;;  %v580_v15 = vpop.f32.mrb[30].mxu0 }
 0x19e   : > { %v15387_v16 = vpack.c.bf16 %v580_v15, %v576_v13  ;;  %v582_v17 = vpop.f32.mrb[31].mxu0 }
 0x19f   : > { %v15389_v18 = vpack.c.bf16 %v582_v17, %v578_v14 }
 0x1a0   : > { %20088 = vst [vmem:[#allocation15_spill] sm:$0xff] %v15387_v16 }
 0x1a1   : > { %20089 = vst [vmem:[#allocation16_spill] sm:$0xff] %v15389_v18  ;;  %754 = vrot.lane.b32.xlu1 %v15349_v60, %s15066_s21  ;;  %738 = vrot.lane.b32.xlu0 %v15349_v60, %s15068_s7 }
 0x1a5   : > { %2882 = vrot.lane.b32.xlu1 %v15363_v5, %s15068_s7  ;;  %2866 = vrot.lane.b32.xlu0 %v15363_v5, %s15067_s23 }
 0x1a9   : > { %724 = vrot.lane.b32.xlu1 %v15361_v3, %s15067_s23  ;;  %2898 = vrot.lane.b32.xlu0 %v15363_v5, %s15066_s21 }
 0x1ad   : > { %756 = vrot.lane.b32.xlu1 %v15361_v3, %s15066_s21  ;;  %740 = vrot.lane.b32.xlu0 %v15361_v3, %s15068_s7 }
 0x1b1   : > { %2884 = vrot.lane.b32.xlu1 %v15377_v12, %s15068_s7  ;;  %2868 = vrot.lane.b32.xlu0 %v15377_v12, %s15067_s23 }
 0x1b5   : > { %726 = vrot.lane.b32.xlu1 %v15375_v10, %s15067_s23  ;;  %2900 = vrot.lane.b32.xlu0 %v15377_v12, %s15066_s21 }
 0x1b9   : > { %758 = vrot.lane.b32.xlu1 %v15375_v10, %s15066_s21  ;;  %742 = vrot.lane.b32.xlu0 %v15375_v10, %s15068_s7 }
 0x1bd   : > { %2886 = vrot.lane.b32.xlu1 %v15389_v18, %s15068_s7  ;;  %2870 = vrot.lane.b32.xlu0 %v15389_v18, %s15067_s23 }
 0x1c1   : > { %728 = vrot.lane.b32.xlu1 %v15387_v16, %s15067_s23  ;;  %2902 = vrot.lane.b32.xlu0 %v15389_v18, %s15066_s21 }
 0x1c5   : > { %760 = vrot.lane.b32.xlu1 %v15387_v16, %s15066_s21  ;;  %744 = vrot.lane.b32.xlu0 %v15387_v16, %s15068_s7 }
 0x1db   : > { %v2889_v19 = vpop.permute.xlu1 %2888  ;;  %v2857_v23 = vpop.permute.xlu0 %2856 }
 0x1dc   : > { %v2906_v39 = vpack.i.b16 %v2857_v23, %v15303_v38  ;;  %v2909_v45 = vshrl.u32 %v2857_v23, 16  ;;  %v2917_v2 = vshrl.u32 %v2889_v19, 16 }
 0x1de   : > { %v3032_v59 = vcombine.high %v2906_v39, %v15437_v31 }
 0x1df   : > { %v715_v28 = vpop.permute.xlu1 %714  ;;  %v2873_v30 = vpop.permute.xlu0 %2872 }
 0x1e0   : > { %v2914_v41 = vpack.i.b16 %v2889_v19, %v2873_v30  ;;  %v764_v49 = vpack.i.b16 %v715_v28, %v15301_v36  ;;  %v767_v55 = vshrl.u32 %v715_v28, 16  ;;  %v2916_v57 = vshrl.u32 %v2873_v30, 16 }
 0x1e1   : > { %v2910_v36 = vpack.i.b16 %v2909_v45, %v2908_v40  ;;  %v3039_v19 = vrot.slane %v2906_v39, %v15439_v32  ;;  %v3046_v21 = vrot.slane %v3032_v59, %v15439_v32 }
 0x1e2   : > { %v3047_v61 = vcombine.high %v2914_v41, %v15437_v31  ;;  %v896_v7 = vcombine.high %v764_v49, %v15437_v31  ;;  %v768_v14 = vpack.i.b16 %v767_v55, %v766_v33  ;;  %v903_v15 = vrot.slane %v764_v49, %v15439_v32 }
 0x1e3   : > { %v747_v35 = vpop.permute.xlu1 %746  ;;  %v731_v37 = vpop.permute.xlu0 %730  ;;  %v2918_v17 = vpack.i.b16 %v2917_v2, %v2916_v57  ;;  %v3054_v22 = vrot.slane %v2914_v41, %v15439_v32  ;;  %v3098_v24 = vcombine.high %v2910_v36, %v15437_v31  ;;  %v3105_v30 = vrot.slane %v2910_v36, %v15439_v32 }
 0x1e4   : > { %v772_v46 = vpack.i.b16 %v747_v35, %v731_v37  ;;  %v775_v51 = vshrl.u32 %v747_v35, 16  ;;  %v774_v52 = vshrl.u32 %v731_v37, 16  ;;  %v3061_v23 = vrot.slane %v3047_v61, %v15439_v32 }
 0x1e5   : > { %v910_v33 = vrot.slane %v896_v7, %v15439_v32  ;;  %v962_v39 = vcombine.high %v768_v14, %v15437_v31  ;;  %v969_v40 = vrot.slane %v768_v14, %v15439_v32  ;;  %v3113_v41 = vcombine.high %v2918_v17, %v15437_v31 }
 0x1e6   : > { %v911_v4 = vcombine.high %v772_v46, %v15437_v31  ;;  %v918_v6 = vrot.slane %v772_v46, %v15439_v32  ;;  %v776_v9 = vpack.i.b16 %v775_v51, %v774_v52  ;;  %v3120_v45 = vrot.slane %v2918_v17, %v15439_v32 }
 0x1e7   : > { %v15470_v28 = vpop.permute.xlu1 %2874  ;;  %v15472_v29 = vpop.permute.xlu0 %2858  ;;  %v3062_v46 = vcombine.low %v3039_v19, %v3054_v22  ;;  %v3063_v49 = vcombine.high %v3039_v19, %v3054_v22  ;;  %v3078_v51 = vcombine.low %v3046_v21, %v3061_v23  ;;  %v3079_v52 = vcombine.high %v3046_v21, %v3061_v23 }
 0x1e8   : > { %v925_v25 = vrot.slane %v911_v4, %v15439_v32  ;;  %v926_v26 = vcombine.low %v903_v15, %v918_v6  ;;  %v927_v27 = vcombine.high %v903_v15, %v918_v6  ;;  %v977_v35 = vcombine.high %v776_v9, %v15437_v31 }
 0x1e9   : > { %v984_v37 = vrot.slane %v776_v9, %v15439_v32  ;;  %v3112_v2 = vrot.slane %v3098_v24, %v15439_v32  ;;  %v976_v7 = vrot.slane %v962_v39, %v15439_v32  ;;  %v3127_v9 = vrot.slane %v3113_v41, %v15439_v32 }
 0x1ea   : > { %v934_v55 = vrot.slane %v926_v26, %v15442_v34  ;;  %v941_v57 = vrot.slane %v927_v27, %v15442_v34  ;;  %v942_v59 = vcombine.low %v910_v33, %v925_v25  ;;  %v943_v61 = vcombine.high %v910_v33, %v925_v25 }
 0x1eb   : > { %v991_v36 = vrot.slane %v977_v35, %v15439_v32  ;;  %v992_v4 = vcombine.low %v969_v40, %v984_v37  ;;  %v993_v6 = vcombine.high %v969_v40, %v984_v37  ;;  %v3128_v14 = vcombine.low %v3105_v30, %v3120_v45  ;;  %v717_v17 = vpop.permute.xlu1 %716  ;;  %v15488_v19 = vpop.permute.xlu0 %2890 }
 0x1ec   : > { %v3129_v15 = vcombine.high %v3105_v30, %v3120_v45  ;;  %v15491_v21 = vrot.slane %v3062_v46, %v15442_v34  ;;  %v15494_v22 = vrot.slane %v3063_v49, %v15442_v34  ;;  %v15497_v23 = vrot.slane %v3078_v51, %v15442_v34 }
 0x1ed   : > { %v15500_v24 = vrot.slane %v3079_v52, %v15442_v34  ;;  %v950_v25 = vrot.slane %v942_v59, %v15442_v34  ;;  %v957_v26 = vrot.slane %v943_v61, %v15442_v34  ;;  %v1952_v27 = vcombine.low %v934_v55, %v941_v57 }
 0x1ee   : > { %v13563_v30 = vcombine.high %v934_v55, %v941_v57  ;;  %v1000_v33 = vrot.slane %v992_v4, %v15442_v34  ;;  %v1007_v35 = vrot.slane %v993_v6, %v15442_v34  ;;  %v1008_v37 = vcombine.low %v976_v7, %v991_v36 }
 0x1ef   : > { %v1009_v39 = vcombine.high %v976_v7, %v991_v36  ;;  %v15507_v40 = vrot.slane %v3128_v14, %v15442_v34  ;;  %v15510_v41 = vrot.slane %v3129_v15, %v15442_v34  ;;  %v3144_v45 = vcombine.low %v3112_v2, %v3127_v9  ;;  %v749_v4 = vpop.permute.xlu1 %748 }
 0x1f0   : > { %v3145_v46 = vcombine.high %v3112_v2, %v3127_v9  ;;  %v4104_v52 = vcombine.low %v15497_v23, %v15500_v24  ;;  %v13596_v55 = vcombine.high %v15497_v23, %v15500_v24  ;;  %v1959_v57 = vrot.slane %v1952_v27, %v15439_v32  ;;  %v733_v2 = vpop.permute.xlu0 %732 }
 0x1f1   : > { %v1967_v59 = vrot.slane %v13563_v30, %v15439_v32  ;;  %v1968_v61 = vcombine.low %v950_v25, %v957_v26  ;;  %v13564_v36 = vcombine.high %v950_v25, %v957_v26  ;;  %v1016_v6 = vrot.slane %v1008_v37, %v15442_v34 }
 0x1f2   : > { %v1023_v7 = vrot.slane %v1009_v39, %v15442_v34  ;;  %v2002_v9 = vcombine.low %v1000_v33, %v1007_v35  ;;  %v2922_v14 = vpack.i.b16 %v15472_v29, %v15315_v44  ;;  %v15527_v15 = vrot.slane %v3144_v45, %v15442_v34 }
 0x1f3   : > { %v15530_v20 = vrot.slane %v3145_v46, %v15442_v34  ;;  %v13565_v25 = vcombine.high %v1000_v33, %v1007_v35  ;;  %v786_v30 = vpack.i.b16 %v717_v17, %v15313_v42  ;;  %v789_v37 = vshrl.u32 %v717_v17, 16 }
 0x1f4   : > { %v794_v39 = vpack.i.b16 %v749_v4, %v733_v2  ;;  %v1975_v13 = vrot.slane %v1968_v61, %v15439_v32  ;;  %v1983_v11 = vrot.slane %v13564_v36, %v15439_v32  ;;  %v1984_v45 = vcombine.low %v1959_v57, %v1967_v59  ;;  %v2861_v51 = vpop.permute.xlu0 %2860 }
 0x1f5   : > { %v2925_v1 = vshrl.u32 %v15472_v29, 16  ;;  %v2009_v46 = vrot.slane %v2002_v9, %v15439_v32  ;;  %v2018_v63 = vcombine.low %v1016_v6, %v1023_v7  ;;  %v13566_v38 = vcombine.high %v1016_v6, %v1023_v7 }
 0x1f6   : > { %v3164_v33 = vcombine.high %v2922_v14, %v15437_v31  ;;  %v2017_v35 = vrot.slane %v13565_v25, %v15439_v32  ;;  %v2930_v58 = vpack.i.b16 %v15488_v19, %v15470_v28  ;;  %v797_v17 = vshrl.u32 %v749_v4, 16 }
 0x1f7   : > { %v796_v8 = vshrl.u32 %v733_v2, 16  ;;  %v2932_v61 = vshrl.u32 %v15470_v28, 16  ;;  %v790_v57 = vpack.i.b16 %v789_v37, %v788_v43  ;;  %v1028_v29 = vcombine.high %v786_v30, %v15437_v31 }
 0x1f8   : > { %v1043_v59 = vcombine.high %v794_v39, %v15437_v31  ;;  %v15551_v36 = vrot.slane %v1984_v45, %v15442_v34  ;;  %v1992_v6 = vcombine.low %v1975_v13, %v1983_v11  ;;  %v2926_v7 = vpack.i.b16 %v2925_v1, %v2924_v0 }
 0x1f9   : > { %v2933_v9 = vshrl.u32 %v15488_v19, 16  ;;  %v15557_v4 = vrot.slane %v2018_v63, %v15439_v32  ;;  %v15560_v28 = vrot.slane %v13566_v38, %v15439_v32  ;;  %v3171_v42 = vrot.slane %v2922_v14, %v15439_v32 }
 0x1fa   : > { %v3178_v43 = vrot.slane %v3164_v33, %v15439_v32  ;;  %v2034_v2 = vcombine.low %v2009_v46, %v2017_v35  ;;  %v1035_v25 = vrot.slane %v786_v30, %v15439_v32  ;;  %v3179_v11 = vcombine.high %v2930_v58, %v15437_v31 }
 0x1fb   : > { %v798_v13 = vpack.i.b16 %v797_v17, %v796_v8  ;;  %v1042_v44 = vrot.slane %v1028_v29, %v15439_v32  ;;  %v1094_v0 = vcombine.high %v790_v57, %v15437_v31  ;;  %v1050_v63 = vrot.slane %v794_v39, %v15439_v32 }
 0x1fc   : > { %v1057_v1 = vrot.slane %v1043_v59, %v15439_v32  ;;  %v15571_v38 = vrot.slane %v1992_v6, %v15442_v34  ;;  %v3230_v19 = vcombine.high %v2926_v7, %v15437_v31  ;;  %v2934_v14 = vpack.i.b16 %v2933_v9, %v2932_v61 }
 0x1fd   : > { %v3186_v37 = vrot.slane %v2930_v58, %v15439_v32  ;;  %v1058_v30 = vcombine.low %v1035_v25, %v1050_v63  ;;  %v1059_v45 = vcombine.high %v1035_v25, %v1050_v63  ;;  %v3237_v33 = vrot.slane %v2926_v7, %v15439_v32 }
 0x1fe   : > { %v1074_v46 = vcombine.low %v1042_v44, %v1057_v1  ;;  %v1075_v8 = vcombine.high %v1042_v44, %v1057_v1  ;;  %v1101_v35 = vrot.slane %v790_v57, %v15439_v32  ;;  %v1109_v39 = vcombine.high %v798_v13, %v15437_v31 }
 0x1ff   : > { %v1116_v17 = vrot.slane %v798_v13, %v15439_v32  ;;  %v15580_v29 = vrot.slane %v2034_v2, %v15442_v34  ;;  %v1108_v59 = vrot.slane %v1094_v0, %v15439_v32  ;;  %v3193_v61 = vrot.slane %v3179_v11, %v15439_v32 }
 0x200   : > { %v1066_v58 = vrot.slane %v1058_v30, %v15442_v34  ;;  %v1073_v6 = vrot.slane %v1059_v45, %v15442_v34  ;;  %v1123_v9 = vrot.slane %v1109_v39, %v15439_v32  ;;  %v3194_v57 = vcombine.low %v3171_v42, %v3186_v37 }
 0x201   : > { %v1124_v7 = vcombine.low %v1101_v35, %v1116_v17  ;;  %v1125_v25 = vcombine.high %v1101_v35, %v1116_v17  ;;  %v3245_v44 = vcombine.high %v2934_v14, %v15437_v31  ;;  %v1082_v13 = vrot.slane %v1074_v46, %v15442_v34 }
 0x202   : > { %v1089_v2 = vrot.slane %v1075_v8, %v15442_v34  ;;  %v3252_v11 = vrot.slane %v2934_v14, %v15439_v32  ;;  %v1140_v63 = vcombine.low %v1108_v59, %v1123_v9  ;;  %v1141_v1 = vcombine.high %v1108_v59, %v1123_v9  ;;  %v15600_v59 = vpop.permute.xlu1 %2876 }
 0x203   : > { %v3244_v30 = vrot.slane %v3230_v19, %v15439_v32  ;;  %v3195_v45 = vcombine.high %v3171_v42, %v3186_v37  ;;  %v1132_v39 = vrot.slane %v1124_v7, %v15442_v34  ;;  %v1139_v35 = vrot.slane %v1125_v25, %v15442_v34 }
 0x204   : > { %v3210_v17 = vcombine.low %v3178_v43, %v3193_v61  ;;  %v3211_v26 = vcombine.high %v3178_v43, %v3193_v61  ;;  %v2052_v27 = vcombine.low %v1066_v58, %v1073_v6  ;;  %v13567_v46 = vcombine.high %v1066_v58, %v1073_v6 }
 0x205   : > { %v15597_v8 = vrot.slane %v3194_v57, %v15442_v34  ;;  %v3259_v0 = vrot.slane %v3245_v44, %v15439_v32  ;;  %v2068_v14 = vcombine.low %v1082_v13, %v1089_v2  ;;  %v13568_v49 = vcombine.high %v1082_v13, %v1089_v2 }
 0x206   : > { %v3260_v19 = vcombine.low %v3237_v33, %v3252_v11  ;;  %v3261_v42 = vcombine.high %v3237_v33, %v3252_v11  ;;  %v1148_v37 = vrot.slane %v1140_v63, %v15442_v34  ;;  %v1155_v9 = vrot.slane %v1141_v1, %v15442_v34 }
 0x207   : > { %v15605_v43 = vrot.slane %v3195_v45, %v15442_v34  ;;  %v2102_v61 = vcombine.low %v1132_v39, %v1139_v35  ;;  %v13569_v58 = vcombine.high %v1132_v39, %v1139_v35  ;;  %v2941_v6 = vshrl.u32 %v2861_v51, 16 }
 0x208   : > { %v15608_v7 = vrot.slane %v3210_v17, %v15442_v34  ;;  %v15611_v25 = vrot.slane %v3211_v26, %v15442_v34  ;;  %v2059_v57 = vrot.slane %v2052_v27, %v15439_v32  ;;  %v2067_v33 = vrot.slane %v13567_v46, %v15439_v32  ;;  %v719_v46 = vpop.permute.xlu1 %718 }
 0x209   : > { %v3276_v44 = vcombine.low %v3244_v30, %v3259_v0  ;;  %v2075_v13 = vrot.slane %v2068_v14, %v15439_v32  ;;  %v2083_v2 = vrot.slane %v13568_v49, %v15439_v32  ;;  %v2938_v11 = vpack.i.b16 %v2861_v51, %v15327_v50 }
 0x20a   : > { %v15619_v63 = vrot.slane %v3260_v19, %v15442_v34  ;;  %v15622_v1 = vrot.slane %v3261_v42, %v15442_v34  ;;  %v3277_v45 = vcombine.high %v3244_v30, %v3259_v0  ;;  %v2118_v26 = vcombine.low %v1148_v37, %v1155_v9  ;;  %v2893_v30 = vpop.permute.xlu0 %2892 }
 0x20b   : > { %v2109_v39 = vrot.slane %v2102_v61, %v15439_v32  ;;  %v2117_v27 = vrot.slane %v13569_v58, %v15439_v32  ;;  %v13570_v35 = vcombine.high %v1148_v37, %v1155_v9  ;;  %v2942_v17 = vpack.i.b16 %v2941_v6, %v2940_v53 }
 0x20c   : > { %v2084_v0 = vcombine.low %v2059_v57, %v2067_v33  ;;  %v15635_v19 = vrot.slane %v3276_v44, %v15442_v34  ;;  %v2092_v50 = vcombine.low %v2075_v13, %v2083_v2  ;;  %v3296_v53 = vcombine.high %v2938_v11, %v15437_v31 }
 0x20d   : > { %v15641_v37 = vrot.slane %v3277_v45, %v15442_v34  ;;  %v15646_v61 = vrot.slane %v2118_v26, %v15439_v32  ;;  %v802_v58 = vpack.i.b16 %v719_v46, %v15325_v48  ;;  %v15650_v6 = vrot.slane %v13570_v35, %v15439_v32 }
 0x20e   : > { %v2134_v57 = vcombine.low %v2109_v39, %v2117_v27  ;;  %v3362_v33 = vcombine.high %v2942_v17, %v15437_v31  ;;  %v2946_v44 = vpack.i.b16 %v2893_v30, %v15600_v59  ;;  %v15657_v2 = vrot.slane %v2084_v0, %v15442_v34 }
 0x20f   : > { %v2948_v45 = vshrl.u32 %v15600_v59, 16  ;;  %v805_v26 = vshrl.u32 %v719_v46, 16  ;;  %v15661_v9 = vrot.slane %v2092_v50, %v15442_v34  ;;  %v3303_v35 = vrot.slane %v2938_v11, %v15439_v32 }
 0x210   : > { %v15665_v39 = vrot.slane %v3296_v53, %v15439_v32  ;;  %v2949_v27 = vshrl.u32 %v2893_v30, 16  ;;  %v15668_v51 = vrot.slane %v2942_v17, %v15439_v32  ;;  %v1160_v13 = vcombine.high %v802_v58, %v15437_v31 }
 0x211   : > { %v4111_v59 = vrot.slane %v4104_v52, %v15439_v32  ;;  %v4119_v46 = vrot.slane %v13596_v55, %v15439_v32  ;;  %v15680_v11 = vrot.slane %v2134_v57, %v15442_v34  ;;  %v15685_v17 = vrot.slane %v3362_v33, %v15439_v32  ;;  %v751_v57 = vpop.permute.xlu1 %750  ;;  %v735_v33 = vpop.permute.xlu0 %734 }
 0x212   : > { %v3311_v30 = vcombine.high %v2946_v44, %v15437_v31  ;;  %v806_v50 = vpack.i.b16 %v805_v26, %v804_v47  ;;  %v15691_v52 = vrot.slane %v802_v58, %v15439_v32  ;;  %v20093_v23 = vcombine.low %v15491_v21, %v15494_v22 }
 0x213   : > { %v20094_v55 = vcombine.high %v15491_v21, %v15494_v22  ;;  %v2950_v0 = vpack.i.b16 %v2949_v27, %v2948_v45  ;;  %v3318_v49 = vrot.slane %v2946_v44, %v15439_v32  ;;  %v20095_v48 = vcombine.low %v15507_v40, %v15510_v41 }
 0x214   : > { %v4095_v24 = vrot.slane %v20093_v23, %v15439_v32  ;;  %v20096_v58 = vcombine.high %v15507_v40, %v15510_v41  ;;  %v15711_v23 = vrot.slane %v1160_v13, %v15439_v32  ;;  %v4128_v21 = vcombine.low %v4111_v59, %v4119_v46 }
 0x215   : > { %v4103_v53 = vrot.slane %v20094_v55, %v15439_v32  ;;  %v4145_v47 = vrot.slane %v20095_v48, %v15439_v32  ;;  %v4154_v22 = vcombine.low %v15527_v15, %v15530_v20  ;;  %v13598_v44 = vcombine.high %v15527_v15, %v15530_v20  ;;  %v15778_v18 = vpop.permute.xlu1 %2878 }
 0x216   : > { %v4153_v26 = vrot.slane %v20096_v58, %v15439_v32  ;;  %v3325_v45 = vrot.slane %v3311_v30, %v15439_v32  ;;  %v813_v27 = vshrl.u32 %v751_v57, 16  ;;  %v810_v55 = vpack.i.b16 %v751_v57, %v735_v33 }
 0x217   : > { %v812_v48 = vshrl.u32 %v735_v33, 16  ;;  %v4120_v42 = vcombine.low %v4095_v24, %v4103_v53  ;;  %v4161_v40 = vrot.slane %v4154_v22, %v15439_v32  ;;  %v4169_v41 = vrot.slane %v13598_v44, %v15439_v32 }
 0x218   : > { %v4170_v13 = vcombine.low %v4145_v47, %v4153_v26  ;;  %v1226_v59 = vcombine.high %v806_v50, %v15437_v31  ;;  %v3384_v46 = vrot.slane %v2950_v0, %v15439_v32  ;;  %v1175_v14 = vcombine.high %v810_v55, %v15437_v31 }
 0x219   : > { %v814_v58 = vpack.i.b16 %v813_v27, %v812_v48  ;;  %v1233_v20 = vrot.slane %v806_v50, %v15439_v32  ;;  %v3377_v15 = vcombine.high %v2950_v0, %v15437_v31  ;;  %v15726_v30 = vrot.slane %v4128_v21, %v15442_v34 }
 0x21a   : > { %v4178_v24 = vcombine.low %v4161_v40, %v4169_v41  ;;  %v3326_v53 = vcombine.low %v3303_v35, %v3318_v49  ;;  %v3327_v57 = vcombine.high %v3303_v35, %v3318_v49  ;;  %v3342_v33 = vcombine.low %v15665_v39, %v3325_v45 }
 0x21b   : > { %v1182_v47 = vrot.slane %v810_v55, %v15439_v32  ;;  %v3343_v26 = vcombine.high %v15665_v39, %v3325_v45  ;;  %v15732_v22 = vrot.slane %v4120_v42, %v15442_v34  ;;  %v15735_v44 = vrot.slane %v4170_v13, %v15442_v34 }
 0x21c   : > { %v15738_v0 = vrot.slane %v4178_v24, %v15442_v34  ;;  %v1240_v50 = vrot.slane %v1226_v59, %v15439_v32  ;;  %v3392_v21 = vcombine.low %v15668_v51, %v3384_v46  ;;  %v1189_v49 = vrot.slane %v1175_v14, %v15439_v32 }
 0x21d   : > { %v1241_v35 = vcombine.high %v814_v58, %v15437_v31  ;;  %v3391_v27 = vrot.slane %v3377_v15, %v15439_v32  ;;  %v4136_v42 = vcombine.low %v15732_v22, %v15726_v30  ;;  %v1248_v45 = vrot.slane %v814_v58, %v15439_v32 }
 0x21e   : > { %v4186_v39 = vcombine.low %v15735_v44, %v15738_v0  ;;  %v15751_v55 = vrot.slane %v3326_v53, %v15442_v34  ;;  %v15754_v48 = vrot.slane %v3327_v57, %v15442_v34  ;;  %v1190_v14 = vcombine.low %v15691_v52, %v1182_v47 }
 0x21f   : > { %v1191_v40 = vcombine.high %v15691_v52, %v1182_v47  ;;  %v15759_v41 = vrot.slane %v3342_v33, %v15442_v34  ;;  %v15762_v13 = vrot.slane %v3343_v26, %v15442_v34  ;;  %v3393_v59 = vcombine.high %v15668_v51, %v3384_v46 }
 0x220   : > { %v4890_v15 = vpack.i.b16 %v4186_v39, %v4136_v42  ;;  %v15766_v58 = vrot.slane %v3392_v21, %v15442_v34  ;;  %v1206_v24 = vcombine.low %v15711_v23, %v1189_v49  ;;  %v1207_v53 = vcombine.high %v15711_v23, %v1189_v49 }
 0x221   : > { %20097 = vst [vmem:[#allocation20_spill] sm:$0xff] %v15762_v13  ;;  %v1255_v57 = vrot.slane %v1241_v35, %v15439_v32  ;;  %v3408_v52 = vcombine.low %v15685_v17, %v3391_v27  ;;  %v1256_v47 = vcombine.low %v1233_v20, %v1248_v45  ;;  %v1257_v16 = vcombine.high %v1233_v20, %v1248_v45  ;;  %v2863_v35 = vpop.permute.xlu0 %2862 }
 0x222   : > { %v7157_v33 = vsel %vm7152_vm1, %v4890_v15, 0  ;;  %v3409_v26 = vcombine.high %v15685_v17, %v3391_v27  ;;  %v1198_v46 = vrot.slane %v1190_v14, %v15442_v34  ;;  %v1205_v21 = vrot.slane %v1191_v40, %v15442_v34 }
 0x223   : > { %13964 = vmatpush3.bf16.xpose.msra.mxu1 %v7157_v33  ;;  %v15781_v23 = vrot.slane %v3393_v59, %v15442_v34  ;;  %v20098_v27 = vmov 0.0   ;;  %v1214_v45 = vrot.slane %v1206_v24, %v15442_v34  ;;  %v1221_v14 = vrot.slane %v1207_v53, %v15442_v34 }
 0x224   : > { %13969 = vmatprep.subr.bf16.mxu1 %v20098_v27  ;;  %v1272_v40 = vcombine.low %v1240_v50, %v1255_v57  ;;  %v1273_v15 = vcombine.high %v1240_v50, %v1255_v57  ;;  %v15793_v59 = vrot.slane %v3408_v52, %v15442_v34  ;;  %v1264_v33 = vrot.slane %v1256_v47, %v15442_v34 }
 0x225   : > { %v1271_v49 = vrot.slane %v1257_v16, %v15442_v34  ;;  %v20100_v17 = vcombine.low %v15557_v4, %v15560_v28  ;;  %v2152_v51 = vcombine.low %v1198_v46, %v1205_v21  ;;  %v13571_v12 = vcombine.high %v1198_v46, %v1205_v21  ;;  %v721_v46 = vpop.permute.xlu1 %720 }
 0x226   : > { %20099 = vst [vmem:[#allocation21_spill] sm:$0xff] %v15793_v59  ;;  %v2954_v24 = vpack.i.b16 %v2863_v35, %v15339_v56  ;;  %v2957_v53 = vshrl.u32 %v2863_v35, 16  ;;  %v15806_v50 = vcombine.low %v15551_v36, %v15571_v38  ;;  %v4891_v16 = vshrl.u32 %v4136_v42, 16 }
 0x227   : > { %v15801_v20 = vrot.slane %v20100_v17, %v15442_v34  ;;  %v4892_v52 = vshrl.u32 %v4186_v39, 16  ;;  %v1280_v47 = vrot.slane %v1272_v40, %v15442_v34  ;;  %v1287_v4 = vrot.slane %v1273_v15, %v15442_v34  ;;  %v2895_v15 = vpop.permute.xlu0 %2894 }
 0x228   : > { %v2168_v28 = vcombine.low %v1214_v45, %v1221_v14  ;;  %v13572_v17 = vcombine.high %v1214_v45, %v1221_v14  ;;  %v2202_v21 = vcombine.low %v1264_v33, %v1271_v49  ;;  %v13573_v3 = vcombine.high %v1264_v33, %v1271_v49 }
 0x229   : > { %v15810_v57 = vcombine.low %v15580_v29, %v15801_v20  ;;  %v4893_v5 = vpack.i.b16 %v4892_v52, %v4891_v16  ;;  %v15817_v59 = vrot.slane %v3409_v26, %v15442_v34  ;;  %v15820_v13 = vrot.slane %v2152_v51, %v15439_v32 }
 0x22a   : > { %v15823_v42 = vrot.slane %v13571_v12, %v15439_v32  ;;  %v20103_v39 = vshrl.u32 %v15339_v56, 16  ;;  %v3428_v49 = vcombine.high %v2954_v24, %v15437_v31  ;;  %v818_v26 = vpack.i.b16 %v721_v46, %v15337_v54 }
 0x22b   : > { %v2754_v35 = vpack.i.b16 %v15810_v57, %v15806_v50  ;;  %20101 = vst [vmem:[#allocation22_spill] sm:$0xff] %v15820_v13  ;;  %v7204_v14 = vsel %vm7152_vm1, %v4893_v5, 0  ;;  %v15834_v51 = vrot.slane %v2168_v28, %v15439_v32  ;;  %v15837_v12 = vrot.slane %v13572_v17, %v15439_v32 }
 0x22c   : > { %20102 = vst [vmem:[#allocation23_spill] sm:$0xff] %v15823_v42  ;;  %v2958_v40 = vpack.i.b16 %v2957_v53, %v20103_v39  ;;  %v2218_v56 = vcombine.low %v1280_v47, %v1287_v4  ;;  %v821_v33 = vshrl.u32 %v721_v46, 16  ;;  %v15842_v16 = vrot.slane %v2202_v21, %v15439_v32 }
 0x22d   : > { %13966 = vmatmul.mubr.msk.bf16.vlgmr.msra.gmra.mrb[16].mxu1 %vm7152_vm1, %v2754_v35  ;;  %20104 = vst [vmem:[#allocation24_spill] sm:$0xff] %v15834_v51  ;;  %20105 = vst [vmem:[#allocation25_spill] sm:$0xff] %v15837_v12  ;;  %v15845_v5 = vrot.slane %v13573_v3, %v15439_v32  ;;  %v13574_v52 = vcombine.high %v1280_v47, %v1287_v4  ;;  %v2964_v17 = vshrl.u32 %v15778_v18, 16  ;;  %v2965_v4 = vshrl.u32 %v2895_v15, 16 }
 0x22e   : > { %13970 = vmatpush3.bf16.xpose.msra.mxu1 %v7204_v14  ;;  %20106 = vst [vmem:[#allocation26_spill] sm:$0xff] %v15842_v16  ;;  %13971 = vmatprep.mubr.msk.bf16.mxu1 %vm15070_vm0, %v20098_v27  ;;  %v3494_v46 = vcombine.high %v2958_v40, %v15437_v31  ;;  %v2962_v35 = vpack.i.b16 %v2895_v15, %v15778_v18  ;;  %v20109_v18 = vshrl.u32 %v15337_v54, 16 }
 0x22f   : > { %20107 = vst [vmem:[#allocation27_spill] sm:$0xff] %v15845_v5  ;;  %13975 = vmatprep.subr.bf16.mxu1 %v20098_v27  ;;  %v3435_v21 = vrot.slane %v2954_v24, %v15439_v32  ;;  %v15857_v3 = vrot.slane %v3428_v49, %v15439_v32  ;;  %v1292_v47 = vcombine.high %v818_v26, %v15437_v31  ;;  %v15872_v24 = vpop.f32.mrb[0].mxu1 }
 0x230   : > { %v15863_v14 = vrot.slane %v2218_v56, %v15439_v32  ;;  %v15866_v28 = vrot.slane %v2958_v40, %v15439_v32  ;;  %v15870_v53 = vpack.i.b16 %v821_v33, %v20109_v18  ;;  %20110 = vst [vmem:[#allocation29_spill] sm:$0xff] %v15872_v24  ;;  %v15875_v49 = vrot.slane %v13574_v52, %v15439_v32  ;;  %v753_v33 = vpop.permute.xlu1 %752  ;;  %v15887_v18 = vpop.f32.mrb[1].mxu1 }
 0x231   : > { %v20111_v56 = vcombine.low %v15608_v7, %v15611_v25  ;;  %v20112_v40 = vcombine.high %v15608_v7, %v15611_v25  ;;  %20113 = vst [vmem:[#allocation30_spill] sm:$0xff] %v15887_v18  ;;  %v15890_v45 = vrot.slane %v3494_v46, %v15439_v32  ;;  %v3443_v52 = vcombine.high %v2962_v35, %v15437_v31  ;;  %v737_v7 = vpop.permute.xlu0 %736  ;;  %v15901_v25 = vpop.f32.mrb[2].mxu1 }
 0x232   : > { %20108 = vst [vmem:[#allocation28_spill] sm:$0xff] %v15863_v14  ;;  %v20114_v15 = vcombine.low %v15597_v8, %v15605_v43  ;;  %20116 = vst [vmem:[#allocation31_spill] sm:$0xff] %v15901_v25  ;;  %v15907_v46 = vrot.slane %v1292_v47, %v15439_v32  ;;  %v2966_v18 = vpack.i.b16 %v2965_v4, %v2964_v17  ;;  %v15910_v42 = vpop.f32.mrb[3].mxu1  ;;  %v829_v13 = vshrl.u32 %v753_v33, 16 }
 0x233   : > { %v4211_v39 = vrot.slane %v20111_v56, %v15439_v32  ;;  %v4219_v54 = vrot.slane %v20112_v40, %v15439_v32  ;;  %v20115_v56 = vcombine.high %v15597_v8, %v15605_v43  ;;  %v15904_v40 = vrot.slane %v818_v26, %v15439_v32  ;;  %20117 = vst [vmem:[#allocation32_spill] sm:$0xff] %v15910_v42 }
 0x234   : > { %v4195_v24 = vrot.slane %v20114_v15, %v15439_v32  ;;  %v3450_v16 = vrot.slane %v2962_v35, %v15439_v32  ;;  %v1358_v15 = vcombine.high %v15870_v53, %v15437_v31  ;;  %v20118_v8 = vcombine.low %v15619_v63, %v15622_v1 }
 0x235   : > { %v4203_v5 = vrot.slane %v20115_v56, %v15439_v32  ;;  %v20119_v26 = vcombine.high %v15619_v63, %v15622_v1  ;;  %v4254_v17 = vcombine.low %v15635_v19, %v15641_v37  ;;  %v15926_v35 = vrot.slane %v15870_v53, %v15439_v32 }
 0x236   : > { %v4245_v43 = vrot.slane %v20118_v8, %v15439_v32  ;;  %v4228_v47 = vcombine.low %v4211_v39, %v4219_v54  ;;  %v13602_v4 = vcombine.high %v15635_v19, %v15641_v37  ;;  %v826_v42 = vpack.i.b16 %v753_v33, %v737_v7 }
 0x237   : > { %v4253_v56 = vrot.slane %v20119_v26, %v15439_v32  ;;  %v3457_v25 = vrot.slane %v3443_v52, %v15439_v32  ;;  %v4261_v8 = vrot.slane %v4254_v17, %v15439_v32  ;;  %v828_v12 = vshrl.u32 %v737_v7, 16 }
 0x238   : > { %v3458_v63 = vcombine.low %v3435_v21, %v3450_v16  ;;  %v4220_v1 = vcombine.low %v4195_v24, %v4203_v5  ;;  %v4269_v26 = vrot.slane %v13602_v4, %v15439_v32  ;;  %v3459_v14 = vcombine.high %v3435_v21, %v3450_v16 }
 0x239   : > { %v4270_v51 = vcombine.low %v4245_v43, %v4253_v56  ;;  %v1307_v53 = vcombine.high %v826_v42, %v15437_v31  ;;  %v2755_v39 = vshrl.u32 %v15806_v50, 16  ;;  %v2756_v54 = vshrl.u32 %v15810_v57, 16 }
 0x23a   : > { %v3509_v19 = vcombine.high %v2966_v18, %v15437_v31  ;;  %v3516_v37 = vrot.slane %v2966_v18, %v15439_v32  ;;  %v15939_v52 = vrot.slane %v4228_v47, %v15442_v34  ;;  %v4278_v33 = vcombine.low %v4261_v8, %v4269_v26 }
 0x23b   : > { %v830_v7 = vpack.i.b16 %v829_v13, %v828_v12  ;;  %v1314_v5 = vrot.slane %v826_v42, %v15439_v32  ;;  %v2757_v24 = vpack.i.b16 %v2756_v54, %v2755_v39  ;;  %v15944_v16 = vcombine.high %v15735_v44, %v15738_v0  ;;  %v15994_v39 = vpop.permute.xlu0 %2864 }
 0x23c   : > { %v15947_v50 = vrot.slane %v3458_v63, %v15442_v34  ;;  %v4227_v57 = vrot.slane %v4220_v1, %v15442_v34  ;;  %v4277_v21 = vrot.slane %v4270_v51, %v15442_v34  ;;  %v4285_v18 = vrot.slane %v4278_v33, %v15442_v34 }
 0x23d   : > { %v15953_v43 = vrot.slane %v3459_v14, %v15442_v34  ;;  %v3474_v13 = vcombine.low %v15857_v3, %v3457_v25  ;;  %v1321_v42 = vrot.slane %v1307_v53, %v15439_v32  ;;  %13972 = vmatmul.mubr.msk.bf16.vlgmr.msra.gmra.mrb[20].mxu1 %vm7152_vm1, %v2757_v24  ;;  %v15960_v44 = vcombine.high %v15732_v22, %v15726_v30 }
 0x23e   : > { %v3475_v0 = vcombine.high %v15857_v3, %v3457_v25  ;;  %v3523_v12 = vrot.slane %v3509_v19, %v15439_v32  ;;  %v15965_v51 = vcombine.low %v4227_v57, %v15939_v52  ;;  %v15967_v56 = vcombine.low %v4277_v21, %v4285_v18  ;;  %13977 = vmatprep.mubr.msk.bf16.mxu1 %vm15070_vm0, %v20098_v27 }
 0x23f   : > { %v1322_v14 = vcombine.low %v15904_v40, %v1314_v5  ;;  %v1323_v17 = vcombine.high %v15904_v40, %v1314_v5  ;;  %v1373_v47 = vcombine.high %v830_v7, %v15437_v31  ;;  %v4896_v30 = vpack.i.b16 %v15944_v16, %v15960_v44 }
 0x240   : > { %v1372_v22 = vrot.slane %v1358_v15, %v15439_v32  ;;  %v3524_v3 = vcombine.low %v15866_v28, %v3516_v37  ;;  %v3525_v25 = vcombine.high %v15866_v28, %v3516_v37  ;;  %v4902_v4 = vpack.i.b16 %v15967_v56, %v15965_v51 }
 0x241   : > { %v15982_v8 = vrot.slane %v3474_v13, %v15442_v34  ;;  %v1338_v63 = vcombine.low %v15907_v46, %v1321_v42  ;;  %v1339_v40 = vcombine.high %v15907_v46, %v1321_v42  ;;  %v1380_v1 = vrot.slane %v830_v7, %v15439_v32 }
 0x242   : > { %v15988_v26 = vrot.slane %v3475_v0, %v15442_v34  ;;  %v3540_v15 = vcombine.low %v15890_v45, %v3523_v12  ;;  %v7345_v53 = vsel %vm7152_vm1, %v4902_v4, 0  ;;  %v1330_v54 = vrot.slane %v1322_v14, %v15442_v34 }
 0x243   : > { %13988 = vmatpush3.bf16.xpose.msra.mxu0 %v7345_v53  ;;  %v1337_v19 = vrot.slane %v1323_v17, %v15442_v34  ;;  %v1387_v46 = vrot.slane %v1373_v47, %v15439_v32  ;;  %v7251_v37 = vsel %vm7152_vm1, %v4896_v30, 0  ;;  %v16001_v33 = vrot.slane %v3524_v3, %v15442_v34  ;;  %v16020_v3 = vpop.permute.xlu1 %2880 }
 0x244   : > { %v16004_v7 = vrot.slane %v3525_v25, %v15442_v34  ;;  %13976 = vmatpush3.bf16.xpose.msra.mxu1 %v7251_v37  ;;  %13999 = vmatprep.subr.bf16.mxu0 %v20098_v27  ;;  %v1346_v13 = vrot.slane %v1338_v63, %v15442_v34  ;;  %v1353_v42 = vrot.slane %v1339_v40, %v15442_v34 }
 0x245   : > { %v1388_v0 = vcombine.low %v15926_v35, %v1380_v1  ;;  %v1389_v14 = vcombine.high %v15926_v35, %v1380_v1  ;;  %13981 = vmatprep.subr.bf16.mxu1 %v20098_v27  ;;  %v3541_v17 = vcombine.high %v15890_v45, %v3523_v12  ;;  %v20120_v25 = vcombine.low %v15646_v61, %v15650_v6  ;;  %v16044_v6 = vpop.permute.xlu0 %2896 }
 0x246   : > { %v16029_v35 = vrot.slane %v3540_v15, %v15442_v34  ;;  %v1404_v63 = vcombine.low %v1372_v22, %v1387_v46  ;;  %v1405_v40 = vcombine.high %v1372_v22, %v1387_v46  ;;  %v2252_v45 = vcombine.low %v1330_v54, %v1337_v19 }
 0x247   : > { %v16026_v4 = vrot.slane %v20120_v25, %v15442_v34  ;;  %v16033_v12 = vcombine.low %v15657_v2, %v15661_v9  ;;  %v16040_v53 = vcombine.high %v4227_v57, %v15939_v52  ;;  %v16042_v61 = vcombine.high %v4277_v21, %v4285_v18  ;;  %v16057_v21 = vpop.f32.mrb[4].mxu1 }
 0x248   : > { %v1396_v15 = vrot.slane %v1388_v0, %v15442_v34  ;;  %v1403_v22 = vrot.slane %v1389_v14, %v15442_v34  ;;  %v13575_v46 = vcombine.high %v1330_v54, %v1337_v19  ;;  %v2268_v37 = vcombine.low %v1346_v13, %v1353_v42  ;;  %20121 = vst [vmem:[#allocation33_spill] sm:$0xff] %v16057_v21  ;;  %v16063_v14 = vpop.f32.mrb[5].mxu1 }
 0x249   : > { %v16037_v1 = vcombine.low %v15680_v11, %v16026_v4  ;;  %v16049_v25 = vrot.slane %v3541_v17, %v15442_v34  ;;  %v4908_v57 = vpack.i.b16 %v16042_v61, %v16040_v53  ;;  %v1412_v18 = vrot.slane %v1404_v63, %v15442_v34  ;;  %20122 = vst [vmem:[#allocation34_spill] sm:$0xff] %v16063_v14  ;;  %v739_v21 = vpop.permute.xlu0 %738 }
 0x24a   : > { %v1419_v0 = vrot.slane %v1405_v40, %v15442_v34  ;;  %v13576_v54 = vcombine.high %v1346_v13, %v1353_v42  ;;  %v2978_v19 = vpack.i.b16 %v16044_v6, %v16020_v3  ;;  %v16068_v24 = vrot.slane %v2252_v45, %v15439_v32  ;;  %v723_v40 = vpop.permute.xlu1 %722  ;;  %v16074_v13 = vpop.f32.mrb[6].mxu1 }
 0x24b   : > { %v2766_v52 = vpack.i.b16 %v16037_v1, %v16033_v12  ;;  %v2970_v30 = vpack.i.b16 %v15994_v39, %v15351_v62  ;;  %v7439_v63 = vsel %vm7152_vm1, %v4908_v57, 0  ;;  %20124 = vst [vmem:[#allocation36_spill] sm:$0xff] %v16074_v13  ;;  %v16077_v42 = vrot.slane %v13575_v46, %v15439_v32  ;;  %v16082_v45 = vpop.f32.mrb[7].mxu1 }
 0x24c   : > { %20123 = vst [vmem:[#allocation35_spill] sm:$0xff] %v16068_v24  ;;  %v16080_v47 = vrot.slane %v2268_v37, %v15439_v32  ;;  %v2302_v17 = vcombine.low %v1396_v15, %v1403_v22  ;;  %v13577_v5 = vcombine.high %v1396_v15, %v1403_v22  ;;  %20126 = vst [vmem:[#allocation38_spill] sm:$0xff] %v16082_v45  ;;  %v4897_v57 = vshrl.u32 %v15960_v44, 16 }
 0x24d   : > { %13990 = vmatmul.mubr.msk.bf16.vlgmr.msra.gmra.mrb[32].mxu0 %vm7152_vm1, %v2766_v52  ;;  %20125 = vst [vmem:[#allocation37_spill] sm:$0xff] %v16077_v42  ;;  %v16086_v28 = vcombine.high %v15551_v36, %v15571_v38  ;;  %v16090_v52 = vcombine.high %v15580_v29, %v15801_v20  ;;  %v4898_v46 = vshrl.u32 %v15944_v16, 16  ;;  %v16098_v15 = vrot.slane %v13576_v54, %v15439_v32 }
 0x24e   : > { %14000 = vmatpush3.bf16.xpose.msra.mxu0 %v7439_v63  ;;  %14001 = vmatprep.mubr.msk.bf16.mxu0 %vm15070_vm0, %v20098_v27  ;;  %v2318_v22 = vcombine.low %v1412_v18, %v1419_v0  ;;  %v2973_v36 = vshrl.u32 %v15994_v39, 16  ;;  %v3575_v38 = vcombine.high %v2978_v19, %v15437_v31  ;;  %v3560_v29 = vcombine.high %v2970_v30, %v15437_v31 }
 0x24f   : > { %14011 = vmatprep.subr.bf16.mxu0 %v20098_v27  ;;  %v837_v20 = vshrl.u32 %v723_v40, 16  ;;  %v2760_v44 = vpack.i.b16 %v16090_v52, %v16086_v28  ;;  %v4899_v16 = vpack.i.b16 %v4898_v46, %v4897_v57  ;;  %v16108_v63 = vrot.slane %v2302_v17, %v15439_v32  ;;  %v755_v46 = vpop.permute.xlu1 %754 }
 0x250   : > { %v2980_v54 = vshrl.u32 %v16020_v3, 16  ;;  %v2981_v45 = vshrl.u32 %v16044_v6, 16  ;;  %v16113_v39 = vrot.slane %v13577_v5, %v15439_v32  ;;  %v13578_v14 = vcombine.high %v1412_v18, %v1419_v0 }
 0x251   : > { %v3582_v13 = vrot.slane %v2978_v19, %v15439_v32  ;;  %13978 = vmatmul.mubr.msk.bf16.vlgmr.msra.gmra.mrb[24].mxu1 %vm7152_vm1, %v2760_v44  ;;  %v7298_v57 = vsel %vm7152_vm1, %v4899_v16, 0  ;;  %v16121_v37 = vrot.slane %v2318_v22, %v15439_v32  ;;  %v20127_v3 = vshrl.u32 %v15351_v62, 16 }
 0x252   : > { %v3589_v5 = vrot.slane %v3575_v38, %v15439_v32  ;;  %13982 = vmatpush3.bf16.xpose.msra.mxu1 %v7298_v57  ;;  %v3567_v18 = vrot.slane %v2970_v30, %v15439_v32  ;;  %v3574_v0 = vrot.slane %v3560_v29, %v15439_v32  ;;  %v834_v19 = vpack.i.b16 %v723_v40, %v15349_v60 }
 0x253   : > { %v2974_v6 = vpack.i.b16 %v2973_v36, %v20127_v3  ;;  %v20128_v44 = vshrl.u32 %v15349_v60, 16  ;;  %13983 = vmatprep.mubr.msk.bf16.mxu1 %vm15070_vm0, %v20098_v27  ;;  %v2982_v22 = vpack.i.b16 %v2981_v45, %v2980_v54  ;;  %v845_v17 = vshrl.u32 %v755_v46, 16  ;;  %13993 = vmatprep.subr.bf16.mxu1 %v20098_v27 }
 0x254   : > { %v842_v42 = vpack.i.b16 %v755_v46, %v739_v21  ;;  %v844_v62 = vshrl.u32 %v739_v21, 16  ;;  %v16135_v36 = vrot.slane %v13578_v14, %v15439_v32  ;;  %v3590_v38 = vcombine.low %v3567_v18, %v3582_v13 }
 0x255   : > { %v838_v16 = vpack.i.b16 %v837_v20, %v20128_v44  ;;  %v3591_v40 = vcombine.high %v3567_v18, %v3582_v13  ;;  %v3626_v60 = vcombine.high %v2974_v6, %v15437_v31  ;;  %v3606_v29 = vcombine.low %v3574_v0, %v3589_v5 }
 0x256   : > { %v3607_v20 = vcombine.high %v3574_v0, %v3589_v5  ;;  %v16142_v45 = vcombine.high %v15680_v11, %v16026_v4  ;;  %v1424_v21 = vcombine.high %v834_v19, %v15437_v31  ;;  %v1439_v14 = vcombine.high %v842_v42, %v15437_v31 }
 0x257   : > { %v1490_v54 = vcombine.high %v838_v16, %v15437_v31  ;;  %v16149_v57 = vcombine.high %v15657_v2, %v15661_v9  ;;  %v3633_v13 = vrot.slane %v2974_v6, %v15439_v32  ;;  %v3641_v46 = vcombine.high %v2982_v22, %v15437_v31 }
 0x258   : > { %v846_v3 = vpack.i.b16 %v845_v17, %v844_v62  ;;  %v1446_v5 = vrot.slane %v842_v42, %v15439_v32  ;;  %v16155_v11 = vrot.slane %v3590_v38, %v15442_v34  ;;  %v16158_v4 = vrot.slane %v3591_v40, %v15442_v34 }
 0x259   : > { %v3648_v18 = vrot.slane %v2982_v22, %v15439_v32  ;;  %v2772_v0 = vpack.i.b16 %v16142_v45, %v16149_v57  ;;  %v16164_v9 = vrot.slane %v3626_v60, %v15439_v32  ;;  %v1431_v2 = vrot.slane %v834_v19, %v15439_v32 }
 0x25a   : > { %20129 = vst [vmem:[#allocation39_spill] sm:$0xff] %v16155_v11  ;;  %20130 = vst [vmem:[#allocation40_spill] sm:$0xff] %v16158_v4  ;;  %v16168_v17 = vrot.slane %v3606_v29, %v15442_v34  ;;  %v16171_v42 = vrot.slane %v3607_v20, %v15442_v34  ;;  %v1438_v6 = vrot.slane %v1424_v21, %v15439_v32  ;;  %v20135_v21 = vld [vmem:[#allocation20_spill] sm:$0xff] }
 0x25b   : > { %v1497_v44 = vrot.slane %v838_v16, %v15439_v32  ;;  %v16176_v22 = vrot.slane %v1490_v54, %v15439_v32  ;;  %v1453_v62 = vrot.slane %v1439_v14, %v15439_v32  ;;  %14002 = vmatmul.mubr.msk.bf16.vlgmr.msra.gmra.mrb[36].mxu0 %vm7152_vm1, %v2772_v0  ;;  %v16181_v38 = vrot.slane %v3641_v46, %v15439_v32 }
 0x25c   : > { %20131 = vst [vmem:[#allocation41_spill] sm:$0xff] %v16168_v17  ;;  %20132 = vst [vmem:[#allocation42_spill] sm:$0xff] %v16171_v42  ;;  %v1454_v19 = vcombine.low %v1431_v2, %v1446_v5  ;;  %v1455_v40 = vcombine.high %v1431_v2, %v1446_v5  ;;  %v1505_v60 = vcombine.high %v846_v3, %v15437_v31  ;;  %14013 = vmatprep.mubr.msk.bf16.mxu0 %vm15070_vm0, %v20098_v27  ;;  %v20142_v42 = vld [vmem:[#allocation21_spill] sm:$0xff] }
 0x25d   : > { %v3656_v29 = vcombine.low %v3633_v13, %v3648_v18  ;;  %v3657_v20 = vcombine.high %v3633_v13, %v3648_v18  ;;  %v1512_v14 = vrot.slane %v846_v3, %v15439_v32  ;;  %v20133_v46 = vcombine.low %v15751_v55, %v15754_v48 }
 0x25e   : > { %v20134_v13 = vcombine.high %v15751_v55, %v15754_v48  ;;  %v1470_v2 = vcombine.low %v1438_v6, %v1453_v62  ;;  %v20136_v54 = vcombine.low %v15759_v41, %v20135_v21  ;;  %v20137_v3 = vcombine.high %v15759_v41, %v20135_v21  ;;  %v16235_v41 = vpop.f32.mrb[8].mxu1 }
 0x25f   : > { %v4295_v5 = vrot.slane %v20133_v46, %v15439_v32  ;;  %v1462_v46 = vrot.slane %v1454_v19, %v15442_v34  ;;  %v1469_v4 = vrot.slane %v1455_v40, %v15442_v34  ;;  %v1471_v55 = vcombine.high %v1438_v6, %v1453_v62  ;;  %20143 = vst [vmem:[#allocation21_spill] sm:$0xff] %v16235_v41  ;;  %v16241_v24 = vpop.f32.mrb[9].mxu1 }
 0x260   : > { %v4303_v18 = vrot.slane %v20134_v13, %v15439_v32  ;;  %v4311_v16 = vrot.slane %v20136_v54, %v15439_v32  ;;  %v4319_v30 = vrot.slane %v20137_v3, %v15439_v32  ;;  %v1519_v48 = vrot.slane %v1505_v60, %v15439_v32  ;;  %20144 = vst [vmem:[#allocation44_spill] sm:$0xff] %v16241_v24 }
 0x261   : > { %v16215_v13 = vrot.slane %v3656_v29, %v15442_v34  ;;  %v16218_v0 = vrot.slane %v3657_v20, %v15442_v34  ;;  %v3672_v54 = vcombine.low %v16164_v9, %v16181_v38  ;;  %v1520_v21 = vcombine.low %v1497_v44, %v1512_v14 }
 0x262   : > { %v4320_v3 = vcombine.low %v4295_v5, %v4303_v18  ;;  %v20140_v6 = vcombine.low %v15766_v58, %v15781_v23  ;;  %v20141_v19 = vcombine.high %v15766_v58, %v15781_v23  ;;  %v1478_v60 = vrot.slane %v1470_v2, %v15442_v34 }
 0x263   : > { %20138 = vst [vmem:[#allocation20_spill] sm:$0xff] %v16215_v13  ;;  %20139 = vst [vmem:[#allocation43_spill] sm:$0xff] %v16218_v0  ;;  %v1521_v29 = vcombine.high %v1497_v44, %v1512_v14  ;;  %v4328_v20 = vcombine.low %v4311_v16, %v4319_v30  ;;  %v4354_v17 = vcombine.low %v20142_v42, %v15817_v59  ;;  %v2867_v30 = vpop.permute.xlu0 %2866  ;;  %v2761_v44 = vshrl.u32 %v16086_v28, 16  ;;  %v16247_v14 = vpop.f32.mrb[10].mxu1 }
 0x264   : > { %v4345_v62 = vrot.slane %v20140_v6, %v15439_v32  ;;  %v4353_v40 = vrot.slane %v20141_v19, %v15439_v32  ;;  %v1485_v5 = vrot.slane %v1471_v55, %v15442_v34  ;;  %v1536_v18 = vcombine.low %v16176_v22, %v1519_v48  ;;  %20145 = vst [vmem:[#allocation45_spill] sm:$0xff] %v16247_v14 }
 0x265   : > { %v2352_v11 = vcombine.low %v1462_v46, %v1469_v4  ;;  %v13606_v6 = vcombine.high %v20142_v42, %v15817_v59  ;;  %v1537_v58 = vcombine.high %v16176_v22, %v1519_v48  ;;  %v4361_v23 = vrot.slane %v4354_v17, %v15439_v32  ;;  %v16251_v59 = vpop.f32.mrb[11].mxu1 }
 0x266   : > { %v2762_v16 = vshrl.u32 %v16090_v52, 16  ;;  %v1528_v2 = vrot.slane %v1520_v21, %v15442_v34  ;;  %v13579_v55 = vcombine.high %v1462_v46, %v1469_v4  ;;  %v4370_v41 = vcombine.low %v4345_v62, %v4353_v40  ;;  %20146 = vst [vmem:[#allocation46_spill] sm:$0xff] %v16251_v59  ;;  %v2883_v46 = vpop.permute.xlu1 %2882  ;;  %v20160_v59 = vld [vmem:[#allocation24_spill] sm:$0xff] }
 0x267   : > { %v4369_v19 = vrot.slane %v13606_v6, %v15439_v32  ;;  %v1535_v42 = vrot.slane %v1521_v29, %v15442_v34  ;;  %v4903_v17 = vshrl.u32 %v15965_v51, 16  ;;  %v4904_v48 = vshrl.u32 %v15967_v56, 16 }
 0x268   : > { %v2763_v22 = vpack.i.b16 %v2762_v16, %v2761_v44  ;;  %v16257_v28 = vrot.slane %v3672_v54, %v15442_v34  ;;  %v2368_v52 = vcombine.low %v1478_v60, %v1485_v5  ;;  %v16260_v24 = vrot.slane %v4328_v20, %v15442_v34 }
 0x269   : > { %v4378_v4 = vcombine.low %v4361_v23, %v4369_v19  ;;  %v1544_v21 = vrot.slane %v1536_v18, %v15442_v34  ;;  %v1551_v62 = vrot.slane %v1537_v58, %v15442_v34  ;;  %v13580_v40 = vcombine.high %v1478_v60, %v1485_v5  ;;  %v20150_v60 = vld [vmem:[#allocation13_spill] sm:$0xff]  ;;  %v2899_v23 = vpop.permute.xlu0 %2898 }
 0x26a   : > { %20147 = vst [vmem:[#allocation47_spill] sm:$0xff] %v16257_v28  ;;  %13984 = vmatmul.mubr.msk.bf16.vlgmr.msra.gmra.mrb[28].mxu1 %vm7152_vm1, %v2763_v22  ;;  %v4905_v29 = vpack.i.b16 %v4904_v48, %v4903_v17  ;;  %v16266_v51 = vrot.slane %v2352_v11, %v15439_v32  ;;  %v4327_v56 = vrot.slane %v4320_v3, %v15442_v34  ;;  %v725_v17 = vpop.permute.xlu1 %724 }
 0x26b   : > { %v4377_v54 = vrot.slane %v4370_v41, %v15442_v34  ;;  %v4385_v20 = vrot.slane %v4378_v4, %v15442_v34  ;;  %13995 = vmatprep.mubr.msk.bf16.mxu1 %vm15070_vm0, %v20098_v27  ;;  %v16274_v18 = vrot.slane %v13579_v55, %v15439_v32  ;;  %v2402_v6 = vcombine.low %v1528_v2, %v1535_v42 }
 0x26c   : > { %20148 = vst [vmem:[#allocation48_spill] sm:$0xff] %v16266_v51  ;;  %v2986_v5 = vpack.i.b16 %v2867_v30, %v20150_v60  ;;  %v7392_v58 = vsel %vm7152_vm1, %v4905_v29, 0  ;;  %v13581_v11 = vcombine.high %v1528_v2, %v1535_v42  ;;  %v16279_v44 = vcombine.low %v4327_v56, %v16260_v24 }
 0x26d   : > { %20149 = vst [vmem:[#allocation49_spill] sm:$0xff] %v16274_v18  ;;  %v16281_v3 = vcombine.low %v4377_v54, %v4385_v20  ;;  %v2989_v41 = vshrl.u32 %v2867_v30, 16  ;;  %13994 = vmatpush3.bf16.xpose.msra.mxu1 %v7392_v58  ;;  %v16284_v16 = vrot.slane %v2368_v52, %v15439_v32  ;;  %v16287_v55 = vrot.slane %v13580_v40, %v15439_v32  ;;  %v20164_v18 = vld [vmem:[#allocation23_spill] sm:$0xff] }
 0x26e   : > { %v2418_v19 = vcombine.low %v1544_v21, %v1551_v62  ;;  %v13582_v22 = vcombine.high %v1544_v21, %v1551_v62  ;;  %14005 = vmatprep.subr.bf16.mxu1 %v20098_v27  ;;  %v2996_v42 = vshrl.u32 %v2883_v46, 16  ;;  %v2994_v48 = vpack.i.b16 %v2899_v23, %v2883_v46 }
 0x26f   : > { %20151 = vst [vmem:[#allocation13_spill] sm:$0xff] %v16284_v16  ;;  %20152 = vst [vmem:[#allocation50_spill] sm:$0xff] %v16287_v55  ;;  %v4914_v2 = vpack.i.b16 %v16281_v3, %v16279_v44  ;;  %v2997_v4 = vshrl.u32 %v2899_v23, 16  ;;  %v20153_v30 = vcombine.high %v16164_v9, %v16181_v38  ;;  %v3692_v62 = vcombine.high %v2986_v5, %v15437_v31  ;;  %v20159_v23 = vld [vmem:[#allocation12_spill] sm:$0xff] }
 0x270   : > { %v16306_v46 = vrot.slane %v2402_v6, %v15439_v32  ;;  %v20155_v9 = vshrl.u32 %v20150_v60, 16  ;;  %v16317_v21 = vrot.slane %v2418_v19, %v15439_v32  ;;  %v16320_v40 = vrot.slane %v13582_v22, %v15439_v32  ;;  %v20158_v60 = vld [vmem:[#allocation28_spill] sm:$0xff]  ;;  %v20161_v22 = vld [vmem:[#allocation25_spill] sm:$0xff] }
 0x271   : > { %v16296_v52 = vrot.slane %v20153_v30, %v15442_v34  ;;  %v7533_v58 = vsel %vm7152_vm1, %v4914_v2, 0  ;;  %v16314_v30 = vrot.slane %v13581_v11, %v15439_v32  ;;  %v853_v6 = vshrl.u32 %v725_v17, 16 }
 0x272   : > { %v2990_v38 = vpack.i.b16 %v2989_v41, %v20155_v9  ;;  %20156 = vst [vmem:[#allocation52_spill] sm:$0xff] %v16317_v21  ;;  %20157 = vst [vmem:[#allocation53_spill] sm:$0xff] %v16320_v40  ;;  %14012 = vmatpush3.bf16.xpose.msra.mxu0 %v7533_v58  ;;  %v2998_v29 = vpack.i.b16 %v2997_v4, %v2996_v42  ;;  %v3707_v2 = vcombine.high %v2994_v48, %v15437_v31  ;;  %v20166_v21 = vld [vmem:[#allocation26_spill] sm:$0xff]  ;;  %v20167_v40 = vld [vmem:[#allocation27_spill] sm:$0xff] }
 0x273   : > { %20154 = vst [vmem:[#allocation51_spill] sm:$0xff] %v16296_v52  ;;  %v2242_v41 = vcombine.low %v20158_v60, %v15875_v49  ;;  %14023 = vmatprep.subr.bf16.mxu0 %v20098_v27  ;;  %v3699_v9 = vrot.slane %v2986_v5, %v15439_v32  ;;  %v3706_v11 = vrot.slane %v3692_v62, %v15439_v32  ;;  %v20163_v60 = vld [vmem:[#allocation22_spill] sm:$0xff]  ;;  %v757_v62 = vpop.permute.xlu1 %756 }
 0x274   : > { %v850_v19 = vpack.i.b16 %v725_v17, %v20159_v23  ;;  %v20162_v14 = vcombine.low %v20160_v59, %v20161_v22  ;;  %v3758_v42 = vcombine.high %v2990_v38, %v15437_v31  ;;  %v3765_v4 = vrot.slane %v2990_v38, %v15439_v32  ;;  %v741_v17 = vpop.permute.xlu0 %740 }
 0x275   : > { %v3714_v49 = vrot.slane %v2994_v48, %v15439_v32  ;;  %v20165_v5 = vcombine.low %v20163_v60, %v20164_v18  ;;  %v20168_v59 = vcombine.low %v20166_v21, %v20167_v40  ;;  %v16351_v22 = vrot.slane %v2242_v41, %v15442_v34 }
 0x276   : > { %v16333_v58 = vrot.slane %v20162_v14, %v15442_v34  ;;  %v16354_v38 = vcombine.high %v4327_v56, %v16260_v24  ;;  %v16356_v48 = vcombine.high %v4377_v54, %v4385_v20  ;;  %v20171_v18 = vshrl.u32 %v20159_v23, 16 }
 0x277   : > { %v16342_v51 = vrot.slane %v20165_v5, %v15442_v34  ;;  %v16348_v14 = vrot.slane %v20168_v59, %v15442_v34  ;;  %v3721_v5 = vrot.slane %v3707_v2, %v15439_v32  ;;  %v3773_v55 = vcombine.high %v2998_v29, %v15437_v31 }
 0x278   : > { %20169 = vst [vmem:[#allocation28_spill] sm:$0xff] %v16354_v38  ;;  %20170 = vst [vmem:[#allocation12_spill] sm:$0xff] %v16356_v48  ;;  %v854_v60 = vpack.i.b16 %v853_v6, %v20171_v18  ;;  %v3780_v16 = vrot.slane %v2998_v29, %v15439_v32  ;;  %v4920_v24 = vpack.i.b16 %v16356_v48, %v16354_v38  ;;  %v2767_v54 = vshrl.u32 %v16033_v12, 16 }
 0x279   : > { %v16365_v40 = vcombine.low %v16342_v51, %v16333_v58  ;;  %v16369_v21 = vcombine.low %v16348_v14, %v16351_v22  ;;  %v858_v56 = vpack.i.b16 %v757_v62, %v741_v17  ;;  %v2768_v20 = vshrl.u32 %v16037_v1, 16 }
 0x27a   : > { %v4909_v23 = vshrl.u32 %v16040_v53, 16  ;;  %v4910_v29 = vshrl.u32 %v16042_v61, 16  ;;  %v3722_v6 = vcombine.low %v3699_v9, %v3714_v49  ;;  %v861_v41 = vshrl.u32 %v757_v62, 16  ;;  %v16383_v53 = vpop.f32.mrb[12].mxu1 }
 0x27b   : > { %v2778_v2 = vpack.i.b16 %v16369_v21, %v16365_v40  ;;  %v860_v59 = vshrl.u32 %v741_v17, 16  ;;  %v3723_v18 = vcombine.high %v3699_v9, %v3714_v49  ;;  %v1571_v28 = vcombine.high %v858_v56, %v15437_v31  ;;  %20172 = vst [vmem:[#allocation24_spill] sm:$0xff] %v16383_v53  ;;  %v16388_v49 = vpop.f32.mrb[13].mxu1 }
 0x27c   : > { %v2769_v52 = vpack.i.b16 %v2768_v20, %v2767_v54  ;;  %v4911_v0 = vpack.i.b16 %v4910_v29, %v4909_v23  ;;  %v1556_v13 = vcombine.high %v850_v19, %v15437_v31  ;;  %v3738_v12 = vcombine.low %v3706_v11, %v3721_v5  ;;  %20173 = vst [vmem:[#allocation25_spill] sm:$0xff] %v16388_v49  ;;  %v16394_v54 = vpop.f32.mrb[14].mxu1 }
 0x27d   : > { %v3739_v48 = vcombine.high %v3706_v11, %v3721_v5  ;;  %14014 = vmatmul.mubr.msk.bf16.vlgmr.msra.gmra.mrb[40].mxu0 %vm7152_vm1, %v2778_v2  ;;  %v7627_v1 = vsel %vm7152_vm1, %v4920_v24, 0  ;;  %v3787_v61 = vrot.slane %v3773_v55, %v15439_v32  ;;  %v3788_v38 = vcombine.low %v3765_v4, %v3780_v16  ;;  %20174 = vst [vmem:[#allocation22_spill] sm:$0xff] %v16394_v54 }
 0x27e   : > { %v3789_v62 = vcombine.high %v3765_v4, %v3780_v16  ;;  %14024 = vmatpush3.bf16.xpose.msra.mxu0 %v7627_v1  ;;  %13996 = vmatmul.mubr.msk.bf16.vlgmr.msra.gmra.mrb[32].mxu1 %vm7152_vm1, %v2769_v52  ;;  %v7486_v9 = vsel %vm7152_vm1, %v4911_v0, 0  ;;  %v3772_v17 = vrot.slane %v3758_v42, %v15439_v32  ;;  %v1622_v5 = vcombine.high %v854_v60, %v15437_v31  ;;  %v16406_v42 = vpop.f32.mrb[15].mxu1  ;;  %v2869_v1 = vpop.permute.xlu0 %2868 }
 0x27f   : > { %v862_v24 = vpack.i.b16 %v861_v41, %v860_v59  ;;  %14006 = vmatpush3.bf16.xpose.msra.mxu1 %v7486_v9  ;;  %v16397_v16 = vrot.slane %v3722_v6, %v15442_v34  ;;  %v16400_v55 = vrot.slane %v3723_v18, %v15442_v34  ;;  %v1578_v0 = vrot.slane %v858_v56, %v15439_v32 }
 0x280   : > { %v1585_v52 = vrot.slane %v1571_v28, %v15439_v32  ;;  %14025 = vmatprep.mubr.msk.bf16.mxu0 %vm15070_vm0, %v20098_v27  ;;  %20175 = vst [vmem:[#allocation23_spill] sm:$0xff] %v16406_v42  ;;  %v1563_v4 = vrot.slane %v850_v19, %v15439_v32  ;;  %v1570_v20 = vrot.slane %v1556_v13, %v15439_v32 }
 0x281   : > { %v16411_v23 = vrot.slane %v3738_v12, %v15442_v34  ;;  %v16414_v29 = vrot.slane %v3739_v48, %v15442_v34  ;;  %14035 = vmatprep.subr.bf16.mxu0 %v20098_v27  ;;  %v16418_v56 = vrot.slane %v3788_v38, %v15442_v34  ;;  %v16421_v28 = vrot.slane %v3789_v62, %v15442_v34 }
 0x282   : > { %v3804_v6 = vcombine.low %v3772_v17, %v3787_v61  ;;  %v3805_v2 = vcombine.high %v3772_v17, %v3787_v61  ;;  %14007 = vmatprep.mubr.msk.bf16.mxu1 %vm15070_vm0, %v20098_v27  ;;  %v1629_v13 = vrot.slane %v854_v60, %v15439_v32  ;;  %v16427_v19 = vrot.slane %v1622_v5, %v15439_v32  ;;  %v20176_v60 = vld [vmem:[#allocation14_spill] sm:$0xff] }
 0x283   : > { %v1637_v48 = vcombine.high %v862_v24, %v15437_v31  ;;  %v1644_v41 = vrot.slane %v862_v24, %v15439_v32  ;;  %14017 = vmatprep.subr.bf16.mxu1 %v20098_v27  ;;  %v1586_v59 = vcombine.low %v1563_v4, %v1578_v0  ;;  %v1587_v18 = vcombine.high %v1563_v4, %v1578_v0  ;;  %v16470_v0 = vpop.permute.xlu1 %2884 }
 0x284   : > { %v1602_v12 = vcombine.low %v1570_v20, %v1585_v52  ;;  %v1603_v9 = vcombine.high %v1570_v20, %v1585_v52  ;;  %v16441_v17 = vrot.slane %v3804_v6, %v15442_v34  ;;  %v16444_v5 = vrot.slane %v3805_v2, %v15442_v34 }
 0x285   : > { %v1651_v4 = vrot.slane %v1637_v48, %v15439_v32  ;;  %v1652_v61 = vcombine.low %v1629_v13, %v1644_v41  ;;  %v16452_v38 = vpack.i.b16 %v2869_v1, %v20176_v60  ;;  %v3005_v62 = vshrl.u32 %v2869_v1, 16 }
 0x286   : > { %v1594_v52 = vrot.slane %v1586_v59, %v15442_v34  ;;  %v1601_v20 = vrot.slane %v1587_v18, %v15442_v34  ;;  %v1610_v6 = vrot.slane %v1602_v12, %v15442_v34  ;;  %v1653_v2 = vcombine.high %v1629_v13, %v1644_v41 }
 0x287   : > { %v1617_v11 = vrot.slane %v1603_v9, %v15442_v34  ;;  %v16460_v24 = vcombine.high %v16342_v51, %v16333_v58  ;;  %v16464_v48 = vcombine.high %v16348_v14, %v16351_v22  ;;  %v20177_v1 = vcombine.low %v15947_v50, %v15953_v43 }
 0x288   : > { %v20178_v13 = vcombine.high %v15947_v50, %v15953_v43  ;;  %v20179_v51 = vcombine.low %v15982_v8, %v15988_v26  ;;  %v20180_v14 = vcombine.high %v15982_v8, %v15988_v26  ;;  %v20181_v18 = vcombine.low %v16001_v33, %v16004_v7 }
 0x289   : > { %v4395_v59 = vrot.slane %v20177_v1, %v15439_v32  ;;  %v2784_v9 = vpack.i.b16 %v16464_v48, %v16460_v24  ;;  %v20182_v50 = vcombine.high %v16001_v33, %v16004_v7  ;;  %v4454_v1 = vcombine.low %v16029_v35, %v16049_v25 }
 0x28a   : > { %v4403_v41 = vrot.slane %v20178_v13, %v15439_v32  ;;  %v4411_v58 = vrot.slane %v20179_v51, %v15439_v32  ;;  %v4419_v22 = vrot.slane %v20180_v14, %v15439_v32  ;;  %v4445_v12 = vrot.slane %v20181_v18, %v15439_v32 }
 0x28b   : > { %v4453_v43 = vrot.slane %v20182_v50, %v15439_v32  ;;  %v13610_v8 = vcombine.high %v16029_v35, %v16049_v25  ;;  %v1668_v26 = vcombine.low %v16427_v19, %v1651_v4  ;;  %v2452_v13 = vcombine.low %v1594_v52, %v1601_v20  ;;  %14026 = vmatmul.mubr.msk.bf16.vlgmr.msra.gmra.mrb[44].mxu0 %vm7152_vm1, %v2784_v9 }
 0x28c   : > { %v13583_v51 = vcombine.high %v1594_v52, %v1601_v20  ;;  %v4428_v14 = vcombine.low %v4411_v58, %v4419_v22  ;;  %v4420_v18 = vcombine.low %v4395_v59, %v4403_v41  ;;  %v4461_v42 = vrot.slane %v4454_v1, %v15439_v32  ;;  %14037 = vmatprep.mubr.msk.bf16.mxu0 %vm15070_vm0, %v20098_v27  ;;  %v2901_v22 = vpop.permute.xlu0 %2900 }
 0x28d   : > { %v4469_v49 = vrot.slane %v13610_v8, %v15439_v32  ;;  %v4470_v33 = vcombine.low %v4445_v12, %v4453_v43  ;;  %v1660_v7 = vrot.slane %v1652_v61, %v15442_v34  ;;  %v1667_v50 = vrot.slane %v1653_v2, %v15442_v34 }
 0x28e   : > { %v1669_v54 = vcombine.high %v16427_v19, %v1651_v4  ;;  %v3012_v35 = vshrl.u32 %v16470_v0, 16  ;;  %v2468_v25 = vcombine.low %v1610_v6, %v1617_v11  ;;  %v13584_v52 = vcombine.high %v1610_v6, %v1617_v11  ;;  %v727_v4 = vpop.permute.xlu1 %726 }
 0x28f   : > { %v16509_v20 = vrot.slane %v4428_v14, %v15442_v34  ;;  %v4478_v59 = vcombine.low %v4461_v42, %v4469_v49  ;;  %v1676_v41 = vrot.slane %v1668_v26, %v15442_v34  ;;  %v16513_v58 = vrot.slane %v2452_v13, %v15439_v32 }
 0x290   : > { %v20183_v61 = vshrl.u32 %v20176_v60, 16  ;;  %v3824_v19 = vcombine.high %v16452_v38, %v15437_v31  ;;  %v16520_v12 = vrot.slane %v13583_v51, %v15439_v32  ;;  %v16523_v11 = vrot.slane %v4420_v18, %v15442_v34 }
 0x291   : > { %v16526_v49 = vrot.slane %v4470_v33, %v15442_v34  ;;  %v16529_v42 = vrot.slane %v4478_v59, %v15442_v34  ;;  %v1683_v60 = vrot.slane %v1669_v54, %v15442_v34  ;;  %v2773_v6 = vshrl.u32 %v16149_v57, 16  ;;  %v743_v59 = vpop.permute.xlu0 %742 }
 0x292   : > { %v3006_v2 = vpack.i.b16 %v3005_v62, %v20183_v61  ;;  %20184 = vst [vmem:[#allocation26_spill] sm:$0xff] %v16520_v12  ;;  %v2502_v62 = vcombine.low %v1660_v7, %v1667_v50  ;;  %v2774_v9 = vshrl.u32 %v16142_v45, 16  ;;  %v16535_v43 = vrot.slane %v2468_v25, %v15439_v32 }
 0x293   : > { %v16538_v1 = vrot.slane %v13584_v52, %v15439_v32  ;;  %v16542_v8 = vcombine.low %v16523_v11, %v16509_v20  ;;  %v16546_v26 = vcombine.low %v16526_v49, %v16529_v42  ;;  %v13585_v54 = vcombine.high %v1660_v7, %v1667_v50  ;;  %v759_v52 = vpop.permute.xlu1 %758 }
 0x294   : > { %20185 = vst [vmem:[#allocation27_spill] sm:$0xff] %v16535_v43  ;;  %v16550_v57 = vrot.slane %v16452_v38, %v15439_v32  ;;  %v869_v45 = vshrl.u32 %v727_v4, 16  ;;  %v2775_v13 = vpack.i.b16 %v2774_v9, %v2773_v6  ;;  %v3010_v18 = vpack.i.b16 %v2901_v22, %v16470_v0 }
 0x295   : > { %20186 = vst [vmem:[#allocation14_spill] sm:$0xff] %v16538_v1  ;;  %v4926_v14 = vpack.i.b16 %v16546_v26, %v16542_v8  ;;  %v4916_v33 = vshrl.u32 %v16281_v3, 16  ;;  %v16559_v25 = vrot.slane %v2502_v62, %v15439_v32  ;;  %v2518_v7 = vcombine.low %v1676_v41, %v1683_v60 }
 0x296   : > { %v13586_v50 = vcombine.high %v1676_v41, %v1683_v60  ;;  %v866_v38 = vpack.i.b16 %v727_v4, %v15375_v10  ;;  %14008 = vmatmul.mubr.msk.bf16.vlgmr.msra.gmra.mrb[36].mxu1 %vm7152_vm1, %v2775_v13  ;;  %v3013_v9 = vshrl.u32 %v2901_v22, 16  ;;  %v4915_v0 = vshrl.u32 %v16279_v44, 16 }
 0x297   : > { %20187 = vst [vmem:[#allocation54_spill] sm:$0xff] %v16559_v25  ;;  %v7721_v6 = vsel %vm7152_vm1, %v4926_v14, 0  ;;  %14019 = vmatprep.mubr.msk.bf16.mxu1 %vm15070_vm0, %v20098_v27  ;;  %v16570_v3 = vrot.slane %v13585_v54, %v15439_v32  ;;  %v16573_v41 = vrot.slane %v3824_v19, %v15439_v32  ;;  %v3890_v4 = vcombine.high %v3006_v2, %v15437_v31 }
 0x298   : > { %14036 = vmatpush3.bf16.xpose.msra.mxu0 %v7721_v6  ;;  %v20189_v60 = vshrl.u32 %v15375_v10, 16  ;;  %v3846_v13 = vrot.slane %v3010_v18, %v15439_v32  ;;  %v4917_v22 = vpack.i.b16 %v4916_v33, %v4915_v0  ;;  %v877_v14 = vshrl.u32 %v759_v52, 16 }
 0x299   : > { %20188 = vst [vmem:[#allocation55_spill] sm:$0xff] %v16570_v3  ;;  %v874_v44 = vpack.i.b16 %v759_v52, %v743_v59  ;;  %14047 = vmatprep.subr.bf16.mxu0 %v20098_v27  ;;  %v16581_v61 = vrot.slane %v2518_v7, %v15439_v32  ;;  %v16584_v54 = vrot.slane %v13586_v50, %v15439_v32  ;;  %v876_v33 = vshrl.u32 %v743_v59, 16 }
 0x29a   : > { %v870_v62 = vpack.i.b16 %v869_v45, %v20189_v60  ;;  %v3897_v19 = vrot.slane %v3006_v2, %v15439_v32  ;;  %v1688_v6 = vcombine.high %v866_v38, %v15437_v31  ;;  %v3014_v51 = vpack.i.b16 %v3013_v9, %v3012_v35 }
 0x29b   : > { %v3839_v10 = vcombine.high %v3010_v18, %v15437_v31  ;;  %v7580_v45 = vsel %vm7152_vm1, %v4917_v22, 0  ;;  %v16593_v0 = vrot.slane %v3890_v4, %v15439_v32  ;;  %v1703_v50 = vcombine.high %v874_v44, %v15437_v31 }
 0x29c   : > { %v1754_v7 = vcombine.high %v870_v62, %v15437_v31  ;;  %14018 = vmatpush3.bf16.xpose.msra.mxu1 %v7580_v45  ;;  %v1695_v2 = vrot.slane %v866_v38, %v15439_v32  ;;  %v3854_v35 = vcombine.low %v16550_v57, %v3846_v13  ;;  %v878_v9 = vpack.i.b16 %v877_v14, %v876_v33 }
 0x29d   : > { %v2342_v18 = vcombine.low %v16121_v37, %v16135_v36  ;;  %14029 = vmatprep.subr.bf16.mxu1 %v20098_v27  ;;  %v1702_v59 = vrot.slane %v1688_v6, %v15439_v32  ;;  %v1761_v4 = vrot.slane %v870_v62, %v15439_v32  ;;  %v3855_v60 = vcombine.high %v16550_v57, %v3846_v13 }
 0x29e   : > { %v1710_v22 = vrot.slane %v874_v44, %v15439_v32  ;;  %v3853_v45 = vrot.slane %v3839_v10, %v15439_v32  ;;  %v3912_v38 = vrot.slane %v3014_v51, %v15439_v32  ;;  %v20190_v14 = vcombine.low %v16080_v47, %v16098_v15  ;;  %v20192_v10 = vld [vmem:[#allocation35_spill] sm:$0xff] }
 0x29f   : > { %v16615_v37 = vrot.slane %v2342_v18, %v15442_v34  ;;  %v1768_v36 = vrot.slane %v1754_v7, %v15439_v32  ;;  %v1717_v62 = vrot.slane %v1703_v50, %v15439_v32  ;;  %v1769_v57 = vcombine.high %v878_v9, %v15437_v31  ;;  %v20193_v7 = vld [vmem:[#allocation37_spill] sm:$0xff] }
 0x2a0   : > { %v16612_v33 = vrot.slane %v20190_v14, %v15442_v34  ;;  %v20191_v13 = vcombine.low %v16108_v63, %v16113_v39  ;;  %v16627_v6 = vrot.slane %v3854_v35, %v15442_v34  ;;  %v3905_v47 = vcombine.high %v3014_v51, %v15437_v31 }
 0x2a1   : > { %v1776_v15 = vrot.slane %v878_v9, %v15439_v32  ;;  %v20194_v18 = vcombine.low %v20192_v10, %v20193_v7  ;;  %v16638_v14 = vrot.slane %v3855_v60, %v15442_v34  ;;  %v1718_v52 = vcombine.low %v1695_v2, %v1710_v22 }
 0x2a2   : > { %v16624_v44 = vrot.slane %v20191_v13, %v15442_v34  ;;  %v1719_v63 = vcombine.high %v1695_v2, %v1710_v22  ;;  %v3870_v35 = vcombine.low %v16573_v41, %v3853_v45  ;;  %v3871_v51 = vcombine.high %v16573_v41, %v3853_v45 }
 0x2a3   : > { %v16635_v50 = vrot.slane %v20194_v18, %v15442_v34  ;;  %20195 = vst [vmem:[#allocation35_spill] sm:$0xff] %v16638_v14  ;;  %v3920_v9 = vcombine.low %v3897_v19, %v3912_v38  ;;  %v1734_v10 = vcombine.low %v1702_v59, %v1717_v62  ;;  %v1735_v7 = vcombine.high %v1702_v59, %v1717_v62 }
 0x2a4   : > { %v16642_v39 = vcombine.low %v16624_v44, %v16615_v37  ;;  %v1783_v60 = vrot.slane %v1769_v57, %v15439_v32  ;;  %v16653_v2 = vcombine.high %v16526_v49, %v16529_v42  ;;  %v3919_v22 = vrot.slane %v3905_v47, %v15439_v32 }
 0x2a5   : > { %v16648_v13 = vcombine.low %v16635_v50, %v16612_v33  ;;  %v3921_v18 = vcombine.high %v3897_v19, %v3912_v38  ;;  %v1784_v53 = vcombine.low %v1761_v4, %v1776_v15  ;;  %v1785_v3 = vcombine.high %v1761_v4, %v1776_v15 }
 0x2a6   : > { %v1726_v41 = vrot.slane %v1718_v52, %v15442_v34  ;;  %v1733_v45 = vrot.slane %v1719_v63, %v15442_v34  ;;  %v16662_v59 = vcombine.high %v16523_v11, %v16509_v20  ;;  %v16665_v62 = vrot.slane %v3870_v35, %v15442_v34 }
 0x2a7   : > { %v2790_v25 = vpack.i.b16 %v16642_v39, %v16648_v13  ;;  %v16668_v49 = vrot.slane %v3871_v51, %v15442_v34  ;;  %v16671_v42 = vrot.slane %v3920_v9, %v15442_v34  ;;  %v1742_v52 = vrot.slane %v1734_v10, %v15442_v34  ;;  %v16690_v9 = vpop.permute.xlu1 %2886  ;;  %v2871_v10 = vpop.permute.xlu0 %2870 }
 0x2a8   : > { %v1749_v4 = vrot.slane %v1735_v7, %v15442_v34  ;;  %v1800_v38 = vcombine.low %v1768_v36, %v1783_v60  ;;  %v4932_v20 = vpack.i.b16 %v16653_v2, %v16662_v59  ;;  %v16681_v11 = vrot.slane %v3921_v18, %v15442_v34 }
 0x2a9   : > { %20196 = vst [vmem:[#allocation37_spill] sm:$0xff] %v16671_v42  ;;  %14038 = vmatmul.mubr.msk.bf16.vlgmr.msra.gmra.mrb[48].mxu0 %vm7152_vm1, %v2790_v25  ;;  %v1792_v57 = vrot.slane %v1784_v53, %v15442_v34  ;;  %v1799_v47 = vrot.slane %v1785_v3, %v15442_v34  ;;  %v1801_v15 = vcombine.high %v1768_v36, %v1783_v60  ;;  %v2779_v7 = vshrl.u32 %v16365_v40, 16  ;;  %v20198_v3 = vld [vmem:[#allocation28_spill] sm:$0xff] }
 0x2aa   : > { %20197 = vst [vmem:[#allocation56_spill] sm:$0xff] %v16681_v11  ;;  %14049 = vmatprep.mubr.msk.bf16.mxu0 %vm15070_vm0, %v20098_v27  ;;  %v3936_v63 = vcombine.low %v16593_v0, %v3919_v22  ;;  %v3937_v35 = vcombine.high %v16593_v0, %v3919_v22  ;;  %v2552_v51 = vcombine.low %v1726_v41, %v1733_v45  ;;  %v7815_v25 = vsel %vm7152_vm1, %v4932_v20, 0  ;;  %v20199_v60 = vld [vmem:[#allocation12_spill] sm:$0xff] }
 0x2ab   : > { %14048 = vmatpush3.bf16.xpose.msra.mxu0 %v7815_v25  ;;  %v2780_v53 = vshrl.u32 %v16369_v21, 16  ;;  %v4921_v36 = vshrl.u32 %v20198_v3, 16  ;;  %v4922_v18 = vshrl.u32 %v20199_v60, 16  ;;  %v1808_v19 = vrot.slane %v1800_v38, %v15442_v34 }
 0x2ac   : > { %v13587_v1 = vcombine.high %v1726_v41, %v1733_v45  ;;  %v2568_v43 = vcombine.low %v1742_v52, %v1749_v4  ;;  %v13588_v0 = vcombine.high %v1742_v52, %v1749_v4  ;;  %14059 = vmatprep.subr.bf16.mxu0 %v20098_v27  ;;  %v1815_v22 = vrot.slane %v1801_v15, %v15442_v34 }
 0x2ad   : > { %v2602_v20 = vcombine.low %v1792_v57, %v1799_v47  ;;  %v2781_v12 = vpack.i.b16 %v2780_v53, %v2779_v7  ;;  %v4923_v25 = vpack.i.b16 %v4922_v18, %v4921_v36  ;;  %v16700_v40 = vrot.slane %v3936_v63, %v15442_v34  ;;  %v2903_v7 = vpop.permute.xlu0 %2902  ;;  %v20207_v36 = vld [vmem:[#allocation16_spill] sm:$0xff] }
 0x2ae   : > { %v13589_v38 = vcombine.high %v1792_v57, %v1799_v47  ;;  %v16707_v41 = vrot.slane %v3937_v35, %v15442_v34  ;;  %v16716_v15 = vrot.slane %v2552_v51, %v15439_v32  ;;  %v16719_v63 = vrot.slane %v13587_v1, %v15439_v32  ;;  %v729_v35 = vpop.permute.xlu1 %728 }
 0x2af   : > { %20200 = vst [vmem:[#allocation28_spill] sm:$0xff] %v16700_v40  ;;  %14020 = vmatmul.mubr.msk.bf16.vlgmr.msra.gmra.mrb[40].mxu1 %vm7152_vm1, %v2781_v12  ;;  %v7674_v4 = vsel %vm7152_vm1, %v4923_v25, 0  ;;  %v16722_v57 = vrot.slane %v2568_v43, %v15439_v32  ;;  %v16725_v47 = vrot.slane %v13588_v0, %v15439_v32  ;;  %v16728_v53 = vrot.slane %v2602_v20, %v15439_v32  ;;  %v20226_v40 = vld [vmem:[#allocation29_spill] sm:$0xff] }
 0x2b0   : > { %20201 = vst [vmem:[#allocation12_spill] sm:$0xff] %v16707_v41  ;;  %20202 = vst [vmem:[#allocation57_spill] sm:$0xff] %v16716_v15  ;;  %14030 = vmatpush3.bf16.xpose.msra.mxu1 %v7674_v4  ;;  %v2618_v12 = vcombine.low %v1808_v19, %v1815_v22  ;;  %v3018_v60 = vpack.i.b16 %v2871_v10, %v20207_v36  ;;  %v3021_v51 = vshrl.u32 %v2871_v10, 16  ;;  %14031 = vmatprep.mubr.msk.bf16.mxu1 %vm15070_vm0, %v20098_v27  ;;  %v20227_v41 = vld [vmem:[#allocation31_spill] sm:$0xff] }
 0x2b1   : > { %20203 = vst [vmem:[#allocation58_spill] sm:$0xff] %v16719_v63  ;;  %20204 = vst [vmem:[#allocation59_spill] sm:$0xff] %v16722_v57  ;;  %v16734_v1 = vrot.slane %v13589_v38, %v15439_v32  ;;  %v13590_v43 = vcombine.high %v1808_v19, %v1815_v22  ;;  %v16738_v18 = vcombine.high %v16635_v50, %v16612_v33  ;;  %14041 = vmatprep.subr.bf16.mxu1 %v20098_v27  ;;  %v20213_v19 = vld [vmem:[#allocation40_spill] sm:$0xff]  ;;  %v20225_v57 = vld [vmem:[#allocation47_spill] sm:$0xff] }
 0x2b2   : > { %20205 = vst [vmem:[#allocation60_spill] sm:$0xff] %v16725_v47  ;;  %20206 = vst [vmem:[#allocation61_spill] sm:$0xff] %v16728_v53  ;;  %v16742_v0 = vcombine.high %v16624_v44, %v16615_v37  ;;  %v3020_v20 = vshrl.u32 %v20207_v36, 16  ;;  %v885_v25 = vshrl.u32 %v729_v35, 16  ;;  %v3026_v38 = vpack.i.b16 %v2903_v7, %v16690_v9  ;;  %v20210_v36 = vld [vmem:[#allocation15_spill] sm:$0xff] }
 0x2b3   : > { %20208 = vst [vmem:[#allocation16_spill] sm:$0xff] %v16734_v1  ;;  %v3028_v50 = vshrl.u32 %v16690_v9, 16  ;;  %v16757_v44 = vrot.slane %v2618_v12, %v15439_v32  ;;  %v3956_v4 = vcombine.high %v3018_v60, %v15437_v31  ;;  %v884_v10 = vshrl.u32 %v20210_v36, 16 }
 0x2b4   : > { %v2796_v37 = vpack.i.b16 %v16742_v0, %v16738_v18  ;;  %v16759_v22 = vpack.i.b16 %v3021_v51, %v3020_v20  ;;  %v16764_v52 = vrot.slane %v13590_v43, %v15439_v32  ;;  %v16769_v9 = vpack.i.b16 %v729_v35, %v20210_v36  ;;  %v20212_v43 = vld [vmem:[#allocation39_spill] sm:$0xff] }
 0x2b5   : > { %20209 = vst [vmem:[#allocation62_spill] sm:$0xff] %v16757_v44  ;;  %v3029_v33 = vshrl.u32 %v2903_v7, 16  ;;  %v3963_v12 = vrot.slane %v3018_v60, %v15439_v32  ;;  %v16773_v51 = vpack.i.b16 %v885_v25, %v884_v10  ;;  %v3971_v20 = vcombine.high %v3026_v38, %v15437_v31  ;;  %v20216_v60 = vld [vmem:[#allocation41_spill] sm:$0xff]  ;;  %v20217_v10 = vld [vmem:[#allocation42_spill] sm:$0xff] }
 0x2b6   : > { %20211 = vst [vmem:[#allocation15_spill] sm:$0xff] %v16764_v52  ;;  %14050 = vmatmul.mubr.msk.bf16.vlgmr.msra.gmra.mrb[52].mxu0 %vm7152_vm1, %v2796_v37  ;;  %v3978_v21 = vrot.slane %v3026_v38, %v15439_v32  ;;  %v20214_v45 = vcombine.low %v20212_v43, %v20213_v19  ;;  %v20215_v7 = vcombine.high %v20212_v43, %v20213_v19  ;;  %v20220_v19 = vld [vmem:[#allocation20_spill] sm:$0xff]  ;;  %v20221_v43 = vld [vmem:[#allocation43_spill] sm:$0xff] }
 0x2b7   : > { %14061 = vmatprep.mubr.msk.bf16.mxu0 %vm15070_vm0, %v20098_v27  ;;  %v20218_v25 = vcombine.low %v20216_v60, %v20217_v10  ;;  %v20219_v38 = vcombine.high %v20216_v60, %v20217_v10  ;;  %v3970_v63 = vrot.slane %v3956_v4, %v15439_v32  ;;  %v4029_v15 = vrot.slane %v16759_v22, %v15439_v32 }
 0x2b8   : > { %v4495_v35 = vrot.slane %v20214_v45, %v15439_v32  ;;  %v4503_v37 = vrot.slane %v20215_v7, %v15439_v32  ;;  %v4022_v45 = vcombine.high %v16759_v22, %v15437_v31  ;;  %v20222_v7 = vcombine.low %v20220_v19, %v20221_v43 }
 0x2b9   : > { %v4511_v36 = vrot.slane %v20218_v25, %v15439_v32  ;;  %v4519_v3 = vrot.slane %v20219_v38, %v15439_v32  ;;  %v1820_v25 = vcombine.high %v16769_v9, %v15437_v31  ;;  %v3030_v53 = vpack.i.b16 %v3029_v33, %v3028_v50  ;;  %v20224_v38 = vld [vmem:[#allocation51_spill] sm:$0xff]  ;;  %v761_v33 = vpop.permute.xlu1 %760 }
 0x2ba   : > { %v4545_v1 = vrot.slane %v20222_v7, %v15439_v32  ;;  %v20223_v4 = vcombine.high %v20220_v19, %v20221_v43  ;;  %v16812_v10 = vrot.slane %v16769_v9, %v15439_v32  ;;  %v1886_v22 = vcombine.high %v16773_v51, %v15437_v31 }
 0x2bb   : > { %v4528_v47 = vcombine.low %v4511_v36, %v4519_v3  ;;  %v4554_v7 = vcombine.low %v20225_v57, %v20224_v38  ;;  %v13614_v44 = vcombine.high %v20225_v57, %v20224_v38  ;;  %v745_v3 = vpop.permute.xlu0 %744  ;;  %v3985_v50 = vrot.slane %v3971_v20, %v15439_v32 }
 0x2bc   : > { %v4553_v60 = vrot.slane %v20223_v4, %v15439_v32  ;;  %v3986_v36 = vcombine.low %v3963_v12, %v3978_v21  ;;  %v3987_v19 = vcombine.high %v3963_v12, %v3978_v21  ;;  %v4520_v43 = vcombine.low %v4495_v35, %v4503_v37  ;;  %v20229_v35 = vld [vmem:[#allocation30_spill] sm:$0xff] }
 0x2bd   : > { %v4561_v4 = vrot.slane %v4554_v7, %v15439_v32  ;;  %v4569_v9 = vrot.slane %v13614_v44, %v15439_v32  ;;  %v16825_v11 = vpack.c.bf16 %v20227_v41, %v20226_v40  ;;  %v4037_v42 = vcombine.high %v3030_v53, %v15437_v31  ;;  %v20230_v44 = vld [vmem:[#allocation32_spill] sm:$0xff] }
 0x2be   : > { %v4570_v52 = vcombine.low %v4545_v1, %v4553_v60  ;;  %v4044_v57 = vrot.slane %v3030_v53, %v15439_v32  ;;  %v16830_v38 = vrot.slane %v4528_v47, %v15442_v34  ;;  %v890_v20 = vpack.i.b16 %v761_v33, %v745_v3 }
 0x2bf   : > { %20228 = vst [vmem:[#allocation39_spill] sm:$0xff] %v16825_v11  ;;  %v4578_v14 = vcombine.low %v4561_v4, %v4569_v9  ;;  %v2785_v21 = vshrl.u32 %v16460_v24, 16  ;;  %v2786_v12 = vshrl.u32 %v16464_v48, 16  ;;  %v16836_v1 = vpack.c.bf16 %v20230_v44, %v20229_v35 }
 0x2c0   : > { %v4002_v37 = vcombine.low %v3970_v63, %v3985_v50  ;;  %v4003_v40 = vcombine.high %v3970_v63, %v3985_v50  ;;  %v893_v41 = vshrl.u32 %v761_v33, 16  ;;  %v892_v60 = vshrl.u32 %v745_v3, 16 }
 0x2c1   : > { %20231 = vst [vmem:[#allocation40_spill] sm:$0xff] %v16836_v1  ;;  %v16839_v7 = vrot.slane %v4520_v43, %v15442_v34  ;;  %v4577_v47 = vrot.slane %v4570_v52, %v15442_v34  ;;  %v4585_v53 = vrot.slane %v4578_v14, %v15442_v34  ;;  %v2787_v4 = vpack.i.b16 %v2786_v12, %v2785_v21 }
 0x2c2   : > { %4992 = vrot.lane.b32.xlu1 %v16836_v1, %s15067_s23  ;;  %v16846_v24 = vrot.slane %v3986_v36, %v15442_v34  ;;  %v4051_v48 = vrot.slane %v4037_v42, %v15439_v32  ;;  %v4052_v9 = vcombine.low %v4029_v15, %v4044_v57  ;;  %v4053_v63 = vcombine.high %v4029_v15, %v4044_v57 }
 0x2c3   : > { %5008 = vrot.lane.b32.xlu0 %v16836_v1, %s15068_s7  ;;  %v16852_v33 = vrot.slane %v3987_v19, %v15442_v34  ;;  %v16856_v14 = vcombine.low %v16839_v7, %v16830_v38  ;;  %v16858_v52 = vcombine.low %v4577_v47, %v4585_v53  ;;  %v1835_v3 = vcombine.high %v890_v20, %v15437_v31 }
 0x2c4   : > { %14032 = vmatmul.mubr.msk.bf16.vlgmr.msra.gmra.mrb[44].mxu1 %vm7152_vm1, %v2787_v4  ;;  %v4036_v42 = vrot.slane %v4022_v45, %v15439_v32  ;;  %v16864_v15 = vrot.slane %v4002_v37, %v15442_v34  ;;  %v16867_v50 = vrot.slane %v4003_v40, %v15442_v34  ;;  %v894_v36 = vpack.i.b16 %v893_v41, %v892_v60  ;;  %v20232_v40 = vld [vmem:[#allocation13_spill] sm:$0xff] }
 0x2c5   : > { %14043 = vmatprep.mubr.msk.bf16.mxu1 %vm15070_vm0, %v20098_v27  ;;  %v16872_v19 = vrot.slane %v1820_v25, %v15439_v32  ;;  %v16876_v43 = vrot.slane %v16773_v51, %v15439_v32  ;;  %v4938_v45 = vpack.i.b16 %v16858_v52, %v16856_v14  ;;  %v1842_v57 = vrot.slane %v890_v20, %v15439_v32  ;;  %v20233_v20 = vld [vmem:[#allocation50_spill] sm:$0xff] }
 0x2c6   : > { %5024 = vrot.lane.b32.xlu1 %v16836_v1, %s15066_s21  ;;  %v16884_v21 = vrot.slane %v4052_v9, %v15442_v34  ;;  %v16887_v12 = vrot.slane %v4053_v63, %v15442_v34  ;;  %v4068_v25 = vcombine.low %v4036_v42, %v4051_v48  ;;  %v4069_v35 = vcombine.high %v4036_v42, %v4051_v48 }
 0x2c7   : > { %4994 = vrot.lane.b32.xlu0 %v16825_v11, %s15067_s23  ;;  %v16892_v51 = vrot.slane %v1886_v22, %v15439_v32  ;;  %v7909_v44 = vsel %vm7152_vm1, %v4938_v45, 0  ;;  %v1849_v37 = vrot.slane %v1835_v3, %v15439_v32  ;;  %v1901_v60 = vcombine.high %v894_v36, %v15437_v31  ;;  %v20235_v31 = vld [vmem:[#allocation53_spill] sm:$0xff]  ;;  %v20236_v45 = vld [vmem:[#allocation52_spill] sm:$0xff] }
 0x2c8   : > { %14060 = vmatpush3.bf16.xpose.msra.mxu0 %v7909_v44  ;;  %v16904_v4 = vrot.slane %v894_v36, %v15439_v32  ;;  %v1850_v48 = vcombine.low %v16812_v10, %v1842_v57  ;;  %v4927_v9 = vshrl.u32 %v16542_v8, 16  ;;  %v4928_v63 = vshrl.u32 %v16546_v26, 16 }
 0x2c9   : > { %14071 = vmatprep.subr.bf16.mxu0 %v20098_v27  ;;  %v16915_v3 = vrot.slane %v4068_v25, %v15442_v34  ;;  %v16918_v42 = vrot.slane %v4069_v35, %v15442_v34  ;;  %v1851_v8 = vcombine.high %v16812_v10, %v1842_v57  ;;  %v1866_v26 = vcombine.low %v16872_v19, %v1849_v37 }
 0x2ca   : > { %5010 = vrot.lane.b32.xlu1 %v16825_v11, %s15068_s7  ;;  %v4929_v44 = vpack.i.b16 %v4928_v63, %v4927_v9  ;;  %v20234_v22 = vcombine.low %v20232_v40, %v20233_v20  ;;  %v1867_v41 = vcombine.high %v16872_v19, %v1849_v37  ;;  %v16932_v35 = vrot.slane %v1901_v60, %v15439_v32  ;;  %v20237_v9 = vld [vmem:[#allocation48_spill] sm:$0xff]  ;;  %v20238_v20 = vld [vmem:[#allocation49_spill] sm:$0xff] }
 0x2cb   : > { %v1916_v36 = vcombine.low %v16876_v43, %v16904_v4  ;;  %v2442_v1 = vcombine.low %v20236_v45, %v20235_v31  ;;  %v16939_v10 = vrot.slane %v1850_v48, %v15442_v34  ;;  %v20239_v40 = vcombine.low %v20237_v9, %v20238_v20 }
 0x2cc   : > { %v2399_v25 = vrot.slane %v20234_v22, %v15442_v34  ;;  %v7768_v57 = vsel %vm7152_vm1, %v4929_v44, 0  ;;  %v16946_v19 = vcombine.high %v4577_v47, %v4585_v53  ;;  %v20240_v31 = vcombine.low %v16306_v46, %v16314_v30 }
 0x2cd   : > { %v2391_v22 = vrot.slane %v20239_v40, %v15442_v34  ;;  %14042 = vmatpush3.bf16.xpose.msra.mxu1 %v7768_v57  ;;  %v2449_v60 = vrot.slane %v2442_v1, %v15442_v34  ;;  %v16957_v48 = vcombine.high %v16839_v7, %v16830_v38  ;;  %v4934_v63 = vshrl.u32 %v16653_v2, 16 }
 0x2ce   : > { %5026 = vrot.lane.b32.xlu1 %v16825_v11, %s15066_s21  ;;  %v2441_v37 = vrot.slane %v20240_v31, %v15442_v34  ;;  %v16961_v47 = vrot.slane %v1851_v8, %v15442_v34  ;;  %v2792_v45 = vshrl.u32 %v16642_v39, 16  ;;  %14053 = vmatprep.subr.bf16.mxu1 %v20098_v27  ;;  %v4933_v46 = vshrl.u32 %v16662_v59, 16 }
 0x2cf   : > { %v16963_v53 = vcombine.low %v2391_v22, %v2399_v25  ;;  %v4944_v1 = vpack.i.b16 %v16946_v19, %v16957_v48  ;;  %v2791_v38 = vshrl.u32 %v16648_v13, 16  ;;  %v20241_v2 = vcombine.low %v16397_v16, %v16400_v55 }
 0x2d0   : > { %v16968_v30 = vcombine.low %v2441_v37, %v2449_v60  ;;  %v4935_v8 = vpack.i.b16 %v4934_v63, %v4933_v46  ;;  %v20242_v39 = vcombine.high %v16397_v16, %v16400_v55  ;;  %v20243_v59 = vcombine.low %v16411_v23, %v16414_v29 }
 0x2d1   : > { %v4595_v7 = vrot.slane %v20241_v2, %v15439_v32  ;;  %v20244_v13 = vcombine.high %v16411_v23, %v16414_v29  ;;  %v16990_v20 = vrot.slane %v1866_v26, %v15442_v34  ;;  %v1917_v40 = vcombine.high %v16876_v43, %v16904_v4 }
 0x2d2   : > { %v4603_v44 = vrot.slane %v20242_v39, %v15439_v32  ;;  %v4611_v57 = vrot.slane %v20243_v59, %v15439_v32  ;;  %v2802_v16 = vpack.i.b16 %v16968_v30, %v16963_v53  ;;  %v20245_v55 = vcombine.low %v16418_v56, %v16421_v28  ;;  %v20247_v39 = vld [vmem:[#allocation33_spill] sm:$0xff] }
 0x2d3   : > { %v4619_v9 = vrot.slane %v20244_v13, %v15439_v32  ;;  %v17001_v63 = vrot.slane %v1867_v41, %v15442_v34  ;;  %v2793_v46 = vpack.i.b16 %v2792_v45, %v2791_v38  ;;  %v20246_v23 = vcombine.high %v16418_v56, %v16421_v28  ;;  %v20248_v41 = vld [vmem:[#allocation36_spill] sm:$0xff] }
 0x2d4   : > { %v4645_v31 = vrot.slane %v20245_v55, %v15439_v32  ;;  %v4654_v43 = vcombine.low %v16441_v17, %v16444_v5  ;;  %14062 = vmatmul.mubr.msk.bf16.vlgmr.msra.gmra.mrb[56].mxu0 %vm7152_vm1, %v2802_v16  ;;  %v8003_v4 = vsel %vm7152_vm1, %v4944_v1, 0  ;;  %v13618_v2 = vcombine.high %v16441_v17, %v16444_v5  ;;  %v20250_v1 = vld [vmem:[#allocation34_spill] sm:$0xff] }
 0x2d5   : > { %v4653_v29 = vrot.slane %v20246_v23, %v15439_v32  ;;  %v4628_v26 = vcombine.low %v4611_v57, %v4619_v9  ;;  %v17015_v59 = vpack.c.bf16 %v20248_v41, %v20247_v39  ;;  %14072 = vmatpush3.bf16.xpose.msra.mxu0 %v8003_v4  ;;  %14044 = vmatmul.mubr.msk.bf16.vlgmr.msra.gmra.mrb[48].mxu1 %vm7152_vm1, %v2793_v46  ;;  %v7862_v56 = vsel %vm7152_vm1, %v4935_v8, 0  ;;  %v20251_v57 = vld [vmem:[#allocation38_spill] sm:$0xff] }
 0x2d6   : > { %v17019_v28 = vcombine.high %v2441_v37, %v2449_v60  ;;  %v4620_v45 = vcombine.low %v4595_v7, %v4603_v44  ;;  %v4661_v38 = vrot.slane %v4654_v43, %v15439_v32  ;;  %14054 = vmatpush3.bf16.xpose.msra.mxu1 %v7862_v56  ;;  %14073 = vmatprep.mubr.msk.bf16.mxu0 %vm15070_vm0, %v20098_v27  ;;  %v4940_v9 = vshrl.u32 %v16858_v52, 16 }
 0x2d7   : > { %20249 = vst [vmem:[#allocation41_spill] sm:$0xff] %v17015_v59  ;;  %v4669_v17 = vrot.slane %v13618_v2, %v15439_v32  ;;  %v4670_v5 = vcombine.low %v4645_v31, %v4653_v29  ;;  %v17027_v13 = vpack.c.bf16 %v20251_v57, %v20250_v1  ;;  %v17031_v8 = vrot.slane %v1916_v36, %v15442_v34  ;;  %v20253_v29 = vld [vmem:[#allocation26_spill] sm:$0xff] }
 0x2d8   : > { %v1932_v37 = vcombine.low %v16892_v51, %v16932_v35  ;;  %14083 = vmatprep.subr.bf16.mxu0 %v20098_v27  ;;  %14055 = vmatprep.mubr.msk.bf16.mxu1 %vm15070_vm0, %v20098_v27  ;;  %v2798_v60 = vshrl.u32 %v16742_v0, 16  ;;  %v4939_v7 = vshrl.u32 %v16856_v14, 16  ;;  %v17041_v44 = vrot.slane %v1917_v40, %v15442_v34  ;;  %v20256_v2 = vld [vmem:[#allocation14_spill] sm:$0xff] }
 0x2d9   : > { %20252 = vst [vmem:[#allocation42_spill] sm:$0xff] %v17027_v13  ;;  %v17043_v16 = vcombine.high %v2391_v22, %v2399_v25  ;;  %v4635_v52 = vrot.slane %v4628_v26, %v15442_v34  ;;  %v4678_v36 = vcombine.low %v4661_v38, %v4669_v17  ;;  %14065 = vmatprep.subr.bf16.mxu1 %v20098_v27  ;;  %v2797_v31 = vshrl.u32 %v16738_v18, 16  ;;  %v20255_v26 = vld [vmem:[#allocation27_spill] sm:$0xff] }
 0x2da   : > { %v1933_v55 = vcombine.high %v16892_v51, %v16932_v35  ;;  %v4941_v46 = vpack.i.b16 %v4940_v9, %v4939_v7  ;;  %v2542_v0 = vcombine.low %v16581_v61, %v16584_v54  ;;  %4996 = vrot.lane.b32.xlu1 %v17027_v13, %s15067_s23  ;;  %5012 = vrot.lane.b32.xlu0 %v17027_v13, %s15068_s7  ;;  %v20259_v38 = vld [vmem:[#allocation55_spill] sm:$0xff]  ;;  %v4946_v1 = vshrl.u32 %v16946_v19, 16 }
 0x2db   : > { %v2808_v14 = vpack.i.b16 %v17019_v28, %v17043_v16  ;;  %v4627_v25 = vrot.slane %v4620_v45, %v15442_v34  ;;  %v4677_v22 = vrot.slane %v4670_v5, %v15442_v34  ;;  %v4685_v51 = vrot.slane %v4678_v36, %v15442_v34  ;;  %v20258_v45 = vld [vmem:[#allocation54_spill] sm:$0xff] }
 0x2dc   : > { %v17062_v18 = vrot.slane %v1932_v37, %v15442_v34  ;;  %v2652_v61 = vcombine.low %v16939_v10, %v16961_v47  ;;  %v13591_v54 = vcombine.high %v16939_v10, %v16961_v47  ;;  %v2799_v35 = vpack.i.b16 %v2798_v60, %v2797_v31 }
 0x2dd   : > { %14074 = vmatmul.mubr.msk.bf16.vlgmr.msra.gmra.mrb[60].mxu0 %vm7152_vm1, %v2808_v14  ;;  %v17069_v40 = vcombine.low %v4627_v25, %v4635_v52  ;;  %v17071_v23 = vcombine.low %v4677_v22, %v4685_v51  ;;  %v20254_v43 = vcombine.low %v16513_v58, %v20253_v29  ;;  %v20257_v39 = vcombine.low %v20255_v26, %v20256_v2  ;;  %v20270_v26 = vld [vmem:[#allocation12_spill] sm:$0xff] }
 0x2de   : > { %14056 = vmatmul.mubr.msk.bf16.vlgmr.msra.gmra.mrb[52].mxu1 %vm7152_vm1, %v2799_v35  ;;  %v7956_v56 = vsel %vm7152_vm1, %v4941_v46, 0  ;;  %14085 = vmatprep.mubr.msk.bf16.mxu0 %vm15070_vm0, %v20098_v27  ;;  %v20260_v17 = vcombine.low %v20258_v45, %v20259_v38  ;;  %v2549_v5 = vrot.slane %v2542_v0, %v15442_v34  ;;  %v2803_v9 = vshrl.u32 %v16963_v53, 16  ;;  %v20263_v46 = vld [vmem:[#allocation35_spill] sm:$0xff]  ;;  %v20271_v2 = vld [vmem:[#allocation28_spill] sm:$0xff]  ;;  %v20272_v38 = vld [vmem:[#allocation21_spill] sm:$0xff] }
 0x2df   : > { %v17077_v4 = vrot.slane %v20254_v43, %v15442_v34  ;;  %v17083_v41 = vrot.slane %v20257_v39, %v15442_v34  ;;  %v4950_v57 = vpack.i.b16 %v17071_v23, %v17069_v40  ;;  %14066 = vmatpush3.bf16.xpose.msra.mxu1 %v7956_v56  ;;  %14067 = vmatprep.mubr.msk.bf16.mxu1 %vm15070_vm0, %v20098_v27  ;;  %v2804_v31 = vshrl.u32 %v16968_v30, 16 }
 0x2e0   : > { %v2541_v58 = vrot.slane %v20260_v17, %v15442_v34  ;;  %v20261_v37 = vcombine.low %v16665_v62, %v16668_v49  ;;  %v20262_v7 = vcombine.high %v16665_v62, %v16668_v49  ;;  %v17108_v19 = vcombine.high %v4627_v25, %v4635_v52  ;;  %14077 = vmatprep.subr.bf16.mxu1 %v20098_v27  ;;  %v20266_v52 = vld [vmem:[#allocation37_spill] sm:$0xff]  ;;  %v20267_v25 = vld [vmem:[#allocation56_spill] sm:$0xff] }
 0x2e1   : > { %5028 = vrot.lane.b32.xlu1 %v17027_v13, %s15066_s21  ;;  %v4945_v53 = vshrl.u32 %v16957_v48, 16  ;;  %v20264_v0 = vcombine.low %v16627_v6, %v20263_v46  ;;  %v8097_v35 = vsel %vm7152_vm1, %v4950_v57, 0  ;;  %v17120_v62 = vcombine.high %v4677_v22, %v4685_v51  ;;  %4998 = vrot.lane.b32.xlu0 %v17015_v59, %s15067_s23  ;;  %v20273_v17 = vld [vmem:[#allocation45_spill] sm:$0xff] }
 0x2e2   : > { %v4711_v60 = vrot.slane %v20261_v37, %v15439_v32  ;;  %v4719_v36 = vrot.slane %v20262_v7, %v15439_v32  ;;  %v20265_v49 = vcombine.high %v16627_v6, %v20263_v46  ;;  %v20268_v29 = vcombine.low %v20266_v52, %v20267_v25  ;;  %14084 = vmatpush3.bf16.xpose.msra.mxu0 %v8097_v35  ;;  %v20276_v37 = vld [vmem:[#allocation46_spill] sm:$0xff] }
 0x2e3   : > { %v4695_v14 = vrot.slane %v20264_v0, %v15439_v32  ;;  %v4947_v48 = vpack.i.b16 %v4946_v1, %v4945_v53  ;;  %v20269_v22 = vcombine.high %v20266_v52, %v20267_v25  ;;  %v4754_v39 = vcombine.low %v20271_v2, %v20270_v26  ;;  %14095 = vmatprep.subr.bf16.mxu0 %v20098_v27  ;;  %v20275_v1 = vld [vmem:[#allocation44_spill] sm:$0xff] }
 0x2e4   : > { %v4703_v30 = vrot.slane %v20265_v49, %v15439_v32  ;;  %v4745_v43 = vrot.slane %v20268_v29, %v15439_v32  ;;  %v13622_v6 = vcombine.high %v20271_v2, %v20270_v26  ;;  %v17140_v56 = vcombine.low %v2541_v58, %v2549_v5  ;;  %v20278_v26 = vld [vmem:[#allocation15_spill] sm:$0xff]  ;;  %v20279_v2 = vld [vmem:[#allocation62_spill] sm:$0xff] }
 0x2e5   : > { %v4753_v51 = vrot.slane %v20269_v22, %v15439_v32  ;;  %v4728_v45 = vcombine.low %v4711_v60, %v4719_v36  ;;  %v17145_v57 = vpack.c.bf16 %v20273_v17, %v20272_v38  ;;  %v17149_v7 = vpack.c.bf16 %v20276_v37, %v20275_v1  ;;  %5014 = vrot.lane.b32.xlu1 %v17015_v59, %s15068_s7 }
 0x2e6   : > { %v2805_v53 = vpack.i.b16 %v2804_v31, %v2803_v9  ;;  %v4761_v46 = vrot.slane %v4754_v39, %v15439_v32  ;;  %v4769_v0 = vrot.slane %v13622_v6, %v15439_v32  ;;  %v2668_v60 = vcombine.low %v16990_v20, %v17001_v63 }
 0x2e7   : > { %20274 = vst [vmem:[#allocation20_spill] sm:$0xff] %v17145_v57  ;;  %20277 = vst [vmem:[#allocation43_spill] sm:$0xff] %v17149_v7  ;;  %v4770_v35 = vcombine.low %v4745_v43, %v4753_v51  ;;  %v17159_v36 = vcombine.low %v17077_v4, %v17083_v41  ;;  %v4956_v49 = vpack.i.b16 %v17120_v62, %v17108_v19  ;;  %5016 = vrot.lane.b32.xlu0 %v17149_v7, %s15068_s7 }
 0x2e8   : > { %v4720_v52 = vcombine.low %v4695_v14, %v4703_v30  ;;  %v17166_v9 = vrot.slane %v1933_v55, %v15442_v34  ;;  %14068 = vmatmul.mubr.msk.bf16.vlgmr.msra.gmra.mrb[56].mxu1 %vm7152_vm1, %v2805_v53  ;;  %v8050_v31 = vsel %vm7152_vm1, %v4947_v48, 0  ;;  %v4778_v25 = vcombine.low %v4761_v46, %v4769_v0  ;;  %v20280_v0 = vld [vmem:[#allocation59_spill] sm:$0xff] }
 0x2e9   : > { %v4952_v29 = vshrl.u32 %v17071_v23, 16  ;;  %v2814_v43 = vpack.i.b16 %v17140_v56, %v17159_v36  ;;  %14078 = vmatpush3.bf16.xpose.msra.mxu1 %v8050_v31  ;;  %v17173_v22 = vcombine.high %v2541_v58, %v2549_v5  ;;  %v17176_v14 = vrot.slane %v4728_v45, %v15442_v34  ;;  %14079 = vmatprep.mubr.msk.bf16.mxu1 %vm15070_vm0, %v20098_v27  ;;  %v20284_v31 = vld [vmem:[#allocation16_spill] sm:$0xff] }
 0x2ea   : > { %v4777_v55 = vrot.slane %v4770_v35, %v15442_v34  ;;  %v4785_v30 = vrot.slane %v4778_v25, %v15442_v34  ;;  %v2810_v48 = vshrl.u32 %v17019_v28, 16  ;;  %14089 = vmatprep.subr.bf16.mxu1 %v20098_v27  ;;  %5030 = vrot.lane.b32.xlu1 %v17015_v59, %s15066_s21  ;;  %v4951_v23 = vshrl.u32 %v17069_v40, 16  ;;  %v20281_v35 = vld [vmem:[#allocation60_spill] sm:$0xff] }
 0x2eb   : > { %v13592_v58 = vcombine.high %v16990_v20, %v17001_v63  ;;  %14086 = vmatmul.mubr.msk.bf16.vlgmr.msra.gmra.mrb[64].mxu0 %vm7152_vm1, %v2814_v43  ;;  %v8191_v5 = vsel %vm7152_vm1, %v4956_v49, 0  ;;  %v4727_v51 = vrot.slane %v4720_v52, %v15442_v34  ;;  %v2642_v39 = vcombine.low %v20279_v2, %v20278_v26  ;;  %5002 = vrot.lane.b32.xlu0 %v17145_v57, %s15067_s23  ;;  %v20283_v52 = vld [vmem:[#allocation61_spill] sm:$0xff] }
 0x2ec   : > { %14096 = vmatpush3.bf16.xpose.msra.mxu0 %v8191_v5  ;;  %14097 = vmatprep.mubr.msk.bf16.mxu0 %vm15070_vm0, %v20098_v27  ;;  %v17200_v28 = vcombine.high %v17077_v4, %v17083_v41  ;;  %v17202_v40 = vcombine.low %v4777_v55, %v4785_v30  ;;  %v2809_v6 = vshrl.u32 %v17043_v16, 16  ;;  %v4953_v45 = vpack.i.b16 %v4952_v29, %v4951_v23 }
 0x2ed   : > { %v17206_v38 = vrot.slane %v2668_v60, %v15439_v32  ;;  %v2702_v17 = vcombine.low %v17031_v8, %v17041_v44  ;;  %v13593_v1 = vcombine.high %v17031_v8, %v17041_v44  ;;  %14107 = vmatprep.subr.bf16.mxu0 %v20098_v27  ;;  %v17214_v37 = vcombine.low %v4727_v51, %v17176_v14 }
 0x2ee   : > { %v2718_v4 = vcombine.low %v17062_v18, %v17166_v9  ;;  %v13594_v16 = vcombine.high %v17062_v18, %v17166_v9  ;;  %v2820_v41 = vpack.i.b16 %v17173_v22, %v17200_v28  ;;  %v2811_v53 = vpack.i.b16 %v2810_v48, %v2809_v6  ;;  %5000 = vrot.lane.b32.xlu1 %v17149_v7, %s15067_s23 }
 0x2ef   : > { %v4962_v46 = vpack.i.b16 %v17202_v40, %v17214_v37  ;;  %v20282_v60 = vcombine.low %v20280_v0, %v20281_v35  ;;  %v20285_v18 = vcombine.low %v20283_v52, %v20284_v31  ;;  %v17239_v25 = vrot.slane %v2642_v39, %v15442_v34  ;;  %v20292_v52 = vld [vmem:[#allocation57_spill] sm:$0xff] }
 0x2f0   : > { %14080 = vmatmul.mubr.msk.bf16.vlgmr.msra.gmra.mrb[60].mxu1 %vm7152_vm1, %v2811_v53  ;;  %v8144_v29 = vsel %vm7152_vm1, %v4953_v45, 0  ;;  %v4958_v43 = vshrl.u32 %v17120_v62, 16  ;;  %v20286_v48 = vcombine.low %v16864_v15, %v16867_v50  ;;  %v20287_v5 = vcombine.high %v16864_v15, %v16867_v50 }
 0x2f1   : > { %v17230_v49 = vrot.slane %v20282_v60, %v15442_v34  ;;  %v17236_v9 = vrot.slane %v20285_v18, %v15442_v34  ;;  %14090 = vmatpush3.bf16.xpose.msra.mxu1 %v8144_v29  ;;  %14091 = vmatprep.mubr.msk.bf16.mxu1 %vm15070_vm0, %v20098_v27  ;;  %v20288_v2 = vcombine.low %v16884_v21, %v16887_v12  ;;  %v2816_v15 = vshrl.u32 %v17140_v56, 16 }
 0x2f2   : > { %v4811_v23 = vrot.slane %v20286_v48, %v15439_v32  ;;  %v4819_v26 = vrot.slane %v20287_v5, %v15439_v32  ;;  %v20289_v62 = vcombine.high %v16884_v21, %v16887_v12  ;;  %v4854_v45 = vcombine.low %v16915_v3, %v16918_v42  ;;  %14101 = vmatprep.subr.bf16.mxu1 %v20098_v27  ;;  %v20296_v5 = vld [vmem:[#allocation22_spill] sm:$0xff] }
 0x2f3   : > { %v4845_v39 = vrot.slane %v20288_v2, %v15439_v32  ;;  %5032 = vrot.lane.b32.xlu1 %v17149_v7, %s15066_s21  ;;  %v4957_v50 = vshrl.u32 %v17108_v19, 16  ;;  %v20290_v53 = vcombine.low %v16846_v24, %v16852_v33  ;;  %v13626_v21 = vcombine.high %v16915_v3, %v16918_v42  ;;  %14098 = vmatmul.mubr.msk.bf16.vlgmr.msra.gmra.mrb[68].mxu0 %vm7152_vm1, %v2820_v41  ;;  %v20293_v3 = vld [vmem:[#allocation58_spill] sm:$0xff] }
 0x2f4   : > { %v4853_v6 = vrot.slane %v20289_v62, %v15439_v32  ;;  %v8285_v12 = vsel %vm7152_vm1, %v4962_v46, 0  ;;  %v17277_v56 = vcombine.high %v4777_v55, %v4785_v30  ;;  %v20291_v35 = vcombine.high %v16846_v24, %v16852_v33  ;;  %14109 = vmatprep.mubr.msk.bf16.mxu0 %vm15070_vm0, %v20098_v27 }
 0x2f5   : > { %v4795_v0 = vrot.slane %v20290_v53, %v15439_v32  ;;  %v4861_v19 = vrot.slane %v4854_v45, %v15439_v32  ;;  %14108 = vmatpush3.bf16.xpose.msra.mxu0 %v8285_v12  ;;  %v20294_v42 = vcombine.low %v20292_v52, %v20293_v3  ;;  %v2815_v46 = vshrl.u32 %v17159_v36, 16 }
 0x2f6   : > { %v4803_v60 = vrot.slane %v20291_v35, %v15439_v32  ;;  %v4959_v55 = vpack.i.b16 %v4958_v43, %v4957_v50  ;;  %v4869_v30 = vrot.slane %v13626_v21, %v15439_v32  ;;  %v17294_v24 = vcombine.low %v17236_v9, %v17239_v25  ;;  %14119 = vmatprep.subr.bf16.mxu0 %v20098_v27  ;;  %v20295_v43 = vld [vmem:[#allocation24_spill] sm:$0xff] }
 0x2f7   : > { %v2591_v41 = vrot.slane %v20294_v42, %v15442_v34  ;;  %v17298_v33 = vcombine.high %v4727_v51, %v17176_v14  ;;  %v4828_v31 = vcombine.low %v4811_v23, %v4819_v26  ;;  %v4870_v18 = vcombine.low %v4845_v39, %v4853_v6  ;;  %5018 = vrot.lane.b32.xlu1 %v17145_v57, %s15068_s7  ;;  %v20298_v23 = vld [vmem:[#allocation25_spill] sm:$0xff]  ;;  %v20299_v26 = vld [vmem:[#allocation23_spill] sm:$0xff] }
 0x2f8   : > { %v2725_v29 = vrot.slane %v2718_v4, %v15439_v32  ;;  %v2817_v48 = vpack.i.b16 %v2816_v15, %v2815_v46  ;;  %v4878_v36 = vcombine.low %v4861_v19, %v4869_v30  ;;  %v17305_v2 = vpack.c.bf16 %v20296_v5, %v20295_v43 }
 0x2f9   : > { %v17308_v62 = vcombine.low %v2591_v41, %v17230_v49  ;;  %v4968_v14 = vpack.i.b16 %v17277_v56, %v17298_v33  ;;  %v4820_v51 = vcombine.low %v4795_v0, %v4803_v60  ;;  %v17314_v39 = vpack.c.bf16 %v20299_v26, %v20298_v23 }
 0x2fa   : > { %20297 = vst [vmem:[#allocation51_spill] sm:$0xff] %v17305_v2  ;;  %v2733_v4 = vrot.slane %v13594_v16, %v15439_v32  ;;  %14092 = vmatmul.mubr.msk.bf16.vlgmr.msra.gmra.mrb[64].mxu1 %vm7152_vm1, %v2817_v48  ;;  %v8238_v6 = vsel %vm7152_vm1, %v4959_v55, 0  ;;  %v4885_v45 = vrot.slane %v4878_v36, %v15442_v34  ;;  %v4964_v15 = vshrl.u32 %v17202_v40, 16 }
 0x2fb   : > { %v2826_v50 = vpack.i.b16 %v17294_v24, %v17308_v62  ;;  %14102 = vmatpush3.bf16.xpose.msra.mxu1 %v8238_v6  ;;  %v4835_v53 = vrot.slane %v4828_v31, %v15442_v34  ;;  %v4877_v0 = vrot.slane %v4870_v18, %v15442_v34  ;;  %14103 = vmatprep.mubr.msk.bf16.mxu1 %vm15070_vm0, %v20098_v27  ;;  %v2822_v21 = vshrl.u32 %v17173_v22, 16 }
 0x2fc   : > { %v2683_v16 = vrot.slane %v13592_v58, %v15439_v32  ;;  %v2709_v40 = vrot.slane %v2702_v17, %v15439_v32  ;;  %14113 = vmatprep.subr.bf16.mxu1 %v20098_v27  ;;  %5034 = vrot.lane.b32.xlu1 %v17145_v57, %s15066_s21  ;;  %v4963_v12 = vshrl.u32 %v17214_v37, 16  ;;  %v2717_v20 = vrot.slane %v13593_v1, %v15439_v32 }
 0x2fd   : > { %14110 = vmatmul.mubr.msk.bf16.vlgmr.msra.gmra.mrb[72].mxu0 %vm7152_vm1, %v2826_v50  ;;  %v8379_v63 = vsel %vm7152_vm1, %v4968_v14, 0  ;;  %v4827_v58 = vrot.slane %v4820_v51, %v15442_v34  ;;  %v17347_v17 = vcombine.low %v4877_v0, %v4885_v45  ;;  %5020 = vrot.lane.b32.xlu0 %v17314_v39, %s15068_s7  ;;  %v2659_v22 = vrot.slane %v2652_v61, %v15439_v32 }
 0x2fe   : > { %14120 = vmatpush3.bf16.xpose.msra.mxu0 %v8379_v63  ;;  %14121 = vmatprep.mubr.msk.bf16.mxu0 %vm15070_vm0, %v20098_v27  ;;  %v2821_v8 = vshrl.u32 %v17200_v28, 16  ;;  %v4965_v44 = vpack.i.b16 %v4964_v15, %v4963_v12  ;;  %v2667_v1 = vrot.slane %v13591_v54, %v15439_v32  ;;  %v2651_v37 = vcombine.high %v17236_v9, %v17239_v25 }
 0x2ff   : > { %14131 = vmatprep.subr.bf16.mxu0 %v20098_v27  ;;  %v4836_v35 = vcombine.low %v4827_v58, %v4835_v53  ;;  %v2742_v60 = vcombine.low %v2725_v29, %v2733_v4  ;;  %v2692_v19 = vcombine.low %v17206_v38, %v2683_v16  ;;  %v2734_v28 = vcombine.low %v2709_v40, %v2717_v20 }
 0x300   : > { %v2823_v61 = vpack.i.b16 %v2822_v21, %v2821_v8  ;;  %5004 = vrot.lane.b32.xlu1 %v17314_v39, %s15067_s23  ;;  %v2601_v52 = vcombine.high %v2591_v41, %v17230_v49  ;;  %v8332_v10 = vsel %vm7152_vm1, %v4965_v44, 0  ;;  %v4970_v47 = vshrl.u32 %v17277_v56, 16  ;;  %v17385_v55 = vpop.f32.mrb[16].mxu1 }
 0x301   : > { %v4974_v3 = vpack.i.b16 %v17347_v17, %v4836_v35  ;;  %v2684_v54 = vcombine.low %v2659_v22, %v2667_v1  ;;  %v2749_v25 = vrot.slane %v2742_v60, %v15442_v34  ;;  %v2828_v38 = vshrl.u32 %v17294_v24, 16 }
 0x302   : > { %14104 = vmatmul.mubr.msk.bf16.vlgmr.msra.gmra.mrb[68].mxu1 %vm7152_vm1, %v2823_v61  ;;  %v2832_v9 = vpack.i.b16 %v2651_v37, %v2601_v52  ;;  %v4969_v49 = vshrl.u32 %v17298_v33, 16  ;;  %v2699_v42 = vrot.slane %v2692_v19, %v15442_v34  ;;  %v2741_v41 = vrot.slane %v2734_v28, %v15442_v34  ;;  %v13967_v33 = vpop.f32.mrb[17].mxu1 }
 0x303   : > { %14114 = vmatpush3.bf16.xpose.msra.mxu1 %v8332_v10  ;;  %14115 = vmatprep.mubr.msk.bf16.mxu1 %vm15070_vm0, %v20098_v27  ;;  %v8473_v56 = vsel %vm7152_vm1, %v4974_v3, 0  ;;  %v4887_v46 = vcombine.high %v4877_v0, %v4885_v45  ;;  %v2827_v30 = vshrl.u32 %v17308_v62, 16  ;;  %v2691_v31 = vrot.slane %v2684_v54, %v15442_v34  ;;  %v17392_v48 = vpop.f32.mrb[18].mxu1 }
 0x304   : > { %14125 = vmatprep.subr.bf16.mxu1 %v20098_v27  ;;  %5036 = vrot.lane.b32.xlu1 %v17314_v39, %s15066_s21  ;;  %v4971_v24 = vpack.i.b16 %v4970_v47, %v4969_v49  ;;  %v2750_v18 = vcombine.low %v2741_v41, %v2749_v25  ;;  %v4837_v29 = vcombine.high %v4827_v58, %v4835_v53  ;;  %v13968_v43 = vpop.f32.mrb[19].mxu1  ;;  %v4976_v62 = vshrl.u32 %v17347_v17, 16 }
 0x305   : > { %14122 = vmatmul.mubr.msk.bf16.vlgmr.msra.gmra.mrb[76].mxu0 %vm7152_vm1, %v2832_v9  ;;  %v2829_v36 = vpack.i.b16 %v2828_v38, %v2827_v30  ;;  %v2700_v5 = vcombine.low %v2691_v31, %v2699_v42  ;;  %v2834_v26 = vshrl.u32 %v2651_v37, 16  ;;  %v4975_v4 = vshrl.u32 %v4836_v35, 16 }
 0x306   : > { %14132 = vmatpush3.bf16.xpose.msra.mxu0 %v8473_v56  ;;  %14133 = vmatprep.mubr.msk.bf16.mxu0 %vm15070_vm0, %v20098_v27  ;;  %v4980_v14 = vpack.i.b16 %v4887_v46, %v4837_v29  ;;  %v8426_v51 = vsel %vm7152_vm1, %v4971_v24, 0  ;;  %v2833_v45 = vshrl.u32 %v2601_v52, 16  ;;  %v2751_v50 = vcombine.high %v2741_v41, %v2749_v25 }
 0x307   : > { %14143 = vmatprep.subr.bf16.mxu0 %v20098_v27  ;;  %v2838_v23 = vpack.i.b16 %v2750_v18, %v2700_v5  ;;  %v4977_v15 = vpack.i.b16 %v4976_v62, %v4975_v4  ;;  %v2701_v0 = vcombine.high %v2691_v31, %v2699_v42  ;;  %v4982_v40 = vshrl.u32 %v4887_v46, 16 }
 0x308   : > { %v8567_v6 = vsel %vm7152_vm1, %v4980_v14, 0  ;;  %v2835_v53 = vpack.i.b16 %v2834_v26, %v2833_v45  ;;  %v2840_v12 = vshrl.u32 %v2750_v18, 16  ;;  %v4981_v20 = vshrl.u32 %v4837_v29, 16  ;;  %v20300_v26 = vld [vmem:[#allocation40_spill] sm:$0xff] }
 0x309   : > { %v8520_v16 = vsel %vm7152_vm1, %v4977_v15, 0  ;;  %v2844_v21 = vpack.i.b16 %v2751_v50, %v2701_v0  ;;  %v2839_v63 = vshrl.u32 %v2700_v5, 16  ;;  %v8658_v1 = vsel %vm8657_vm2, %v17385_v55, -inf }
 0x30a   : > { %14116 = vmatmul.mubr.msk.bf16.vlgmr.msra.gmra.mrb[72].mxu1 %vm7152_vm1, %v2829_v36  ;;  %v4983_v58 = vpack.i.b16 %v4982_v40, %v4981_v20  ;;  %v2846_v60 = vshrl.u32 %v2751_v50, 16  ;;  %v2845_v19 = vshrl.u32 %v2701_v0, 16  ;;  %v8661_v3 = vsel %vm8657_vm2, %v17392_v48, -inf }
 0x30b   : > { %14126 = vmatpush3.bf16.xpose.msra.mxu1 %v8426_v51  ;;  %14127 = vmatprep.mubr.msk.bf16.mxu1 %vm15070_vm0, %v20098_v27  ;;  %v2841_v8 = vpack.i.b16 %v2840_v12, %v2839_v63  ;;  %v5044_v15 = vshrl.u32 %v20300_v26, 16 }
 0x30c   : > { %14137 = vmatprep.subr.bf16.mxu1 %v20098_v27  ;;  %v8614_v35 = vsel %vm7152_vm1, %v4983_v58, 0  ;;  %v2847_v28 = vpack.i.b16 %v2846_v60, %v2845_v19 }
 0x30d   : > { %14134 = vmatmul.mubr.msk.bf16.vlgmr.msra.gmra.mrb[80].mxu0 %vm7152_vm1, %v2838_v23 }
 0x30e   : > { %14144 = vmatpush3.bf16.xpose.msra.mxu0 %v8567_v6  ;;  %14145 = vmatprep.mubr.msk.bf16.mxu0 %vm15070_vm0, %v20098_v27 }
 0x30f   : > { %14155 = vmatprep.subr.bf16.mxu0 %v20098_v27 }
 0x310   : > { %v17411_v17 = vpop.f32.mrb[20].mxu1 }
 0x311   : > { %v13973_v22 = vpop.f32.mrb[21].mxu1  ;;  %v8664_v61 = vsel %vm8657_vm2, %v17411_v17, -inf }
 0x312   : > { %14128 = vmatmul.mubr.msk.bf16.vlgmr.msra.gmra.mrb[76].mxu1 %vm7152_vm1, %v2835_v53  ;;  %v17415_v44 = vpop.f32.mrb[22].mxu1 }
 0x313   : > { %14138 = vmatpush3.bf16.xpose.msra.mxu1 %v8520_v16  ;;  %14139 = vmatprep.mubr.msk.bf16.mxu1 %vm15070_vm0, %v20098_v27  ;;  %v13974_v37 = vpop.f32.mrb[23].mxu1  ;;  %v8667_v52 = vsel %vm8657_vm2, %v17415_v44, -inf  ;;  %v20301_v16 = vld [vmem:[#allocation17_spill] sm:$0xff] }
 0x314   : > { %14149 = vmatprep.subr.bf16.mxu1 %v20098_v27 }
 0x315   : > { %14146 = vmatmul.mubr.msk.bf16.vlgmr.msra.gmra.mrb[84].mxu0 %vm7152_vm1, %v2844_v21 }
 0x316   : > { %14157 = vmatprep.mubr.msk.bf16.mxu0 %vm15070_vm0, %v20098_v27 }
 0x31a   : > { %14140 = vmatmul.mubr.msk.bf16.vlgmr.msra.gmra.mrb[80].mxu1 %vm7152_vm1, %v2841_v8 }
 0x31b   : > { %14150 = vmatpush3.bf16.xpose.msra.mxu1 %v8614_v35  ;;  %14151 = vmatprep.mubr.msk.bf16.mxu1 %vm15070_vm0, %v20098_v27 }
 0x31c   : > { %14161 = vmatprep.subr.bf16.mxu1 %v20098_v27  ;;  %8659 = vmax.xlane.f32.xlu0 %v8658_v1 }
 0x320   : > { %8665 = vmax.xlane.f32.xlu0 %v8664_v61  ;;  %v17433_v10 = vpop.f32.mrb[32].mxu0 }
 0x321   : > { %v13991_v47 = vpop.f32.mrb[33].mxu0  ;;  %v8682_v38 = vsel %vm8657_vm2, %v17433_v10, -inf }
 0x322   : > { %14152 = vmatmul.mubr.msk.bf16.vlgmr.msra.gmra.mrb[84].mxu1 %vm7152_vm1, %v2847_v28  ;;  %v17435_v54 = vpop.f32.mrb[34].mxu0 }
 0x323   : > { %14163 = vmatprep.mubr.msk.bf16.mxu1 %vm15070_vm0, %v20098_v27  ;;  %v13992_v9 = vpop.f32.mrb[35].mxu0  ;;  %v8685_v25 = vsel %vm8657_vm2, %v17435_v54, -inf }
 0x324   : > { %8668 = vmax.xlane.f32.xlu0 %v8667_v52  ;;  %v17441_v49 = vpop.f32.mrb[24].mxu1 }
 0x325   : > { %v13979_v56 = vpop.f32.mrb[25].mxu1  ;;  %v8670_v41 = vsel %vm8657_vm2, %v17441_v49, -inf }
 0x326   : > { %v17443_v42 = vpop.f32.mrb[26].mxu1 }
 0x327   : > { %v13980_v46 = vpop.f32.mrb[27].mxu1  ;;  %v8673_v30 = vsel %vm8657_vm2, %v17443_v42, -inf }
 0x328   : > { %8662 = vmax.xlane.f32.xlu1 %v8661_v3  ;;  %8686 = vmax.xlane.f32.xlu0 %v8685_v25 }
 0x32c   : > { %8683 = vmax.xlane.f32.xlu1 %v8682_v38  ;;  %8674 = vmax.xlane.f32.xlu0 %v8673_v30 }
 0x32e   : > { %v17449_v24 = vpop.f32.mrb[36].mxu0 }
 0x32f   : > { %v14003_v33 = vpop.f32.mrb[37].mxu0  ;;  %v8694_v31 = vsel %vm8657_vm2, %v17449_v24, -inf }
 0x330   : > { %8671 = vmax.xlane.f32.xlu1 %v8670_v41  ;;  %v17453_v18 = vpop.f32.mrb[38].mxu0 }
 0x331   : > { %v14004_v29 = vpop.f32.mrb[39].mxu0  ;;  %v8697_v36 = vsel %vm8657_vm2, %v17453_v18, -inf }
 0x332   : > { %8698 = vmax.xlane.f32.xlu0 %v8697_v36 }
 0x334   : > { %8695 = vmax.xlane.f32.xlu1 %v8694_v31  ;;  %v4993_v43 = vpop.permute.xlu1 %4992 }
 0x335   : > { %v5009_v14 = vpop.permute.xlu0 %5008  ;;  %v5042_v4 = vpack.i.b16 %v4993_v43, %v20300_v26  ;;  %v5045_v50 = vshrl.u32 %v4993_v43, 16 }
 0x336   : > { %v5052_v0 = vshrl.u32 %v5009_v14, 16 }
 0x337   : > { %v5168_v40 = vcombine.high %v5042_v4, %v20301_v16  ;;  %v5046_v12 = vpack.i.b16 %v5045_v50, %v5044_v15  ;;  %v5175_v63 = vrot.slane %v5042_v4, %v15439_v32 }
 0x338   : > { %v5025_v62 = vpop.permute.xlu1 %5024 }
 0x339   : > { %v5050_v6 = vpack.i.b16 %v5025_v62, %v5009_v14  ;;  %v5053_v53 = vshrl.u32 %v5025_v62, 16  ;;  %v5182_v58 = vrot.slane %v5168_v40, %v15439_v32  ;;  %v5234_v1 = vcombine.high %v5046_v12, %v20301_v16 }
 0x33a   : > { %v5241_v28 = vrot.slane %v5046_v12, %v15439_v32 }
 0x33b   : > { %v5183_v21 = vcombine.high %v5050_v6, %v20301_v16  ;;  %v5054_v20 = vpack.i.b16 %v5053_v53, %v5052_v0  ;;  %v5190_v22 = vrot.slane %v5050_v6, %v15439_v32  ;;  %v5248_v52 = vrot.slane %v5234_v1, %v15439_v32 }
 0x33d   : > { %v17457_v5 = vpop.f32.mrb[28].mxu1  ;;  %v5197_v8 = vrot.slane %v5183_v21, %v15439_v32  ;;  %v5249_v37 = vcombine.high %v5054_v20, %v20301_v16  ;;  %v5198_v35 = vcombine.low %v5175_v63, %v5190_v22  ;;  %v5199_v60 = vcombine.high %v5175_v63, %v5190_v22  ;;  %v17491_v21 = vpop.permute.xlu1 %5010 }
 0x33e   : > { %v13985_v51 = vpop.f32.mrb[29].mxu1  ;;  %v5256_v3 = vrot.slane %v5054_v20, %v15439_v32  ;;  %20302 = vst [vmem:[#allocation47_spill] sm:$0xff] %v17491_v21 }
 0x33f   : > { %v17459_v23 = vpop.f32.mrb[30].mxu1  ;;  %v5214_v61 = vcombine.low %v5182_v58, %v5197_v8  ;;  %v5215_v19 = vcombine.high %v5182_v58, %v5197_v8  ;;  %v5263_v47 = vrot.slane %v5249_v37, %v15439_v32  ;;  %v5206_v25 = vrot.slane %v5198_v35, %v15442_v34 }
 0x340   : > { %v13986_v45 = vpop.f32.mrb[31].mxu1  ;;  %v5213_v38 = vrot.slane %v5199_v60, %v15442_v34  ;;  %v5264_v30 = vcombine.low %v5241_v28, %v5256_v3  ;;  %v5265_v33 = vcombine.high %v5241_v28, %v5256_v3 }
 0x341   : > { %v5222_v56 = vrot.slane %v5214_v61, %v15442_v34  ;;  %v5229_v41 = vrot.slane %v5215_v19, %v15442_v34  ;;  %v5280_v31 = vcombine.low %v5248_v52, %v5263_v47  ;;  %v5281_v29 = vcombine.high %v5248_v52, %v5263_v47  ;;  %v17501_v3 = vpop.permute.xlu1 %5026 }
 0x342   : > { %v6224_v62 = vcombine.low %v5206_v25, %v5213_v38  ;;  %v13627_v26 = vcombine.high %v5206_v25, %v5213_v38  ;;  %v5272_v15 = vrot.slane %v5264_v30, %v15442_v34  ;;  %v5279_v50 = vrot.slane %v5265_v33, %v15442_v34  ;;  %20303 = vst [vmem:[#allocation29_spill] sm:$0xff] %v17501_v3 }
 0x343   : > { %v6240_v4 = vcombine.low %v5222_v56, %v5229_v41  ;;  %v13628_v6 = vcombine.high %v5222_v56, %v5229_v41  ;;  %v5288_v53 = vrot.slane %v5280_v31, %v15442_v34  ;;  %v5295_v0 = vrot.slane %v5281_v29, %v15442_v34 }
 0x344   : > { %v6231_v12 = vrot.slane %v6224_v62, %v15439_v32  ;;  %v6239_v20 = vrot.slane %v13627_v26, %v15439_v32  ;;  %v6274_v22 = vcombine.low %v5272_v15, %v5279_v50  ;;  %v13629_v8 = vcombine.high %v5272_v15, %v5279_v50 }
 0x345   : > { %v6247_v63 = vrot.slane %v6240_v4, %v15439_v32  ;;  %v6255_v58 = vrot.slane %v13628_v6, %v15439_v32  ;;  %v6290_v1 = vcombine.low %v5288_v53, %v5295_v0  ;;  %v13630_v37 = vcombine.high %v5288_v53, %v5295_v0 }
 0x346   : > { %v6256_v35 = vcombine.low %v6231_v12, %v6239_v20  ;;  %v6281_v61 = vrot.slane %v6274_v22, %v15439_v32  ;;  %v6289_v19 = vrot.slane %v13629_v8, %v15439_v32 }
 0x347   : > { %v6264_v60 = vcombine.low %v6247_v63, %v6255_v58  ;;  %v6297_v28 = vrot.slane %v6290_v1, %v15439_v32  ;;  %v6305_v52 = vrot.slane %v13630_v37, %v15439_v32 }
 0x348   : > { %v17506_v38 = vrot.slane %v6256_v35, %v15442_v34  ;;  %v6306_v41 = vcombine.low %v6281_v61, %v6289_v19  ;;  %v17537_v35 = vpop.permute.xlu0 %4994 }
 0x349   : > { %v17509_v56 = vrot.slane %v6264_v60, %v15442_v34  ;;  %20311 = vst [vmem:[#allocation48_spill] sm:$0xff] %v17537_v35  ;;  %v8676_v60 = vsel %vm8657_vm2, %v17457_v5, -inf }
 0x34a   : > { %20304 = vst [vmem:[#allocation31_spill] sm:$0xff] %v17506_v38  ;;  %8677 = vmax.xlane.f32.xlu1 %v8676_v60 }
 0x34b   : > { %20305 = vst [vmem:[#allocation30_spill] sm:$0xff] %v17509_v56  ;;  %v6272_v29 = vcombine.low %v17506_v38, %v17509_v56 }
 0x34c   : > { %v17513_v31 = vpop.permute.xlu1 %4996 }
 0x34d   : > { %20306 = vst [vmem:[#allocation32_spill] sm:$0xff] %v17513_v31  ;;  %v7028_v4 = vshrl.u32 %v6272_v29, 16 }
 0x350   : > { %v17475_v9 = vpop.f32.mrb[40].mxu0 }
 0x351   : > { %v14015_v46 = vpop.f32.mrb[41].mxu0  ;;  %v17483_v14 = vpop.f32.mrb[32].mxu1 }
 0x352   : > { %v17481_v36 = vpop.f32.mrb[42].mxu0  ;;  %v13997_v51 = vpop.f32.mrb[33].mxu1  ;;  %v6314_v46 = vcombine.low %v6297_v28, %v6305_v52 }
 0x353   : > { %v14016_v43 = vpop.f32.mrb[43].mxu0  ;;  %v17485_v45 = vpop.f32.mrb[34].mxu1 }
 0x354   : > { %v13998_v40 = vpop.f32.mrb[35].mxu1  ;;  %v6313_v43 = vrot.slane %v6306_v41, %v15442_v34  ;;  %v6321_v51 = vrot.slane %v6314_v46, %v15442_v34  ;;  %v17521_v15 = vpop.permute.xlu1 %5028  ;;  %v8679_v41 = vsel %vm8657_vm2, %v17459_v23, -inf }
 0x355   : > { %20307 = vst [vmem:[#allocation13_spill] sm:$0xff] %v17521_v15  ;;  %v17545_v52 = vpop.permute.xlu0 %5012  ;;  %8680 = vmax.xlane.f32.xlu0 %v8679_v41 }
 0x356   : > { %v6322_v26 = vcombine.low %v6313_v43, %v6321_v51  ;;  %20313 = vst [vmem:[#allocation33_spill] sm:$0xff] %v17545_v52 }
 0x358   : > { %v7026_v53 = vpack.i.b16 %v6322_v26, %v6272_v29  ;;  %v7029_v0 = vshrl.u32 %v6322_v26, 16  ;;  %v17526_v20 = vpop.permute.xlu1 %5014  ;;  %v8688_v29 = vsel %vm8657_vm2, %v17483_v14, -inf  ;;  %v8709_v26 = vsel %vm8657_vm2, %v17481_v36, -inf }
 0x359   : > { %20308 = vst [vmem:[#allocation50_spill] sm:$0xff] %v17526_v20  ;;  %8710 = vmax.xlane.f32.xlu0 %v8709_v26 }
 0x35a   : > { %14156 = vmatpush3.bf16.msra.mxu0 %v7026_v53  ;;  %v7030_v12 = vpack.i.b16 %v7029_v0, %v7028_v4  ;;  %v17561_v53 = vpop.permute.xlu0 %4998 }
 0x35b   : > { %14167 = vmatprep.subr.bf16.mxu0 %v20098_v27  ;;  %20315 = vst [vmem:[#allocation34_spill] sm:$0xff] %v17561_v53 }
 0x35c   : > { %14162 = vmatpush3.bf16.msra.mxu1 %v7030_v12  ;;  %v17529_v63 = vpop.permute.xlu1 %5030 }
 0x35d   : > { %14173 = vmatprep.subr.bf16.mxu1 %v20098_v27  ;;  %20309 = vst [vmem:[#allocation53_spill] sm:$0xff] %v17529_v63 }
 0x35e   : > { %v17503_v47 = vpop.f32.mrb[44].mxu0  ;;  %v17569_v60 = vpop.permute.xlu0 %5016 }
 0x35f   : > { %v14027_v25 = vpop.f32.mrb[45].mxu0  ;;  %v8718_v12 = vsel %vm8657_vm2, %v17503_v47, -inf  ;;  %20316 = vst [vmem:[#allocation38_spill] sm:$0xff] %v17569_v60 }
 0x360   : > { %v17511_v30 = vpop.f32.mrb[46].mxu0  ;;  %v17533_v8 = vpop.permute.xlu1 %5000  ;;  %v8706_v25 = vsel %vm8657_vm2, %v17475_v9, -inf }
 0x361   : > { %v14028_v33 = vpop.f32.mrb[47].mxu0  ;;  %20310 = vst [vmem:[#allocation52_spill] sm:$0xff] %v17533_v8  ;;  %8707 = vmax.xlane.f32.xlu1 %v8706_v25  ;;  %v17573_v25 = vcombine.high %v6313_v43, %v6321_v51 }
 0x362   : > { %v17579_v26 = vpop.permute.xlu0 %5002 }
 0x363   : > { %20318 = vst [vmem:[#allocation27_spill] sm:$0xff] %v17573_v25  ;;  %20319 = vst [vmem:[#allocation14_spill] sm:$0xff] %v17579_v26 }
 0x365   : > { %v17543_v19 = vpop.permute.xlu1 %5032  ;;  %8689 = vmax.xlane.f32.xlu1 %v8688_v29 }
 0x366   : > { %20312 = vst [vmem:[#allocation49_spill] sm:$0xff] %v17543_v19 }
 0x369   : > { %v17519_v62 = vpop.f32.mrb[36].mxu1  ;;  %v17557_v4 = vpop.permute.xlu1 %5018  ;;  %8719 = vmax.xlane.f32.xlu1 %v8718_v12 }
 0x36a   : > { %v14009_v6 = vpop.f32.mrb[37].mxu1  ;;  %20314 = vst [vmem:[#allocation36_spill] sm:$0xff] %v17557_v4  ;;  %v8700_v41 = vsel %vm8657_vm2, %v17519_v62, -inf }
 0x36b   : > { %v17523_v50 = vpop.f32.mrb[38].mxu1 }
 0x36c   : > { %v14010_v40 = vpop.f32.mrb[39].mxu1 }
 0x36d   : > { %8701 = vmax.xlane.f32.xlu1 %v8700_v41 }
 0x36f   : > { %v5021_v12 = vpop.permute.xlu0 %5020 }
 0x37c   : > { %v17531_v58 = vpop.f32.mrb[48].mxu0 }
 0x37d   : > { %v14039_v22 = vpop.f32.mrb[49].mxu0 }
 0x37e   : > { %v17535_v1 = vpop.f32.mrb[50].mxu0  ;;  %v8691_v22 = vsel %vm8657_vm2, %v17485_v45, -inf }
 0x37f   : > { %v14040_v37 = vpop.f32.mrb[51].mxu0  ;;  %8692 = vmax.xlane.f32.xlu0 %v8691_v22  ;;  %v8703_v22 = vsel %vm8657_vm2, %v17523_v50, -inf  ;;  %v8733_v41 = vsel %vm8657_vm2, %v17535_v1, -inf }
 0x382   : > { %v17541_v61 = vpop.f32.mrb[40].mxu1 }
 0x383   : > { %v14021_v28 = vpop.f32.mrb[41].mxu1 }
 0x384   : > { %v17551_v46 = vpop.f32.mrb[42].mxu1  ;;  %v17571_v28 = vpop.permute.xlu1 %5034 }
 0x385   : > { %v14022_v33 = vpop.f32.mrb[43].mxu1  ;;  %20317 = vst [vmem:[#allocation26_spill] sm:$0xff] %v17571_v28  ;;  %v5140_v28 = vshrl.u32 %v17314_v39, 16  ;;  %v8715_v19 = vsel %vm8657_vm2, %v17551_v46, -inf }
 0x386   : > { %v8721_v33 = vsel %vm8657_vm2, %v17511_v30, -inf }
 0x387   : > { %8722 = vmax.xlane.f32.xlu0 %v8721_v33 }
 0x388   : > { %v5005_v29 = vpop.permute.xlu1 %5004 }
 0x389   : > { %v17559_v6 = vpop.f32.mrb[52].mxu0  ;;  %v5141_v4 = vshrl.u32 %v5005_v29, 16 }
 0x38a   : > { %v14051_v0 = vpop.f32.mrb[53].mxu0  ;;  %v8742_v60 = vsel %vm8657_vm2, %v17559_v6, -inf }
 0x38b   : > { %v17563_v40 = vpop.f32.mrb[54].mxu0  ;;  %v8730_v0 = vsel %vm8657_vm2, %v17531_v58, -inf  ;;  %8704 = vmax.xlane.f32.xlu0 %v8703_v22  ;;  %v5138_v22 = vpack.i.b16 %v5005_v29, %v17314_v39 }
 0x38c   : > { %v14052_v37 = vpop.f32.mrb[55].mxu0  ;;  %8731 = vmax.xlane.f32.xlu1 %v8730_v0  ;;  %v5037_v26 = vpop.permute.xlu1 %5036  ;;  %v8745_v29 = vsel %vm8657_vm2, %v17563_v40, -inf }
 0x38d   : > { %v8712_v37 = vsel %vm8657_vm2, %v17541_v61, -inf  ;;  %v5146_v27 = vpack.i.b16 %v5037_v26, %v5021_v12  ;;  %v5149_v0 = vshrl.u32 %v5037_v26, 16  ;;  %v5960_v25 = vcombine.high %v5138_v22, %v20301_v16 }
 0x38e   : > { %v5967_v26 = vrot.slane %v5138_v22, %v15439_v32 }
 0x38f   : > { %8734 = vmax.xlane.f32.xlu0 %v8733_v41  ;;  %v5142_v41 = vpack.i.b16 %v5141_v4, %v5140_v28 }
 0x390   : > { %8713 = vmax.xlane.f32.xlu1 %v8712_v37 }
 0x391   : > { %v6033_v22 = vrot.slane %v5142_v41, %v15439_v32 }
 0x393   : > { %8716 = vmax.xlane.f32.xlu0 %v8715_v19  ;;  %v5974_v19 = vrot.slane %v5960_v25, %v15439_v32 }
 0x394   : > { %8743 = vmax.xlane.f32.xlu1 %v8742_v60  ;;  %v6026_v60 = vcombine.high %v5142_v41, %v20301_v16 }
 0x397   : > { %v17585_v43 = vpop.f32.mrb[44].mxu1  ;;  %8746 = vmax.xlane.f32.xlu0 %v8745_v29 }
 0x398   : > { %v14033_v51 = vpop.f32.mrb[45].mxu1  ;;  %v8724_v39 = vsel %vm8657_vm2, %v17585_v43, -inf }
 0x399   : > { %v17591_v33 = vpop.f32.mrb[46].mxu1  ;;  %v5148_v51 = vshrl.u32 %v5021_v12, 16  ;;  %v5982_v12 = vrot.slane %v5146_v27, %v15439_v32  ;;  %8725 = vmax.xlane.f32.xlu1 %v8724_v39 }
 0x39a   : > { %v14034_v57 = vpop.f32.mrb[47].mxu1  ;;  %v8727_v28 = vsel %vm8657_vm2, %v17591_v33, -inf }
 0x39b   : > { %v5975_v57 = vcombine.high %v5146_v27, %v20301_v16  ;;  %v5150_v38 = vpack.i.b16 %v5149_v0, %v5148_v51  ;;  %v5990_v0 = vcombine.low %v5967_v26, %v5982_v12  ;;  %v5991_v51 = vcombine.high %v5967_v26, %v5982_v12  ;;  %8728 = vmax.xlane.f32.xlu0 %v8727_v28 }
 0x39d   : > { %v5989_v37 = vrot.slane %v5975_v57, %v15439_v32  ;;  %v6041_v4 = vcombine.high %v5150_v38, %v20301_v16  ;;  %v6048_v27 = vrot.slane %v5150_v38, %v15439_v32  ;;  %v6040_v57 = vrot.slane %v6026_v60, %v15439_v32 }
 0x39e   : > { %v5998_v26 = vrot.slane %v5990_v0, %v15442_v34  ;;  %v6005_v41 = vrot.slane %v5991_v51, %v15442_v34 }
 0x39f   : > { %v6006_v29 = vcombine.low %v5974_v19, %v5989_v37  ;;  %v6007_v56 = vcombine.high %v5974_v19, %v5989_v37  ;;  %v6055_v39 = vrot.slane %v6041_v4, %v15439_v32  ;;  %v6056_v19 = vcombine.low %v6033_v22, %v6048_v27 }
 0x3a0   : > { %v6057_v37 = vcombine.high %v6033_v22, %v6048_v27  ;;  %v13651_v7 = vcombine.high %v5998_v26, %v6005_v41 }
 0x3a1   : > { %v6014_v20 = vrot.slane %v6006_v29, %v15442_v34  ;;  %v6021_v0 = vrot.slane %v6007_v56, %v15442_v34  ;;  %v6072_v53 = vcombine.low %v6040_v57, %v6055_v39  ;;  %v6064_v22 = vrot.slane %v6056_v19, %v15442_v34 }
 0x3a2   : > { %v6071_v27 = vrot.slane %v6057_v37, %v15442_v34 }
 0x3a3   : > { %v6840_v59 = vcombine.low %v6014_v20, %v6021_v0  ;;  %v13652_v52 = vcombine.high %v6014_v20, %v6021_v0  ;;  %v6080_v56 = vrot.slane %v6072_v53, %v15442_v34 }
 0x3a4   : > { %v6874_v20 = vcombine.low %v6064_v22, %v6071_v27 }
 0x3a6   : > { %v6881_v31 = vrot.slane %v6874_v20, %v15439_v32 }
 0x3a7   : > { %v17615_v25 = vpop.f32.mrb[56].mxu0 }
 0x3a8   : > { %v14063_v2 = vpop.f32.mrb[57].mxu0  ;;  %v8754_v8 = vsel %vm8657_vm2, %v17615_v25, -inf  ;;  %v17621_v63 = vpop.f32.mrb[48].mxu1 }
 0x3a9   : > { %v17625_v12 = vpop.f32.mrb[58].mxu0  ;;  %8755 = vmax.xlane.f32.xlu1 %v8754_v8  ;;  %v14045_v38 = vpop.f32.mrb[49].mxu1  ;;  %v8736_v2 = vsel %vm8657_vm2, %v17621_v63, -inf  ;;  %v6073_v8 = vcombine.high %v6040_v57, %v6055_v39 }
 0x3aa   : > { %v14064_v28 = vpop.f32.mrb[59].mxu0  ;;  %v17627_v60 = vpop.f32.mrb[50].mxu1  ;;  %v8757_v4 = vsel %vm8657_vm2, %v17625_v12, -inf  ;;  %v6824_v38 = vcombine.low %v5998_v26, %v6005_v41 }
 0x3ab   : > { %8758 = vmax.xlane.f32.xlu0 %v8757_v4  ;;  %v14046_v51 = vpop.f32.mrb[51].mxu1  ;;  %v8739_v28 = vsel %vm8657_vm2, %v17627_v60, -inf  ;;  %v6087_v29 = vrot.slane %v6073_v8, %v15442_v34  ;;  %v13653_v8 = vcombine.high %v6064_v22, %v6071_v27 }
 0x3ac   : > { %v6831_v26 = vrot.slane %v6824_v38, %v15439_v32  ;;  %v6839_v51 = vrot.slane %v13651_v7, %v15439_v32 }
 0x3ad   : > { %8737 = vmax.xlane.f32.xlu1 %v8736_v2  ;;  %v6890_v38 = vcombine.low %v6080_v56, %v6087_v29  ;;  %v6889_v7 = vrot.slane %v13653_v8, %v15439_v32 }
 0x3ae   : > { %v6856_v13 = vcombine.low %v6831_v26, %v6839_v51 }
 0x3af   : > { %8740 = vmax.xlane.f32.xlu0 %v8739_v28  ;;  %v6897_v27 = vrot.slane %v6890_v38, %v15439_v32 }
 0x3b0   : > { %v17639_v15 = vpop.f32.mrb[60].mxu0  ;;  %v17672_v20 = vrot.slane %v6856_v13, %v15442_v34 }
 0x3b1   : > { %v14075_v57 = vpop.f32.mrb[61].mxu0  ;;  %v8766_v39 = vsel %vm8657_vm2, %v17639_v15, -inf  ;;  %v17645_v19 = vpop.f32.mrb[52].mxu1 }
 0x3b2   : > { %v17647_v37 = vpop.f32.mrb[62].mxu0  ;;  %8767 = vmax.xlane.f32.xlu1 %v8766_v39  ;;  %v14057_v2 = vpop.f32.mrb[53].mxu1  ;;  %v8748_v53 = vsel %vm8657_vm2, %v17645_v19, -inf  ;;  %v6847_v57 = vrot.slane %v6840_v59, %v15439_v32  ;;  %v6855_v39 = vrot.slane %v13652_v52, %v15439_v32  ;;  %20320 = vst [vmem:[#allocation54_spill] sm:$0xff] %v17672_v20 }
 0x3b3   : > { %v14076_v41 = vpop.f32.mrb[63].mxu0  ;;  %v17650_v4 = vpop.f32.mrb[54].mxu1  ;;  %v8769_v0 = vsel %vm8657_vm2, %v17647_v37, -inf  ;;  %v13654_v2 = vcombine.high %v6080_v56, %v6087_v29  ;;  %v6906_v56 = vcombine.low %v6881_v31, %v6889_v7 }
 0x3b4   : > { %8770 = vmax.xlane.f32.xlu0 %v8769_v0  ;;  %v14058_v28 = vpop.f32.mrb[55].mxu1  ;;  %v8751_v41 = vsel %vm8657_vm2, %v17650_v4, -inf  ;;  %v6864_v16 = vcombine.low %v6847_v57, %v6855_v39 }
 0x3b5   : > { %v6905_v52 = vrot.slane %v13654_v2, %v15439_v32  ;;  %v17682_v39 = vrot.slane %v6906_v56, %v15442_v34 }
 0x3b6   : > { %8749 = vmax.xlane.f32.xlu1 %v8748_v53  ;;  %v17675_v26 = vrot.slane %v6864_v16, %v15442_v34 }
 0x3b7   : > { %v6914_v28 = vcombine.low %v6897_v27, %v6905_v52  ;;  %20322 = vst [vmem:[#allocation35_spill] sm:$0xff] %v17682_v39 }
 0x3b8   : > { %8752 = vmax.xlane.f32.xlu0 %v8751_v41  ;;  %20321 = vst [vmem:[#allocation55_spill] sm:$0xff] %v17675_v26  ;;  %v17693_v2 = vcombine.high %v17672_v20, %v17675_v26 }
 0x3b9   : > { %v17689_v16 = vrot.slane %v6914_v28, %v15442_v34 }
 0x3ba   : > { %20324 = vst [vmem:[#allocation56_spill] sm:$0xff] %v17693_v2 }
 0x3bb   : > { %v17663_v22 = vpop.f32.mrb[56].mxu1  ;;  %20323 = vst [vmem:[#allocation37_spill] sm:$0xff] %v17689_v16  ;;  %v17699_v27 = vcombine.high %v17682_v39, %v17689_v16 }
 0x3bc   : > { %v14069_v59 = vpop.f32.mrb[57].mxu1  ;;  %v8760_v38 = vsel %vm8657_vm2, %v17663_v22, -inf }
 0x3bd   : > { %v17666_v0 = vpop.f32.mrb[58].mxu1  ;;  %20325 = vst [vmem:[#allocation12_spill] sm:$0xff] %v17699_v27 }
 0x3be   : > { %v17669_v29 = vpop.f32.mrb[64].mxu0  ;;  %v14070_v53 = vpop.f32.mrb[59].mxu1  ;;  %v8763_v59 = vsel %vm8657_vm2, %v17666_v0, -inf }
 0x3bf   : > { %v14087_v51 = vpop.f32.mrb[65].mxu0  ;;  %v8778_v8 = vsel %vm8657_vm2, %v17669_v29, -inf }
 0x3c0   : > { %v17679_v57 = vpop.f32.mrb[66].mxu0  ;;  %8779 = vmax.xlane.f32.xlu1 %v8778_v8  ;;  %v7132_v51 = vshrl.u32 %v17693_v2, 16 }
 0x3c1   : > { %v14088_v31 = vpop.f32.mrb[67].mxu0  ;;  %v8781_v13 = vsel %vm8657_vm2, %v17679_v57, -inf }
 0x3c2   : > { %8782 = vmax.xlane.f32.xlu0 %v8781_v13 }
 0x3c3   : > { %v17695_v41 = vpop.f32.mrb[60].mxu1 }
 0x3c4   : > { %8761 = vmax.xlane.f32.xlu1 %v8760_v38  ;;  %v14081_v7 = vpop.f32.mrb[61].mxu1  ;;  %v7133_v38 = vshrl.u32 %v17699_v27, 16 }
 0x3c5   : > { %v17703_v52 = vpop.f32.mrb[62].mxu1  ;;  %v8772_v7 = vsel %vm8657_vm2, %v17695_v41, -inf }
 0x3c6   : > { %20326 = vst [vmem:[#allocation28_spill] sm:$0xff] %v17703_v52  ;;  %v17705_v56 = vpop.f32.mrb[68].mxu0  ;;  %8764 = vmax.xlane.f32.xlu0 %v8763_v59  ;;  %v14082_v53 = vpop.f32.mrb[63].mxu1  ;;  %v17717_v59 = vpack.i.b16 %v7133_v38, %v7132_v51  ;;  %v8775_v51 = vsel %vm8657_vm2, %v17703_v52, -inf }
 0x3c7   : > { %v14099_v8 = vpop.f32.mrb[69].mxu0  ;;  %v8790_v28 = vsel %vm8657_vm2, %v17705_v56, -inf }
 0x3c8   : > { %v17710_v31 = vpop.f32.mrb[70].mxu0  ;;  %8791 = vmax.xlane.f32.xlu1 %v8790_v28  ;;  %20327 = vst [vmem:[#allocation21_spill] sm:$0xff] %v17717_v59 }
 0x3c9   : > { %v14100_v13 = vpop.f32.mrb[71].mxu0  ;;  %v8793_v39 = vsel %vm8657_vm2, %v17710_v31, -inf }
 0x3ca   : > { %8794 = vmax.xlane.f32.xlu0 %v8793_v39 }
 0x3cc   : > { %8773 = vmax.xlane.f32.xlu1 %v8772_v7 }
 0x3cd   : > { %v17719_v53 = vpop.f32.mrb[64].mxu1 }
 0x3ce   : > { %20328 = vst [vmem:[#allocation45_spill] sm:$0xff] %v17719_v53  ;;  %v14093_v8 = vpop.f32.mrb[65].mxu1 }
 0x3cf   : > { %v17721_v2 = vpop.f32.mrb[66].mxu1 }
 0x3d0   : > { %20329 = vst [vmem:[#allocation44_spill] sm:$0xff] %v17721_v2  ;;  %v17723_v16 = vpop.f32.mrb[72].mxu0  ;;  %v14094_v28 = vpop.f32.mrb[67].mxu1  ;;  %v8787_v32 = vsel %vm8657_vm2, %v17721_v2, -inf }
 0x3d1   : > { %v14111_v27 = vpop.f32.mrb[73].mxu0  ;;  %v8802_v13 = vsel %vm8657_vm2, %v17723_v16, -inf }
 0x3d2   : > { %v17727_v20 = vpop.f32.mrb[74].mxu0  ;;  %8803 = vmax.xlane.f32.xlu0 %v8802_v13  ;;  %v8784_v27 = vsel %vm8657_vm2, %v17719_v53, -inf }
 0x3d3   : > { %20330 = vst [vmem:[#allocation46_spill] sm:$0xff] %v17727_v20  ;;  %v14112_v26 = vpop.f32.mrb[75].mxu0  ;;  %v8805_v39 = vsel %vm8657_vm2, %v17727_v20, -inf }
 0x3d4   : > { %8806 = vmax.xlane.f32.xlu1 %v8805_v39 }
 0x3d5   : > { %v17733_v38 = vpop.f32.mrb[68].mxu1 }
 0x3d6   : > { %20331 = vst [vmem:[#allocation15_spill] sm:$0xff] %v17733_v38  ;;  %8776 = vmax.xlane.f32.xlu0 %v8775_v51  ;;  %v14105_v7 = vpop.f32.mrb[69].mxu1 }
 0x3d7   : > { %v17737_v8 = vpop.f32.mrb[70].mxu1  ;;  %v8660_v7 = vpop.xlane.xlu0 %8659 }
 0x3d8   : > { %20332 = vst [vmem:[#allocation62_spill] sm:$0xff] %v17737_v8  ;;  %v17739_v28 = vpop.f32.mrb[76].mxu0  ;;  %8785 = vmax.xlane.f32.xlu1 %v8784_v27  ;;  %v14106_v26 = vpop.f32.mrb[71].mxu1 }
 0x3d9   : > { %20333 = vst [vmem:[#allocation59_spill] sm:$0xff] %v17739_v28  ;;  %v14123_v13 = vpop.f32.mrb[77].mxu0  ;;  %v8814_v39 = vsel %vm8657_vm2, %v17739_v28, -inf  ;;  %v8663_v27 = vpop.xlane.xlu1 %8662 }
 0x3da   : > { %v17743_v59 = vpop.f32.mrb[78].mxu0  ;;  %8815 = vmax.xlane.f32.xlu0 %v8814_v39 }
 0x3db   : > { %20334 = vst [vmem:[#allocation60_spill] sm:$0xff] %v17743_v59  ;;  %v14124_v34 = vpop.f32.mrb[79].mxu0  ;;  %v8817_v51 = vsel %vm8657_vm2, %v17743_v59, -inf  ;;  %v8666_v21 = vpop.xlane.xlu0 %8665  ;;  %v8796_v59 = vsel %vm8657_vm2, %v17733_v38, -inf }
 0x3dc   : > { %8818 = vmax.xlane.f32.xlu1 %v8817_v51 }
 0x3dd   : > { %v17749_v3 = vpop.f32.mrb[72].mxu1  ;;  %v8684_v11 = vpop.xlane.xlu1 %8683 }
 0x3de   : > { %20335 = vst [vmem:[#allocation61_spill] sm:$0xff] %v17749_v3  ;;  %8788 = vmax.xlane.f32.xlu0 %v8787_v32  ;;  %v14117_v26 = vpop.f32.mrb[73].mxu1 }
 0x3df   : > { %v17751_v13 = vpop.f32.mrb[74].mxu1  ;;  %v8799_v26 = vsel %vm8657_vm2, %v17737_v8, -inf  ;;  %v8669_v38 = vpop.xlane.xlu0 %8668  ;;  %v8808_v8 = vsel %vm8657_vm2, %v17749_v3, -inf }
 0x3e0   : > { %20336 = vst [vmem:[#allocation16_spill] sm:$0xff] %v17751_v13  ;;  %v17753_v35 = vpop.f32.mrb[80].mxu0  ;;  %v14118_v39 = vpop.f32.mrb[75].mxu1 }
 0x3e1   : > { %20337 = vst [vmem:[#allocation57_spill] sm:$0xff] %v17753_v35  ;;  %v14135_v34 = vpop.f32.mrb[81].mxu0  ;;  %v8826_v51 = vsel %vm8657_vm2, %v17753_v35, -inf }
 0x3e2   : > { %8797 = vmax.xlane.f32.xlu0 %v8796_v59  ;;  %8827 = vmax.xlane.f32.xlu1 %v8826_v51  ;;  %v17759_v2 = vpop.f32.mrb[82].mxu0  ;;  %v8851_v34 = vsub.f32 %v17392_v48, %v8663_v27  ;;  %v17770_v59 = vpop.xlane.xlu1 %8671  ;;  %v8858_v48 = vsub.f32 %v17433_v10, %v8684_v11 }
 0x3e3   : > { %20338 = vst [vmem:[#allocation58_spill] sm:$0xff] %v17759_v2  ;;  %v14136_v32 = vpop.f32.mrb[83].mxu0  ;;  %v8829_v28 = vsel %vm8657_vm2, %v17759_v2, -inf }
 0x3e4   : > { %v8916_v20 = vmul.f32 1.442695, %v8851_v34  ;;  %v8930_v34 = vmul.f32 1.442695, %v8858_v48 }
 0x3e5   : > { %v17765_v39 = vpop.f32.mrb[76].mxu1 }
 0x3e6   : > { %8800 = vmax.xlane.f32.xlu1 %v8799_v26  ;;  %8830 = vmax.xlane.f32.xlu0 %v8829_v28  ;;  %v14129_v35 = vpop.f32.mrb[77].mxu1  ;;  %v8850_v28 = vsub.f32 %v17385_v55, %v8660_v7  ;;  %v8687_v26 = vpop.xlane.xlu0 %8686  ;;  %14644 = vpow2.f32 %v8916_v20 }
 0x3e7   : > { %v17768_v53 = vpop.f32.mrb[78].mxu1  ;;  %14646 = vpow2.f32 %v8930_v34 }
 0x3e8   : > { %v17772_v51 = vpop.f32.mrb[84].mxu0  ;;  %v14130_v32 = vpop.f32.mrb[79].mxu1  ;;  %v8914_v10 = vmul.f32 1.442695, %v8850_v28 }
 0x3e9   : > { %20339 = vst [vmem:[#allocation24_spill] sm:$0xff] %v17772_v51  ;;  %v14147_v52 = vpop.f32.mrb[85].mxu0  ;;  %v8838_v2 = vsel %vm8657_vm2, %v17772_v51, -inf }
 0x3ea   : > { %8809 = vmax.xlane.f32.xlu0 %v8808_v8  ;;  %8839 = vmax.xlane.f32.xlu1 %v8838_v2  ;;  %v17779_v35 = vpop.f32.mrb[86].mxu0  ;;  %v8811_v52 = vsel %vm8657_vm2, %v17751_v13, -inf  ;;  %v8852_v2 = vsub.f32 %v17411_v17, %v8666_v21  ;;  %v8696_v8 = vpop.xlane.xlu1 %8695  ;;  %14648 = vpow2.f32 %v8914_v10  ;;  %v8859_v21 = vsub.f32 %v17435_v54, %v8687_v26 }
 0x3eb   : > { %20340 = vst [vmem:[#allocation22_spill] sm:$0xff] %v17779_v35  ;;  %v14148_v27 = vpop.f32.mrb[87].mxu0  ;;  %v8841_v32 = vsel %vm8657_vm2, %v17779_v35, -inf  ;;  %v8820_v35 = vsel %vm8657_vm2, %v17765_v39, -inf  ;;  %v8862_v20 = vsub.f32 %v17449_v24, %v8696_v8  ;;  %v8675_v48 = vpop.xlane.xlu0 %8674  ;;  %v8854_v10 = vsub.f32 %v17441_v49, %v17770_v59 }
 0x3ec   : > { %v8853_v27 = vsub.f32 %v17415_v44, %v8669_v38  ;;  %v8918_v17 = vmul.f32 1.442695, %v8852_v2 }
 0x3ed   : > { %v17786_v3 = vpop.f32.mrb[80].mxu1  ;;  %v8938_v44 = vmul.f32 1.442695, %v8862_v20  ;;  %v8922_v49 = vmul.f32 1.442695, %v8854_v10 }
 0x3ee   : > { %8812 = vmax.xlane.f32.xlu1 %v8811_v52  ;;  %8842 = vmax.xlane.f32.xlu0 %v8841_v32  ;;  %v14141_v11 = vpop.f32.mrb[81].mxu1  ;;  %v8832_v7 = vsel %vm8657_vm2, %v17786_v3, -inf  ;;  %v8920_v28 = vmul.f32 1.442695, %v8853_v27  ;;  %v8823_v52 = vsel %vm8657_vm2, %v17768_v53, -inf  ;;  %14650 = vpow2.f32 %v8918_v17 }
 0x3ef   : > { %v17789_v55 = vpop.f32.mrb[82].mxu1  ;;  %v8699_v11 = vpop.xlane.xlu0 %8698 }
 0x3f0   : > { %20341 = vst [vmem:[#allocation25_spill] sm:$0xff] %v17789_v55  ;;  %v14142_v13 = vpop.f32.mrb[83].mxu1  ;;  %v17802_v34 = vpop.eup %14644  ;;  %14652 = vpow2.f32 %v8920_v28  ;;  %v8835_v2 = vsel %vm8657_vm2, %v17789_v55, -inf }
 0x3f1   : > { %v8932_v13 = vmul.f32 1.442695, %v8859_v21  ;;  %14654 = vpow2.f32 %v8938_v44  ;;  %v9045_v8 = vsel %vm8657_vm2, %v17802_v34, 0.0 }
 0x3f2   : > { %8821 = vmax.xlane.f32.xlu0 %v8820_v35  ;;  %8833 = vmax.xlane.f32.xlu1 %v8832_v7  ;;  %v8855_v35 = vsub.f32 %v17443_v42, %v8675_v48  ;;  %v8863_v42 = vsub.f32 %v17453_v18, %v8699_v11  ;;  %v17816_v7 = vpop.eup %14646 }
 0x3f3   : > { %14656 = vpow2.f32 %v8932_v13  ;;  %v9066_v17 = vsel %vm8657_vm2, %v17816_v7, 0.0 }
 0x3f4   : > { %v8924_v20 = vmul.f32 1.442695, %v8855_v35  ;;  %v17820_v48 = vpop.eup %14648  ;;  %v8940_v59 = vmul.f32 1.442695, %v8863_v42 }
 0x3f5   : > { %v17800_v32 = vpop.f32.mrb[84].mxu1  ;;  %v9042_v21 = vsel %vm8657_vm2, %v17820_v48, 0.0 }
 0x3f6   : > { %20342 = vst [vmem:[#allocation23_spill] sm:$0xff] %v17800_v32  ;;  %8824 = vmax.xlane.f32.xlu0 %v8823_v52  ;;  %v14153_v38 = vpop.f32.mrb[85].mxu1  ;;  %v8844_v27 = vsel %vm8657_vm2, %v17800_v32, -inf  ;;  %14658 = vpow2.f32 %v8924_v20 }
 0x3f7   : > { %v17804_v24 = vpop.f32.mrb[86].mxu1  ;;  %14660 = vpow2.f32 %v8922_v49  ;;  %v8681_v49 = vpop.xlane.xlu0 %8680 }
 0x3f8   : > { %20343 = vst [vmem:[#allocation40_spill] sm:$0xff] %v17804_v24  ;;  %v14154_v54 = vpop.f32.mrb[87].mxu1  ;;  %v8847_v26 = vsel %vm8657_vm2, %v17804_v24, -inf  ;;  %v17826_v18 = vpop.eup %14650  ;;  %14662 = vpow2.f32 %v8940_v59 }
 0x3f9   : > { %8848 = vmax.xlane.f32.xlu1 %v8847_v26  ;;  %v9048_v44 = vsel %vm8657_vm2, %v17826_v18, 0.0 }
 0x3fa   : > { %8836 = vmax.xlane.f32.xlu0 %v8835_v2  ;;  %v17828_v28 = vpop.eup %14652 }
 0x3fb   : > { %v17830_v52 = vpop.eup %14654  ;;  %v9051_v13 = vsel %vm8657_vm2, %v17828_v28, 0.0 }
 0x3fc   : > { %20344 = vst [vmem:[#allocation63_spill] sm:$0xff] %v17830_v52  ;;  %v9078_v35 = vsel %vm8657_vm2, %v17830_v52, 0.0 }
 0x3fd   : > { %9046 = vadd.xlane.f32.xlu1 %v9045_v8  ;;  %v17834_v38 = vpop.eup %14656 }
 0x3fe   : > { %8845 = vmax.xlane.f32.xlu0 %v8844_v27  ;;  %v9069_v11 = vsel %vm8657_vm2, %v17834_v38, 0.0  ;;  %v8678_v27 = vpop.xlane.xlu1 %8677 }
 0x3ff   : > { %v8856_v20 = vsub.f32 %v17457_v5, %v8678_v27 }
 0x400   : > { %v17842_v54 = vpop.eup %14658 }
 0x401   : > { %9067 = vadd.xlane.f32.xlu1 %v9066_v17  ;;  %v17844_v26 = vpop.eup %14660  ;;  %v9057_v2 = vsel %vm8657_vm2, %v17842_v54, 0.0  ;;  %v8926_v59 = vmul.f32 1.442695, %v8856_v20  ;;  %v8857_v17 = vsub.f32 %v17459_v23, %v8681_v49 }
 0x402   : > { %9043 = vadd.xlane.f32.xlu0 %v9042_v21  ;;  %v17846_v10 = vpop.eup %14662  ;;  %v9054_v8 = vsel %vm8657_vm2, %v17844_v26, 0.0  ;;  %v8708_v21 = vpop.xlane.xlu1 %8707 }
 0x403   : > { %20345 = vst [vmem:[#allocation64_spill] sm:$0xff] %v17846_v10  ;;  %v9081_v42 = vsel %vm8657_vm2, %v17846_v10, 0.0  ;;  %14664 = vpow2.f32 %v8926_v59  ;;  %v20424_v10 = vld [vmem:[#allocation30_spill] sm:$0xff] }
 0x405   : > { %9052 = vadd.xlane.f32.xlu1 %v9051_v13  ;;  %v8928_v13 = vmul.f32 1.442695, %v8857_v17 }
 0x406   : > { %9049 = vadd.xlane.f32.xlu0 %v9048_v44  ;;  %v8866_v44 = vsub.f32 %v17475_v9, %v8708_v21 }
 0x407   : > { %14666 = vpow2.f32 %v8928_v13 }
 0x409   : > { %9079 = vadd.xlane.f32.xlu1 %v9078_v35  ;;  %v8711_v35 = vpop.xlane.xlu0 %8710 }
 0x40a   : > { %9070 = vadd.xlane.f32.xlu0 %v9069_v11  ;;  %v8946_v11 = vmul.f32 1.442695, %v8866_v44 }
 0x40c   : > { %14668 = vpow2.f32 %v8946_v11 }
 0x40d   : > { %9058 = vadd.xlane.f32.xlu1 %v9057_v2  ;;  %v8867_v2 = vsub.f32 %v17481_v36, %v8711_v35  ;;  %v8693_v5 = vpop.xlane.xlu0 %8692  ;;  %v17861_v17 = vpop.eup %14664 }
 0x40e   : > { %9055 = vadd.xlane.f32.xlu0 %v9054_v8  ;;  %v8690_v8 = vpop.xlane.xlu1 %8689  ;;  %v8861_v23 = vsub.f32 %v17485_v45, %v8693_v5  ;;  %20346 = vst [vmem:[#allocation65_spill] sm:$0xff] %v17861_v17 }
 0x40f   : > { %v8948_v24 = vmul.f32 1.442695, %v8867_v2 }
 0x410   : > { %v8936_v49 = vmul.f32 1.442695, %v8861_v23 }
 0x411   : > { %14670 = vpow2.f32 %v8948_v24  ;;  %v17866_v13 = vpop.eup %14666 }
 0x412   : > { %9082 = vadd.xlane.f32.xlu0 %v9081_v42  ;;  %v8860_v42 = vsub.f32 %v17483_v14, %v8690_v8  ;;  %v8720_v20 = vpop.xlane.xlu1 %8719  ;;  %v9060_v14 = vsel %vm8657_vm2, %v17861_v17, 0.0  ;;  %20347 = vst [vmem:[#allocation66_spill] sm:$0xff] %v17866_v13  ;;  %v9063_v35 = vsel %vm8657_vm2, %v17866_v13, 0.0 }
 0x413   : > { %v8870_v9 = vsub.f32 %v17503_v47, %v8720_v20  ;;  %9064 = vadd.xlane.f32.xlu1 %v9063_v35 }
 0x414   : > { %v8934_v27 = vmul.f32 1.442695, %v8860_v42  ;;  %v8723_v59 = vpop.xlane.xlu0 %8722 }
 0x415   : > { %v8954_v21 = vmul.f32 1.442695, %v8870_v9  ;;  %v8871_v36 = vsub.f32 %v17511_v30, %v8723_v59 }
 0x416   : > { %14672 = vpow2.f32 %v8934_v27  ;;  %v8702_v44 = vpop.xlane.xlu1 %8701  ;;  %9061 = vadd.xlane.f32.xlu0 %v9060_v14  ;;  %v17871_v11 = vpop.eup %14668 }
 0x417   : > { %14674 = vpow2.f32 %v8954_v21  ;;  %v8864_v45 = vsub.f32 %v17519_v62, %v8702_v44  ;;  %v8956_v24 = vmul.f32 1.442695, %v8871_v36  ;;  %20348 = vst [vmem:[#allocation67_spill] sm:$0xff] %v17871_v11  ;;  %v9090_v42 = vsel %vm8657_vm2, %v17871_v11, 0.0 }
 0x418   : > { %14676 = vpow2.f32 %v8936_v49  ;;  %v8705_v47 = vpop.xlane.xlu0 %8704 }
 0x419   : > { %v8942_v2 = vmul.f32 1.442695, %v8864_v45  ;;  %14678 = vpow2.f32 %v8956_v24  ;;  %v8865_v30 = vsub.f32 %v17523_v50, %v8705_v47 }
 0x41a   : > { %v8732_v8 = vpop.xlane.xlu1 %8731  ;;  %9091 = vadd.xlane.f32.xlu0 %v9090_v42 }
 0x41b   : > { %v17876_v5 = vpop.eup %14670  ;;  %14680 = vpow2.f32 %v8942_v2  ;;  %v8874_v62 = vsub.f32 %v17531_v58, %v8732_v8  ;;  %v8944_v27 = vmul.f32 1.442695, %v8865_v30 }
 0x41c   : > { %20349 = vst [vmem:[#allocation68_spill] sm:$0xff] %v17876_v5  ;;  %v8735_v23 = vpop.xlane.xlu0 %8734  ;;  %v9093_v20 = vsel %vm8657_vm2, %v17876_v5, 0.0 }
 0x41d   : > { %v8962_v49 = vmul.f32 1.442695, %v8874_v62  ;;  %v8875_v50 = vsub.f32 %v17535_v1, %v8735_v23  ;;  %9094 = vadd.xlane.f32.xlu1 %v9093_v20 }
 0x41e   : > { %v8714_v59 = vpop.xlane.xlu1 %8713 }
 0x41f   : > { %14682 = vpow2.f32 %v8962_v49  ;;  %v8868_v21 = vsub.f32 %v17541_v61, %v8714_v59  ;;  %v8964_v36 = vmul.f32 1.442695, %v8875_v50 }
 0x420   : > { %v17881_v9 = vpop.eup %14672  ;;  %14684 = vpow2.f32 %v8944_v27  ;;  %v8717_v44 = vpop.xlane.xlu0 %8716 }
 0x421   : > { %20350 = vst [vmem:[#allocation69_spill] sm:$0xff] %v17881_v9  ;;  %v9072_v58 = vsel %vm8657_vm2, %v17881_v9, 0.0  ;;  %v17887_v14 = vpop.eup %14674  ;;  %v8950_v45 = vmul.f32 1.442695, %v8868_v21  ;;  %14686 = vpow2.f32 %v8964_v36  ;;  %v8869_v24 = vsub.f32 %v17551_v46, %v8717_v44 }
 0x422   : > { %20351 = vst [vmem:[#allocation70_spill] sm:$0xff] %v17887_v14  ;;  %9073 = vadd.xlane.f32.xlu1 %v9072_v58  ;;  %v17890_v47 = vpop.eup %14676  ;;  %v8744_v1 = vpop.xlane.xlu1 %8743  ;;  %v9102_v35 = vsel %vm8657_vm2, %v17887_v14, 0.0 }
 0x423   : > { %20352 = vst [vmem:[#allocation71_spill] sm:$0xff] %v17890_v47  ;;  %v17894_v61 = vpop.eup %14678  ;;  %v8878_v2 = vsub.f32 %v17559_v6, %v8744_v1  ;;  %9103 = vadd.xlane.f32.xlu0 %v9102_v35  ;;  %v8952_v30 = vmul.f32 1.442695, %v8869_v24  ;;  %14688 = vpow2.f32 %v8950_v45  ;;  %v9075_v20 = vsel %vm8657_vm2, %v17890_v47, 0.0 }
 0x424   : > { %20353 = vst [vmem:[#allocation72_spill] sm:$0xff] %v17894_v61  ;;  %v8747_v8 = vpop.xlane.xlu0 %8746  ;;  %v9105_v42 = vsel %vm8657_vm2, %v17894_v61, 0.0 }
 0x425   : > { %v17899_v62 = vpop.eup %14680  ;;  %v8970_v46 = vmul.f32 1.442695, %v8878_v2  ;;  %v8879_v27 = vsub.f32 %v17563_v40, %v8747_v8 }
 0x426   : > { %20354 = vst [vmem:[#allocation73_spill] sm:$0xff] %v17899_v62  ;;  %9106 = vadd.xlane.f32.xlu1 %v9105_v42  ;;  %v8726_v23 = vpop.xlane.xlu1 %8725  ;;  %v9084_v59 = vsel %vm8657_vm2, %v17899_v62, 0.0  ;;  %v20414_v62 = vld [vmem:[#allocation53_spill] sm:$0xff] }
 0x427   : > { %14690 = vpow2.f32 %v8970_v46  ;;  %v8872_v6 = vsub.f32 %v17585_v43, %v8726_v23  ;;  %v8972_v49 = vmul.f32 1.442695, %v8879_v27  ;;  %9076 = vadd.xlane.f32.xlu0 %v9075_v20 }
 0x428   : > { %14692 = vpow2.f32 %v8952_v30  ;;  %v8729_v50 = vpop.xlane.xlu0 %8728 }
 0x429   : > { %v17907_v21 = vpop.eup %14682  ;;  %v8958_v36 = vmul.f32 1.442695, %v8872_v6  ;;  %14694 = vpow2.f32 %v8972_v49  ;;  %v8873_v44 = vsub.f32 %v17591_v33, %v8729_v50 }
 0x42a   : > { %20355 = vst [vmem:[#allocation74_spill] sm:$0xff] %v17907_v21  ;;  %9085 = vadd.xlane.f32.xlu1 %v9084_v59  ;;  %v17909_v40 = vpop.eup %14684  ;;  %v9114_v58 = vsel %vm8657_vm2, %v17907_v21, 0.0 }
 0x42b   : > { %20356 = vst [vmem:[#allocation75_spill] sm:$0xff] %v17909_v40  ;;  %v17914_v43 = vpop.eup %14686  ;;  %9115 = vadd.xlane.f32.xlu0 %v9114_v58  ;;  %14696 = vpow2.f32 %v8958_v36  ;;  %v8960_v35 = vmul.f32 1.442695, %v8873_v44  ;;  %v9087_v30 = vsel %vm8657_vm2, %v17909_v40, 0.0 }
 0x42c   : > { %20357 = vst [vmem:[#allocation76_spill] sm:$0xff] %v17914_v43  ;;  %v9117_v24 = vsel %vm8657_vm2, %v17914_v43, 0.0 }
 0x42d   : > { %v17921_v33 = vpop.eup %14688 }
 0x42e   : > { %9118 = vadd.xlane.f32.xlu1 %v9117_v24  ;;  %20358 = vst [vmem:[#allocation77_spill] sm:$0xff] %v17921_v33  ;;  %v9096_v50 = vsel %vm8657_vm2, %v17921_v33, 0.0 }
 0x42f   : > { %9088 = vadd.xlane.f32.xlu0 %v9087_v30 }
 0x431   : > { %v17924_v27 = vpop.eup %14690 }
 0x432   : > { %20359 = vst [vmem:[#allocation78_spill] sm:$0xff] %v17924_v27  ;;  %v9126_v49 = vsel %vm8657_vm2, %v17924_v27, 0.0 }
 0x433   : > { %9127 = vadd.xlane.f32.xlu1 %v9126_v49  ;;  %9097 = vadd.xlane.f32.xlu0 %v9096_v50 }
 0x436   : > { %v8756_v45 = vpop.xlane.xlu1 %8755 }
 0x437   : > { %v8882_v1 = vsub.f32 %v17615_v25, %v8756_v45  ;;  %v17927_v25 = vpop.eup %14692 }
 0x438   : > { %v8759_v2 = vpop.xlane.xlu0 %8758  ;;  %20360 = vst [vmem:[#allocation79_spill] sm:$0xff] %v17927_v25  ;;  %v17933_v59 = vpop.eup %14694  ;;  %v9099_v24 = vsel %vm8657_vm2, %v17927_v25, 0.0 }
 0x439   : > { %v8978_v8 = vmul.f32 1.442695, %v8882_v1  ;;  %v8883_v42 = vsub.f32 %v17625_v12, %v8759_v2  ;;  %20361 = vst [vmem:[#allocation80_spill] sm:$0xff] %v17933_v59  ;;  %v9129_v44 = vsel %vm8657_vm2, %v17933_v59, 0.0  ;;  %v17941_v1 = vpop.eup %14696  ;;  %9100 = vadd.xlane.f32.xlu1 %v9099_v24  ;;  %v20408_v59 = vld [vmem:[#allocation41_spill] sm:$0xff] }
 0x43a   : > { %v8738_v46 = vpop.xlane.xlu1 %8737  ;;  %20362 = vst [vmem:[#allocation81_spill] sm:$0xff] %v17941_v1  ;;  %9130 = vadd.xlane.f32.xlu0 %v9129_v44  ;;  %v5092_v25 = vshrl.u32 %v20408_v59, 16 }
 0x43b   : > { %14698 = vpow2.f32 %v8978_v8  ;;  %v8876_v23 = vsub.f32 %v17621_v63, %v8738_v46  ;;  %v8980_v20 = vmul.f32 1.442695, %v8883_v42 }
 0x43c   : > { %14700 = vpow2.f32 %v8960_v35  ;;  %v8741_v6 = vpop.xlane.xlu0 %8740 }
 0x43d   : > { %v8966_v12 = vmul.f32 1.442695, %v8876_v23  ;;  %14702 = vpow2.f32 %v8980_v20  ;;  %v8877_v63 = vsub.f32 %v17627_v60, %v8741_v6 }
 0x43f   : > { %v8768_v36 = vpop.xlane.xlu1 %8767  ;;  %14704 = vpow2.f32 %v8966_v12  ;;  %v8968_v30 = vmul.f32 1.442695, %v8877_v63 }
 0x440   : > { %v8886_v58 = vsub.f32 %v17639_v15, %v8768_v36  ;;  %v9108_v15 = vsel %vm8657_vm2, %v17941_v1, 0.0  ;;  %v20403_v1 = vld [vmem:[#allocation32_spill] sm:$0xff] }
 0x441   : > { %v8771_v45 = vpop.xlane.xlu0 %8770  ;;  %9109 = vadd.xlane.f32.xlu0 %v9108_v15 }
 0x442   : > { %v8986_v35 = vmul.f32 1.442695, %v8886_v58  ;;  %v8887_v2 = vsub.f32 %v17647_v37, %v8771_v45 }
 0x443   : > { %v8750_v8 = vpop.xlane.xlu1 %8749 }
 0x444   : > { %14706 = vpow2.f32 %v8986_v35  ;;  %v8880_v60 = vsub.f32 %v17645_v19, %v8750_v8  ;;  %v8988_v42 = vmul.f32 1.442695, %v8887_v2 }
 0x445   : > { %v17947_v46 = vpop.eup %14698  ;;  %v8753_v20 = vpop.xlane.xlu0 %8752 }
 0x446   : > { %20363 = vst [vmem:[#allocation82_spill] sm:$0xff] %v17947_v46  ;;  %v8974_v23 = vmul.f32 1.442695, %v8880_v60  ;;  %14708 = vpow2.f32 %v8988_v42  ;;  %v17949_v6 = vpop.eup %14700  ;;  %v9138_v37 = vsel %vm8657_vm2, %v17947_v46, 0.0  ;;  %v8881_v19 = vsub.f32 %v17650_v4, %v8753_v20 }
 0x447   : > { %20364 = vst [vmem:[#allocation83_spill] sm:$0xff] %v17949_v6  ;;  %14710 = vpow2.f32 %v8968_v30  ;;  %v17953_v49 = vpop.eup %14702  ;;  %9139 = vadd.xlane.f32.xlu1 %v9138_v37  ;;  %v9111_v63 = vsel %vm8657_vm2, %v17949_v6, 0.0  ;;  %v5077_v46 = vshrl.u32 %v20403_v1, 16 }
 0x448   : > { %20365 = vst [vmem:[#allocation84_spill] sm:$0xff] %v17953_v49  ;;  %14712 = vpow2.f32 %v8974_v23  ;;  %v9141_v50 = vsel %vm8657_vm2, %v17953_v49, 0.0  ;;  %v8976_v58 = vmul.f32 1.442695, %v8881_v19 }
 0x449   : > { %v17958_v12 = vpop.eup %14704  ;;  %9142 = vadd.xlane.f32.xlu0 %v9141_v50 }
 0x44a   : > { %20366 = vst [vmem:[#allocation85_spill] sm:$0xff] %v17958_v12  ;;  %v9120_v24 = vsel %vm8657_vm2, %v17958_v12, 0.0 }
 0x44b   : > { %9112 = vadd.xlane.f32.xlu1 %v9111_v63 }
 0x44d   : > { %v8780_v36 = vpop.xlane.xlu1 %8779  ;;  %9121 = vadd.xlane.f32.xlu0 %v9120_v24 }
 0x44e   : > { %v8890_v44 = vsub.f32 %v17669_v29, %v8780_v36  ;;  %v17965_v35 = vpop.eup %14706 }
 0x44f   : > { %v8783_v45 = vpop.xlane.xlu0 %8782  ;;  %20367 = vst [vmem:[#allocation86_spill] sm:$0xff] %v17965_v35  ;;  %v9150_v20 = vsel %vm8657_vm2, %v17965_v35, 0.0 }
 0x450   : > { %v8994_v4 = vmul.f32 1.442695, %v8890_v44  ;;  %v8891_v2 = vsub.f32 %v17679_v57, %v8783_v45  ;;  %v17968_v8 = vpop.eup %14708 }
 0x451   : > { %v8762_v30 = vpop.xlane.xlu1 %8761  ;;  %20368 = vst [vmem:[#allocation87_spill] sm:$0xff] %v17968_v8  ;;  %v17971_v29 = vpop.eup %14710  ;;  %v9153_v23 = vsel %vm8657_vm2, %v17968_v8, 0.0  ;;  %9151 = vadd.xlane.f32.xlu0 %v9150_v20 }
 0x452   : > { %14714 = vpow2.f32 %v8994_v4  ;;  %v8884_v60 = vsub.f32 %v17663_v22, %v8762_v30  ;;  %v8996_v42 = vmul.f32 1.442695, %v8891_v2  ;;  %20369 = vst [vmem:[#allocation88_spill] sm:$0xff] %v17971_v29  ;;  %v17977_v37 = vpop.eup %14712  ;;  %9154 = vadd.xlane.f32.xlu1 %v9153_v23 }
 0x453   : > { %14716 = vpow2.f32 %v8976_v58  ;;  %v8765_v15 = vpop.xlane.xlu0 %8764  ;;  %20370 = vst [vmem:[#allocation89_spill] sm:$0xff] %v17977_v37  ;;  %v9132_v44 = vsel %vm8657_vm2, %v17977_v37, 0.0  ;;  %v9123_v58 = vsel %vm8657_vm2, %v17971_v29, 0.0 }
 0x454   : > { %v8982_v57 = vmul.f32 1.442695, %v8884_v60  ;;  %14718 = vpow2.f32 %v8996_v42  ;;  %v8885_v19 = vsub.f32 %v17666_v0, %v8765_v15 }
 0x455   : > { %v8792_v22 = vpop.xlane.xlu1 %8791  ;;  %9124 = vadd.xlane.f32.xlu0 %v9123_v58  ;;  %v20376_v58 = vld [vmem:[#allocation28_spill] sm:$0xff] }
 0x456   : > { %v8894_v50 = vsub.f32 %v17705_v56, %v8792_v22  ;;  %v8984_v36 = vmul.f32 1.442695, %v8885_v19  ;;  %14720 = vpow2.f32 %v8982_v57  ;;  %9133 = vadd.xlane.f32.xlu1 %v9132_v44  ;;  %v20374_v19 = vld [vmem:[#allocation46_spill] sm:$0xff] }
 0x457   : > { %v8795_v63 = vpop.xlane.xlu0 %8794 }
 0x458   : > { %v9002_v45 = vmul.f32 1.442695, %v8894_v50  ;;  %v8895_v24 = vsub.f32 %v17710_v31, %v8795_v63 }
 0x459   : > { %v8774_v0 = vpop.xlane.xlu1 %8773 }
 0x45a   : > { %14722 = vpow2.f32 %v9002_v45  ;;  %v8888_v4 = vsub.f32 %v17695_v41, %v8774_v0  ;;  %v9004_v2 = vmul.f32 1.442695, %v8895_v24 }
 0x45b   : > { %14724 = vpow2.f32 %v8984_v36 }
 0x45c   : > { %v17987_v56 = vpop.eup %14714  ;;  %v8990_v30 = vmul.f32 1.442695, %v8888_v4  ;;  %14726 = vpow2.f32 %v9004_v2  ;;  %v20378_v4 = vld [vmem:[#allocation45_spill] sm:$0xff] }
 0x45d   : > { %20371 = vst [vmem:[#allocation90_spill] sm:$0xff] %v17987_v56  ;;  %v17989_v60 = vpop.eup %14716  ;;  %v9162_v15 = vsel %vm8657_vm2, %v17987_v56, 0.0 }
 0x45e   : > { %20372 = vst [vmem:[#allocation91_spill] sm:$0xff] %v17989_v60  ;;  %v17993_v23 = vpop.eup %14718  ;;  %9163 = vadd.xlane.f32.xlu0 %v9162_v15  ;;  %14728 = vpow2.f32 %v8990_v30  ;;  %v9135_v36 = vsel %vm8657_vm2, %v17989_v60, 0.0 }
 0x45f   : > { %v8804_v42 = vpop.xlane.xlu0 %8803  ;;  %20373 = vst [vmem:[#allocation92_spill] sm:$0xff] %v17993_v23  ;;  %v9165_v41 = vsel %vm8657_vm2, %v17993_v23, 0.0 }
 0x460   : > { %v8898_v31 = vsub.f32 %v17723_v16, %v8804_v42  ;;  %9166 = vadd.xlane.f32.xlu1 %v9165_v41  ;;  %v18001_v63 = vpop.eup %14720 }
 0x461   : > { %v8807_v20 = vpop.xlane.xlu1 %8806  ;;  %20375 = vst [vmem:[#allocation46_spill] sm:$0xff] %v18001_v63 }
 0x462   : > { %v9010_v57 = vmul.f32 1.442695, %v8898_v31  ;;  %v8899_v22 = vsub.f32 %v20374_v19, %v8807_v20  ;;  %9136 = vadd.xlane.f32.xlu0 %v9135_v36  ;;  %v9144_v31 = vsel %vm8657_vm2, %v18001_v63, 0.0  ;;  %v20386_v63 = vld [vmem:[#allocation29_spill] sm:$0xff] }
 0x463   : > { %v8777_v50 = vpop.xlane.xlu0 %8776  ;;  %v5069_v37 = vshrl.u32 %v20386_v63, 16 }
 0x464   : > { %14730 = vpow2.f32 %v9010_v57  ;;  %v9012_v44 = vmul.f32 1.442695, %v8899_v22  ;;  %v8889_v16 = vsub.f32 %v20376_v58, %v8777_v50  ;;  %v18004_v24 = vpop.eup %14722  ;;  %v20381_v57 = vld [vmem:[#allocation59_spill] sm:$0xff] }
 0x465   : > { %v8786_v45 = vpop.xlane.xlu1 %8785  ;;  %20377 = vst [vmem:[#allocation28_spill] sm:$0xff] %v18004_v24  ;;  %v18007_v30 = vpop.eup %14724  ;;  %v9174_v15 = vsel %vm8657_vm2, %v18004_v24, 0.0  ;;  %v20382_v22 = vld [vmem:[#allocation39_spill] sm:$0xff] }
 0x466   : > { %14732 = vpow2.f32 %v9012_v44  ;;  %v8992_v0 = vmul.f32 1.442695, %v8889_v16  ;;  %v8892_v2 = vsub.f32 %v20378_v4, %v8786_v45  ;;  %20379 = vst [vmem:[#allocation45_spill] sm:$0xff] %v18007_v30  ;;  %v18013_v20 = vpop.eup %14726  ;;  %9175 = vadd.xlane.f32.xlu1 %v9174_v15  ;;  %9145 = vadd.xlane.f32.xlu0 %v9144_v31  ;;  %v5060_v50 = vshrl.u32 %v20382_v22, 16  ;;  %v20383_v44 = vld [vmem:[#allocation48_spill] sm:$0xff]  ;;  %v20385_v24 = vld [vmem:[#allocation47_spill] sm:$0xff] }
 0x467   : > { %v8816_v42 = vpop.xlane.xlu0 %8815  ;;  %20380 = vst [vmem:[#allocation93_spill] sm:$0xff] %v18013_v20  ;;  %v5061_v58 = vshrl.u32 %v20383_v44, 16  ;;  %v20384_v45 = vld [vmem:[#allocation60_spill] sm:$0xff]  ;;  %v5068_v60 = vshrl.u32 %v20385_v24, 16  ;;  %v5066_v15 = vpack.i.b16 %v20386_v63, %v20385_v24  ;;  %v5058_v31 = vpack.i.b16 %v20383_v44, %v20382_v22 }
 0x468   : > { %14734 = vpow2.f32 %v8992_v0  ;;  %v8998_v41 = vmul.f32 1.442695, %v8892_v2  ;;  %v8902_v19 = vsub.f32 %v20381_v57, %v8816_v42  ;;  %v9147_v0 = vsel %vm8657_vm2, %v18007_v30, 0.0  ;;  %v18025_v42 = vpop.eup %14728  ;;  %v20388_v57 = vld [vmem:[#allocation44_spill] sm:$0xff] }
 0x469   : > { %v8819_v36 = vpop.xlane.xlu1 %8818  ;;  %v9177_v2 = vsel %vm8657_vm2, %v18013_v20, 0.0  ;;  %20387 = vst [vmem:[#allocation59_spill] sm:$0xff] %v18025_v42  ;;  %v5070_v30 = vpack.i.b16 %v5069_v37, %v5068_v60  ;;  %v5062_v20 = vpack.i.b16 %v5061_v58, %v5060_v50  ;;  %v9156_v24 = vsel %vm8657_vm2, %v18025_v42, 0.0  ;;  %v20393_v37 = vld [vmem:[#allocation18_spill] sm:$0xff] }
 0x46a   : > { %14736 = vpow2.f32 %v8998_v41  ;;  %v9018_v16 = vmul.f32 1.442695, %v8902_v19  ;;  %v8903_v4 = vsub.f32 %v20384_v45, %v8819_v36  ;;  %9148 = vadd.xlane.f32.xlu1 %v9147_v0  ;;  %9178 = vadd.xlane.f32.xlu0 %v9177_v2  ;;  %v5322_v60 = vrot.slane %v5066_v15, %v20393_v37 }
 0x46b   : > { %v8789_v23 = vpop.xlane.xlu0 %8788  ;;  %v5307_v50 = vrot.slane %v5058_v31, %v20393_v37  ;;  %v5388_v42 = vrot.slane %v5070_v30, %v20393_v37 }
 0x46c   : > { %v9020_v41 = vmul.f32 1.442695, %v8903_v4  ;;  %v8893_v19 = vsub.f32 %v20388_v57, %v8789_v23  ;;  %14738 = vpow2.f32 %v9018_v16  ;;  %v20391_v23 = vld [vmem:[#allocation17_spill] sm:$0xff]  ;;  %v20392_v4 = vld [vmem:[#allocation15_spill] sm:$0xff] }
 0x46d   : > { %v5315_v44 = vcombine.high %v5066_v15, %v20391_v23  ;;  %v5300_v16 = vcombine.high %v5058_v31, %v20391_v23  ;;  %v5366_v57 = vcombine.high %v5062_v20, %v20391_v23  ;;  %v5331_v12 = vcombine.high %v5307_v50, %v5322_v60 }
 0x46e   : > { %v18032_v36 = vpop.eup %14730  ;;  %14740 = vpow2.f32 %v9020_v41  ;;  %v9000_v45 = vmul.f32 1.442695, %v8893_v19  ;;  %9157 = vadd.xlane.f32.xlu0 %v9156_v24  ;;  %v5381_v41 = vcombine.high %v5070_v30, %v20391_v23  ;;  %v20397_v24 = vld [vmem:[#allocation62_spill] sm:$0xff] }
 0x46f   : > { %20389 = vst [vmem:[#allocation39_spill] sm:$0xff] %v18032_v36  ;;  %v8798_v56 = vpop.xlane.xlu0 %8797  ;;  %v18034_v29 = vpop.xlane.xlu1 %8827  ;;  %v9186_v63 = vsel %vm8657_vm2, %v18032_v36, 0.0  ;;  %v5329_v31 = vrot.slane %v5315_v44, %v20393_v37  ;;  %v5380_v44 = vrot.slane %v5366_v57, %v20393_v37 }
 0x470   : > { %v18040_v22 = vpop.eup %14732  ;;  %v8896_v0 = vsub.f32 %v20392_v4, %v8798_v56  ;;  %9187 = vadd.xlane.f32.xlu1 %v9186_v63  ;;  %14742 = vpow2.f32 %v9000_v45  ;;  %v5314_v45 = vrot.slane %v5300_v16, %v20393_v37 }
 0x471   : > { %20390 = vst [vmem:[#allocation48_spill] sm:$0xff] %v18040_v22  ;;  %v9189_v63 = vsel %vm8657_vm2, %v18040_v22, 0.0  ;;  %v5395_v22 = vrot.slane %v5381_v41, %v20393_v37 }
 0x472   : > { %v18047_v58 = vpop.eup %14734  ;;  %v9006_v2 = vmul.f32 1.442695, %v8896_v0  ;;  %9190 = vadd.xlane.f32.xlu0 %v9189_v63  ;;  %v5330_v0 = vcombine.low %v5307_v50, %v5322_v60  ;;  %v5346_v30 = vcombine.low %v5314_v45, %v5329_v31  ;;  %v5347_v60 = vcombine.high %v5314_v45, %v5329_v31  ;;  %v20401_v50 = vld [vmem:[#allocation19_spill] sm:$0xff]  ;;  %v20404_v31 = vld [vmem:[#allocation13_spill] sm:$0xff] }
 0x473   : > { %20394 = vst [vmem:[#allocation60_spill] sm:$0xff] %v18047_v58  ;;  %v8801_v19 = vpop.xlane.xlu1 %8800  ;;  %v18051_v36 = vpop.xlane.xlu0 %8830  ;;  %v9159_v56 = vsel %vm8657_vm2, %v18047_v58, 0.0  ;;  %v5373_v58 = vrot.slane %v5062_v20, %v20393_v37  ;;  %v20405_v45 = vld [vmem:[#allocation33_spill] sm:$0xff] }
 0x474   : > { %20395 = vst [vmem:[#allocation47_spill] sm:$0xff] %v18051_v36  ;;  %v18057_v15 = vpop.eup %14736  ;;  %14744 = vpow2.f32 %v9006_v2  ;;  %v8897_v4 = vsub.f32 %v20397_v24, %v8801_v19  ;;  %9160 = vadd.xlane.f32.xlu1 %v9159_v56  ;;  %v5338_v41 = vrot.slane %v5330_v0, %v20401_v50  ;;  %v20402_v56 = vld [vmem:[#allocation42_spill] sm:$0xff]  ;;  %v5345_v24 = vrot.slane %v5331_v12, %v20401_v50 }
 0x475   : > { %20396 = vst [vmem:[#allocation29_spill] sm:$0xff] %v18057_v15  ;;  %v9168_v2 = vsel %vm8657_vm2, %v18057_v15, 0.0  ;;  %v5076_v57 = vshrl.u32 %v20402_v56, 16  ;;  %v5397_v15 = vcombine.high %v5373_v58, %v5388_v42  ;;  %v5084_v49 = vshrl.u32 %v20405_v45, 16  ;;  %v20413_v36 = vld [vmem:[#allocation50_spill] sm:$0xff] }
 0x476   : > { %v9008_v35 = vmul.f32 1.442695, %v8897_v4  ;;  %v18064_v8 = vpop.eup %14738  ;;  %9169 = vadd.xlane.f32.xlu0 %v9168_v2  ;;  %v5396_v4 = vcombine.low %v5373_v58, %v5388_v42  ;;  %v18096_v12 = vrot.slane %v5347_v60, %v20401_v50  ;;  %v5412_v42 = vcombine.low %v5380_v44, %v5395_v22 }
 0x477   : > { %20398 = vst [vmem:[#allocation44_spill] sm:$0xff] %v18064_v8  ;;  %v18068_v6 = vpop.xlane.xlu0 %8809  ;;  %v18070_v16 = vpop.xlane.xlu1 %8839  ;;  %v9198_v0 = vsel %vm8657_vm2, %v18064_v8, 0.0  ;;  %v5413_v58 = vcombine.high %v5380_v44, %v5395_v22  ;;  %v5082_v27 = vpack.i.b16 %v20404_v31, %v20405_v45  ;;  %v6324_v60 = vcombine.low %v5338_v41, %v5345_v24 }
 0x478   : > { %20399 = vst [vmem:[#allocation17_spill] sm:$0xff] %v18070_v16  ;;  %v18074_v19 = vpop.eup %14740  ;;  %14746 = vpow2.f32 %v9008_v35  ;;  %v5085_v35 = vshrl.u32 %v20404_v31, 16  ;;  %v18106_v33 = vrot.slane %v5396_v4, %v20401_v50  ;;  %v5078_v16 = vpack.i.b16 %v5077_v46, %v5076_v57  ;;  %v20410_v57 = vld [vmem:[#allocation43_spill] sm:$0xff] }
 0x479   : > { %20400 = vst [vmem:[#allocation15_spill] sm:$0xff] %v18074_v19  ;;  %v9201_v63 = vsel %vm8657_vm2, %v18074_v19, 0.0  ;;  %v18093_v19 = vrot.slane %v5346_v30, %v20401_v50  ;;  %v18109_v30 = vrot.slane %v5397_v15, %v20401_v50  ;;  %v13631_v44 = vcombine.high %v5338_v41, %v5345_v24 }
 0x47a   : > { %9202 = vadd.xlane.f32.xlu1 %v9201_v63  ;;  %v18090_v2 = vpop.eup %14742  ;;  %9199 = vadd.xlane.f32.xlu0 %v9198_v0  ;;  %v5074_v63 = vpack.i.b16 %v20403_v1, %v20402_v56  ;;  %v5086_v0 = vpack.i.b16 %v5085_v35, %v5084_v49  ;;  %v18120_v4 = vrot.slane %v5412_v42, %v20401_v50  ;;  %v5100_v40 = vshrl.u32 %v20413_v36, 16 }
 0x47b   : > { %v18086_v20 = vpop.xlane.xlu0 %8842  ;;  %20407 = vst [vmem:[#allocation62_spill] sm:$0xff] %v18090_v2  ;;  %v18111_v22 = vpop.xlane.xlu1 %8812  ;;  %v9171_v31 = vsel %vm8657_vm2, %v18090_v2, 0.0  ;;  %v18123_v15 = vrot.slane %v5413_v58, %v20401_v50  ;;  %v5447_v35 = vcombine.high %v5082_v27, %v20391_v23  ;;  %v5454_v45 = vrot.slane %v5082_v27, %v20393_v37 }
 0x47c   : > { %20406 = vst [vmem:[#allocation18_spill] sm:$0xff] %v18086_v20  ;;  %v5432_v49 = vcombine.high %v5074_v63, %v20391_v23  ;;  %v5439_v24 = vrot.slane %v5074_v63, %v20393_v37  ;;  %v18135_v58 = vrot.slane %v6324_v60, %v20393_v37  ;;  %v5498_v41 = vcombine.high %v5078_v16, %v20391_v23 }
 0x47d   : > { %v5505_v63 = vrot.slane %v5078_v16, %v20393_v37  ;;  %v5513_v2 = vcombine.high %v5086_v0, %v20391_v23  ;;  %v5520_v27 = vrot.slane %v5086_v0, %v20393_v37  ;;  %v18152_v46 = vrot.slane %v13631_v44, %v20393_v37 }
 0x47e   : > { %v18103_v8 = vpop.eup %14744  ;;  %9172 = vadd.xlane.f32.xlu0 %v9171_v31  ;;  %v5446_v16 = vrot.slane %v5432_v49, %v20393_v37  ;;  %v5461_v21 = vrot.slane %v5447_v35, %v20393_v37  ;;  %v5462_v0 = vcombine.low %v5439_v24, %v5454_v45  ;;  %v5463_v47 = vcombine.high %v5439_v24, %v5454_v45 }
 0x47f   : > { %20409 = vst [vmem:[#allocation19_spill] sm:$0xff] %v18103_v8  ;;  %v18113_v1 = vpop.xlane.xlu0 %8821  ;;  %v9180_v56 = vsel %vm8657_vm2, %v18103_v8, 0.0  ;;  %v18142_v8 = vpop.xlane.xlu1 %8833  ;;  %v5529_v49 = vcombine.high %v5505_v63, %v5520_v27  ;;  %v5098_v35 = vpack.i.b16 %v20414_v62, %v20413_v36 }
 0x480   : > { %9181 = vadd.xlane.f32.xlu1 %v9180_v56  ;;  %v20412_v56 = vld [vmem:[#allocation34_spill] sm:$0xff]  ;;  %v5470_v5 = vrot.slane %v5462_v0, %v20401_v50  ;;  %v5477_v11 = vrot.slane %v5463_v47, %v20401_v50  ;;  %v5479_v13 = vcombine.high %v5446_v16, %v5461_v21 }
 0x481   : > { %v5090_v31 = vpack.i.b16 %v20412_v56, %v20408_v59  ;;  %v5101_v59 = vshrl.u32 %v20414_v62, 16  ;;  %v5093_v43 = vshrl.u32 %v20412_v56, 16  ;;  %v5527_v56 = vrot.slane %v5513_v2, %v20393_v37 }
 0x482   : > { %v18132_v42 = vpop.eup %14746  ;;  %v5478_v2 = vcombine.low %v5446_v16, %v5461_v21  ;;  %v5579_v47 = vcombine.high %v5098_v35, %v20391_v23  ;;  %v18199_v0 = vrot.slane %v5479_v13, %v20401_v50 }
 0x483   : > { %20411 = vst [vmem:[#allocation42_spill] sm:$0xff] %v18132_v42  ;;  %v18147_v51 = vpop.xlane.xlu0 %8824  ;;  %v9183_v60 = vsel %vm8657_vm2, %v18132_v42, 0.0  ;;  %v5512_v42 = vrot.slane %v5498_v41, %v20393_v37  ;;  %v5564_v61 = vcombine.high %v5090_v31, %v20391_v23  ;;  %v5102_v41 = vpack.i.b16 %v5101_v59, %v5100_v40 }
 0x484   : > { %9184 = vadd.xlane.f32.xlu0 %v9183_v60  ;;  %v5528_v60 = vcombine.low %v5505_v63, %v5520_v27  ;;  %v5094_v9 = vpack.i.b16 %v5093_v43, %v5092_v25  ;;  %v5586_v63 = vrot.slane %v5098_v35, %v20393_v37  ;;  %v5571_v62 = vrot.slane %v5090_v31, %v20393_v37  ;;  %v20416_v27 = vld [vmem:[#allocation52_spill] sm:$0xff] }
 0x485   : > { %v5578_v36 = vrot.slane %v5564_v61, %v20393_v37  ;;  %v5109_v17 = vshrl.u32 %v20416_v27, 16  ;;  %v18186_v40 = vrot.slane %v5529_v49, %v20401_v50  ;;  %v5544_v43 = vcombine.low %v5512_v42, %v5527_v56 }
 0x486   : > { %v18165_v14 = vpop.xlane.xlu1 %8848  ;;  %v5545_v21 = vcombine.high %v5512_v42, %v5527_v56  ;;  %v5645_v59 = vcombine.high %v5102_v41, %v20391_v23  ;;  %v5630_v31 = vcombine.high %v5094_v9, %v20391_v23  ;;  %v18196_v16 = vrot.slane %v5478_v2, %v20401_v50 }
 0x487   : > { %20415 = vst [vmem:[#allocation32_spill] sm:$0xff] %v18165_v14  ;;  %v18170_v24 = vpop.xlane.xlu0 %8836  ;;  %v18183_v14 = vrot.slane %v5528_v60, %v20401_v50  ;;  %v6424_v60 = vcombine.low %v5470_v5, %v5477_v11  ;;  %v13635_v49 = vcombine.high %v5470_v5, %v5477_v11  ;;  %v5594_v35 = vcombine.low %v5571_v62, %v5586_v63 }
 0x488   : > { %v5106_v42 = vpack.i.b16 %v20416_v27, %v20410_v57  ;;  %v20418_v56 = vshrl.u32 %v20410_v57, 16  ;;  %v18208_v61 = vrot.slane %v5544_v43, %v20401_v50  ;;  %v5593_v2 = vrot.slane %v5579_v47, %v20393_v37 }
 0x489   : > { %v5652_v13 = vrot.slane %v5102_v41, %v20393_v37  ;;  %v18214_v11 = vrot.slane %v5545_v21, %v20401_v50  ;;  %v5659_v5 = vrot.slane %v5645_v59, %v20393_v37  ;;  %v5595_v27 = vcombine.high %v5571_v62, %v5586_v63 }
 0x48a   : > { %v9047_v45 = vpop.xlane.xlu1 %9046  ;;  %v5110_v44 = vpack.i.b16 %v5109_v17, %v20418_v56  ;;  %v5644_v17 = vrot.slane %v5630_v31, %v20393_v37  ;;  %v18219_v57 = vrot.slane %v6424_v60, %v20393_v37  ;;  %v18228_v47 = vrot.slane %v13635_v49, %v20393_v37 }
 0x48b   : > { %v18189_v25 = vpop.xlane.xlu0 %8845  ;;  %14748 = vrcp.f32 %v9047_v45  ;;  %v5602_v63 = vrot.slane %v5594_v35, %v20401_v50  ;;  %v5696_v62 = vcombine.high %v5106_v42, %v20391_v23  ;;  %v5610_v31 = vcombine.low %v5578_v36, %v5593_v2 }
 0x48c   : > { %20417 = vst [vmem:[#allocation13_spill] sm:$0xff] %v18189_v25  ;;  %v5637_v25 = vrot.slane %v5094_v9, %v20393_v37  ;;  %v20419_v9 = vld [vmem:[#allocation51_spill] sm:$0xff]  ;;  %v5762_v21 = vcombine.high %v5110_v44, %v20391_v23  ;;  %v5611_v60 = vcombine.high %v5578_v36, %v5593_v2  ;;  %v5609_v41 = vrot.slane %v5595_v27, %v20401_v50 }
 0x48d   : > { %v5676_v20 = vcombine.low %v5644_v17, %v5659_v5  ;;  %v18243_v2 = vrot.slane %v5106_v42, %v20393_v37  ;;  %v18246_v27 = vrot.slane %v5696_v62, %v20393_v37  ;;  %v5677_v62 = vcombine.high %v5644_v17, %v5659_v5 }
 0x48e   : > { %v18205_v52 = vpop.xlane.xlu1 %9067  ;;  %v5660_v56 = vcombine.low %v5637_v25, %v5652_v13  ;;  %v5661_v32 = vcombine.high %v5637_v25, %v5652_v13  ;;  %v18249_v25 = vrot.slane %v5110_v44, %v20393_v37  ;;  %v18252_v13 = vrot.slane %v5762_v21, %v20393_v37 }
 0x48f   : > { %v9044_v45 = vpop.xlane.xlu0 %9043  ;;  %v18260_v36 = vrot.slane %v5611_v60, %v20401_v50  ;;  %v18269_v21 = vrot.slane %v5676_v20, %v20401_v50  ;;  %v6524_v49 = vcombine.low %v5602_v63, %v5609_v41  ;;  %v20426_v60 = vcombine.low %v18093_v19, %v18096_v12 }
 0x490   : > { %14750 = vrcp.f32 %v9044_v45  ;;  %20420 = vst [vmem:[#allocation33_spill] sm:$0xff] %v18249_v25  ;;  %20421 = vst [vmem:[#allocation41_spill] sm:$0xff] %v18252_v13  ;;  %v18257_v45 = vrot.slane %v5610_v31, %v20401_v50  ;;  %v18263_v42 = vrot.slane %v5660_v56, %v20401_v50  ;;  %v18266_v44 = vrot.slane %v5661_v32, %v20401_v50  ;;  %v20425_v25 = vld [vmem:[#allocation31_spill] sm:$0xff] }
 0x491   : > { %5022 = vrot.lane.b32.xlu1 %v20419_v9, %s15068_s7  ;;  %20423 = vst [vmem:[#allocation34_spill] sm:$0xff] %v18260_v36  ;;  %v13639_v13 = vcombine.high %v5602_v63, %v5609_v41  ;;  %v6273_v31 = vcombine.high %v20425_v25, %v20424_v10  ;;  %v6347_v55 = vrot.slane %v20426_v60, %v20393_v37 }
 0x492   : > { %v9053_v59 = vpop.xlane.xlu1 %9052  ;;  %20422 = vst [vmem:[#allocation43_spill] sm:$0xff] %v18257_v45  ;;  %v20427_v5 = vcombine.high %v18093_v19, %v18096_v12  ;;  %v20428_v32 = vcombine.low %v18106_v33, %v18109_v30  ;;  %v20429_v63 = vcombine.high %v18106_v33, %v18109_v30  ;;  %v20430_v19 = vcombine.low %v18120_v4, %v18123_v15  ;;  %v20437_v45 = vld [vmem:[#allocation38_spill] sm:$0xff] }
 0x493   : > { %v9050_v43 = vpop.xlane.xlu0 %9049  ;;  %14752 = vrcp.f32 %v9053_v59  ;;  %v20431_v25 = vcombine.high %v18120_v4, %v18123_v15  ;;  %v6356_v4 = vcombine.low %v18135_v58, %v18152_v46 }
 0x494   : > { %14754 = vrcp.f32 %v9050_v43  ;;  %v6355_v17 = vrot.slane %v20427_v5, %v20393_v37  ;;  %v6381_v20 = vrot.slane %v20428_v32, %v20393_v37  ;;  %v6389_v56 = vrot.slane %v20429_v63, %v20393_v37 }
 0x495   : > { %v14749_v59 = vpop.eup %14748  ;;  %v6397_v12 = vrot.slane %v20430_v19, %v20393_v37  ;;  %v6405_v60 = vrot.slane %v20431_v25, %v20393_v37  ;;  %v18301_v32 = vrot.slane %v5677_v62, %v20401_v50  ;;  %v18314_v62 = vrot.slane %v13639_v13, %v20393_v37  ;;  %v20434_v25 = vld [vmem:[#allocation27_spill] sm:$0xff] }
 0x496   : > { %v18254_v43 = vpop.xlane.xlu1 %9079  ;;  %v9299_v10 = vmul.f32 %v14749_v59, %v17802_v34  ;;  %v18308_v59 = vrot.slane %v6524_v49, %v20393_v37  ;;  %v7036_v19 = vshrl.u32 %v6273_v31, 16  ;;  %v7037_v34 = vshrl.u32 %v20434_v25, 16 }
 0x497   : > { %v9071_v35 = vpop.xlane.xlu0 %9070  ;;  %20433 = vst [vmem:[#allocation53_spill] sm:$0xff] %v18314_v62  ;;  %v6406_v49 = vcombine.low %v6381_v20, %v6389_v56  ;;  %v7034_v13 = vpack.i.b16 %v20434_v25, %v6273_v31  ;;  %v20438_v20 = vld [vmem:[#allocation61_spill] sm:$0xff]  ;;  %v20439_v31 = vmov 0.0  }
 0x498   : > { %20432 = vst [vmem:[#allocation50_spill] sm:$0xff] %v18308_v59  ;;  %v6414_v59 = vcombine.low %v6397_v12, %v6405_v60  ;;  %v8905_v60 = vsub.f32 %v17768_v53, %v18147_v51  ;;  %v20442_v51 = vld [vmem:[#allocation20_spill] sm:$0xff] }
 0x49a   : > { %5006 = vrot.lane.b32.xlu0 %v20419_v9, %s15067_s23  ;;  %v9059_v41 = vpop.xlane.xlu1 %9058  ;;  %v14751_v5 = vpop.eup %14750  ;;  %v6364_v9 = vcombine.low %v6347_v55, %v6355_v17  ;;  %v5116_v17 = vshrl.u32 %v20437_v45, 16  ;;  %v6421_v56 = vrot.slane %v6414_v59, %v20401_v50 }
 0x49b   : > { %v9056_v30 = vpop.xlane.xlu0 %9055  ;;  %14756 = vrcp.f32 %v9059_v41  ;;  %v9298_v63 = vmul.f32 %v14751_v5, %v17820_v48  ;;  %v6574_v48 = vcombine.low %v18263_v42, %v18266_v44  ;;  %v20435_v5 = vld [vmem:[#allocation16_spill] sm:$0xff] }
 0x49c   : > { %14758 = vrcp.f32 %v9056_v30  ;;  %v8901_v46 = vsub.f32 %v20435_v5, %v18111_v22  ;;  %v20436_v30 = vld [vmem:[#allocation49_spill] sm:$0xff]  ;;  %v8900_v22 = vsub.f32 %v20438_v20, %v18068_v6  ;;  %v6590_v6 = vcombine.low %v18269_v21, %v18301_v32 }
 0x49d   : > { %v14753_v15 = vpop.eup %14752  ;;  %v9362_v36 = vpack.c.bf16 %v9299_v10, %v9298_v63  ;;  %v5117_v62 = vshrl.u32 %v20436_v30, 16  ;;  %v5114_v55 = vpack.i.b16 %v20436_v30, %v20437_v45  ;;  %14760 = vrcp.f32 %v9071_v35 }
 0x49e   : > { %v14755_v33 = vpop.eup %14754  ;;  %v9301_v41 = vmul.f32 %v14753_v15, %v17828_v28  ;;  %v18329_v28 = vrot.slane %v6356_v4, %v20401_v50  ;;  %v7038_v10 = vpack.i.b16 %v7037_v34, %v7036_v19  ;;  %14762 = vrcp.f32 %v18205_v52  ;;  %v20443_v19 = vld [vmem:[#allocation14_spill] sm:$0xff] }
 0x49f   : > { %v9300_v58 = vmul.f32 %v14755_v33, %v17826_v18  ;;  %14158 = vmatmul.mubr.msk.bf16.vlgmr.msra.gmra.mrb[88].mxu0 %vm8657_vm2, %v9362_v36  ;;  %v6371_v35 = vrot.slane %v6364_v9, %v20401_v50  ;;  %v6413_v36 = vrot.slane %v6406_v49, %v20401_v50  ;;  %v13641_v45 = vcombine.high %v18263_v42, %v18266_v44  ;;  %v20440_v9 = vld [vmem:[#allocation36_spill] sm:$0xff]  ;;  %v20441_v33 = vld [vmem:[#allocation26_spill] sm:$0xff]  ;;  %v9083_v49 = vpop.xlane.xlu0 %9082 }
 0x4a0   : > { %14168 = vmatpush3.bf16.msra.mxu0 %v7034_v13  ;;  %14169 = vmatprep.mubr.msk.bf16.mxu0 %vm15070_vm0, %v20439_v31  ;;  %v9016_v12 = vmul.f32 1.442695, %v8901_v46  ;;  %v13642_v52 = vcombine.high %v18269_v21, %v18301_v32  ;;  %v5132_v34 = vshrl.u32 %v20440_v9, 16  ;;  %v5130_v59 = vpack.i.b16 %v20441_v33, %v20440_v9  ;;  %v20465_v44 = vld [vmem:[#allocation66_spill] sm:$0xff]  ;;  %v20466_v32 = vld [vmem:[#allocation53_spill] sm:$0xff] }
 0x4a1   : > { %v9363_v18 = vpack.c.bf16 %v9301_v41, %v9300_v58  ;;  %14179 = vmatprep.subr.bf16.mxu0 %v20439_v31  ;;  %v5133_v63 = vshrl.u32 %v20441_v33, 16  ;;  %v18356_v15 = vpack.i.b16 %v5117_v62, %v5116_v17  ;;  %v5711_v53 = vcombine.high %v5114_v55, %v20391_v23 }
 0x4a2   : > { %v18361_v25 = vpack.i.b16 %v20443_v19, %v20442_v51  ;;  %v9014_v41 = vmul.f32 1.442695, %v8900_v22  ;;  %v5718_v46 = vrot.slane %v5114_v55, %v20393_v37  ;;  %v18367_v13 = vcombine.low %v18329_v28, %v6371_v35 }
 0x4a3   : > { %14164 = vmatmul.mubr.msk.bf16.vlgmr.msra.gmra.mrb[88].mxu1 %vm8657_vm2, %v9363_v18  ;;  %v18369_v62 = vcombine.low %v6413_v36, %v6421_v56  ;;  %14764 = vpow2.f32 %v9016_v12  ;;  %v8904_v30 = vsub.f32 %v17765_v39, %v18113_v1  ;;  %v9024_v17 = vmul.f32 1.442695, %v8905_v60 }
 0x4a4   : > { %14174 = vmatpush3.bf16.msra.mxu1 %v7038_v10  ;;  %14175 = vmatprep.mubr.msk.bf16.mxu1 %vm15070_vm0, %v20439_v31  ;;  %v5843_v22 = vcombine.high %v5130_v59, %v20391_v23  ;;  %14766 = vrcp.f32 %v9083_v49  ;;  %v20444_v55 = vcombine.low %v18196_v16, %v18199_v0  ;;  %v20445_v18 = vcombine.high %v18196_v16, %v18199_v0 }
 0x4a5   : > { %v14757_v4 = vpop.eup %14756  ;;  %14185 = vmatprep.subr.bf16.mxu1 %v20439_v31  ;;  %14768 = vpow2.f32 %v9014_v41  ;;  %v20446_v39 = vcombine.low %v18183_v14, %v18186_v40  ;;  %v20447_v1 = vcombine.high %v18183_v14, %v18186_v40  ;;  %v7042_v33 = vpack.i.b16 %v18369_v62, %v18367_v13  ;;  %v20450_v14 = vld [vmem:[#allocation57_spill] sm:$0xff] }
 0x4a6   : > { %v14759_v5 = vpop.eup %14758  ;;  %v9303_v58 = vmul.f32 %v14757_v4, %v17842_v54  ;;  %v6447_v54 = vrot.slane %v20444_v55, %v20393_v37  ;;  %v6455_v10 = vrot.slane %v20445_v18, %v20393_v37  ;;  %14770 = vrcp.f32 %v18254_v43 }
 0x4a7   : > { %v9302_v20 = vmul.f32 %v14759_v5, %v17844_v26  ;;  %v6481_v26 = vrot.slane %v20446_v39, %v20393_v37  ;;  %v6489_v60 = vrot.slane %v20447_v1, %v20393_v37  ;;  %v14761_v9 = vpop.eup %14760  ;;  %v20448_v16 = vcombine.low %v18208_v61, %v18214_v11 }
 0x4a8   : > { %v20449_v4 = vcombine.high %v18208_v61, %v18214_v11  ;;  %v18402_v49 = vpack.i.b16 %v5133_v63, %v5132_v34  ;;  %v8906_v40 = vsub.f32 %v20450_v14, %v18034_v29  ;;  %v9022_v5 = vmul.f32 1.442695, %v8904_v30  ;;  %v14763_v43 = vpop.eup %14762 }
 0x4a9   : > { %v9364_v12 = vpack.c.bf16 %v9303_v58, %v9302_v20  ;;  %v6497_v0 = vrot.slane %v20448_v16, %v20393_v37  ;;  %14772 = vpow2.f32 %v9024_v17  ;;  %v18408_v58 = vrot.slane %v5711_v53, %v20393_v37 }
 0x4aa   : > { %v6505_v41 = vrot.slane %v20449_v4, %v20393_v37  ;;  %v5726_v20 = vcombine.low %v18243_v2, %v5718_v46  ;;  %v18412_v55 = vrot.slane %v5130_v59, %v20393_v37  ;;  %v5727_v61 = vcombine.high %v18243_v2, %v5718_v46 }
 0x4ab   : > { %14170 = vmatmul.mubr.msk.bf16.vlgmr.msra.gmra.mrb[92].mxu0 %vm8657_vm2, %v9364_v12  ;;  %v9307_v29 = vmul.f32 %v14761_v9, %v17834_v38  ;;  %v18420_v11 = vcombine.high %v18329_v28, %v6371_v35  ;;  %v6456_v34 = vcombine.low %v18219_v57, %v18228_v47  ;;  %v18424_v63 = vcombine.high %v6413_v36, %v6421_v56 }
 0x4ac   : > { %14180 = vmatpush3.bf16.msra.mxu0 %v7042_v33  ;;  %14181 = vmatprep.mubr.msk.bf16.mxu0 %vm15070_vm0, %v20439_v31  ;;  %v6464_v59 = vcombine.low %v6447_v54, %v6455_v10  ;;  %v6506_v53 = vcombine.low %v6481_v26, %v6489_v60  ;;  %v6514_v30 = vcombine.low %v6497_v0, %v6505_v41  ;;  %v9026_v17 = vmul.f32 1.442695, %v8906_v40  ;;  %v20451_v26 = vld [vmem:[#allocation25_spill] sm:$0xff]  ;;  %v9062_v60 = vpop.xlane.xlu0 %9061  ;;  %v20453_v40 = vld [vmem:[#allocation64_spill] sm:$0xff] }
 0x4ad   : > { %14191 = vmatprep.subr.bf16.mxu0 %v20439_v31  ;;  %14774 = vpow2.f32 %v9022_v5  ;;  %v8908_v2 = vsub.f32 %v17786_v3, %v18142_v8  ;;  %v9306_v38 = vmul.f32 %v14763_v43, %v17816_v7  ;;  %v5777_v46 = vcombine.high %v18356_v15, %v20391_v23  ;;  %v18440_v35 = vpop.eup %14764  ;;  %v9065_v43 = vpop.xlane.xlu1 %9064 }
 0x4ae   : > { %v18433_v28 = vrot.slane %v18356_v15, %v20393_v37  ;;  %v18436_v57 = vrot.slane %v5843_v22, %v20393_v37  ;;  %v5909_v47 = vcombine.high %v18402_v49, %v20391_v23  ;;  %v18443_v36 = vrot.slane %v5726_v20, %v20401_v50  ;;  %v14767_v56 = vpop.eup %14766 }
 0x4af   : > { %v5742_v3 = vcombine.low %v18246_v27, %v18408_v58  ;;  %v9366_v7 = vpack.c.bf16 %v9307_v29, %v9306_v38  ;;  %v18448_v8 = vrot.slane %v6456_v34, %v20401_v50  ;;  %v7050_v15 = vpack.i.b16 %v18424_v63, %v18420_v11  ;;  %v18461_v10 = vpop.eup %14768  ;;  %v20454_v29 = vld [vmem:[#allocation18_spill] sm:$0xff] }
 0x4b0   : > { %v18453_v22 = vrot.slane %v6464_v59, %v20401_v50  ;;  %v18456_v54 = vrot.slane %v6506_v53, %v20401_v50  ;;  %v18459_v18 = vrot.slane %v6514_v30, %v20401_v50  ;;  %v5741_v12 = vrot.slane %v5727_v61, %v20401_v50  ;;  %v14771_v9 = vpop.eup %14770  ;;  %v20455_v34 = vld [vmem:[#allocation22_spill] sm:$0xff]  ;;  %v20456_v30 = vld [vmem:[#allocation63_spill] sm:$0xff] }
 0x4b1   : > { %14776 = vpow2.f32 %v9026_v17  ;;  %v9030_v39 = vmul.f32 1.442695, %v8908_v2  ;;  %v8909_v1 = vsub.f32 %v20451_v26, %v18170_v24  ;;  %v5743_v33 = vcombine.high %v18246_v27, %v18408_v58  ;;  %v20452_v24 = vld [vmem:[#allocation33_spill] sm:$0xff]  ;;  %v9092_v2 = vpop.xlane.xlu0 %9091 }
 0x4b2   : > { %v18470_v16 = vrot.slane %v5777_v46, %v20393_v37  ;;  %v9195_v0 = vsel %vm8657_vm2, %v18440_v35, 0.0  ;;  %14778 = vrcp.f32 %v9062_v60  ;;  %v5792_v41 = vcombine.low %v20452_v24, %v18433_v28 }
 0x4b3   : > { %14182 = vmatmul.mubr.msk.bf16.vlgmr.msra.gmra.mrb[96].mxu0 %vm8657_vm2, %v9366_v7  ;;  %v18476_v4 = vpop.eup %14772  ;;  %v5793_v14 = vcombine.high %v20452_v24, %v18433_v28  ;;  %v5124_v27 = vshrl.u32 %v20442_v51, 16  ;;  %v9311_v5 = vmul.f32 %v14767_v56, %v20453_v40  ;;  %v18486_v58 = vrot.slane %v5742_v3, %v20401_v50 }
 0x4b4   : > { %14192 = vmatpush3.bf16.msra.mxu0 %v7050_v15  ;;  %14193 = vmatprep.mubr.msk.bf16.mxu0 %vm15070_vm0, %v20439_v31  ;;  %14780 = vrcp.f32 %v9065_v43  ;;  %v18490_v20 = vcombine.low %v18448_v8, %v18453_v22  ;;  %v18494_v61 = vcombine.low %v18456_v54, %v18459_v18  ;;  %v8911_v59 = vsub.f32 %v20455_v34, %v20454_v29 }
 0x4b5   : > { %9196 = vadd.xlane.f32.xlu1 %v9195_v0  ;;  %14203 = vmatprep.subr.bf16.mxu0 %v20439_v31  ;;  %14782 = vpow2.f32 %v9030_v39  ;;  %v9032_v53 = vmul.f32 1.442695, %v8909_v1  ;;  %v9310_v17 = vmul.f32 %v14771_v9, %v20456_v30  ;;  %v18500_v38 = vrot.slane %v5743_v33, %v20401_v50  ;;  %v9095_v39 = vpop.xlane.xlu1 %9094  ;;  %v20458_v0 = vld [vmem:[#allocation40_spill] sm:$0xff] }
 0x4b6   : > { %v9207_v46 = vsel %vm8657_vm2, %v18476_v4, 0.0  ;;  %v9192_v28 = vsel %vm8657_vm2, %v18461_v10, 0.0  ;;  %14784 = vrcp.f32 %v9092_v2  ;;  %v6624_v7 = vcombine.low %v18443_v36, %v5741_v12  ;;  %v20461_v2 = vld [vmem:[#allocation34_spill] sm:$0xff] }
 0x4b7   : > { %v18506_v3 = vpop.eup %14774  ;;  %v13643_v56 = vcombine.high %v18443_v36, %v5741_v12  ;;  %v5125_v15 = vshrl.u32 %v20443_v19, 16  ;;  %v9368_v26 = vpack.c.bf16 %v9311_v5, %v9310_v17  ;;  %v18513_v1 = vrot.slane %v18402_v49, %v20393_v37  ;;  %v20457_v12 = vld [vmem:[#allocation32_spill] sm:$0xff]  ;;  %v20460_v17 = vld [vmem:[#allocation43_spill] sm:$0xff] }
 0x4b8   : > { %v18516_v60 = vrot.slane %v5909_v47, %v20393_v37  ;;  %14786 = vrcp.f32 %v9095_v39  ;;  %v7058_v9 = vpack.i.b16 %v18494_v61, %v18490_v20  ;;  %v18521_v33 = vrot.slane %v5792_v41, %v20401_v50  ;;  %v20459_v47 = vld [vmem:[#allocation41_spill] sm:$0xff] }
 0x4b9   : > { %9208 = vadd.xlane.f32.xlu1 %v9207_v46  ;;  %9193 = vadd.xlane.f32.xlu0 %v9192_v28  ;;  %v9036_v36 = vmul.f32 1.442695, %v8911_v59  ;;  %14788 = vpow2.f32 %v9032_v53  ;;  %v8913_v24 = vsub.f32 %v20458_v0, %v20457_v12  ;;  %v18527_v49 = vrot.slane %v5793_v14, %v20401_v50 }
 0x4ba   : > { %v5808_v40 = vcombine.low %v20459_v47, %v18470_v16  ;;  %v5809_v5 = vcombine.high %v20459_v47, %v18470_v16  ;;  %v9204_v41 = vsel %vm8657_vm2, %v18506_v3, 0.0  ;;  %v18540_v29 = vrot.slane %v6624_v7, %v20393_v37  ;;  %v9074_v16 = vpop.xlane.xlu1 %9073 }
 0x4bb   : > { %14194 = vmatmul.mubr.msk.bf16.vlgmr.msra.gmra.mrb[100].mxu0 %vm8657_vm2, %v9368_v26  ;;  %v18537_v43 = vpop.eup %14776  ;;  %v18543_v14 = vrot.slane %v13643_v56, %v20393_v37  ;;  %v6640_v34 = vcombine.low %v18486_v58, %v18500_v38  ;;  %v7044_v59 = vshrl.u32 %v18367_v13, 16  ;;  %v7045_v30 = vshrl.u32 %v18369_v62, 16  ;;  %v20464_v26 = vld [vmem:[#allocation65_spill] sm:$0xff]  ;;  %v9104_v62 = vpop.xlane.xlu0 %9103 }
 0x4bc   : > { %14204 = vmatpush3.bf16.msra.mxu0 %v7058_v9  ;;  %14205 = vmatprep.mubr.msk.bf16.mxu0 %vm15070_vm0, %v20439_v31  ;;  %v14779_v53 = vpop.eup %14778  ;;  %v20462_v46 = vcombine.low %v20460_v17, %v20461_v2  ;;  %v20463_v7 = vcombine.high %v20460_v17, %v20461_v2  ;;  %v6581_v13 = vrot.slane %v6574_v48, %v20393_v37  ;;  %14790 = vpow2.f32 %v9036_v36 }
 0x4bd   : > { %9205 = vadd.xlane.f32.xlu0 %v9204_v41  ;;  %14215 = vmatprep.subr.bf16.mxu0 %v20439_v31  ;;  %v9040_v39 = vmul.f32 1.442695, %v8913_v24  ;;  %v9304_v9 = vmul.f32 %v14779_v53, %v20464_v26  ;;  %v6589_v12 = vrot.slane %v13641_v45, %v20393_v37  ;;  %v9210_v47 = vsel %vm8657_vm2, %v18537_v43, 0.0 }
 0x4be   : > { %v6547_v28 = vrot.slane %v20462_v46, %v20393_v37  ;;  %v6555_v56 = vrot.slane %v20463_v7, %v20393_v37  ;;  %v14781_v0 = vpop.eup %14780  ;;  %14792 = vrcp.f32 %v9104_v62  ;;  %v6597_v48 = vrot.slane %v6590_v6, %v20393_v37  ;;  %v9107_v41 = vpop.xlane.xlu1 %9106  ;;  %v20468_v46 = vld [vmem:[#allocation67_spill] sm:$0xff] }
 0x4bf   : > { %v6605_v36 = vrot.slane %v13642_v52, %v20393_v37  ;;  %v18577_v24 = vpop.eup %14782  ;;  %v13644_v42 = vcombine.high %v18486_v58, %v18500_v38  ;;  %v9305_v45 = vmul.f32 %v14781_v0, %v20465_v44  ;;  %14794 = vrcp.f32 %v9074_v16  ;;  %v20467_v52 = vld [vmem:[#allocation50_spill] sm:$0xff]  ;;  %v9077_v16 = vpop.xlane.xlu0 %9076 }
 0x4c0   : > { %v18584_v53 = vcombine.high %v18448_v8, %v18453_v22  ;;  %v14785_v6 = vpop.eup %14784  ;;  %14796 = vrcp.f32 %v9107_v41  ;;  %v7046_v17 = vpack.i.b16 %v7045_v30, %v7044_v59  ;;  %v18588_v21 = vcombine.high %v18456_v54, %v18459_v18 }
 0x4c1   : > { %9211 = vadd.xlane.f32.xlu0 %v9210_v47  ;;  %v6556_v2 = vcombine.low %v20467_v52, %v20466_v32  ;;  %14798 = vpow2.f32 %v9040_v39  ;;  %v9314_v7 = vmul.f32 %v14785_v6, %v20468_v46  ;;  %v9365_v26 = vpack.c.bf16 %v9305_v45, %v9304_v9  ;;  %v20469_v39 = vld [vmem:[#allocation68_spill] sm:$0xff] }
 0x4c2   : > { %v6564_v62 = vcombine.low %v6547_v28, %v6555_v56  ;;  %v14787_v0 = vpop.eup %14786  ;;  %v9216_v8 = vsel %vm8657_vm2, %v18577_v24, 0.0  ;;  %14800 = vrcp.f32 %v9077_v16  ;;  %v6606_v22 = vcombine.low %v6581_v13, %v6589_v12  ;;  %v9086_v9 = vpop.xlane.xlu1 %9085 }
 0x4c3   : > { %v6614_v59 = vcombine.low %v6597_v48, %v6605_v36  ;;  %v18595_v30 = vpop.eup %14788  ;;  %v18598_v54 = vrot.slane %v5808_v40, %v20401_v50  ;;  %v18601_v18 = vrot.slane %v5809_v5, %v20401_v50  ;;  %v9315_v47 = vmul.f32 %v14787_v0, %v20469_v39  ;;  %14176 = vmatmul.mubr.msk.bf16.vlgmr.msra.gmra.mrb[92].mxu1 %vm8657_vm2, %v9365_v26  ;;  %v9116_v5 = vpop.xlane.xlu0 %9115  ;;  %v20472_v39 = vld [vmem:[#allocation72_spill] sm:$0xff] }
 0x4c4   : > { %v5126_v28 = vpack.i.b16 %v5125_v15, %v5124_v27  ;;  %v5828_v56 = vcombine.high %v18361_v25, %v20391_v23  ;;  %v5835_v40 = vrot.slane %v18361_v25, %v20393_v37  ;;  %14186 = vmatpush3.bf16.msra.mxu1 %v7046_v17  ;;  %14187 = vmatprep.mubr.msk.bf16.mxu1 %vm15070_vm0, %v20439_v31  ;;  %v9219_v25 = vsel %vm8657_vm2, %v18595_v30, 0.0 }
 0x4c5   : > { %9217 = vadd.xlane.f32.xlu0 %v9216_v8  ;;  %14197 = vmatprep.subr.bf16.mxu1 %v20439_v31  ;;  %v9370_v13 = vpack.c.bf16 %v9315_v47, %v9314_v7  ;;  %v7066_v51 = vpack.i.b16 %v18588_v21, %v18584_v53  ;;  %v18619_v19 = vrot.slane %v6556_v2, %v20401_v50  ;;  %14802 = vrcp.f32 %v9116_v5  ;;  %v20470_v2 = vld [vmem:[#allocation51_spill] sm:$0xff] }
 0x4c6   : > { %v18622_v27 = vrot.slane %v6564_v62, %v20401_v50  ;;  %v18627_v15 = vrot.slane %v6606_v22, %v20401_v50  ;;  %v18630_v12 = vrot.slane %v6614_v59, %v20401_v50  ;;  %v18632_v48 = vpop.eup %14790  ;;  %v6674_v36 = vcombine.low %v18521_v33, %v18527_v49  ;;  %v9119_v41 = vpop.xlane.xlu1 %9118  ;;  %v20471_v22 = vld [vmem:[#allocation70_spill] sm:$0xff] }
 0x4c7   : > { %v13645_v44 = vcombine.high %v18521_v33, %v18527_v49  ;;  %v6690_v45 = vcombine.low %v18598_v54, %v18601_v18  ;;  %14804 = vrcp.f32 %v9086_v9  ;;  %14206 = vmatmul.mubr.msk.bf16.vlgmr.msra.gmra.mrb[104].mxu0 %vm8657_vm2, %v9370_v13  ;;  %v5842_v17 = vrot.slane %v5828_v56, %v20393_v37  ;;  %v9089_v16 = vpop.xlane.xlu0 %9088 }
 0x4c8   : > { %v14793_v6 = vpop.eup %14792  ;;  %v5858_v32 = vcombine.low %v5835_v40, %v18412_v55  ;;  %v5859_v52 = vcombine.high %v5835_v40, %v18412_v55  ;;  %14806 = vrcp.f32 %v9119_v41  ;;  %14216 = vmatpush3.bf16.msra.mxu0 %v7066_v51  ;;  %v13646_v49 = vcombine.high %v18598_v54, %v18601_v18  ;;  %14217 = vmatprep.mubr.msk.bf16.mxu0 %vm15070_vm0, %v20439_v31  ;;  %v20473_v41 = vld [vmem:[#allocation69_spill] sm:$0xff]  ;;  %v20475_v54 = vld [vmem:[#allocation74_spill] sm:$0xff] }
 0x4c9   : > { %9220 = vadd.xlane.f32.xlu0 %v9219_v25  ;;  %v14795_v33 = vpop.eup %14794  ;;  %v5894_v46 = vcombine.high %v5126_v28, %v20391_v23  ;;  %v18650_v7 = vrot.slane %v5126_v28, %v20393_v37  ;;  %14227 = vmatprep.subr.bf16.mxu0 %v20439_v31  ;;  %v9225_v26 = vsel %vm8657_vm2, %v18632_v48, 0.0  ;;  %14808 = vrcp.f32 %v9089_v16  ;;  %v20474_v16 = vld [vmem:[#allocation71_spill] sm:$0xff] }
 0x4ca   : > { %5038 = vrot.lane.b32.xlu1 %v20470_v2, %s15066_s21  ;;  %v14797_v55 = vpop.eup %14796  ;;  %v18659_v62 = vcombine.low %v18619_v19, %v18622_v27  ;;  %v18663_v0 = vcombine.low %v18627_v15, %v18630_v12  ;;  %v9318_v59 = vmul.f32 %v14793_v6, %v20471_v22  ;;  %v7052_v9 = vshrl.u32 %v18420_v11, 16 }
 0x4cb   : > { %v18665_v8 = vpop.eup %14798  ;;  %v9319_v47 = vmul.f32 %v14797_v55, %v20472_v39  ;;  %v7053_v28 = vshrl.u32 %v18424_v63, 16  ;;  %v18672_v40 = vrot.slane %v5858_v32, %v20401_v50  ;;  %v18675_v5 = vrot.slane %v5859_v52, %v20401_v50  ;;  %v9128_v55 = vpop.xlane.xlu1 %9127 }
 0x4cc   : > { %v14801_v56 = vpop.eup %14800  ;;  %v5874_v13 = vcombine.low %v5842_v17, %v18436_v57  ;;  %v5875_v51 = vcombine.high %v5842_v17, %v18436_v57  ;;  %v18680_v25 = vrot.slane %v5894_v46, %v20393_v37  ;;  %v9308_v6 = vmul.f32 %v14795_v33, %v20473_v41  ;;  %v9098_v63 = vpop.xlane.xlu0 %9097 }
 0x4cd   : > { %9226 = vadd.xlane.f32.xlu0 %v9225_v26  ;;  %v9309_v11 = vmul.f32 %v14801_v56, %v20474_v16  ;;  %v9372_v26 = vpack.c.bf16 %v9319_v47, %v9318_v59  ;;  %v5924_v32 = vcombine.low %v18650_v7, %v18513_v1  ;;  %v5925_v52 = vcombine.high %v18650_v7, %v18513_v1  ;;  %v20477_v16 = vld [vmem:[#allocation73_spill] sm:$0xff] }
 0x4ce   : > { %v9231_v22 = vsel %vm8657_vm2, %v18665_v8, 0.0  ;;  %v7074_v57 = vpack.i.b16 %v18663_v0, %v18659_v62  ;;  %v7054_v33 = vpack.i.b16 %v7053_v28, %v7052_v9  ;;  %v6647_v46 = vrot.slane %v6640_v34, %v20393_v37 }
 0x4cf   : > { %v9367_v17 = vpack.c.bf16 %v9309_v11, %v9308_v6  ;;  %14218 = vmatmul.mubr.msk.bf16.vlgmr.msra.gmra.mrb[108].mxu0 %vm8657_vm2, %v9372_v26  ;;  %v14803_v59 = vpop.eup %14802  ;;  %14810 = vrcp.f32 %v9098_v63  ;;  %v6655_v1 = vrot.slane %v13644_v42, %v20393_v37  ;;  %v6681_v7 = vrot.slane %v6674_v36, %v20393_v37  ;;  %v9101_v34 = vpop.xlane.xlu1 %9100 }
 0x4d0   : > { %14228 = vmatpush3.bf16.msra.mxu0 %v7074_v57  ;;  %14229 = vmatprep.mubr.msk.bf16.mxu0 %vm15070_vm0, %v20439_v31  ;;  %v6689_v39 = vrot.slane %v13645_v44, %v20393_v37  ;;  %v18706_v9 = vrot.slane %v5874_v13, %v20401_v50  ;;  %14812 = vrcp.f32 %v9128_v55  ;;  %v9131_v28 = vpop.xlane.xlu0 %9130  ;;  %v6697_v58 = vrot.slane %v6690_v45, %v20393_v37  ;;  %v20476_v45 = vld [vmem:[#allocation76_spill] sm:$0xff]  ;;  %v20479_v57 = vld [vmem:[#allocation47_spill] sm:$0xff] }
 0x4d1   : > { %9232 = vadd.xlane.f32.xlu0 %v9231_v22  ;;  %v14805_v47 = vpop.eup %14804  ;;  %14188 = vmatmul.mubr.msk.bf16.vlgmr.msra.gmra.mrb[96].mxu1 %vm8657_vm2, %v9367_v17  ;;  %v6705_v38 = vrot.slane %v13646_v49, %v20393_v37  ;;  %v18716_v36 = vrot.slane %v5875_v51, %v20401_v50  ;;  %14814 = vrcp.f32 %v9101_v34  ;;  %v18722_v44 = vcombine.high %v18619_v19, %v18622_v27 }
 0x4d2   : > { %14239 = vmatprep.subr.bf16.mxu0 %v20439_v31  ;;  %v14807_v42 = vpop.eup %14806  ;;  %14198 = vmatpush3.bf16.msra.mxu1 %v7054_v33  ;;  %v18726_v56 = vcombine.high %v18627_v15, %v18630_v12  ;;  %v9322_v18 = vmul.f32 %v14803_v59, %v20475_v54  ;;  %14816 = vrcp.f32 %v9131_v28  ;;  %v7060_v13 = vshrl.u32 %v18490_v20, 16  ;;  %v20478_v12 = vld [vmem:[#allocation75_spill] sm:$0xff] }
 0x4d3   : > { %14199 = vmatprep.mubr.msk.bf16.mxu1 %vm15070_vm0, %v20439_v31  ;;  %v9323_v49 = vmul.f32 %v14807_v42, %v20476_v45  ;;  %14209 = vmatprep.subr.bf16.mxu1 %v20439_v31  ;;  %v14809_v51 = vpop.eup %14808  ;;  %v7061_v41 = vshrl.u32 %v18494_v61, 16  ;;  %v6656_v19 = vcombine.low %v18540_v29, %v18543_v14  ;;  %v6664_v27 = vcombine.low %v6647_v46, %v6655_v1  ;;  %v20480_v61 = vld [vmem:[#allocation58_spill] sm:$0xff] }
 0x4d4   : > { %v6706_v6 = vcombine.low %v6681_v7, %v6689_v39  ;;  %v9312_v15 = vmul.f32 %v14805_v47, %v20477_v16  ;;  %v9313_v11 = vmul.f32 %v14809_v51, %v20478_v12  ;;  %v9110_v55 = vpop.xlane.xlu0 %9109  ;;  %v6714_v26 = vcombine.low %v6697_v58, %v6705_v38  ;;  %v9140_v59 = vpop.xlane.xlu1 %9139  ;;  %v20484_v16 = vld [vmem:[#allocation77_spill] sm:$0xff]  ;;  %v20485_v12 = vld [vmem:[#allocation79_spill] sm:$0xff] }
 0x4d5   : > { %v9374_v63 = vpack.c.bf16 %v9323_v49, %v9322_v18  ;;  %v5940_v22 = vcombine.low %v18680_v25, %v18516_v60  ;;  %v5941_v20 = vcombine.high %v18680_v25, %v18516_v60  ;;  %v8907_v17 = vsub.f32 %v20480_v61, %v20479_v57  ;;  %v20487_v61 = vld [vmem:[#allocation78_spill] sm:$0xff] }
 0x4d6   : > { %v7082_v29 = vpack.i.b16 %v18726_v56, %v18722_v44  ;;  %v18746_v14 = vrot.slane %v5924_v32, %v20401_v50  ;;  %v5939_v33 = vrot.slane %v5925_v52, %v20401_v50  ;;  %v6724_v46 = vcombine.low %v18672_v40, %v18675_v5 }
 0x4d7   : > { %v9369_v1 = vpack.c.bf16 %v9313_v11, %v9312_v15  ;;  %14230 = vmatmul.mubr.msk.bf16.vlgmr.msra.gmra.mrb[112].mxu0 %vm8657_vm2, %v9374_v63  ;;  %14818 = vrcp.f32 %v9110_v55  ;;  %v7062_v60 = vpack.i.b16 %v7061_v41, %v7060_v13  ;;  %v18755_v25 = vrot.slane %v6656_v19, %v20401_v50 }
 0x4d8   : > { %14240 = vmatpush3.bf16.msra.mxu0 %v7082_v29  ;;  %14241 = vmatprep.mubr.msk.bf16.mxu0 %vm15070_vm0, %v20439_v31  ;;  %v18758_v32 = vrot.slane %v6664_v27, %v20401_v50  ;;  %v13647_v52 = vcombine.high %v18672_v40, %v18675_v5  ;;  %14820 = vrcp.f32 %v9140_v59  ;;  %v9143_v7 = vpop.xlane.xlu0 %9142  ;;  %v18765_v39 = vrot.slane %v6706_v6, %v20401_v50  ;;  %v9113_v45 = vpop.xlane.xlu1 %9112  ;;  %v20481_v27 = vld [vmem:[#allocation24_spill] sm:$0xff] }
 0x4d9   : > { %14200 = vmatmul.mubr.msk.bf16.vlgmr.msra.gmra.mrb[100].mxu1 %vm8657_vm2, %v9369_v1  ;;  %14251 = vmatprep.subr.bf16.mxu0 %v20439_v31  ;;  %v18768_v47 = vrot.slane %v6714_v26, %v20401_v50  ;;  %v14811_v34 = vpop.eup %14810  ;;  %v5948_v28 = vrot.slane %v5940_v22, %v20401_v50  ;;  %v5955_v58 = vrot.slane %v5941_v20, %v20401_v50  ;;  %v9028_v38 = vmul.f32 1.442695, %v8907_v17  ;;  %v20486_v26 = vld [vmem:[#allocation80_spill] sm:$0xff] }
 0x4da   : > { %14210 = vmatpush3.bf16.msra.mxu1 %v7062_v60  ;;  %14822 = vrcp.f32 %v9143_v7  ;;  %14211 = vmatprep.mubr.msk.bf16.mxu1 %vm15070_vm0, %v20439_v31  ;;  %v14813_v40 = vpop.eup %14812  ;;  %v6740_v5 = vcombine.low %v18706_v9, %v18716_v36  ;;  %v13648_v42 = vcombine.high %v18706_v9, %v18716_v36  ;;  %v6774_v54 = vcombine.low %v18746_v14, %v5939_v33  ;;  %v20482_v9 = vld [vmem:[#allocation17_spill] sm:$0xff] }
 0x4db   : > { %v13649_v18 = vcombine.high %v18746_v14, %v5939_v33  ;;  %14221 = vmatprep.subr.bf16.mxu1 %v20439_v31  ;;  %v14815_v49 = vpop.eup %14814  ;;  %14824 = vrcp.f32 %v9113_v45  ;;  %v7068_v13 = vshrl.u32 %v18584_v53, 16  ;;  %v7069_v51 = vshrl.u32 %v18588_v21, 16 }
 0x4dc   : > { %v18785_v41 = vcombine.low %v18755_v25, %v18758_v32  ;;  %v14817_v19 = vpop.eup %14816  ;;  %v20483_v36 = vsub.f32 %v20481_v27, %v20482_v9  ;;  %v9316_v15 = vmul.f32 %v14811_v34, %v20484_v16  ;;  %v9317_v11 = vmul.f32 %v14815_v49, %v20485_v12  ;;  %v9122_v55 = vpop.xlane.xlu0 %9121  ;;  %v20492_v12 = vld [vmem:[#allocation82_spill] sm:$0xff] }
 0x4dd   : > { %v18794_v63 = vcombine.low %v18765_v39, %v18768_v47  ;;  %v6790_v53 = vcombine.low %v5948_v28, %v5955_v58  ;;  %v13650_v21 = vcombine.high %v5948_v28, %v5955_v58  ;;  %14826 = vpow2.f32 %v9028_v38  ;;  %v20488_v58 = vld [vmem:[#allocation23_spill] sm:$0xff]  ;;  %v20489_v38 = vld [vmem:[#allocation13_spill] sm:$0xff] }
 0x4de   : > { %v9034_v6 = vmul.f32 1.442695, %v20483_v36  ;;  %v9327_v22 = vmul.f32 %v14817_v19, %v20486_v26  ;;  %v6731_v20 = vrot.slane %v6724_v46, %v20393_v37  ;;  %v6739_v57 = vrot.slane %v13647_v52, %v20393_v37 }
 0x4df   : > { %v9326_v17 = vmul.f32 %v14813_v40, %v20487_v61  ;;  %v9371_v29 = vpack.c.bf16 %v9317_v11, %v9316_v15  ;;  %v7070_v14 = vpack.i.b16 %v7069_v51, %v7068_v13  ;;  %v6747_v33 = vrot.slane %v6740_v5, %v20393_v37  ;;  %v9155_v60 = vpop.xlane.xlu1 %9154  ;;  %v20491_v13 = vld [vmem:[#allocation84_spill] sm:$0xff]  ;;  %v20493_v11 = vld [vmem:[#allocation81_spill] sm:$0xff] }
 0x4e0   : > { %v6755_v59 = vrot.slane %v13648_v42, %v20393_v37  ;;  %v6781_v1 = vrot.slane %v6774_v54, %v20393_v37  ;;  %14828 = vpow2.f32 %v9034_v6  ;;  %v9152_v7 = vpop.xlane.xlu0 %9151  ;;  %v7090_v46 = vpack.i.b16 %v18794_v63, %v18785_v41 }
 0x4e1   : > { %14212 = vmatmul.mubr.msk.bf16.vlgmr.msra.gmra.mrb[104].mxu1 %vm8657_vm2, %v9371_v29  ;;  %v9376_v34 = vpack.c.bf16 %v9327_v22, %v9326_v17  ;;  %v6789_v52 = vrot.slane %v13649_v18, %v20393_v37  ;;  %v14819_v28 = vpop.eup %14818  ;;  %v20490_v40 = vsub.f32 %v20488_v58, %v20489_v38  ;;  %14830 = vrcp.f32 %v9155_v60 }
 0x4e2   : > { %14222 = vmatpush3.bf16.msra.mxu1 %v7070_v14  ;;  %14223 = vmatprep.mubr.msk.bf16.mxu1 %vm15070_vm0, %v20439_v31  ;;  %v6797_v42 = vrot.slane %v6790_v53, %v20393_v37  ;;  %v6805_v54 = vrot.slane %v13650_v21, %v20393_v37  ;;  %v14821_v45 = vpop.eup %14820  ;;  %14832 = vrcp.f32 %v9152_v7  ;;  %v7076_v49 = vshrl.u32 %v18659_v62, 16  ;;  %v20494_v21 = vld [vmem:[#allocation83_spill] sm:$0xff] }
 0x4e3   : > { %v9038_v5 = vmul.f32 1.442695, %v20490_v40  ;;  %14233 = vmatprep.subr.bf16.mxu1 %v20439_v31  ;;  %14242 = vmatmul.mubr.msk.bf16.vlgmr.msra.gmra.mrb[116].mxu0 %vm8657_vm2, %v9376_v34  ;;  %14834 = vrcp.f32 %v9122_v55  ;;  %v7077_v27 = vshrl.u32 %v18663_v0, 16  ;;  %v6756_v9 = vcombine.low %v6731_v20, %v6739_v57  ;;  %v9134_v22 = vpop.xlane.xlu1 %9133  ;;  %v20495_v7 = vld [vmem:[#allocation87_spill] sm:$0xff] }
 0x4e4   : > { %v14823_v18 = vpop.eup %14822  ;;  %14252 = vmatpush3.bf16.msra.mxu0 %v7090_v46  ;;  %14253 = vmatprep.mubr.msk.bf16.mxu0 %vm15070_vm0, %v20439_v31  ;;  %v9125_v19 = vpop.xlane.xlu0 %9124  ;;  %v6764_v6 = vcombine.low %v6747_v33, %v6755_v59  ;;  %v6806_v16 = vcombine.low %v6781_v1, %v6789_v52  ;;  %v6814_v15 = vcombine.low %v6797_v42, %v6805_v54  ;;  %v20496_v52 = vld [vmem:[#allocation86_spill] sm:$0xff] }
 0x4e5   : > { %v9331_v51 = vmul.f32 %v14823_v18, %v20491_v13  ;;  %14263 = vmatprep.subr.bf16.mxu0 %v20439_v31  ;;  %v14825_v36 = vpop.eup %14824  ;;  %14836 = vpow2.f32 %v9038_v5  ;;  %v9330_v62 = vmul.f32 %v14821_v45, %v20492_v12  ;;  %v9320_v53 = vmul.f32 %v14819_v28, %v20493_v11  ;;  %v20499_v11 = vld [vmem:[#allocation90_spill] sm:$0xff] }
 0x4e6   : > { %v9321_v26 = vmul.f32 %v14825_v36, %v20494_v21  ;;  %14838 = vrcp.f32 %v9125_v19  ;;  %v18829_v0 = vcombine.high %v18755_v25, %v18758_v32  ;;  %v18833_v20 = vcombine.high %v18765_v39, %v18768_v47 }
 0x4e7   : > { %v18825_v55 = vpop.eup %14826  ;;  %v7078_v61 = vpack.i.b16 %v7077_v27, %v7076_v49  ;;  %v9378_v17 = vpack.c.bf16 %v9331_v51, %v9330_v62  ;;  %v18836_v29 = vrot.slane %v6756_v9, %v20401_v50  ;;  %v6771_v14 = vrot.slane %v6764_v6, %v20401_v50  ;;  %v20497_v51 = vld [vmem:[#allocation85_spill] sm:$0xff]  ;;  %v20498_v27 = vld [vmem:[#allocation88_spill] sm:$0xff] }
 0x4e8   : > { %v9373_v57 = vpack.c.bf16 %v9321_v26, %v9320_v53  ;;  %v6813_v33 = vrot.slane %v6806_v16, %v20401_v50  ;;  %v6821_v59 = vrot.slane %v6814_v15, %v20401_v50  ;;  %v9213_v25 = vsel %vm8657_vm2, %v18825_v55, 0.0 }
 0x4e9   : > { %v7098_v47 = vpack.i.b16 %v18833_v20, %v18829_v0  ;;  %v18857_v58 = vcombine.low %v18836_v29, %v6771_v14  ;;  %v7084_v18 = vshrl.u32 %v18722_v44, 16  ;;  %v7085_v49 = vshrl.u32 %v18726_v56, 16 }
 0x4ea   : > { %v18841_v1 = vpop.eup %14828  ;;  %14224 = vmatmul.mubr.msk.bf16.vlgmr.msra.gmra.mrb[108].mxu1 %vm8657_vm2, %v9373_v57  ;;  %v18859_v38 = vcombine.low %v6813_v33, %v6821_v59  ;;  %v18884_v57 = vcombine.high %v18836_v29, %v6771_v14 }
 0x4eb   : > { %v9164_v32 = vpop.xlane.xlu0 %9163  ;;  %14254 = vmatmul.mubr.msk.bf16.vlgmr.msra.gmra.mrb[120].mxu0 %vm8657_vm2, %v9378_v17  ;;  %v14831_v39 = vpop.eup %14830  ;;  %14234 = vmatpush3.bf16.msra.mxu1 %v7078_v61  ;;  %v9222_v5 = vsel %vm8657_vm2, %v18841_v1, 0.0  ;;  %v7086_v44 = vpack.i.b16 %v7085_v49, %v7084_v18  ;;  %v18886_v61 = vcombine.high %v6813_v33, %v6821_v59  ;;  %v20500_v17 = vld [vmem:[#allocation92_spill] sm:$0xff]  ;;  %v7100_v49 = vshrl.u32 %v18829_v0, 16 }
 0x4ec   : > { %14840 = vrcp.f32 %v9164_v32  ;;  %v14833_v60 = vpop.eup %14832  ;;  %v9335_v34 = vmul.f32 %v14831_v39, %v20495_v7  ;;  %14235 = vmatprep.mubr.msk.bf16.mxu1 %vm15070_vm0, %v20439_v31  ;;  %14245 = vmatprep.subr.bf16.mxu1 %v20439_v31  ;;  %v7106_v36 = vpack.i.b16 %v18859_v38, %v18857_v58  ;;  %v7092_v39 = vshrl.u32 %v18785_v41, 16 }
 0x4ed   : > { %14842 = vrcp.f32 %v9134_v22  ;;  %v9167_v46 = vpop.xlane.xlu1 %9166  ;;  %v9334_v28 = vmul.f32 %v14833_v60, %v20496_v52  ;;  %14264 = vmatpush3.bf16.msra.mxu0 %v7098_v47  ;;  %14265 = vmatprep.mubr.msk.bf16.mxu0 %vm15070_vm0, %v20439_v31  ;;  %v14835_v40 = vpop.eup %14834  ;;  %v7093_v47 = vshrl.u32 %v18794_v63, 16  ;;  %v20501_v60 = vld [vmem:[#allocation89_spill] sm:$0xff]  ;;  %v7114_v29 = vpack.i.b16 %v18886_v61, %v18884_v57 }
 0x4ee   : > { %9214 = vadd.xlane.f32.xlu1 %v9213_v25  ;;  %14844 = vrcp.f32 %v9167_v46  ;;  %14275 = vmatprep.subr.bf16.mxu0 %v20439_v31  ;;  %v9324_v19 = vmul.f32 %v14835_v40, %v20497_v51 }
 0x4ef   : > { %v9137_v42 = vpop.xlane.xlu0 %9136  ;;  %v18864_v54 = vpop.eup %14836  ;;  %v9380_v13 = vpack.c.bf16 %v9335_v34, %v9334_v28  ;;  %v20502_v34 = vld [vmem:[#allocation91_spill] sm:$0xff]  ;;  %v7094_v33 = vpack.i.b16 %v7093_v47, %v7092_v39 }
 0x4f0   : > { %14846 = vrcp.f32 %v9137_v42  ;;  %v14839_v45 = vpop.eup %14838  ;;  %v9228_v16 = vsel %vm8657_vm2, %v18864_v54, 0.0  ;;  %v20503_v42 = vld [vmem:[#allocation46_spill] sm:$0xff]  ;;  %v20511_v39 = vld [vmem:[#allocation59_spill] sm:$0xff] }
 0x4f1   : > { %v9325_v9 = vmul.f32 %v14839_v45, %v20498_v27 }
 0x4f2   : > { %9223 = vadd.xlane.f32.xlu1 %v9222_v5 }
 0x4f3   : > { %v9176_v6 = vpop.xlane.xlu1 %9175  ;;  %v9146_v15 = vpop.xlane.xlu0 %9145  ;;  %14266 = vmatmul.mubr.msk.bf16.vlgmr.msra.gmra.mrb[124].mxu0 %vm8657_vm2, %v9380_v13  ;;  %v9375_v12 = vpack.c.bf16 %v9325_v9, %v9324_v19  ;;  %v7101_v13 = vshrl.u32 %v18833_v20, 16  ;;  %v20504_v19 = vld [vmem:[#allocation45_spill] sm:$0xff] }
 0x4f4   : > { %14276 = vmatpush3.bf16.msra.mxu0 %v7106_v36  ;;  %14848 = vrcp.f32 %v9146_v15  ;;  %14277 = vmatprep.mubr.msk.bf16.mxu0 %vm15070_vm0, %v20439_v31  ;;  %v20505_v36 = vld [vmem:[#allocation93_spill] sm:$0xff]  ;;  %v20507_v15 = vld [vmem:[#allocation54_spill] sm:$0xff] }
 0x4f5   : > { %14287 = vmatprep.subr.bf16.mxu0 %v20439_v31  ;;  %14236 = vmatmul.mubr.msk.bf16.vlgmr.msra.gmra.mrb[112].mxu1 %vm8657_vm2, %v9375_v12  ;;  %14850 = vrcp.f32 %v9176_v6 }
 0x4f6   : > { %9229 = vadd.xlane.f32.xlu1 %v9228_v16  ;;  %v14841_v56 = vpop.eup %14840  ;;  %14246 = vmatpush3.bf16.msra.mxu1 %v7086_v44  ;;  %v20506_v16 = vld [vmem:[#allocation55_spill] sm:$0xff]  ;;  %v20508_v44 = vld [vmem:[#allocation37_spill] sm:$0xff] }
 0x4f7   : > { %v14843_v62 = vpop.eup %14842  ;;  %v9338_v53 = vmul.f32 %v14841_v56, %v20499_v11  ;;  %v9149_v21 = vpop.xlane.xlu1 %9148  ;;  %14247 = vmatprep.mubr.msk.bf16.mxu1 %vm15070_vm0, %v20439_v31  ;;  %14257 = vmatprep.subr.bf16.mxu1 %v20439_v31  ;;  %v18910_v12 = vcombine.low %v20507_v15, %v20506_v16  ;;  %v20509_v56 = vld [vmem:[#allocation35_spill] sm:$0xff]  ;;  %v20510_v11 = vld [vmem:[#allocation28_spill] sm:$0xff]  ;;  %v7116_v16 = vshrl.u32 %v18884_v57, 16  ;;  %v7117_v15 = vshrl.u32 %v18886_v61, 16  ;;  %v20521_v57 = vld [vmem:[#allocation42_spill] sm:$0xff] }
 0x4f8   : > { %v9179_v26 = vpop.xlane.xlu0 %9178  ;;  %v14845_v22 = vpop.eup %14844  ;;  %14852 = vrcp.f32 %v9149_v21  ;;  %v9328_v7 = vmul.f32 %v14843_v62, %v20501_v60  ;;  %v18914_v62 = vcombine.low %v20509_v56, %v20508_v44  ;;  %v20519_v56 = vld [vmem:[#allocation29_spill] sm:$0xff] }
 0x4f9   : > { %v9339_v25 = vmul.f32 %v14845_v22, %v20500_v17  ;;  %14854 = vrcp.f32 %v9179_v26  ;;  %v7102_v26 = vpack.i.b16 %v7101_v13, %v7100_v49 }
 0x4fa   : > { %v14847_v32 = vpop.eup %14846 }
 0x4fb   : > { %v9329_v46 = vmul.f32 %v14847_v32, %v20502_v34  ;;  %v9382_v40 = vpack.c.bf16 %v9339_v25, %v9338_v53  ;;  %v7122_v25 = vpack.i.b16 %v18914_v62, %v18910_v12  ;;  %v7109_v34 = vshrl.u32 %v18859_v38, 16 }
 0x4fc   : > { %v9158_v28 = vpop.xlane.xlu0 %9157 }
 0x4fd   : > { %v9188_v52 = vpop.xlane.xlu1 %9187  ;;  %14856 = vrcp.f32 %v9158_v28  ;;  %v9377_v14 = vpack.c.bf16 %v9329_v46, %v9328_v7  ;;  %14278 = vmatmul.mubr.msk.bf16.vlgmr.msra.gmra.mrb[128].mxu0 %vm8657_vm2, %v9382_v40  ;;  %v7108_v7 = vshrl.u32 %v18857_v58, 16 }
 0x4fe   : > { %14288 = vmatpush3.bf16.msra.mxu0 %v7114_v29  ;;  %14289 = vmatprep.mubr.msk.bf16.mxu0 %vm15070_vm0, %v20439_v31  ;;  %v14849_v41 = vpop.eup %14848  ;;  %14858 = vrcp.f32 %v9188_v52  ;;  %v20512_v52 = vld [vmem:[#allocation60_spill] sm:$0xff] }
 0x4ff   : > { %14248 = vmatmul.mubr.msk.bf16.vlgmr.msra.gmra.mrb[116].mxu1 %vm8657_vm2, %v9377_v14  ;;  %14299 = vmatprep.subr.bf16.mxu0 %v20439_v31  ;;  %v14851_v5 = vpop.eup %14850  ;;  %v9332_v45 = vmul.f32 %v14849_v41, %v20503_v42  ;;  %v20513_v29 = vld [vmem:[#allocation48_spill] sm:$0xff]  ;;  %v7110_v58 = vpack.i.b16 %v7109_v34, %v7108_v7 }
 0x500   : > { %v9191_v59 = vpop.xlane.xlu0 %9190  ;;  %14258 = vmatpush3.bf16.msra.mxu1 %v7094_v33  ;;  %14259 = vmatprep.mubr.msk.bf16.mxu1 %vm15070_vm0, %v20439_v31  ;;  %v9342_v53 = vmul.f32 %v14851_v5, %v20510_v11  ;;  %v20514_v33 = vld [vmem:[#allocation39_spill] sm:$0xff]  ;;  %v20515_v42 = vld [vmem:[#allocation56_spill] sm:$0xff] }
 0x501   : > { %v9161_v63 = vpop.xlane.xlu1 %9160  ;;  %14269 = vmatprep.subr.bf16.mxu1 %v20439_v31 }
 0x502   : > { %14860 = vrcp.f32 %v9161_v63  ;;  %v14853_v18 = vpop.eup %14852 }
 0x503   : > { %14862 = vrcp.f32 %v9191_v59  ;;  %v14855_v51 = vpop.eup %14854  ;;  %v9333_v27 = vmul.f32 %v14853_v18, %v20504_v19 }
 0x504   : > { %v9170_v9 = vpop.xlane.xlu0 %9169  ;;  %v9343_v6 = vmul.f32 %v14855_v51, %v20505_v36  ;;  %v20517_v51 = vld [vmem:[#allocation44_spill] sm:$0xff] }
 0x505   : > { %v9379_v0 = vpack.c.bf16 %v9333_v27, %v9332_v45  ;;  %v20516_v45 = vld [vmem:[#allocation12_spill] sm:$0xff] }
 0x506   : > { %v9384_v17 = vpack.c.bf16 %v9343_v6, %v9342_v53  ;;  %v7130_v18 = vpack.i.b16 %v20516_v45, %v20515_v42  ;;  %v20520_v53 = vld [vmem:[#allocation62_spill] sm:$0xff] }
 0x507   : > { %v9203_v21 = vpop.xlane.xlu1 %9202  ;;  %v14857_v20 = vpop.eup %14856  ;;  %14260 = vmatmul.mubr.msk.bf16.vlgmr.msra.gmra.mrb[120].mxu1 %vm8657_vm2, %v9379_v0 }
 0x508   : > { %14864 = vrcp.f32 %v9203_v21  ;;  %v9200_v22 = vpop.xlane.xlu0 %9199  ;;  %14270 = vmatpush3.bf16.msra.mxu1 %v7102_v26  ;;  %14271 = vmatprep.mubr.msk.bf16.mxu1 %vm15070_vm0, %v20439_v31  ;;  %v14859_v32 = vpop.eup %14858  ;;  %v9336_v47 = vmul.f32 %v14857_v20, %v20511_v39  ;;  %v7118_v20 = vpack.i.b16 %v7117_v15, %v7116_v16 }
 0x509   : > { %14866 = vrcp.f32 %v9200_v22  ;;  %14281 = vmatprep.subr.bf16.mxu1 %v20439_v31  ;;  %14290 = vmatmul.mubr.msk.bf16.vlgmr.msra.gmra.mrb[132].mxu0 %vm8657_vm2, %v9384_v17  ;;  %v9346_v41 = vmul.f32 %v14859_v32, %v20514_v33  ;;  %v7124_v17 = vshrl.u32 %v18910_v12, 16  ;;  %v20522_v32 = vld [vmem:[#allocation19_spill] sm:$0xff]  ;;  %v5156_v12 = vshrl.u32 %v20470_v2, 16 }
 0x50a   : > { %14300 = vmatpush3.bf16.msra.mxu0 %v7122_v25  ;;  %14301 = vmatprep.mubr.msk.bf16.mxu0 %vm15070_vm0, %v20439_v31  ;;  %14868 = vrcp.f32 %v9170_v9  ;;  %v20518_v9 = vld [vmem:[#allocation15_spill] sm:$0xff]  ;;  %v7125_v25 = vshrl.u32 %v18914_v62, 16 }
 0x50b   : > { %14311 = vmatprep.subr.bf16.mxu0 %v20439_v31 }
 0x50c   : > { %v14861_v60 = vpop.eup %14860  ;;  %v9173_v40 = vpop.xlane.xlu0 %9172 }
 0x50d   : > { %v14863_v46 = vpop.eup %14862  ;;  %v9337_v28 = vmul.f32 %v14861_v60, %v20512_v52  ;;  %14870 = vrcp.f32 %v9173_v40  ;;  %v9182_v5 = vpop.xlane.xlu1 %9181  ;;  %v7126_v60 = vpack.i.b16 %v7125_v25, %v7124_v17 }
 0x50e   : > { %v9347_v14 = vmul.f32 %v14863_v46, %v20513_v29 }
 0x50f   : > { %v9381_v63 = vpack.c.bf16 %v9337_v28, %v9336_v47 }
 0x510   : > { %v9386_v59 = vpack.c.bf16 %v9347_v14, %v9346_v41 }
 0x511   : > { %14272 = vmatmul.mubr.msk.bf16.vlgmr.msra.gmra.mrb[124].mxu1 %vm8657_vm2, %v9381_v63  ;;  %v9185_v38 = vpop.xlane.xlu0 %9184  ;;  %v5023_v7 = vpop.permute.xlu1 %5022 }
 0x512   : > { %14282 = vmatpush3.bf16.msra.mxu1 %v7110_v58  ;;  %14283 = vmatprep.mubr.msk.bf16.mxu1 %vm15070_vm0, %v20439_v31  ;;  %v14865_v49 = vpop.eup %14864  ;;  %14872 = vrcp.f32 %v9185_v38  ;;  %v5164_v63 = vshrl.u32 %v5023_v7, 16 }
 0x513   : > { %14293 = vmatprep.subr.bf16.mxu1 %v20439_v31  ;;  %14302 = vmatmul.mubr.msk.bf16.vlgmr.msra.gmra.mrb[136].mxu0 %vm8657_vm2, %v9386_v59  ;;  %v14867_v13 = vpop.eup %14866  ;;  %14874 = vrcp.f32 %v9182_v5  ;;  %v9351_v36 = vmul.f32 %v14865_v49, %v20518_v9 }
 0x514   : > { %14312 = vmatpush3.bf16.msra.mxu0 %v7130_v18  ;;  %14313 = vmatprep.mubr.msk.bf16.mxu0 %vm15070_vm0, %v20439_v31  ;;  %v9350_v19 = vmul.f32 %v14867_v13, %v20517_v51  ;;  %v14869_v27 = vpop.eup %14868 }
 0x515   : > { %14323 = vmatprep.subr.bf16.mxu0 %v20439_v31  ;;  %v9340_v11 = vmul.f32 %v14869_v27, %v20519_v56  ;;  %v5007_v34 = vpop.permute.xlu0 %5006 }
 0x516   : > { %v9388_v44 = vpack.c.bf16 %v9351_v36, %v9350_v19  ;;  %v5157_v52 = vshrl.u32 %v5007_v34, 16  ;;  %v5154_v62 = vpack.i.b16 %v5007_v34, %v20470_v2 }
 0x517   : > { %v14871_v6 = vpop.eup %14870 }
 0x518   : > { %v9341_v21 = vmul.f32 %v14871_v6, %v20520_v53  ;;  %v5158_v29 = vpack.i.b16 %v5157_v52, %v5156_v12  ;;  %v6092_v14 = vcombine.high %v5154_v62, %v20391_v23  ;;  %v6099_v5 = vrot.slane %v5154_v62, %v20393_v37 }
 0x51a   : > { %v9383_v0 = vpack.c.bf16 %v9341_v21, %v9340_v11  ;;  %v6158_v59 = vcombine.high %v5158_v29, %v20391_v23  ;;  %v6106_v18 = vrot.slane %v6092_v14, %v20393_v37  ;;  %v6165_v9 = vrot.slane %v5158_v29, %v20393_v37 }
 0x51b   : > { %14314 = vmatmul.mubr.msk.bf16.vlgmr.msra.gmra.mrb[140].mxu0 %vm8657_vm2, %v9388_v44 }
 0x51c   : > { %14325 = vmatprep.mubr.msk.bf16.mxu0 %vm15070_vm0, %v20439_v31  ;;  %v14873_v26 = vpop.eup %14872  ;;  %14284 = vmatmul.mubr.msk.bf16.vlgmr.msra.gmra.mrb[128].mxu1 %vm8657_vm2, %v9383_v0  ;;  %v6172_v36 = vrot.slane %v6158_v59, %v20393_v37 }
 0x51d   : > { %v14875_v22 = vpop.eup %14874  ;;  %14294 = vmatpush3.bf16.msra.mxu1 %v7118_v20  ;;  %14295 = vmatprep.mubr.msk.bf16.mxu1 %vm15070_vm0, %v20439_v31  ;;  %v9345_v61 = vmul.f32 %v14873_v26, %v20521_v57 }
 0x51e   : > { %14305 = vmatprep.subr.bf16.mxu1 %v20439_v31  ;;  %v9344_v39 = vmul.f32 %v14875_v22, %v20522_v32 }
 0x520   : > { %v9385_v47 = vpack.c.bf16 %v9345_v61, %v9344_v39 }
 0x524   : > { %14296 = vmatmul.mubr.msk.bf16.vlgmr.msra.gmra.mrb[132].mxu1 %vm8657_vm2, %v9385_v47 }
 0x525   : > { %14306 = vmatpush3.bf16.msra.mxu1 %v7126_v60  ;;  %14307 = vmatprep.mubr.msk.bf16.mxu1 %vm15070_vm0, %v20439_v31 }
 0x526   : > { %14317 = vmatprep.subr.bf16.mxu1 %v20439_v31 }
 0x542   : > { %v9197_v46 = vpop.xlane.xlu1 %9196 }
 0x543   : > { %14876 = vrcp.f32 %v9197_v46 }
 0x546   : > { %v9209_v28 = vpop.xlane.xlu1 %9208  ;;  %v9194_v40 = vpop.xlane.xlu0 %9193 }
 0x547   : > { %14878 = vrcp.f32 %v9194_v40 }
 0x54a   : > { %v5039_v33 = vpop.permute.xlu1 %5038  ;;  %v9206_v41 = vpop.xlane.xlu0 %9205 }
 0x54b   : > { %v5162_v58 = vpack.i.b16 %v5039_v33, %v5023_v7  ;;  %v5165_v38 = vshrl.u32 %v5039_v33, 16  ;;  %14880 = vrcp.f32 %v9206_v41 }
 0x54c   : > { %14882 = vrcp.f32 %v9209_v28 }
 0x54d   : > { %v5166_v42 = vpack.i.b16 %v5165_v38, %v5164_v63  ;;  %v6107_v45 = vcombine.high %v5162_v58, %v20391_v23  ;;  %v6114_v2 = vrot.slane %v5162_v58, %v20393_v37 }
 0x54e   : > { %v18972_v49 = vpop.xlane.xlu0 %9211 }
 0x54f   : > { %v6121_v13 = vrot.slane %v6107_v45, %v20393_v37  ;;  %v6122_v51 = vcombine.low %v6099_v5, %v6114_v2  ;;  %v6123_v19 = vcombine.high %v6099_v5, %v6114_v2  ;;  %v6173_v27 = vcombine.high %v5166_v42, %v20391_v23  ;;  %v14877_v23 = vpop.eup %14876 }
 0x550   : > { %v6180_v6 = vrot.slane %v5166_v42, %v20393_v37  ;;  %v9349_v28 = vmul.f32 %v14877_v23, %v18440_v35 }
 0x551   : > { %v6130_v16 = vrot.slane %v6122_v51, %v20401_v50  ;;  %v6137_v15 = vrot.slane %v6123_v19, %v20401_v50  ;;  %v6138_v44 = vcombine.low %v6106_v18, %v6121_v13  ;;  %v6139_v56 = vcombine.high %v6106_v18, %v6121_v13  ;;  %v14879_v61 = vpop.eup %14878  ;;  %v20523_v13 = vld [vmem:[#allocation21_spill] sm:$0xff] }
 0x552   : > { %v6187_v11 = vrot.slane %v6173_v27, %v20393_v37  ;;  %v6188_v53 = vcombine.low %v6165_v9, %v6180_v6  ;;  %v6189_v21 = vcombine.high %v6165_v9, %v6180_v6  ;;  %v9218_v0 = vpop.xlane.xlu0 %9217  ;;  %v9348_v14 = vmul.f32 %v14879_v61, %v18461_v10 }
 0x553   : > { %v6146_v26 = vrot.slane %v6138_v44, %v20401_v50  ;;  %v6153_v20 = vrot.slane %v6139_v56, %v20401_v50  ;;  %v6924_v22 = vcombine.low %v6130_v16, %v6137_v15  ;;  %v13655_v57 = vcombine.high %v6130_v16, %v6137_v15 }
 0x554   : > { %v6196_v17 = vrot.slane %v6188_v53, %v20401_v50  ;;  %v6203_v25 = vrot.slane %v6189_v21, %v20401_v50  ;;  %v6204_v32 = vcombine.low %v6172_v36, %v6187_v11  ;;  %v6205_v39 = vcombine.high %v6172_v36, %v6187_v11 }
 0x555   : > { %v6931_v47 = vrot.slane %v6924_v22, %v20393_v37  ;;  %v6939_v60 = vrot.slane %v13655_v57, %v20393_v37  ;;  %v6940_v7 = vcombine.low %v6146_v26, %v6153_v20  ;;  %v13656_v34 = vcombine.high %v6146_v26, %v6153_v20  ;;  %v14881_v42 = vpop.eup %14880 }
 0x556   : > { %v6212_v46 = vrot.slane %v6204_v32, %v20401_v50  ;;  %v6219_v52 = vrot.slane %v6205_v39, %v20401_v50  ;;  %v6974_v12 = vcombine.low %v6196_v17, %v6203_v25  ;;  %v13657_v62 = vcombine.high %v6196_v17, %v6203_v25  ;;  %v9221_v33 = vpop.xlane.xlu0 %9220  ;;  %v14883_v18 = vpop.eup %14882 }
 0x557   : > { %v6947_v40 = vrot.slane %v6940_v7, %v20393_v37  ;;  %v6955_v29 = vrot.slane %v13656_v34, %v20393_v37  ;;  %14884 = vrcp.f32 %v9218_v0  ;;  %v9387_v59 = vpack.c.bf16 %v9349_v28, %v9348_v14 }
 0x558   : > { %v6981_v41 = vrot.slane %v6974_v12, %v20393_v37  ;;  %v6989_v63 = vrot.slane %v13657_v62, %v20393_v37  ;;  %v6990_v58 = vcombine.low %v6212_v46, %v6219_v52  ;;  %v13658_v38 = vcombine.high %v6212_v46, %v6219_v52 }
 0x559   : > { %v6956_v5 = vcombine.low %v6931_v47, %v6939_v60  ;;  %14886 = vrcp.f32 %v9221_v33  ;;  %v6964_v45 = vcombine.low %v6947_v40, %v6955_v29  ;;  %14308 = vmatmul.mubr.msk.bf16.vlgmr.msra.gmra.mrb[136].mxu1 %vm8657_vm2, %v9387_v59  ;;  %v9352_v9 = vmul.f32 %v14881_v42, %v18506_v3 }
 0x55a   : > { %v6997_v35 = vrot.slane %v6990_v58, %v20393_v37  ;;  %v7005_v2 = vrot.slane %v13658_v38, %v20393_v37  ;;  %v7006_v10 = vcombine.low %v6981_v41, %v6989_v63  ;;  %14318 = vmatpush3.bf16.msra.mxu1 %v20523_v13  ;;  %14319 = vmatprep.mubr.msk.bf16.mxu1 %vm15070_vm0, %v20439_v31  ;;  %v9227_v7 = vpop.xlane.xlu0 %9226  ;;  %14888 = vrcp.f32 %v18972_v49 }
 0x55b   : > { %v6963_v51 = vrot.slane %v6956_v5, %v20401_v50  ;;  %v6971_v19 = vrot.slane %v6964_v45, %v20401_v50  ;;  %14329 = vmatprep.subr.bf16.mxu1 %v20439_v31  ;;  %v9353_v15 = vmul.f32 %v14883_v18, %v18476_v4 }
 0x55c   : > { %v7014_v27 = vcombine.low %v6997_v35, %v7005_v2  ;;  %v7013_v6 = vrot.slane %v7006_v10, %v20401_v50 }
 0x55d   : > { %v6972_v36 = vcombine.low %v6963_v51, %v6971_v19  ;;  %v9389_v56 = vpack.c.bf16 %v9353_v15, %v9352_v9  ;;  %v6973_v20 = vcombine.high %v6963_v51, %v6971_v19 }
 0x55e   : > { %v7021_v16 = vrot.slane %v7014_v27, %v20401_v50  ;;  %v9233_v12 = vpop.xlane.xlu0 %9232 }
 0x55f   : > { %v7140_v53 = vshrl.u32 %v6972_v36, 16  ;;  %v7148_v17 = vshrl.u32 %v6973_v20, 16 }
 0x560   : > { %v7022_v44 = vcombine.low %v7013_v6, %v7021_v16  ;;  %v7023_v0 = vcombine.high %v7013_v6, %v7021_v16 }
 0x561   : > { %v14885_v23 = vpop.eup %14884  ;;  %14320 = vmatmul.mubr.msk.bf16.vlgmr.msra.gmra.mrb[140].mxu1 %vm8657_vm2, %v9389_v56 }
 0x562   : > { %v7138_v11 = vpack.i.b16 %v7022_v44, %v6972_v36  ;;  %v7141_v21 = vshrl.u32 %v7022_v44, 16  ;;  %14331 = vmatprep.mubr.msk.bf16.mxu1 %vm15070_vm0, %v20439_v31  ;;  %v9356_v22 = vmul.f32 %v14885_v23, %v18577_v24  ;;  %v7149_v57 = vshrl.u32 %v7023_v0, 16 }
 0x563   : > { %v14887_v26 = vpop.eup %14886  ;;  %v7146_v51 = vpack.i.b16 %v7023_v0, %v6973_v20 }
 0x564   : > { %14324 = vmatpush3.bf16.msra.mxu0 %v7138_v11  ;;  %v7142_v3 = vpack.i.b16 %v7141_v21, %v7140_v53  ;;  %v9357_v4 = vmul.f32 %v14887_v26, %v18595_v30  ;;  %v7150_v25 = vpack.i.b16 %v7149_v57, %v7148_v17  ;;  %v14889_v38 = vpop.eup %14888  ;;  %v14636_v26 = vld [vmem:[#allocation7] sm:$0xff]  }
 0x565   : > { %14335 = vmatprep.subr.bf16.mxu0 %v20439_v31  ;;  %v9354_v42 = vmul.f32 %v14889_v38, %v18537_v43 }
 0x566   : > { %14330 = vmatpush3.bf16.msra.mxu1 %v7142_v3  ;;  %v9391_v61 = vpack.c.bf16 %v9357_v4, %v9356_v22 }
 0x567   : > { %14341 = vmatprep.subr.bf16.mxu1 %v20439_v31 }
 0x569   : > { %14332 = vmatmul.mubr.msk.bf16.vlgmr.msra.gmra.mrb[144].mxu1 %vm8657_vm2, %v9391_v61 }
 0x56a   : > { %14342 = vmatpush3.bf16.msra.mxu1 %v7150_v25  ;;  %14343 = vmatprep.mubr.msk.bf16.mxu1 %vm15070_vm0, %v20439_v31 }
 0x56b   : > { %14379 = vmatprep.subr.bf16.mxu1 %v14636_v26 }
 0x572   : > { %v19019_v32 = vpop.f32.mrb[88].mxu0 }
 0x573   : > { %v14159_v24 = vpop.f32.mrb[89].mxu0 }
 0x574   : > { %v19021_v39 = vpop.f32.mrb[90].mxu0 }
 0x575   : > { %v14160_v30 = vpop.f32.mrb[91].mxu0 }
 0x576   : > { %v19023_v47 = vpop.f32.mrb[88].mxu1 }
 0x577   : > { %v14165_v60 = vpop.f32.mrb[89].mxu1 }
 0x578   : > { %v19025_v34 = vpop.f32.mrb[90].mxu1 }
 0x579   : > { %v14166_v46 = vpop.f32.mrb[91].mxu1 }
 0x57b   : > { %v9215_v52 = vpop.xlane.xlu1 %9214 }
 0x57c   : > { %14890 = vrcp.f32 %v9215_v52 }
 0x57e   : > { %v9519_v62 = vpop.f32.mrb[92].mxu0 }
 0x57f   : > { %v9224_v28 = vpop.xlane.xlu1 %9223  ;;  %v10802_v40 = vcombine.low %v19019_v32, %v9519_v62  ;;  %v10803_v29 = vcombine.high %v19019_v32, %v9519_v62  ;;  %v14171_v14 = vpop.f32.mrb[93].mxu0 }
 0x580   : > { %14892 = vrcp.f32 %v9224_v28  ;;  %v19030_v33 = vpop.f32.mrb[94].mxu0 }
 0x581   : > { %14894 = vrcp.f32 %v9227_v7  ;;  %v10870_v41 = vcombine.low %v19021_v39, %v19030_v33  ;;  %v10871_v49 = vcombine.high %v19021_v39, %v19030_v33  ;;  %v14172_v63 = vpop.f32.mrb[95].mxu0  ;;  %v10810_v3 = vrot.slane %v10802_v40, %v20393_v37 }
 0x582   : > { %14896 = vrcp.f32 %v9233_v12  ;;  %v10817_v20 = vrot.slane %v10803_v29, %v20393_v37 }
 0x583   : > { %v9230_v58 = vpop.xlane.xlu1 %9229  ;;  %v10878_v7 = vrot.slane %v10870_v41, %v20393_v37  ;;  %v10885_v46 = vrot.slane %v10871_v49, %v20393_v37 }
 0x584   : > { %14898 = vrcp.f32 %v9230_v58 }
 0x586   : > { %v14891_v59 = vpop.eup %14890  ;;  %v19036_v5 = vpop.f32.mrb[96].mxu0 }
 0x587   : > { %v9355_v45 = vmul.f32 %v14891_v59, %v18825_v55  ;;  %v14183_v35 = vpop.f32.mrb[97].mxu0 }
 0x588   : > { %v19040_v2 = vpop.f32.mrb[98].mxu0 }
 0x589   : > { %v9390_v10 = vpack.c.bf16 %v9355_v45, %v9354_v42  ;;  %v14184_v18 = vpop.f32.mrb[99].mxu0 }
 0x58a   : > { %v14893_v13 = vpop.eup %14892 }
 0x58b   : > { %v14895_v19 = vpop.eup %14894  ;;  %14326 = vmatmul.mubr.msk.bf16.vlgmr.msra.gmra.mrb[144].mxu0 %vm8657_vm2, %v9390_v10  ;;  %v9358_v9 = vmul.f32 %v14893_v13, %v18841_v1 }
 0x58c   : > { %v14897_v27 = vpop.eup %14896  ;;  %14336 = vmatpush3.bf16.msra.mxu0 %v7146_v51  ;;  %14337 = vmatprep.mubr.msk.bf16.mxu0 %vm15070_vm0, %v20439_v31  ;;  %v9359_v55 = vmul.f32 %v14895_v19, %v18632_v48 }
 0x58d   : > { %v9361_v6 = vmul.f32 %v14897_v27, %v18665_v8  ;;  %14347 = vmatprep.subr.bf16.mxu0 %v14636_v26 }
 0x58e   : > { %v14899_v43 = vpop.eup %14898  ;;  %v19047_v36 = vpop.f32.mrb[100].mxu0  ;;  %v9392_v31 = vpack.c.bf16 %v9359_v55, %v9358_v9 }
 0x58f   : > { %v9360_v16 = vmul.f32 %v14899_v43, %v18864_v54  ;;  %v10938_v15 = vcombine.low %v19036_v5, %v19047_v36  ;;  %v10939_v44 = vcombine.high %v19036_v5, %v19047_v36  ;;  %v14195_v56 = vpop.f32.mrb[101].mxu0 }
 0x590   : > { %v19055_v11 = vpop.f32.mrb[102].mxu0 }
 0x591   : > { %v9393_v1 = vpack.c.bf16 %v9361_v6, %v9360_v16  ;;  %v11006_v48 = vcombine.low %v19040_v2, %v19055_v11  ;;  %v14196_v53 = vpop.f32.mrb[103].mxu0  ;;  %v11007_v8 = vcombine.high %v19040_v2, %v19055_v11 }
 0x593   : > { %14338 = vmatmul.mubr.msk.bf16.vlgmr.msra.gmra.mrb[148].mxu0 %vm8657_vm2, %v9392_v31  ;;  %14344 = vmatmul.mubr.msk.bf16.vlgmr.msra.gmra.mrb[148].mxu1 %vm8657_vm2, %v9393_v1  ;;  %v11014_v5 = vrot.slane %v11006_v48, %v20393_v37 }
 0x594   : > { %14348 = vmatpush3.bf16.msra.mxu0 %v14636_v26  ;;  %14387 = vmatpush3.bf16.msra.mxu1 %v14636_v26 }
 0x596   : > { %v9563_v54 = vpop.f32.mrb[92].mxu1 }
 0x597   : > { %v10818_v21 = vcombine.low %v19023_v47, %v9563_v54  ;;  %v10819_v0 = vcombine.high %v19023_v47, %v9563_v54  ;;  %v14177_v23 = vpop.f32.mrb[93].mxu1 }
 0x598   : > { %v9566_v22 = vpop.f32.mrb[94].mxu1 }
 0x599   : > { %v10826_v4 = vrot.slane %v10818_v21, %v20393_v37  ;;  %v10833_v57 = vrot.slane %v10819_v0, %v20393_v37  ;;  %v10886_v61 = vcombine.low %v19025_v34, %v9566_v22  ;;  %v10887_v17 = vcombine.high %v19025_v34, %v9566_v22  ;;  %v14178_v25 = vpop.f32.mrb[95].mxu1  ;;  %v14637_v21 = vld [vmem:[#allocation7 + $0x8] sm:$0xff]  }
 0x59a   : > { %v19071_v32 = vpop.f32.mrb[104].mxu0  ;;  %14349 = vmatprep.subr.bf16.mxu0 %v14637_v21  ;;  %14380 = vmatprep.subr.bf16.mxu1 %v14637_v21 }
 0x59b   : > { %v10834_v24 = vcombine.low %v10810_v3, %v10826_v4  ;;  %v10835_v39 = vcombine.high %v10810_v3, %v10826_v4  ;;  %v10850_v30 = vcombine.low %v10817_v20, %v10833_v57  ;;  %v10851_v47 = vcombine.high %v10817_v20, %v10833_v57  ;;  %v14207_v60 = vpop.f32.mrb[105].mxu0  ;;  %14350 = vmatpush3.bf16.msra.mxu0 %v14637_v21 }
 0x59c   : > { %v10894_v52 = vrot.slane %v10886_v61, %v20393_v37  ;;  %v10901_v34 = vrot.slane %v10887_v17, %v20393_v37  ;;  %v19077_v12 = vpop.f32.mrb[106].mxu0  ;;  %14388 = vmatpush3.bf16.msra.mxu1 %v14637_v21 }
 0x59d   : > { %v10842_v62 = vrot.slane %v10834_v24, %v20401_v50  ;;  %v10849_v28 = vrot.slane %v10835_v39, %v20401_v50  ;;  %v10858_v40 = vrot.slane %v10850_v30, %v20401_v50  ;;  %v10865_v29 = vrot.slane %v10851_v47, %v20401_v50  ;;  %v14208_v14 = vpop.f32.mrb[107].mxu0 }
 0x59e   : > { %v10902_v33 = vcombine.low %v10878_v7, %v10894_v52  ;;  %v10903_v63 = vcombine.high %v10878_v7, %v10894_v52  ;;  %v10918_v41 = vcombine.low %v10885_v46, %v10901_v34  ;;  %v10919_v58 = vcombine.high %v10885_v46, %v10901_v34 }
 0x59f   : > { %v11890_v49 = vcombine.low %v10842_v62, %v10849_v28  ;;  %v13723_v38 = vcombine.high %v10842_v62, %v10849_v28  ;;  %v11906_v59 = vcombine.low %v10858_v40, %v10865_v29  ;;  %v13724_v42 = vcombine.high %v10858_v40, %v10865_v29 }
 0x5a0   : > { %v10910_v45 = vrot.slane %v10902_v33, %v20401_v50  ;;  %v10917_v35 = vrot.slane %v10903_v63, %v20401_v50  ;;  %v10926_v10 = vrot.slane %v10918_v41, %v20401_v50  ;;  %v10933_v18 = vrot.slane %v10919_v58, %v20401_v50 }
 0x5a1   : > { %v11897_v13 = vrot.slane %v11890_v49, %v20393_v37  ;;  %v11905_v51 = vrot.slane %v13723_v38, %v20393_v37  ;;  %v11913_v19 = vrot.slane %v11906_v59, %v20393_v37  ;;  %v11921_v27 = vrot.slane %v13724_v42, %v20393_v37 }
 0x5a2   : > { %v11958_v9 = vcombine.low %v10910_v45, %v10917_v35  ;;  %v13725_v43 = vcombine.high %v10910_v45, %v10917_v35  ;;  %v11974_v55 = vcombine.low %v10926_v10, %v10933_v18  ;;  %v13726_v6 = vcombine.high %v10926_v10, %v10933_v18  ;;  %v19091_v16 = vpop.f32.mrb[108].mxu0 }
 0x5a3   : > { %v11923_v56 = vcombine.high %v11897_v13, %v11905_v51  ;;  %v11939_v31 = vcombine.high %v11913_v19, %v11921_v27  ;;  %v11922_v1 = vcombine.low %v11897_v13, %v11905_v51  ;;  %v11938_v53 = vcombine.low %v11913_v19, %v11921_v27  ;;  %v14219_v54 = vpop.f32.mrb[109].mxu0 }
 0x5a4   : > { %v11965_v0 = vrot.slane %v11958_v9, %v20393_v37  ;;  %v11973_v23 = vrot.slane %v13725_v43, %v20393_v37  ;;  %v11981_v26 = vrot.slane %v11974_v55, %v20393_v37  ;;  %v11989_v3 = vrot.slane %v13726_v6, %v20393_v37  ;;  %v9651_v20 = vpop.f32.mrb[96].mxu1  ;;  %v19097_v22 = vpop.f32.mrb[110].mxu0 }
 0x5a5   : > { %v14189_v4 = vpop.f32.mrb[97].mxu1  ;;  %v11937_v57 = vrot.slane %v11923_v56, %v20401_v50  ;;  %v11953_v61 = vrot.slane %v11939_v31, %v20401_v50  ;;  %v19102_v17 = vrot.slane %v11922_v1, %v20401_v50  ;;  %v19105_v25 = vrot.slane %v11938_v53, %v20401_v50  ;;  %v14220_v24 = vpop.f32.mrb[111].mxu0  ;;  %v14638_v53 = vld [vmem:[#allocation7 + $0x10] sm:$0xff]  }
 0x5a6   : > { %v9654_v39 = vpop.f32.mrb[98].mxu1  ;;  %v11991_v30 = vcombine.high %v11965_v0, %v11973_v23  ;;  %v12007_v47 = vcombine.high %v11981_v26, %v11989_v3  ;;  %v11990_v60 = vcombine.low %v11965_v0, %v11973_v23  ;;  %v12006_v7 = vcombine.low %v11981_v26, %v11989_v3  ;;  %v14639_v3 = vld [vmem:[#allocation7 + $0x18] sm:$0xff]   ;;  %14351 = vmatprep.subr.bf16.mxu0 %v14638_v53 }
 0x5a7   : > { %v14190_v46 = vpop.f32.mrb[99].mxu1  ;;  %v11956_v52 = vcombine.low %v11937_v57, %v11953_v61  ;;  %v11955_v34 = vcombine.high %v19102_v17, %v19105_v25  ;;  %v11957_v62 = vcombine.high %v11937_v57, %v11953_v61  ;;  %v11074_v28 = vcombine.low %v19071_v32, %v19091_v16  ;;  %14381 = vmatprep.subr.bf16.mxu1 %v14638_v53 }
 0x5a8   : > { %v12005_v40 = vrot.slane %v11991_v30, %v20401_v50  ;;  %v12021_v29 = vrot.slane %v12007_v47, %v20401_v50  ;;  %v19114_v14 = vrot.slane %v11990_v60, %v20401_v50  ;;  %v19117_v33 = vrot.slane %v12006_v7, %v20401_v50  ;;  %14352 = vmatpush3.bf16.msra.mxu0 %v14638_v53 }
 0x5a9   : > { %v11075_v63 = vcombine.high %v19071_v32, %v19091_v16  ;;  %v11142_v41 = vcombine.low %v19077_v12, %v19097_v22  ;;  %v11143_v58 = vcombine.high %v19077_v12, %v19097_v22  ;;  %v11954_v45 = vcombine.low %v19102_v17, %v19105_v25  ;;  %14353 = vmatprep.subr.bf16.mxu0 %v14639_v3 }
 0x5aa   : > { %v12024_v49 = vcombine.low %v12005_v40, %v12021_v29  ;;  %v12023_v38 = vcombine.high %v19114_v14, %v19117_v33  ;;  %v12025_v59 = vcombine.high %v12005_v40, %v12021_v29  ;;  %v19127_v42 = vpop.f32.mrb[112].mxu0  ;;  %v12022_v10 = vcombine.low %v19114_v14, %v19117_v33  ;;  %14389 = vmatpush3.bf16.msra.mxu1 %v14638_v53 }
 0x5ab   : > { %v14231_v35 = vpop.f32.mrb[113].mxu0  ;;  %v10946_v56 = vrot.slane %v10938_v15, %v20393_v37  ;;  %v10953_v31 = vrot.slane %v10939_v44, %v20393_v37  ;;  %v11021_v4 = vrot.slane %v11007_v8, %v20393_v37  ;;  %14382 = vmatprep.subr.bf16.mxu1 %v14639_v3 }
 0x5ac   : > { %v9739_v18 = vpop.f32.mrb[100].mxu1  ;;  %v14481_v13 = vpack.i.bf16 %v12024_v49, %v11956_v52  ;;  %v14476_v51 = vpack.i.bf16 %v12023_v38, %v11955_v34  ;;  %v14486_v19 = vpack.i.bf16 %v12025_v59, %v11957_v62  ;;  %v19133_v27 = vpop.f32.mrb[114].mxu0  ;;  %14354 = vmatpush3.bf16.msra.mxu0 %v14639_v3 }
 0x5ad   : > { %v10954_v9 = vcombine.low %v9651_v20, %v9739_v18  ;;  %v10955_v43 = vcombine.high %v9651_v20, %v9739_v18  ;;  %v14201_v55 = vpop.f32.mrb[101].mxu1  ;;  %v14232_v6 = vpop.f32.mrb[115].mxu0 }
 0x5ae   : > { %v9742_v1 = vpop.f32.mrb[102].mxu1  ;;  %14482 = vrot.lane.b32.xlu0 %v14481_v13, %s15068_s7  ;;  %14477 = vrot.lane.b32.xlu1 %v14476_v51, %s15066_s21 }
 0x5af   : > { %v10962_v54 = vrot.slane %v10954_v9, %v20393_v37  ;;  %v10969_v21 = vrot.slane %v10955_v43, %v20393_v37  ;;  %v11022_v0 = vcombine.low %v9654_v39, %v9742_v1  ;;  %v11023_v23 = vcombine.high %v9654_v39, %v9742_v1  ;;  %v14202_v26 = vpop.f32.mrb[103].mxu1  ;;  %14390 = vmatpush3.bf16.msra.mxu1 %v14639_v3 }
 0x5b1   : > { %v10970_v36 = vcombine.low %v10946_v56, %v10962_v54  ;;  %v10971_v15 = vcombine.high %v10946_v56, %v10962_v54  ;;  %v10986_v44 = vcombine.low %v10953_v31, %v10969_v21  ;;  %v10987_v20 = vcombine.high %v10953_v31, %v10969_v21 }
 0x5b2   : > { %v11030_v57 = vrot.slane %v11022_v0, %v20393_v37  ;;  %v11037_v61 = vrot.slane %v11023_v23, %v20393_v37  ;;  %14487 = vrot.lane.b32.xlu0 %v14486_v19, %s15067_s23 }
 0x5b3   : > { %v10978_v48 = vrot.slane %v10970_v36, %v20401_v50  ;;  %v10985_v24 = vrot.slane %v10971_v15, %v20401_v50  ;;  %v10994_v39 = vrot.slane %v10986_v44, %v20401_v50  ;;  %v11001_v30 = vrot.slane %v10987_v20, %v20401_v50 }
 0x5b4   : > { %v11038_v47 = vcombine.low %v11014_v5, %v11030_v57  ;;  %v11039_v60 = vcombine.high %v11014_v5, %v11030_v57  ;;  %v11054_v2 = vcombine.low %v11021_v4, %v11037_v61  ;;  %v11055_v11 = vcombine.high %v11021_v4, %v11037_v61  ;;  %v19162_v8 = vpop.f32.mrb[104].mxu1 }
 0x5b5   : > { %v12026_v7 = vcombine.low %v10978_v48, %v10985_v24  ;;  %v13727_v46 = vcombine.high %v10978_v48, %v10985_v24  ;;  %v12042_v52 = vcombine.low %v10994_v39, %v11001_v30  ;;  %v13728_v34 = vcombine.high %v10994_v39, %v11001_v30  ;;  %v14213_v62 = vpop.f32.mrb[105].mxu1 }
 0x5b6   : > { %v11046_v40 = vrot.slane %v11038_v47, %v20401_v50  ;;  %v11053_v29 = vrot.slane %v11039_v60, %v20401_v50  ;;  %v11062_v49 = vrot.slane %v11054_v2, %v20401_v50  ;;  %v11069_v38 = vrot.slane %v11055_v11, %v20401_v50  ;;  %v19168_v59 = vpop.f32.mrb[106].mxu1  ;;  %v19170_v35 = vpop.f32.mrb[116].mxu0 }
 0x5b7   : > { %v12033_v18 = vrot.slane %v12026_v7, %v20393_v37  ;;  %v12041_v13 = vrot.slane %v13727_v46, %v20393_v37  ;;  %v12049_v51 = vrot.slane %v12042_v52, %v20393_v37  ;;  %v12057_v19 = vrot.slane %v13728_v34, %v20393_v37  ;;  %v14214_v9 = vpop.f32.mrb[107].mxu1  ;;  %v14243_v43 = vpop.f32.mrb[117].mxu0 }
 0x5b8   : > { %v12094_v55 = vcombine.low %v11046_v40, %v11053_v29  ;;  %v13729_v6 = vcombine.high %v11046_v40, %v11053_v29  ;;  %v12110_v56 = vcombine.low %v11062_v49, %v11069_v38  ;;  %v13730_v31 = vcombine.high %v11062_v49, %v11069_v38  ;;  %v19176_v1 = vpop.f32.mrb[118].mxu0 }
 0x5b9   : > { %v12059_v53 = vcombine.high %v12033_v18, %v12041_v13  ;;  %v12075_v54 = vcombine.high %v12049_v51, %v12057_v19  ;;  %v12058_v21 = vcombine.low %v12033_v18, %v12041_v13  ;;  %v12074_v0 = vcombine.low %v12049_v51, %v12057_v19  ;;  %v14244_v23 = vpop.f32.mrb[119].mxu0 }
 0x5ba   : > { %v12101_v26 = vrot.slane %v12094_v55, %v20393_v37  ;;  %v12109_v5 = vrot.slane %v13729_v6, %v20393_v37  ;;  %v12117_v36 = vrot.slane %v12110_v56, %v20393_v37  ;;  %v12125_v15 = vrot.slane %v13730_v31, %v20393_v37 }
 0x5bb   : > { %v19183_v3 = vrot.slane %v12059_v53, %v20401_v50  ;;  %v19186_v44 = vrot.slane %v12075_v54, %v20401_v50  ;;  %v19189_v20 = vrot.slane %v12058_v21, %v20401_v50  ;;  %v19192_v4 = vrot.slane %v12074_v0, %v20401_v50  ;;  %v14640_v21 = vld [vmem:[#allocation7 + $0x20] sm:$0xff]  }
 0x5bc   : > { %v12127_v57 = vcombine.high %v12101_v26, %v12109_v5  ;;  %v12143_v61 = vcombine.high %v12117_v36, %v12125_v15  ;;  %v12126_v48 = vcombine.low %v12101_v26, %v12109_v5  ;;  %v12142_v24 = vcombine.low %v12117_v36, %v12125_v15  ;;  %14355 = vmatprep.subr.bf16.mxu0 %v14640_v21 }
 0x5bd   : > { %v12092_v39 = vcombine.low %v19183_v3, %v19186_v44  ;;  %v12091_v30 = vcombine.high %v19189_v20, %v19192_v4  ;;  %v11210_v47 = vcombine.low %v19127_v42, %v19170_v35  ;;  %v11211_v60 = vcombine.high %v19127_v42, %v19170_v35  ;;  %v9915_v2 = vpop.f32.mrb[108].mxu1  ;;  %14356 = vmatpush3.bf16.msra.mxu0 %v14640_v21 }
 0x5be   : > { %v19203_v11 = vrot.slane %v12127_v57, %v20401_v50  ;;  %v19206_v7 = vrot.slane %v12143_v61, %v20401_v50  ;;  %v19209_v46 = vrot.slane %v12126_v48, %v20401_v50  ;;  %v19212_v52 = vrot.slane %v12142_v24, %v20401_v50  ;;  %v19214_v34 = vpop.f32.mrb[120].mxu0  ;;  %v14225_v38 = vpop.f32.mrb[109].mxu1  ;;  %14383 = vmatprep.subr.bf16.mxu1 %v14640_v21 }
 0x5bf   : > { %v11082_v62 = vrot.slane %v11074_v28, %v20393_v37  ;;  %v11089_v40 = vrot.slane %v11075_v63, %v20393_v37  ;;  %v11090_v29 = vcombine.low %v19162_v8, %v9915_v2  ;;  %v11091_v49 = vcombine.high %v19162_v8, %v9915_v2  ;;  %v14255_v18 = vpop.f32.mrb[121].mxu0  ;;  %v9918_v13 = vpop.f32.mrb[110].mxu1  ;;  %14391 = vmatpush3.bf16.msra.mxu1 %v14640_v21 }
 0x5c0   : > { %v12160_v51 = vcombine.low %v19203_v11, %v19206_v7  ;;  %v12159_v19 = vcombine.high %v19209_v46, %v19212_v52  ;;  %v11278_v28 = vcombine.low %v19133_v27, %v19176_v1  ;;  %v11279_v32 = vcombine.high %v19133_v27, %v19176_v1  ;;  %v19234_v16 = vpop.f32.mrb[122].mxu0  ;;  %v14226_v55 = vpop.f32.mrb[111].mxu1 }
 0x5c1   : > { %v11098_v63 = vrot.slane %v11090_v29, %v20393_v37  ;;  %v11105_v8 = vrot.slane %v11091_v49, %v20393_v37  ;;  %v11158_v9 = vcombine.low %v19168_v59, %v9918_v13  ;;  %v11159_v43 = vcombine.high %v19168_v59, %v9918_v13  ;;  %v14256_v6 = vpop.f32.mrb[123].mxu0  ;;  %v14641_v59 = vld [vmem:[#allocation7 + $0x28] sm:$0xff]   ;;  %v19260_v29 = vld [vmem:[#allocation7 + $0x30] sm:$0xff]  }
 0x5c2   : > { %v11150_v56 = vrot.slane %v11142_v41, %v20393_v37  ;;  %v11157_v31 = vrot.slane %v11143_v58, %v20393_v37  ;;  %v14496_v53 = vpack.i.bf16 %v12160_v51, %v12092_v39  ;;  %v14491_v54 = vpack.i.bf16 %v12159_v19, %v12091_v30  ;;  %14357 = vmatprep.subr.bf16.mxu0 %v14641_v59 }
 0x5c3   : > { %v11106_v0 = vcombine.low %v11082_v62, %v11098_v63  ;;  %v11107_v23 = vcombine.high %v11082_v62, %v11098_v63  ;;  %v11122_v26 = vcombine.low %v11089_v40, %v11105_v8  ;;  %v11123_v5 = vcombine.high %v11089_v40, %v11105_v8  ;;  %14358 = vmatpush3.bf16.msra.mxu0 %v14641_v59 }
 0x5c4   : > { %v11166_v36 = vrot.slane %v11158_v9, %v20393_v37  ;;  %v11173_v15 = vrot.slane %v11159_v43, %v20393_v37  ;;  %14497 = vrot.lane.b32.xlu0 %v14496_v53, %s15068_s7  ;;  %14492 = vrot.lane.b32.xlu1 %v14491_v54, %s15066_s21  ;;  %v12093_v12 = vcombine.high %v19183_v3, %v19186_v44 }
 0x5c5   : > { %v11114_v22 = vrot.slane %v11106_v0, %v20401_v50  ;;  %v11121_v41 = vrot.slane %v11107_v23, %v20401_v50  ;;  %v11130_v58 = vrot.slane %v11122_v26, %v20401_v50  ;;  %v11137_v57 = vrot.slane %v11123_v5, %v20401_v50  ;;  %14359 = vmatprep.subr.bf16.mxu0 %v19260_v29 }
 0x5c6   : > { %v11174_v61 = vcombine.low %v11150_v56, %v11166_v36  ;;  %v11175_v48 = vcombine.high %v11150_v56, %v11166_v36  ;;  %v11190_v24 = vcombine.low %v11157_v31, %v11173_v15  ;;  %v11191_v39 = vcombine.high %v11157_v31, %v11173_v15  ;;  %v19258_v30 = vpop.f32.mrb[124].mxu0  ;;  %14384 = vmatprep.subr.bf16.mxu1 %v14641_v59 }
 0x5c7   : > { %v12162_v2 = vcombine.low %v11114_v22, %v11121_v41  ;;  %v13731_v62 = vcombine.high %v11114_v22, %v11121_v41  ;;  %v12178_v40 = vcombine.low %v11130_v58, %v11137_v57  ;;  %v13732_v3 = vcombine.high %v11130_v58, %v11137_v57  ;;  %v14267_v44 = vpop.f32.mrb[125].mxu0  ;;  %v14643_v57 = vld [vmem:[#allocation7 + $0x38] sm:$0xff]   ;;  %14392 = vmatpush3.bf16.msra.mxu1 %v14641_v59 }
 0x5c8   : > { %v11182_v49 = vrot.slane %v11174_v61, %v20401_v50  ;;  %v11189_v38 = vrot.slane %v11175_v48, %v20401_v50  ;;  %v11198_v18 = vrot.slane %v11190_v24, %v20401_v50  ;;  %v11205_v13 = vrot.slane %v11191_v39, %v20401_v50  ;;  %v19266_v51 = vpop.f32.mrb[126].mxu0  ;;  %v19272_v43 = vpop.f32.mrb[112].mxu1  ;;  %14360 = vmatpush3.bf16.msra.mxu0 %v19260_v29 }
 0x5c9   : > { %v12169_v19 = vrot.slane %v12162_v2, %v20393_v37  ;;  %v12177_v63 = vrot.slane %v13731_v62, %v20393_v37  ;;  %v12185_v8 = vrot.slane %v12178_v40, %v20393_v37  ;;  %v12193_v9 = vrot.slane %v13732_v3, %v20393_v37  ;;  %v14268_v55 = vpop.f32.mrb[127].mxu0  ;;  %v14237_v54 = vpop.f32.mrb[113].mxu1  ;;  %14361 = vmatprep.subr.bf16.mxu0 %v14643_v57 }
 0x5ca   : > { %v12230_v6 = vcombine.low %v11182_v49, %v11189_v38  ;;  %v13733_v56 = vcombine.high %v11182_v49, %v11189_v38  ;;  %v12246_v31 = vcombine.low %v11198_v18, %v11205_v13  ;;  %v13734_v53 = vcombine.high %v11198_v18, %v11205_v13  ;;  %v19276_v23 = vpop.f32.mrb[114].mxu1  ;;  %14385 = vmatprep.subr.bf16.mxu1 %v19260_v29 }
 0x5cb   : > { %v12161_v0 = vcombine.high %v19203_v11, %v19206_v7  ;;  %v12194_v26 = vcombine.low %v12169_v19, %v12177_v63  ;;  %v12210_v5 = vcombine.low %v12185_v8, %v12193_v9  ;;  %v11346_v36 = vcombine.low %v19214_v34, %v19258_v30  ;;  %v14238_v58 = vpop.f32.mrb[115].mxu1  ;;  %14393 = vmatpush3.bf16.msra.mxu1 %v19260_v29 }
 0x5cc   : > { %v12237_v21 = vrot.slane %v12230_v6, %v20393_v37  ;;  %v12245_v15 = vrot.slane %v13733_v56, %v20393_v37  ;;  %v12253_v22 = vrot.slane %v12246_v31, %v20393_v37  ;;  %v12261_v41 = vrot.slane %v13734_v53, %v20393_v37  ;;  %14362 = vmatpush3.bf16.msra.mxu0 %v14643_v57 }
 0x5cd   : > { %v14501_v11 = vpack.i.bf16 %v12161_v0, %v12093_v12  ;;  %v19286_v7 = vrot.slane %v12194_v26, %v20401_v50  ;;  %v19289_v61 = vrot.slane %v12210_v5, %v20401_v50  ;;  %v11347_v48 = vcombine.high %v19214_v34, %v19258_v30  ;;  %14386 = vmatprep.subr.bf16.mxu1 %v14643_v57 }
 0x5ce   : > { %v12262_v24 = vcombine.low %v12237_v21, %v12245_v15  ;;  %v12278_v39 = vcombine.low %v12253_v22, %v12261_v41  ;;  %v11414_v2 = vcombine.low %v19234_v16, %v19266_v51  ;;  %v11218_v12 = vrot.slane %v11210_v47, %v20393_v37 }
 0x5cf   : > { %14502 = vrot.lane.b32.xlu0 %v14501_v11, %s15067_s23  ;;  %v12227_v62 = vcombine.high %v19286_v7, %v19289_v61  ;;  %v11415_v59 = vcombine.high %v19234_v16, %v19266_v51  ;;  %v12195_v40 = vcombine.high %v12169_v19, %v12177_v63  ;;  %v11225_v3 = vrot.slane %v11211_v60, %v20393_v37 }
 0x5d0   : > { %v19310_v44 = vrot.slane %v12262_v24, %v20401_v50  ;;  %v19313_v49 = vrot.slane %v12278_v39, %v20401_v50  ;;  %v12211_v47 = vcombine.high %v12185_v8, %v12193_v9  ;;  %v19315_v38 = vpop.f32.mrb[128].mxu0  ;;  %v11286_v18 = vrot.slane %v11278_v28, %v20393_v37  ;;  %14394 = vmatpush3.bf16.msra.mxu1 %v14643_v57 }
 0x5d1   : > { %v12209_v13 = vrot.slane %v12195_v40, %v20401_v50  ;;  %v12263_v19 = vcombine.high %v12237_v21, %v12245_v15  ;;  %v12279_v42 = vcombine.high %v12253_v22, %v12261_v41  ;;  %v14279_v35 = vpop.f32.mrb[129].mxu0  ;;  %v11293_v29 = vrot.slane %v11279_v32, %v20393_v37 }
 0x5d2   : > { %v10091_v60 = vpop.f32.mrb[116].mxu1  ;;  %v12295_v63 = vcombine.high %v19310_v44, %v19313_v49  ;;  %v12225_v8 = vrot.slane %v12211_v47, %v20401_v50  ;;  %v19326_v9 = vpop.f32.mrb[130].mxu0 }
 0x5d3   : > { %v11226_v6 = vcombine.low %v19272_v43, %v10091_v60  ;;  %v11227_v56 = vcombine.high %v19272_v43, %v10091_v60  ;;  %v14249_v31 = vpop.f32.mrb[117].mxu1  ;;  %v12277_v53 = vrot.slane %v12263_v19, %v20401_v50  ;;  %v12293_v54 = vrot.slane %v12279_v42, %v20401_v50  ;;  %v14280_v0 = vpop.f32.mrb[131].mxu0 }
 0x5d4   : > { %v10094_v26 = vpop.f32.mrb[118].mxu1  ;;  %v14506_v5 = vpack.i.bf16 %v12295_v63, %v12227_v62  ;;  %v12228_v21 = vcombine.low %v12209_v13, %v12225_v8  ;;  %v12229_v15 = vcombine.high %v12209_v13, %v12225_v8 }
 0x5d5   : > { %v11234_v41 = vrot.slane %v11226_v6, %v20393_v37  ;;  %v11241_v43 = vrot.slane %v11227_v56, %v20393_v37  ;;  %v11294_v58 = vcombine.low %v19276_v23, %v10094_v26  ;;  %v11295_v11 = vcombine.high %v19276_v23, %v10094_v26  ;;  %v14250_v24 = vpop.f32.mrb[119].mxu1 }
 0x5d6   : > { %14507 = vrot.lane.b32.xlu0 %v14506_v5, %s15066_s21  ;;  %v12296_v39 = vcombine.low %v12277_v53, %v12293_v54  ;;  %v12297_v62 = vcombine.high %v12277_v53, %v12293_v54 }
 0x5d7   : > { %v11242_v47 = vcombine.low %v11218_v12, %v11234_v41  ;;  %v11243_v13 = vcombine.high %v11218_v12, %v11234_v41  ;;  %v11258_v19 = vcombine.low %v11225_v3, %v11241_v43  ;;  %v11259_v42 = vcombine.high %v11225_v3, %v11241_v43 }
 0x5d8   : > { %v11302_v23 = vrot.slane %v11294_v58, %v20393_v37  ;;  %v11309_v35 = vrot.slane %v11295_v11, %v20393_v37  ;;  %v14511_v60 = vpack.i.bf16 %v12296_v39, %v12228_v21  ;;  %v19352_v63 = vpack.i.bf16 %v12297_v62, %v12229_v15 }
 0x5d9   : > { %v11250_v27 = vrot.slane %v11242_v47, %v20401_v50  ;;  %v11257_v1 = vrot.slane %v11243_v13, %v20401_v50  ;;  %v11266_v32 = vrot.slane %v11258_v19, %v20401_v50  ;;  %v11273_v8 = vrot.slane %v11259_v42, %v20401_v50 }
 0x5da   : > { %v11310_v6 = vcombine.low %v11286_v18, %v11302_v23  ;;  %v11311_v12 = vcombine.high %v11286_v18, %v11302_v23  ;;  %v11326_v56 = vcombine.low %v11293_v29, %v11309_v35  ;;  %v11327_v3 = vcombine.high %v11293_v29, %v11309_v35  ;;  %14512 = vrot.lane.b32.xlu0 %v14511_v60, %s15068_s7  ;;  %v10179_v57 = vpop.f32.mrb[120].mxu1 }
 0x5db   : > { %v12298_v31 = vcombine.low %v11250_v27, %v11257_v1  ;;  %v13735_v53 = vcombine.high %v11250_v27, %v11257_v1  ;;  %v12314_v54 = vcombine.low %v11266_v32, %v11273_v8  ;;  %v13736_v0 = vcombine.high %v11266_v32, %v11273_v8  ;;  %v14261_v26 = vpop.f32.mrb[121].mxu1 }
 0x5dc   : > { %v11318_v5 = vrot.slane %v11310_v6, %v20401_v50  ;;  %v11325_v21 = vrot.slane %v11311_v12, %v20401_v50  ;;  %v11334_v15 = vrot.slane %v11326_v56, %v20401_v50  ;;  %v11341_v41 = vrot.slane %v11327_v3, %v20401_v50  ;;  %v10182_v43 = vpop.f32.mrb[122].mxu1  ;;  %v19363_v18 = vpop.f32.mrb[132].mxu0 }
 0x5dd   : > { %v12305_v58 = vrot.slane %v12298_v31, %v20393_v37  ;;  %v12313_v11 = vrot.slane %v13735_v53, %v20393_v37  ;;  %v12321_v24 = vrot.slane %v12314_v54, %v20393_v37  ;;  %v12329_v29 = vrot.slane %v13736_v0, %v20393_v37  ;;  %v14262_v39 = vpop.f32.mrb[123].mxu1  ;;  %v14291_v62 = vpop.f32.mrb[133].mxu0 }
 0x5de   : > { %v12366_v47 = vcombine.low %v11318_v5, %v11325_v21  ;;  %v13737_v13 = vcombine.high %v11318_v5, %v11325_v21  ;;  %v12382_v19 = vcombine.low %v11334_v15, %v11341_v41  ;;  %v13738_v42 = vcombine.high %v11334_v15, %v11341_v41  ;;  %v19369_v23 = vpop.f32.mrb[134].mxu0 }
 0x5df   : > { %v11482_v35 = vcombine.low %v19315_v38, %v19363_v18  ;;  %v11483_v60 = vcombine.high %v19315_v38, %v19363_v18  ;;  %v11550_v27 = vcombine.low %v19326_v9, %v19369_v23  ;;  %v11551_v1 = vcombine.high %v19326_v9, %v19369_v23  ;;  %v14292_v32 = vpop.f32.mrb[135].mxu0 }
 0x5e0   : > { %v19380_v8 = vrot.slane %v12366_v47, %v20393_v37  ;;  %v19383_v6 = vrot.slane %v13737_v13, %v20393_v37  ;;  %v19386_v12 = vrot.slane %v12382_v19, %v20393_v37  ;;  %v19389_v56 = vrot.slane %v13738_v42, %v20393_v37 }
 0x5e1   : > { %v11354_v3 = vrot.slane %v11346_v36, %v20393_v37  ;;  %v11361_v31 = vrot.slane %v11347_v48, %v20393_v37  ;;  %v11422_v53 = vrot.slane %v11414_v2, %v20393_v37  ;;  %v11429_v54 = vrot.slane %v11415_v59, %v20393_v37 }
 0x5e2   : > { %v12330_v26 = vcombine.low %v12305_v58, %v12313_v11  ;;  %v12346_v5 = vcombine.low %v12321_v24, %v12329_v29  ;;  %v12398_v36 = vcombine.low %v19380_v8, %v19383_v6  ;;  %v12414_v34 = vcombine.low %v19386_v12, %v19389_v56 }
 0x5e3   : > { %v12331_v15 = vcombine.high %v12305_v58, %v12313_v11  ;;  %v12347_v41 = vcombine.high %v12321_v24, %v12329_v29 }
 0x5e4   : > { %v10267_v0 = vpop.f32.mrb[124].mxu1  ;;  %v19412_v39 = vrot.slane %v12330_v26, %v20401_v50  ;;  %v19415_v16 = vrot.slane %v12346_v5, %v20401_v50  ;;  %v19418_v51 = vrot.slane %v12398_v36, %v20401_v50  ;;  %v19421_v59 = vrot.slane %v12414_v34, %v20401_v50 }
 0x5e5   : > { %v11362_v30 = vcombine.low %v10179_v57, %v10267_v0  ;;  %v11363_v48 = vcombine.high %v10179_v57, %v10267_v0  ;;  %v14273_v21 = vpop.f32.mrb[125].mxu1  ;;  %v19434_v32 = vrot.slane %v12331_v15, %v20401_v50  ;;  %v19437_v0 = vrot.slane %v12347_v41, %v20401_v50 }
 0x5e6   : > { %v10270_v2 = vpop.f32.mrb[126].mxu1  ;;  %v19423_v62 = vpop.f32.mrb[136].mxu0  ;;  %v12363_v13 = vcombine.high %v19412_v39, %v19415_v16  ;;  %v12431_v19 = vcombine.high %v19418_v51, %v19421_v59 }
 0x5e7   : > { %v11370_v57 = vrot.slane %v11362_v30, %v20393_v37  ;;  %v11377_v58 = vrot.slane %v11363_v48, %v20393_v37  ;;  %v11430_v11 = vcombine.low %v10182_v43, %v10270_v2  ;;  %v11431_v24 = vcombine.high %v10182_v43, %v10270_v2  ;;  %v14274_v29 = vpop.f32.mrb[127].mxu1  ;;  %v14303_v47 = vpop.f32.mrb[137].mxu0 }
 0x5e8   : > { %v19431_v42 = vpop.f32.mrb[138].mxu0  ;;  %v14516_v21 = vpack.i.bf16 %v12431_v19, %v12363_v13  ;;  %v12364_v2 = vcombine.low %v19434_v32, %v19437_v0 }
 0x5e9   : > { %v11378_v26 = vcombine.low %v11354_v3, %v11370_v57  ;;  %v11379_v5 = vcombine.high %v11354_v3, %v11370_v57  ;;  %v11394_v36 = vcombine.low %v11361_v31, %v11377_v58  ;;  %v11395_v43 = vcombine.high %v11361_v31, %v11377_v58  ;;  %v14304_v34 = vpop.f32.mrb[139].mxu0 }
 0x5ea   : > { %v11438_v30 = vrot.slane %v11430_v11, %v20393_v37  ;;  %v11445_v48 = vrot.slane %v11431_v24, %v20393_v37  ;;  %14517 = vrot.lane.b32.xlu0 %v14516_v21, %s15066_s21 }
 0x5eb   : > { %v11386_v29 = vrot.slane %v11378_v26, %v20401_v50  ;;  %v11393_v15 = vrot.slane %v11379_v5, %v20401_v50  ;;  %v11402_v41 = vrot.slane %v11394_v36, %v20401_v50  ;;  %v11409_v47 = vrot.slane %v11395_v43, %v20401_v50 }
 0x5ec   : > { %v11446_v3 = vcombine.low %v11422_v53, %v11438_v30  ;;  %v11447_v57 = vcombine.high %v11422_v53, %v11438_v30  ;;  %v11462_v31 = vcombine.low %v11429_v54, %v11445_v48  ;;  %v11463_v58 = vcombine.high %v11429_v54, %v11445_v48 }
 0x5ed   : > { %v12434_v11 = vcombine.low %v11386_v29, %v11393_v15  ;;  %v13739_v24 = vcombine.high %v11386_v29, %v11393_v15  ;;  %v12450_v13 = vcombine.low %v11402_v41, %v11409_v47  ;;  %v13740_v19 = vcombine.high %v11402_v41, %v11409_v47 }
 0x5ee   : > { %v11454_v34 = vrot.slane %v11446_v3, %v20401_v50  ;;  %v11461_v26 = vrot.slane %v11447_v57, %v20401_v50  ;;  %v11470_v5 = vrot.slane %v11462_v31, %v20401_v50  ;;  %v11477_v36 = vrot.slane %v11463_v58, %v20401_v50  ;;  %v19452_v40 = vpop.f32.mrb[140].mxu0 }
 0x5ef   : > { %v12441_v53 = vrot.slane %v12434_v11, %v20393_v37  ;;  %v12449_v54 = vrot.slane %v13739_v24, %v20393_v37  ;;  %v12457_v43 = vrot.slane %v12450_v13, %v20393_v37  ;;  %v12465_v30 = vrot.slane %v13740_v19, %v20393_v37  ;;  %v14315_v48 = vpop.f32.mrb[141].mxu0  ;;  %v10355_v3 = vpop.f32.mrb[128].mxu1 }
 0x5f0   : > { %v12502_v21 = vcombine.low %v11454_v34, %v11461_v26  ;;  %v13741_v29 = vcombine.high %v11454_v34, %v11461_v26  ;;  %v12518_v15 = vcombine.low %v11470_v5, %v11477_v36  ;;  %v13742_v41 = vcombine.high %v11470_v5, %v11477_v36  ;;  %v19458_v47 = vpop.f32.mrb[142].mxu0  ;;  %v14285_v5 = vpop.f32.mrb[129].mxu1 }
 0x5f1   : > { %v11618_v57 = vcombine.low %v19423_v62, %v19452_v40  ;;  %v11619_v31 = vcombine.high %v19423_v62, %v19452_v40  ;;  %v14316_v24 = vpop.f32.mrb[143].mxu0  ;;  %v11490_v36 = vrot.slane %v11482_v35, %v20393_v37  ;;  %v19480_v48 = vrot.slane %v11483_v60, %v20393_v37 }
 0x5f2   : > { %v12509_v13 = vrot.slane %v12502_v21, %v20393_v37  ;;  %v12517_v19 = vrot.slane %v13741_v29, %v20393_v37  ;;  %v12525_v34 = vrot.slane %v12518_v15, %v20393_v37  ;;  %v12533_v26 = vrot.slane %v13742_v41, %v20393_v37  ;;  %v10358_v15 = vpop.f32.mrb[130].mxu1 }
 0x5f3   : > { %v19486_v21 = vrot.slane %v11550_v27, %v20393_v37  ;;  %v19492_v29 = vrot.slane %v11551_v1, %v20393_v37  ;;  %v14286_v35 = vpop.f32.mrb[131].mxu1  ;;  %v12467_v41 = vcombine.high %v12441_v53, %v12449_v54  ;;  %v12483_v24 = vcombine.high %v12457_v43, %v12465_v30 }
 0x5f4   : > { %v12535_v5 = vcombine.high %v12509_v13, %v12517_v19  ;;  %v12551_v38 = vcombine.high %v12525_v34, %v12533_v26  ;;  %v12466_v18 = vcombine.low %v12441_v53, %v12449_v54  ;;  %v12482_v60 = vcombine.low %v12457_v43, %v12465_v30 }
 0x5f5   : > { %v12534_v22 = vcombine.low %v12509_v13, %v12517_v19  ;;  %v12550_v28 = vcombine.low %v12525_v34, %v12533_v26  ;;  %v12481_v55 = vrot.slane %v12467_v41, %v20401_v50  ;;  %v12497_v27 = vrot.slane %v12483_v24, %v20401_v50 }
 0x5f6   : > { %v12549_v11 = vrot.slane %v12535_v5, %v20401_v50  ;;  %v12565_v9 = vrot.slane %v12551_v38, %v20401_v50  ;;  %v19499_v23 = vrot.slane %v12466_v18, %v20401_v50  ;;  %v19502_v1 = vrot.slane %v12482_v60, %v20401_v50 }
 0x5f7   : > { %v19505_v35 = vrot.slane %v12534_v22, %v20401_v50  ;;  %v19508_v53 = vrot.slane %v12550_v28, %v20401_v50  ;;  %v12500_v54 = vcombine.low %v12481_v55, %v12497_v27  ;;  %v12501_v30 = vcombine.high %v12481_v55, %v12497_v27  ;;  %v10443_v19 = vpop.f32.mrb[132].mxu1 }
 0x5f8   : > { %v12568_v43 = vcombine.low %v12549_v11, %v12565_v9  ;;  %v12569_v13 = vcombine.high %v12549_v11, %v12565_v9  ;;  %v12499_v34 = vcombine.high %v19499_v23, %v19502_v1  ;;  %v12399_v41 = vcombine.high %v19380_v8, %v19383_v6  ;;  %v14297_v5 = vpop.f32.mrb[133].mxu1 }
 0x5f9   : > { %v12567_v26 = vcombine.high %v19505_v35, %v19508_v53  ;;  %v12415_v22 = vcombine.high %v19386_v12, %v19389_v56  ;;  %v11498_v24 = vcombine.low %v10355_v3, %v10443_v19  ;;  %v11499_v28 = vcombine.high %v10355_v3, %v10443_v19  ;;  %v10446_v55 = vpop.f32.mrb[134].mxu1 }
 0x5fa   : > { %v14536_v38 = vpack.i.bf16 %v12568_v43, %v12500_v54  ;;  %v14541_v18 = vpack.i.bf16 %v12569_v13, %v12501_v30  ;;  %v12413_v60 = vrot.slane %v12399_v41, %v20401_v50  ;;  %v12365_v9 = vcombine.high %v19434_v32, %v19437_v0  ;;  %v14298_v56 = vpop.f32.mrb[135].mxu1 }
 0x5fb   : > { %v14521_v11 = vpack.i.bf16 %v12567_v26, %v12499_v34  ;;  %v12429_v27 = vrot.slane %v12415_v22, %v20401_v50  ;;  %v11506_v58 = vrot.slane %v11498_v24, %v20393_v37  ;;  %v11513_v8 = vrot.slane %v11499_v28, %v20393_v37 }
 0x5fc   : > { %v11566_v6 = vcombine.low %v10358_v15, %v10446_v55  ;;  %v11567_v12 = vcombine.high %v10358_v15, %v10446_v55  ;;  %14537 = vrot.lane.b32.xlu1 %v14536_v38, %s15068_s7  ;;  %v12362_v43 = vcombine.low %v19412_v39, %v19415_v16  ;;  %v12430_v30 = vcombine.low %v19418_v51, %v19421_v59 }
 0x5fd   : > { %14522 = vrot.lane.b32.xlu0 %v14521_v11, %s15066_s21  ;;  %v12432_v3 = vcombine.low %v12413_v60, %v12429_v27  ;;  %v12433_v54 = vcombine.high %v12413_v60, %v12429_v27  ;;  %v11514_v13 = vcombine.low %v11490_v36, %v11506_v58  ;;  %v11515_v19 = vcombine.high %v11490_v36, %v11506_v58 }
 0x5fe   : > { %v11530_v34 = vcombine.low %v19480_v48, %v11513_v8  ;;  %v11531_v26 = vcombine.high %v19480_v48, %v11513_v8  ;;  %v11574_v15 = vrot.slane %v11566_v6, %v20393_v37  ;;  %v11581_v41 = vrot.slane %v11567_v12, %v20393_v37 }
 0x5ff   : > { %v14526_v22 = vpack.i.bf16 %v12432_v3, %v12364_v2  ;;  %v14586_v24 = vpack.i.bf16 %v12433_v54, %v12365_v9  ;;  %v11522_v28 = vrot.slane %v11514_v13, %v20401_v50  ;;  %v11529_v5 = vrot.slane %v11515_v19, %v20401_v50 }
 0x600   : > { %v11538_v38 = vrot.slane %v11530_v34, %v20401_v50  ;;  %v11545_v58 = vrot.slane %v11531_v26, %v20401_v50  ;;  %14542 = vrot.lane.b32.xlu1 %v14541_v18, %s15067_s23  ;;  %v11582_v36 = vcombine.low %v19486_v21, %v11574_v15  ;;  %v11583_v48 = vcombine.high %v19486_v21, %v11574_v15 }
 0x601   : > { %v11598_v55 = vcombine.low %v19492_v29, %v11581_v41  ;;  %v11599_v32 = vcombine.high %v19492_v29, %v11581_v41  ;;  %14527 = vrot.lane.b32.xlu0 %v14526_v22, %s15068_s7  ;;  %v12570_v0 = vcombine.low %v11522_v28, %v11529_v5  ;;  %v13743_v2 = vcombine.high %v11522_v28, %v11529_v5 }
 0x602   : > { %v12586_v11 = vcombine.low %v11538_v38, %v11545_v58  ;;  %v13744_v60 = vcombine.high %v11538_v38, %v11545_v58  ;;  %v11590_v27 = vrot.slane %v11582_v36, %v20401_v50  ;;  %v11597_v9 = vrot.slane %v11583_v48, %v20401_v50 }
 0x603   : > { %v11606_v18 = vrot.slane %v11598_v55, %v20401_v50  ;;  %v11613_v8 = vrot.slane %v11599_v32, %v20401_v50  ;;  %v12577_v21 = vrot.slane %v12570_v0, %v20393_v37  ;;  %v12585_v6 = vrot.slane %v13743_v2, %v20393_v37 }
 0x604   : > { %v12593_v29 = vrot.slane %v12586_v11, %v20393_v37  ;;  %v12601_v12 = vrot.slane %v13744_v60, %v20393_v37  ;;  %v12638_v56 = vcombine.low %v11590_v27, %v11597_v9  ;;  %v13745_v3 = vcombine.high %v11590_v27, %v11597_v9 }
 0x605   : > { %v12654_v54 = vcombine.low %v11606_v18, %v11613_v8  ;;  %v13746_v13 = vcombine.high %v11606_v18, %v11613_v8  ;;  %14532 = vrot.lane.b32.xlu0 %v19352_v63, %s15067_s23  ;;  %v12602_v19 = vcombine.low %v12577_v21, %v12585_v6  ;;  %v12603_v26 = vcombine.high %v12577_v21, %v12585_v6 }
 0x606   : > { %v12618_v34 = vcombine.low %v12593_v29, %v12601_v12  ;;  %v12619_v15 = vcombine.high %v12593_v29, %v12601_v12  ;;  %v12645_v41 = vrot.slane %v12638_v56, %v20393_v37  ;;  %v12653_v22 = vrot.slane %v13745_v3, %v20393_v37 }
 0x607   : > { %v12661_v28 = vrot.slane %v12654_v54, %v20393_v37  ;;  %v12669_v5 = vrot.slane %v13746_v13, %v20393_v37  ;;  %v19562_v38 = vrot.slane %v12602_v19, %v20401_v50  ;;  %v12617_v63 = vrot.slane %v12603_v26, %v20401_v50 }
 0x608   : > { %v19565_v58 = vrot.slane %v12618_v34, %v20401_v50  ;;  %v12633_v36 = vrot.slane %v12619_v15, %v20401_v50  ;;  %v12670_v48 = vcombine.low %v12645_v41, %v12653_v22  ;;  %v12671_v32 = vcombine.high %v12645_v41, %v12653_v22 }
 0x609   : > { %14587 = vrot.lane.b32.xlu0 %v14586_v24, %s15067_s23  ;;  %v12686_v55 = vcombine.low %v12661_v28, %v12669_v5  ;;  %v12687_v0 = vcombine.high %v12661_v28, %v12669_v5  ;;  %v12498_v27 = vcombine.low %v19499_v23, %v19502_v1  ;;  %v12566_v21 = vcombine.low %v19505_v35, %v19508_v53 }
 0x60a   : > { %v12635_v2 = vcombine.high %v19562_v38, %v19565_v58  ;;  %v12636_v11 = vcombine.low %v12617_v63, %v12633_v36  ;;  %v12637_v60 = vcombine.high %v12617_v63, %v12633_v36  ;;  %v19575_v9 = vrot.slane %v12670_v48, %v20401_v50 }
 0x60b   : > { %v19578_v18 = vrot.slane %v12686_v55, %v20401_v50  ;;  %v12685_v24 = vrot.slane %v12671_v32, %v20401_v50  ;;  %v12701_v8 = vrot.slane %v12687_v0, %v20401_v50  ;;  %v12634_v6 = vcombine.low %v19562_v38, %v19565_v58 }
 0x60d   : > { %v12703_v29 = vcombine.high %v19575_v9, %v19578_v18  ;;  %v12704_v12 = vcombine.low %v12685_v24, %v12701_v8  ;;  %v12705_v56 = vcombine.high %v12685_v24, %v12701_v8  ;;  %v12702_v3 = vcombine.low %v19575_v9, %v19578_v18 }
 0x60f   : > { %v14546_v54 = vpack.i.bf16 %v12703_v29, %v12635_v2  ;;  %v14551_v13 = vpack.i.bf16 %v12704_v12, %v12636_v11  ;;  %v14556_v19 = vpack.i.bf16 %v12705_v56, %v12637_v60  ;;  %v11626_v29 = vrot.slane %v11618_v57, %v20393_v37 }
 0x610   : > { %v11633_v12 = vrot.slane %v11619_v31, %v20393_v37  ;;  %v20524_v56 = vcombine.low %v19431_v42, %v19458_v47 }
 0x611   : > { %14547 = vrot.lane.b32.xlu1 %v14546_v54, %s15066_s21 }
 0x612   : > { %v11694_v54 = vrot.slane %v20524_v56, %v20393_v37 }
 0x615   : > { %14552 = vrot.lane.b32.xlu1 %v14551_v13, %s15068_s7  ;;  %v20525_v13 = vcombine.high %v19431_v42, %v19458_v47 }
 0x619   : > { %14557 = vrot.lane.b32.xlu1 %v14556_v19, %s15067_s23  ;;  %v11701_v19 = vrot.slane %v20525_v13, %v20393_v37 }
 0x620   : > { %v14483_v34 = vpop.permute.xlu0 %14482  ;;  %v14478_v26 = vpop.permute.xlu1 %14477 }
 0x621   : > { %v14480_v15 = vunpack.i.h.bf16 %v14478_v26  ;;  %v14479_v41 = vunpack.i.l.bf16 %v14478_v26  ;;  %v14485_v22 = vunpack.i.h.bf16 %v14483_v34  ;;  %v14484_v28 = vunpack.i.l.bf16 %v14483_v34 }
 0x623   : > { %v13170_v5 = vsel %vm7152_vm1, %v11954_v45, %v14479_v41  ;;  %v13171_v63 = vsel %vm7152_vm1, %v12022_v10, %v14480_v15 }
 0x624   : > { %v14488_v36 = vpop.permute.xlu0 %14487  ;;  %v13187_v32 = vsel %vm13186_vm3, %v13170_v5, %v14484_v28  ;;  %v13188_v0 = vsel %vm13186_vm3, %v13171_v63, %v14485_v22 }
 0x625   : > { %v14490_v48 = vunpack.i.h.bf16 %v14488_v36  ;;  %v14489_v55 = vunpack.i.l.bf16 %v14488_v36 }
 0x627   : > { %v13204_v2 = vsel %vm13203_vm4, %v13187_v32, %v14489_v55  ;;  %v13205_v17 = vsel %vm13203_vm4, %v13188_v0, %v14490_v48  ;;  %v20526_v0 = vcombine.low %v19189_v20, %v19192_v4 }
 0x628   : > { %v13220_v25 = vpack.c.bf16 %v13205_v17, %v13204_v2  ;;  %v20527_v17 = vcombine.low %v19209_v46, %v19212_v52 }
 0x62a   : > { %14363 = vmatprep.mubr.bf16.mxu0 %v13220_v25 }
 0x62c   : > { %v10531_v45 = vpop.f32.mrb[136].mxu1 }
 0x62d   : > { %v14309_v11 = vpop.f32.mrb[137].mxu1 }
 0x62e   : > { %v10534_v14 = vpop.f32.mrb[138].mxu1 }
 0x62f   : > { %v14310_v33 = vpop.f32.mrb[139].mxu1 }
 0x634   : > { %v10619_v10 = vpop.f32.mrb[140].mxu1 }
 0x635   : > { %v11634_v60 = vcombine.low %v10531_v45, %v10619_v10  ;;  %v11635_v24 = vcombine.high %v10531_v45, %v10619_v10  ;;  %v14321_v8 = vpop.f32.mrb[141].mxu1 }
 0x636   : > { %v10622_v34 = vpop.f32.mrb[142].mxu1  ;;  %v14498_v26 = vpop.permute.xlu0 %14497 }
 0x637   : > { %v11642_v15 = vrot.slane %v11634_v60, %v20393_v37  ;;  %v11649_v57 = vrot.slane %v11635_v24, %v20393_v37  ;;  %v11702_v41 = vcombine.low %v10534_v14, %v10622_v34  ;;  %v11703_v22 = vcombine.high %v10534_v14, %v10622_v34  ;;  %v14322_v40 = vpop.f32.mrb[143].mxu1  ;;  %v14493_v62 = vpop.permute.xlu1 %14492 }
 0x638   : > { %v14500_v31 = vunpack.i.h.bf16 %v14498_v26  ;;  %v14499_v28 = vunpack.i.l.bf16 %v14498_v26  ;;  %v14495_v5 = vunpack.i.h.bf16 %v14493_v62  ;;  %v14494_v63 = vunpack.i.l.bf16 %v14493_v62 }
 0x639   : > { %v11650_v36 = vcombine.low %v11626_v29, %v11642_v15  ;;  %v11651_v48 = vcombine.high %v11626_v29, %v11642_v15  ;;  %v11666_v55 = vcombine.low %v11633_v12, %v11649_v57  ;;  %v11667_v32 = vcombine.high %v11633_v12, %v11649_v57 }
 0x63a   : > { %v11710_v42 = vrot.slane %v11702_v41, %v20393_v37  ;;  %v11717_v47 = vrot.slane %v11703_v22, %v20393_v37  ;;  %v13172_v2 = vsel %vm7152_vm1, %v20526_v0, %v14494_v63  ;;  %v13173_v25 = vsel %vm7152_vm1, %v20527_v17, %v14495_v5 }
 0x63b   : > { %v11658_v45 = vrot.slane %v11650_v36, %v20401_v50  ;;  %v11665_v11 = vrot.slane %v11651_v48, %v20401_v50  ;;  %v11674_v14 = vrot.slane %v11666_v55, %v20401_v50  ;;  %v11681_v33 = vrot.slane %v11667_v32, %v20401_v50 }
 0x63c   : > { %v11718_v10 = vcombine.low %v11694_v54, %v11710_v42  ;;  %v11719_v60 = vcombine.high %v11694_v54, %v11710_v42  ;;  %v11734_v24 = vcombine.low %v11701_v19, %v11717_v47  ;;  %v11735_v8 = vcombine.high %v11701_v19, %v11717_v47  ;;  %v19637_v20 = vpop.f32.mrb[144].mxu1 }
 0x63d   : > { %v12706_v4 = vcombine.low %v11658_v45, %v11665_v11  ;;  %v13747_v29 = vcombine.high %v11658_v45, %v11665_v11  ;;  %v12722_v12 = vcombine.low %v11674_v14, %v11681_v33  ;;  %v13748_v46 = vcombine.high %v11674_v14, %v11681_v33  ;;  %v14333_v52 = vpop.f32.mrb[145].mxu1 }
 0x63e   : > { %v11726_v56 = vrot.slane %v11718_v10, %v20401_v50  ;;  %v11733_v13 = vrot.slane %v11719_v60, %v20401_v50  ;;  %v11742_v34 = vrot.slane %v11734_v24, %v20401_v50  ;;  %v11749_v26 = vrot.slane %v11735_v8, %v20401_v50  ;;  %v19643_v15 = vpop.f32.mrb[146].mxu1 }
 0x63f   : > { %v12713_v54 = vrot.slane %v12706_v4, %v20393_v37  ;;  %v12721_v19 = vrot.slane %v13747_v29, %v20393_v37  ;;  %v12729_v57 = vrot.slane %v12722_v12, %v20393_v37  ;;  %v12737_v41 = vrot.slane %v13748_v46, %v20393_v37  ;;  %v14334_v22 = vpop.f32.mrb[147].mxu1 }
 0x640   : > { %v12774_v40 = vcombine.low %v11726_v56, %v11733_v13  ;;  %v13749_v62 = vcombine.high %v11726_v56, %v11733_v13  ;;  %v12790_v5 = vcombine.low %v11742_v34, %v11749_v26  ;;  %v13750_v63 = vcombine.high %v11742_v34, %v11749_v26 }
 0x641   : > { %v14503_v36 = vpop.permute.xlu0 %14502  ;;  %v13189_v48 = vsel %vm13186_vm3, %v13172_v2, %v14499_v28  ;;  %v13190_v55 = vsel %vm13186_vm3, %v13173_v25, %v14500_v31  ;;  %v12738_v32 = vcombine.low %v12713_v54, %v12721_v19  ;;  %v12754_v42 = vcombine.low %v12729_v57, %v12737_v41 }
 0x642   : > { %v12781_v47 = vrot.slane %v12774_v40, %v20393_v37  ;;  %v12789_v0 = vrot.slane %v13749_v62, %v20393_v37  ;;  %v12797_v17 = vrot.slane %v12790_v5, %v20393_v37  ;;  %v12805_v45 = vrot.slane %v13750_v63, %v20393_v37 }
 0x643   : > { %v14505_v11 = vunpack.i.h.bf16 %v14503_v36  ;;  %v14504_v14 = vunpack.i.l.bf16 %v14503_v36  ;;  %v19656_v33 = vrot.slane %v12738_v32, %v20401_v50  ;;  %v19659_v10 = vrot.slane %v12754_v42, %v20401_v50 }
 0x644   : > { %v12806_v28 = vcombine.low %v12781_v47, %v12789_v0  ;;  %v12822_v31 = vcombine.low %v12797_v17, %v12805_v45  ;;  %v12739_v2 = vcombine.high %v12713_v54, %v12721_v19  ;;  %v12755_v25 = vcombine.high %v12729_v57, %v12737_v41 }
 0x645   : > { %v13206_v60 = vsel %vm13203_vm4, %v13189_v48, %v14504_v14  ;;  %v13207_v24 = vsel %vm13203_vm4, %v13190_v55, %v14505_v11  ;;  %v12771_v8 = vcombine.high %v19656_v33, %v19659_v10  ;;  %v12807_v4 = vcombine.high %v12781_v47, %v12789_v0 }
 0x646   : > { %v13221_v29 = vpack.c.bf16 %v13207_v24, %v13206_v60  ;;  %v19666_v12 = vrot.slane %v12806_v28, %v20401_v50  ;;  %v19669_v46 = vrot.slane %v12822_v31, %v20401_v50  ;;  %v12753_v52 = vrot.slane %v12739_v2, %v20401_v50 }
 0x647   : > { %v12769_v56 = vrot.slane %v12755_v25, %v20401_v50  ;;  %v12821_v13 = vrot.slane %v12807_v4, %v20401_v50  ;;  %v12823_v34 = vcombine.high %v12797_v17, %v12805_v45  ;;  %v12770_v26 = vcombine.low %v19656_v33, %v19659_v10 }
 0x648   : > { %14364 = vmatmul.mubr.bf16.vlgmr.msra.gmra.mrb[152].mxu0 %v13221_v29  ;;  %v12839_v54 = vcombine.high %v19666_v12, %v19669_v46  ;;  %v12838_v19 = vcombine.low %v19666_v12, %v19669_v46  ;;  %v14508_v48 = vpop.permute.xlu0 %14507  ;;  %v20528_v25 = vcombine.low %v19286_v7, %v19289_v61  ;;  %v20529_v24 = vcombine.low %v19310_v44, %v19313_v49 }
 0x649   : > { %v12772_v57 = vcombine.low %v12753_v52, %v12769_v56  ;;  %v12837_v41 = vrot.slane %v12823_v34, %v20401_v50  ;;  %v12773_v40 = vcombine.high %v12753_v52, %v12769_v56  ;;  %v14510_v45 = vunpack.i.h.bf16 %v14508_v48 }
 0x64a   : > { %v14561_v22 = vpack.i.bf16 %v12839_v54, %v12771_v8  ;;  %v14509_v11 = vunpack.i.l.bf16 %v14508_v48 }
 0x64b   : > { %v12840_v62 = vcombine.low %v12821_v13, %v12837_v41  ;;  %v12841_v5 = vcombine.high %v12821_v13, %v12837_v41  ;;  %v13175_v8 = vsel %vm7152_vm1, %v20529_v24, %v14510_v45 }
 0x64c   : > { %14562 = vrot.lane.b32.xlu1 %v14561_v22, %s15066_s21  ;;  %v14513_v55 = vpop.permute.xlu0 %14512  ;;  %v13174_v60 = vsel %vm7152_vm1, %v20528_v25, %v14509_v11 }
 0x64d   : > { %v14566_v63 = vpack.i.bf16 %v12840_v62, %v12772_v57  ;;  %v14571_v36 = vpack.i.bf16 %v12841_v5, %v12773_v40  ;;  %v14515_v14 = vunpack.i.h.bf16 %v14513_v55  ;;  %v14514_v28 = vunpack.i.l.bf16 %v14513_v55 }
 0x64f   : > { %v19695_v41 = vsel %vm13186_vm3, %v13174_v60, %v14514_v28  ;;  %v19698_v7 = vsel %vm13186_vm3, %v13175_v8, %v14515_v14 }
 0x650   : > { %14567 = vrot.lane.b32.xlu1 %v14566_v63, %s15068_s7 }
 0x654   : > { %14572 = vrot.lane.b32.xlu1 %v14571_v36, %s15067_s23 }
 0x65c   : > { %v14518_v0 = vpop.permute.xlu0 %14517 }
 0x65d   : > { %v14520_v31 = vunpack.i.h.bf16 %v14518_v0  ;;  %v14519_v2 = vunpack.i.l.bf16 %v14518_v0 }
 0x65e   : > { %v10663_v32 = vpop.f32.mrb[144].mxu0 }
 0x65f   : > { %v14327_v42 = vpop.f32.mrb[145].mxu0  ;;  %v19704_v61 = vsel %vm7152_vm1, %v12362_v43, %v14519_v2  ;;  %v19710_v44 = vsel %vm7152_vm1, %v12430_v30, %v14520_v31 }
 0x660   : > { %v10666_v47 = vpop.f32.mrb[146].mxu0 }
 0x661   : > { %v14328_v17 = vpop.f32.mrb[147].mxu0 }
 0x666   : > { %v10751_v4 = vpop.f32.mrb[148].mxu0  ;;  %v10795_v29 = vpop.f32.mrb[148].mxu1 }
 0x667   : > { %v11754_v52 = vcombine.low %v10663_v32, %v10751_v4  ;;  %v11755_v56 = vcombine.high %v10663_v32, %v10751_v4  ;;  %v11770_v13 = vcombine.low %v19637_v20, %v10795_v29  ;;  %v11771_v34 = vcombine.high %v19637_v20, %v10795_v29  ;;  %v14339_v54 = vpop.f32.mrb[149].mxu0  ;;  %v14345_v57 = vpop.f32.mrb[149].mxu1 }
 0x668   : > { %v10754_v49 = vpop.f32.mrb[150].mxu0  ;;  %v10798_v20 = vpop.f32.mrb[150].mxu1 }
 0x669   : > { %v11762_v22 = vrot.slane %v11754_v52, %v20393_v37  ;;  %v11769_v40 = vrot.slane %v11755_v56, %v20393_v37  ;;  %v11778_v62 = vrot.slane %v11770_v13, %v20393_v37  ;;  %v11785_v5 = vrot.slane %v11771_v34, %v20393_v37  ;;  %v14340_v39 = vpop.f32.mrb[151].mxu0  ;;  %v14346_v16 = vpop.f32.mrb[151].mxu1 }
 0x66a   : > { %v11822_v43 = vcombine.low %v10666_v47, %v10754_v49  ;;  %v11823_v63 = vcombine.high %v10666_v47, %v10754_v49  ;;  %v11838_v36 = vcombine.low %v19643_v15, %v10798_v20  ;;  %v11839_v51 = vcombine.high %v19643_v15, %v10798_v20 }
 0x66b   : > { %v11786_v59 = vcombine.low %v11762_v22, %v11778_v62  ;;  %v11787_v30 = vcombine.high %v11762_v22, %v11778_v62  ;;  %v11802_v48 = vcombine.low %v11769_v40, %v11785_v5  ;;  %v11803_v55 = vcombine.high %v11769_v40, %v11785_v5 }
 0x66c   : > { %v11830_v32 = vrot.slane %v11822_v43, %v20393_v37  ;;  %v11837_v42 = vrot.slane %v11823_v63, %v20393_v37  ;;  %v11846_v0 = vrot.slane %v11838_v36, %v20393_v37  ;;  %v11853_v17 = vrot.slane %v11839_v51, %v20393_v37 }
 0x66d   : > { %v11794_v45 = vrot.slane %v11786_v59, %v20401_v50  ;;  %v11801_v47 = vrot.slane %v11787_v30, %v20401_v50  ;;  %v11810_v11 = vrot.slane %v11802_v48, %v20401_v50  ;;  %v11817_v15 = vrot.slane %v11803_v55, %v20401_v50 }
 0x66e   : > { %v11854_v14 = vcombine.low %v11830_v32, %v11846_v0  ;;  %v11855_v28 = vcombine.high %v11830_v32, %v11846_v0  ;;  %v11870_v31 = vcombine.low %v11837_v42, %v11853_v17  ;;  %v11871_v2 = vcombine.high %v11837_v42, %v11853_v17  ;;  %v14538_v25 = vpop.permute.xlu1 %14537 }
 0x66f   : > { %v12842_v60 = vcombine.low %v11794_v45, %v11801_v47  ;;  %v13751_v24 = vcombine.high %v11794_v45, %v11801_v47  ;;  %v12858_v8 = vcombine.low %v11810_v11, %v11817_v15  ;;  %v13752_v4 = vcombine.high %v11810_v11, %v11817_v15  ;;  %v14523_v29 = vpop.permute.xlu0 %14522 }
 0x670   : > { %v11862_v52 = vrot.slane %v11854_v14, %v20401_v50  ;;  %v11869_v56 = vrot.slane %v11855_v28, %v20401_v50  ;;  %v11878_v13 = vrot.slane %v11870_v31, %v20401_v50  ;;  %v11885_v34 = vrot.slane %v11871_v2, %v20401_v50 }
 0x671   : > { %v12849_v54 = vrot.slane %v12842_v60, %v20393_v37  ;;  %v12857_v57 = vrot.slane %v13751_v24, %v20393_v37  ;;  %v12865_v49 = vrot.slane %v12858_v8, %v20393_v37  ;;  %v12873_v20 = vrot.slane %v13752_v4, %v20393_v37 }
 0x672   : > { %v12910_v22 = vcombine.low %v11862_v52, %v11869_v56  ;;  %v13753_v40 = vcombine.high %v11862_v52, %v11869_v56  ;;  %v12926_v62 = vcombine.low %v11878_v13, %v11885_v34  ;;  %v13754_v5 = vcombine.high %v11878_v13, %v11885_v34  ;;  %v14543_v39 = vpop.permute.xlu1 %14542 }
 0x673   : > { %v14540_v16 = vunpack.i.h.bf16 %v14538_v25  ;;  %v14539_v43 = vunpack.i.l.bf16 %v14538_v25  ;;  %v14525_v63 = vunpack.i.h.bf16 %v14523_v29  ;;  %v14524_v36 = vunpack.i.l.bf16 %v14523_v29  ;;  %v14528_v51 = vpop.permute.xlu0 %14527 }
 0x674   : > { %v12917_v59 = vrot.slane %v12910_v22, %v20393_v37  ;;  %v12925_v30 = vrot.slane %v13753_v40, %v20393_v37  ;;  %v12933_v48 = vrot.slane %v12926_v62, %v20393_v37  ;;  %v12941_v55 = vrot.slane %v13754_v5, %v20393_v37 }
 0x675   : > { %v13178_v32 = vsel %vm7152_vm1, %v12498_v27, %v14524_v36  ;;  %v13179_v42 = vsel %vm7152_vm1, %v12566_v21, %v14525_v63  ;;  %v14545_v0 = vunpack.i.h.bf16 %v14543_v39  ;;  %v14544_v17 = vunpack.i.l.bf16 %v14543_v39 }
 0x676   : > { %v14530_v45 = vunpack.i.h.bf16 %v14528_v51  ;;  %v14529_v47 = vunpack.i.l.bf16 %v14528_v51  ;;  %v13195_v11 = vsel %vm13186_vm3, %v13178_v32, %v14539_v43  ;;  %v13196_v15 = vsel %vm13186_vm3, %v13179_v42, %v14540_v16 }
 0x677   : > { %v14533_v14 = vpop.permute.xlu0 %14532  ;;  %v13212_v37 = vsel %vm13203_vm4, %v13195_v11, %v14544_v17  ;;  %v13213_v23 = vsel %vm13203_vm4, %v13196_v15, %v14545_v0  ;;  %v12874_v1 = vcombine.low %v12849_v54, %v12857_v57  ;;  %v12890_v27 = vcombine.low %v12865_v49, %v12873_v20 }
 0x678   : > { %v13194_v35 = vsel %vm13186_vm3, %v19710_v44, %v14530_v45  ;;  %v13193_v53 = vsel %vm13186_vm3, %v19704_v61, %v14529_v47  ;;  %v14535_v21 = vunpack.i.h.bf16 %v14533_v14  ;;  %v14534_v28 = vunpack.i.l.bf16 %v14533_v14 }
 0x679   : > { %v13224_v31 = vpack.c.bf16 %v13213_v23, %v13212_v37  ;;  %v19755_v2 = vrot.slane %v12874_v1, %v20401_v50  ;;  %v19758_v25 = vrot.slane %v12890_v27, %v20401_v50  ;;  %v12942_v60 = vcombine.low %v12917_v59, %v12925_v30 }
 0x67a   : > { %v12958_v24 = vcombine.low %v12933_v48, %v12941_v55  ;;  %v13208_v8 = vsel %vm13203_vm4, %v19695_v41, %v14534_v28  ;;  %v13209_v44 = vsel %vm13203_vm4, %v19698_v7, %v14535_v21  ;;  %v12875_v4 = vcombine.high %v12849_v54, %v12857_v57 }
 0x67b   : > { %14371 = vmatprep.mubr.bf16.mxu1 %v13224_v31  ;;  %v14588_v61 = vpop.permute.xlu0 %14587  ;;  %v12907_v29 = vcombine.high %v19755_v2, %v19758_v25  ;;  %v19767_v52 = vrot.slane %v12942_v60, %v20401_v50  ;;  %v13222_v56 = vpack.c.bf16 %v13209_v44, %v13208_v8  ;;  %v12891_v13 = vcombine.high %v12865_v49, %v12873_v20 }
 0x67c   : > { %v14590_v34 = vunpack.i.h.bf16 %v14588_v61  ;;  %v14589_v22 = vunpack.i.l.bf16 %v14588_v61  ;;  %v19770_v40 = vrot.slane %v12958_v24, %v20401_v50  ;;  %v12889_v41 = vrot.slane %v12875_v4, %v20401_v50 }
 0x67d   : > { %14367 = vmatprep.mubr.bf16.mxu0 %v13222_v56  ;;  %v12905_v7 = vrot.slane %v12891_v13, %v20401_v50  ;;  %v12943_v54 = vcombine.high %v12917_v59, %v12925_v30  ;;  %v12959_v57 = vcombine.high %v12933_v48, %v12941_v55  ;;  %v12906_v62 = vcombine.low %v19755_v2, %v19758_v25 }
 0x67e   : > { %v12975_v5 = vcombine.high %v19767_v52, %v19770_v40  ;;  %v13210_v49 = vsel %vm13203_vm4, %v13193_v53, %v14589_v22  ;;  %v13211_v20 = vsel %vm13203_vm4, %v13194_v35, %v14590_v34  ;;  %v12974_v39 = vcombine.low %v19767_v52, %v19770_v40 }
 0x67f   : > { %v12908_v16 = vcombine.low %v12889_v41, %v12905_v7  ;;  %v12957_v43 = vrot.slane %v12943_v54, %v20401_v50  ;;  %v12973_v63 = vrot.slane %v12959_v57, %v20401_v50  ;;  %v13223_v36 = vpack.c.bf16 %v13211_v20, %v13210_v49  ;;  %v13755_v57 = vld [vmem:[%s19892_s3] ss:$0 sm:$0xff] }
 0x680   : > { %v14576_v51 = vpack.i.bf16 %v12975_v5, %v12907_v29  ;;  %v12909_v59 = vcombine.high %v12889_v41, %v12905_v7 }
 0x681   : > { %v12976_v30 = vcombine.low %v12957_v43, %v12973_v63  ;;  %14368 = vmatmul.mubr.bf16.gmra.mrb[156].mxu0 %v13223_v36  ;;  %v12977_v48 = vcombine.high %v12957_v43, %v12973_v63 }
 0x682   : > { %14577 = vrot.lane.b32.xlu1 %v14576_v51, %s15066_s21 }
 0x683   : > { %v14581_v55 = vpack.i.bf16 %v12976_v30, %v12908_v16  ;;  %v14548_v32 = vpop.permute.xlu1 %14547  ;;  %v14591_v42 = vpack.i.bf16 %v12977_v48, %v12909_v59 }
 0x684   : > { %v14550_v17 = vunpack.i.h.bf16 %v14548_v32  ;;  %v14549_v45 = vunpack.i.l.bf16 %v14548_v32 }
 0x686   : > { %14582 = vrot.lane.b32.xlu1 %v14581_v55, %s15068_s7  ;;  %v13180_v15 = vsel %vm7152_vm1, %v12634_v6, %v14549_v45  ;;  %v13181_v14 = vsel %vm7152_vm1, %v12702_v3, %v14550_v17 }
 0x687   : > { %v14553_v0 = vpop.permute.xlu1 %14552 }
 0x688   : > { %v14555_v47 = vunpack.i.h.bf16 %v14553_v0  ;;  %v14554_v11 = vunpack.i.l.bf16 %v14553_v0 }
 0x68a   : > { %14592 = vrot.lane.b32.xlu1 %v14591_v42, %s15067_s23  ;;  %v13197_v1 = vsel %vm13186_vm3, %v13180_v15, %v14554_v11  ;;  %v13198_v27 = vsel %vm13186_vm3, %v13181_v14, %v14555_v47 }
 0x68b   : > { %v14558_v50 = vpop.permute.xlu1 %14557 }
 0x68c   : > { %v14560_v37 = vunpack.i.h.bf16 %v14558_v50  ;;  %v14559_v23 = vunpack.i.l.bf16 %v14558_v50 }
 0x68e   : > { %v13214_v35 = vsel %vm13203_vm4, %v13197_v1, %v14559_v23  ;;  %v13215_v53 = vsel %vm13203_vm4, %v13198_v27, %v14560_v37 }
 0x68f   : > { %v13225_v21 = vpack.c.bf16 %v13215_v53, %v13214_v35 }
 0x691   : > { %14372 = vmatmul.mubr.bf16.vlgmr.msra.gmra.mrb[152].mxu1 %v13225_v21 }
 0x6be   : > { %v14563_v38 = vpop.permute.xlu1 %14562 }
 0x6bf   : > { %v14565_v6 = vunpack.i.h.bf16 %v14563_v38  ;;  %v14564_v28 = vunpack.i.l.bf16 %v14563_v38 }
 0x6c1   : > { %v13182_v3 = vsel %vm7152_vm1, %v12770_v26, %v14564_v28  ;;  %v13183_v2 = vsel %vm7152_vm1, %v12838_v19, %v14565_v6 }
 0x6c2   : > { %v14568_v58 = vpop.permute.xlu1 %14567 }
 0x6c3   : > { %v14570_v31 = vunpack.i.h.bf16 %v14568_v58  ;;  %v14569_v9 = vunpack.i.l.bf16 %v14568_v58 }
 0x6c5   : > { %v13199_v24 = vsel %vm13186_vm3, %v13182_v3, %v14569_v9  ;;  %v13200_v8 = vsel %vm13186_vm3, %v13183_v2, %v14570_v31 }
 0x6c6   : > { %v14573_v18 = vpop.permute.xlu1 %14572 }
 0x6c7   : > { %v14575_v25 = vunpack.i.h.bf16 %v14573_v18  ;;  %v14574_v60 = vunpack.i.l.bf16 %v14573_v18 }
 0x6c9   : > { %v13216_v44 = vsel %vm13203_vm4, %v13199_v24, %v14574_v60  ;;  %v13217_v4 = vsel %vm13203_vm4, %v13200_v8, %v14575_v25 }
 0x6ca   : > { %v13226_v61 = vpack.c.bf16 %v13217_v4, %v13216_v44 }
 0x6cc   : > { %14375 = vmatprep.mubr.bf16.mxu1 %v13226_v61 }
 0x6f4   : > { %v14578_v33 = vpop.permute.xlu1 %14577 }
 0x6f5   : > { %v14580_v26 = vunpack.i.h.bf16 %v14578_v33  ;;  %v14579_v29 = vunpack.i.l.bf16 %v14578_v33 }
 0x6f7   : > { %v13184_v52 = vsel %vm7152_vm1, %v12906_v62, %v14579_v29  ;;  %v13185_v56 = vsel %vm7152_vm1, %v12974_v39, %v14580_v26 }
 0x6f8   : > { %v14583_v10 = vpop.permute.xlu1 %14582 }
 0x6f9   : > { %v14585_v12 = vunpack.i.h.bf16 %v14583_v10  ;;  %v14584_v46 = vunpack.i.l.bf16 %v14583_v10 }
 0x6fb   : > { %v13201_v22 = vsel %vm13186_vm3, %v13184_v52, %v14584_v46  ;;  %v13202_v40 = vsel %vm13186_vm3, %v13185_v56, %v14585_v12 }
 0x6fc   : > { %v14593_v19 = vpop.permute.xlu1 %14592 }
 0x6fd   : > { %v14595_v13 = vunpack.i.h.bf16 %v14593_v19  ;;  %v14594_v34 = vunpack.i.l.bf16 %v14593_v19 }
 0x6ff   : > { %v13218_v41 = vsel %vm13203_vm4, %v13201_v22, %v14594_v34  ;;  %v13219_v7 = vsel %vm13203_vm4, %v13202_v40, %v14595_v13 }
 0x700   : > { %v13227_v54 = vpack.c.bf16 %v13219_v7, %v13218_v41 }
 0x702   : > { %14376 = vmatmul.mubr.bf16.gmra.mrb[156].mxu1 %v13227_v54 }
 0x71b   : > { %v14365_v62 = vpop.f32.mrb[152].mxu0 }
 0x71c   : > { %v13342_v5 = vadd.f32 %v14365_v62, %v13755_v57  ;;  %v13333_v49 = vpop.f32.mrb[153].mxu0 }
 0x71d   : > { %v13334_v20 = vadd.f32 %v13755_v57, %v13333_v49  ;;  %v14366_v39 = vpop.f32.mrb[154].mxu0 }
 0x71e   : > { %13398 = vst [vmem:[%s19821_s25 + $0x10] sm:$0xff] %v13342_v5  ;;  %v13345_v16 = vadd.f32 %v14366_v39, %v13755_v57  ;;  %v13336_v43 = vpop.f32.mrb[155].mxu0 }
 0x71f   : > { %13396 = vst [vmem:[%s19821_s25] sm:$0xff] %v13334_v20  ;;  %v13337_v63 = vadd.f32 %v13755_v57, %v13336_v43 }
 0x720   : > { %13399 = vst [vmem:[%s19821_s25 + $0x18] sm:$0xff] %v13345_v16 }
 0x721   : > { %13397 = vst [vmem:[%s19821_s25 + $0x8] sm:$0xff] %v13337_v63 }
 0x754   : > { %v14369_v36 = vpop.f32.mrb[156].mxu0 }
 0x755   : > { %v13358_v51 = vadd.f32 %v14369_v36, %v13755_v57  ;;  %v13349_v59 = vpop.f32.mrb[157].mxu0 }
 0x756   : > { %v13350_v30 = vadd.f32 %v13755_v57, %v13349_v59  ;;  %v14370_v48 = vpop.f32.mrb[158].mxu0 }
 0x757   : > { %13402 = vst [vmem:[%s19821_s25 + $0x30] sm:$0xff] %v13358_v51  ;;  %v13361_v55 = vadd.f32 %v14370_v48, %v13755_v57  ;;  %v13352_v32 = vpop.f32.mrb[159].mxu0 }
 0x758   : > { %13400 = vst [vmem:[%s19821_s25 + $0x20] sm:$0xff] %v13350_v30  ;;  %v13353_v42 = vadd.f32 %v13755_v57, %v13352_v32 }
 0x759   : > { %13403 = vst [vmem:[%s19821_s25 + $0x38] sm:$0xff] %v13361_v55 }
 0x75a   : > { %13401 = vst [vmem:[%s19821_s25 + $0x28] sm:$0xff] %v13353_v42 }
 0x764   : > { %v14373_v0 = vpop.f32.mrb[152].mxu1 }
 0x765   : > { %v13374_v17 = vadd.f32 %v14373_v0, %v13755_v57  ;;  %v13365_v45 = vpop.f32.mrb[153].mxu1 }
 0x766   : > { %v13366_v47 = vadd.f32 %v13755_v57, %v13365_v45  ;;  %v14374_v11 = vpop.f32.mrb[154].mxu1 }
 0x767   : > { %13406 = vst [vmem:[%s19821_s25 + $0x50] sm:$0xff] %v13374_v17  ;;  %v13377_v50 = vadd.f32 %v14374_v11, %v13755_v57  ;;  %v13368_v15 = vpop.f32.mrb[155].mxu1 }
 0x768   : > { %13404 = vst [vmem:[%s19821_s25 + $0x40] sm:$0xff] %v13366_v47  ;;  %v13369_v14 = vadd.f32 %v13755_v57, %v13368_v15 }
 0x769   : > { %13407 = vst [vmem:[%s19821_s25 + $0x58] sm:$0xff] %v13377_v50 }
 0x76a   : > { %13405 = vst [vmem:[%s19821_s25 + $0x48] sm:$0xff] %v13369_v14 }
 0x7d5   : > { %v14377_v37 = vpop.f32.mrb[156].mxu1 }
 0x7d6   : > { %v13390_v23 = vadd.f32 %v14377_v37, %v13755_v57  ;;  %v13381_v1 = vpop.f32.mrb[157].mxu1 }
 0x7d7   : > { %v13382_v27 = vadd.f32 %v13755_v57, %v13381_v1  ;;  %v14378_v35 = vpop.f32.mrb[158].mxu1 }
 0x7d8   : > { %13410 = vst [vmem:[%s19821_s25 + $0x70] sm:$0xff] %v13390_v23  ;;  %v13393_v53 = vadd.f32 %v14378_v35, %v13755_v57  ;;  %v13384_v21 = vpop.f32.mrb[159].mxu1 }
 0x7d9   : > { %13408 = vst [vmem:[%s19821_s25 + $0x60] sm:$0xff] %v13382_v27  ;;  %v13385_v38 = vadd.f32 %v13755_v57, %v13384_v21 }
 0x7da   : > { %13411 = vst [vmem:[%s19821_s25 + $0x78] sm:$0xff] %v13393_v53 }
 0x7db   : > { %13409 = vst [vmem:[%s19821_s25 + $0x68] sm:$0xff] %v13385_v38 }
 0x7dc   : > { %14999 = shalt.err (!%p14996_p7)
}
 0x7dd   : > { %s15000_s21 = scalar_lea.hbm %s19841_s5, 2048  ;;  %s15004_s8 = scalar_lea.hbm %s19893_s4, 8192 }
 0x7de   : > { %p15001_p9 = scmp.ne.s32.totalorder %s19841_s5, %s15000_s21  ;;  %p15005_p5 = scmp.lt.u32.totalorder %s19841_s5, %s19893_s4 }
 0x7df   : > { %p15006_p10 = scmp.lt.u32.totalorder %s15004_s8, %s15000_s21  ;;  %p15008_p1 = scmp.lt.u32.totalorder %s15000_s21, %s19841_s5 }
 0x7e0   : > { %p15002_p12 = pnand %p15001_p9, %p15219_p6 }
 0x7e1   : > { %p15007_p11 = por %p15006_p10, %p15005_p5 }
 0x7e2   : > { %p15003_p0 = pneg %p15002_p12 }
 0x7e3   : > { %p15009_p2 = por %p15008_p1, %p15007_p11 }
 0x7e5   : > { %p15010_p4 = pnand %p15009_p2, %p15003_p0 }
 0x7e7   : > { %15013 = shalt.err (!%p15010_p4)
}
 0x7e8   : > { %s15074_s25 = smov 128   ;;  %s15075_s9 = smov 8  }
 0x7e9   : > { %14405 = dma.vmem_to_hbm [thread:$0]  (%p15219_p6), %s19843_s27, 2048, %s19841_s5, %s13413_s19, %s15074_s25, %s15074_s25, %s15075_s9  }
 0x7ea PF: > { %p14427_p8 = scmp.ge.s32.totalorder %s15056_s18, 2  ;;  %s13441_s20 = sand.u32 1, %s15044_s15  }
 0x7eb   : > { %p20530_p13 = scmp.ne.s32.totalorder %s20075_s22, 0  ;;  %s13442_s29 = scalar_lea.sflag [#allocation4], %s13441_s20 }
 0x7ed   : > { %p14419_p3 = pnand %p14427_p8, %p20530_p13 }
 0x7ef   : > { %15039 = dma.done.wait (!%p14419_p3), %s13442_s29, 2048  }
 0x7f0   : > { %15041 = vsyncadd (!%p14419_p3), %s13442_s29, 4294965248  ;;  %p18_p7 = scmp.ge.s32.totalorder %s15206_s11, 6   ;;  %s20531_s15 = smov %s15048_s16 }
 0x7f1   : > { %s20532_s16 = smov %s15052_s17  ;;  %s20533_s17 = smov %s15215_s14 }
 0x7f2   : > { %s20534_s18 = smov %s15206_s11  ;;  %20 = sbr.rel (!%p18_p7) target bundleno = 6 (0x6), region = 89 }
 0x7f9   :  { %13447 = vsyncpa [#allocation3], 1 }
 0x7fa   :  { %13449 = vsyncpa [#allocation3 + $0x1], 1 }
 0x7fb   :  { %13450 = vsyncpa [#allocation6], 1 }
 0x7fc   :  { %13451 = vsyncpa [#allocation4], 1 }
 0x7fd   :  { %13453 = vsyncpa [#allocation4 + $0x1], 1 }

</bundles_post_ra>
